<compile_context>
chip_gen: v6e
topology: v6e:2x2x1
jax: 0.10.0
libtpu: 0.0.40
codegen_flags: <defaults>
</compile_context>

<pallas_src>
from functools import partial

import jax
import jax.numpy as jnp
import numpy as np
from jax import lax
from jax.experimental import pallas as pl
from jax.experimental.pallas import tpu as pltpu

EPS = 1e-6
KS = 7
PAD = 3
LANE = 128


def _round_up(n, m):
    return ((n + m - 1) // m) * m


def _vmem_capacity_bytes():
    try:
        return int(pltpu.get_tpu_info().vmem_capacity_bytes)
    except Exception:
        pass
    try:
        kind = jax.devices()[0].device_kind.lower()
        return (64 << 20) if "v7" in kind else (128 << 20)
    except Exception:
        return 64 << 20


def _elementwise_bf16():
    """bf16 VPU/EUP exists on v6e/v7x; keep f32 elementwise on v5e and unknown HW."""
    try:
        kind = jax.devices()[0].device_kind.lower()
    except Exception:
        return False
    return ("v6" in kind) or ("v7" in kind)


def convnext_block_kernel(x_ref, dww_ref, dwb_ref, w1_ref, b1_ref, w2_ref, b2_ref,
                          o_ref, *, c_true, act_bf16):
    """x_ref: (1, H+6, W+6, Cp) zero-padded NHWC image; o_ref: (1, tile_h, W, Cp)."""
    _, th, W, Cp = o_ref.shape
    row0 = pl.program_id(1) * th        # first output row of this tile (unpadded coords)

    # ---- depthwise 7x7 conv (padding=3, groups=C): 7 ref-level offset loads (dx outer),
    #      7 cheap leading-dim slices (dy inner), fully unrolled.
    wdw = dww_ref[...].astype(jnp.float32)                               # (7, 7, Cp)
    acc = jnp.zeros((th, W, Cp), jnp.float32)
    for dx in range(KS):
        slab = x_ref[0, pl.ds(row0, th + 2 * PAD), pl.ds(dx, W), :]      # (th+6, W, Cp)
        slab = slab.astype(jnp.float32)
        for dy in range(KS):
            acc = acc + slab[dy:dy + th] * wdw[dy, dx]
    acc = acc + dwb_ref[0].astype(jnp.float32)

    # ---- LayerNorm over channels (LayerNorm2d), single-pass stats, biased variance.
    #      Divide by the TRUE channel count: zero-padded channels contribute 0 to both sums.
    inv_c = 1.0 / c_true
    s1 = jnp.sum(acc, axis=-1, keepdims=True)
    s2 = jnp.sum(acc * acc, axis=-1, keepdims=True)
    mean = s1 * inv_c
    var = s2 * inv_c - mean * mean
    xn = (acc - mean) * lax.rsqrt(var + EPS)
    # LN affine is folded into w1/b1 (wrapper); padded lanes hit zero rows of w1.

    # ---- ConvMlp: 1x1 conv (C->hid), tanh-GELU (EUP), 1x1 conv (hid->C) on the MXU.
    x2d = xn.reshape(th * W, Cp).astype(jnp.bfloat16)
    h = jnp.dot(x2d, w1_ref[...], preferred_element_type=jnp.float32)
    if act_bf16:   # bf16 elementwise only where the VPU/EUP support it (v6e/v7x)
        h = h.astype(jnp.bfloat16) + b1_ref[0].astype(jnp.bfloat16)
    else:
        h = h + b1_ref[0]
    h = jax.nn.gelu(h, approximate=True)     # accepted numeric deviation from exact erf
    y2d = jnp.dot(h.astype(jnp.bfloat16), w2_ref[...],
                  preferred_element_type=jnp.float32)
    y2d = y2d + b2_ref[0]                    # gamma folded into w2/b2 (wrapper)
    y = y2d.reshape(th, W, Cp)

    # ---- residual: direct ref slice of the padded-window interior (zero padding ->
    #      bit-identical to the unpadded input tile; no extra HBM operand).
    sc = x_ref[0, pl.ds(row0 + PAD, th), pl.ds(PAD, W), :].astype(jnp.float32)
    o_ref[0] = (y + sc).astype(o_ref.dtype)


def _pick_tile_h(H, W, Cp, HIDp, x_itemsize, act_bf16, vmem_cap):
    """Largest divisor of H whose per-step working set fits the VMEM byte budget."""
    budget = int(vmem_cap * 0.5)                 # headroom for compiler scratch etc.
    Hp, Wp = H + 2 * PAD, W + 2 * PAD
    eb = 2 if act_bf16 else 4
    fixed = 2 * Hp * Wp * Cp * x_itemsize        # double-buffered padded image block
    fixed += KS * KS * Cp * 4 + 2 * (Cp + HIDp) * 4          # dw weights + biases
    fixed += 2 * Cp * HIDp * 2 + 2 * HIDp * Cp * 2           # bf16 matmul weights (dbl-buf)
    best = 1
    for t in range(1, H + 1):
        if H % t:
            continue
        per = (2 * t * W * Cp * x_itemsize       # double-buffered output tile
               + t * W * Cp * 4                  # dwconv accumulator (f32)
               + 2 * (t + 2 * PAD) * W * Cp * 4  # ~2 live tap slabs (f32)
               + t * W * Cp * 2                  # xn as bf16 MXU operand
               + t * W * HIDp * eb               # hidden activation
               + t * W * Cp * 4)                 # second matmul output (f32)
        if fixed + per <= budget:
            best = t
    return best


def convnext_block_nhwc(x, dw_w, dw_b, ln_w, ln_b, w1, b1, w2, b2, gamma,
                        *, tile_h=None):
    """x: (B, H, W, C) NHWC. Returns NHWC output of the ConvNeXt block."""
    B, H, W, C = x.shape
    hid = w1.shape[1]
    Cp = _round_up(C, LANE)
    HIDp = _round_up(hid, LANE)
    act_bf16 = _elementwise_bf16()
    vmem_cap = _vmem_capacity_bytes()

    # ---- fold LayerNorm affine into fc1 and gamma into fc2 (exact f32 algebra).
    w1f = ln_w[0][:, None] * w1                       # (C, hid)
    b1f = b1 + ln_b @ w1                              # (1, hid)
    w2f = w2 * gamma[0][None, :]                      # (hid, C)
    b2f = b2 * gamma                                  # (1, C)

    # ---- zero-pad channels / hidden dim to lane multiples (lane-dense layout).
    def padto(a, axis, to):
        pad = [(0, 0)] * a.ndim
        pad[axis] = (0, to - a.shape[axis])
        return jnp.pad(a, pad)

    xw = padto(x, 3, Cp)
    dw_wp = padto(dw_w, 2, Cp)
    dw_bp = padto(dw_b, 1, Cp)
    w1p = padto(padto(w1f, 0, Cp), 1, HIDp).astype(jnp.bfloat16)
    b1p = padto(b1f, 1, HIDp).astype(jnp.float32)
    w2p = padto(padto(w2f, 0, HIDp), 1, Cp).astype(jnp.bfloat16)
    b2p = padto(b2f, 1, Cp).astype(jnp.float32)

    if tile_h is None:
        tile_h = _pick_tile_h(H, W, Cp, HIDp, jnp.dtype(x.dtype).itemsize,
                              act_bf16, vmem_cap)
    assert H % tile_h == 0, "tile_h must divide H"
    nH = H // tile_h
    Hp_, Wp_ = H + 2 * PAD, W + 2 * PAD
    xpad = jnp.pad(xw, ((0, 0), (PAD, PAD), (PAD, PAD), (0, 0)))

    kernel = partial(convnext_block_kernel, c_true=float(C), act_bf16=act_bf16)

    out = pl.pallas_call(
        kernel,
        out_shape=jax.ShapeDtypeStruct((B, H, W, Cp), x.dtype),
        grid_spec=pltpu.PrefetchScalarGridSpec(
            num_scalar_prefetch=0,
            grid=(B, nH),
            in_specs=[
                # whole padded image per batch; constant block index across the row-tile
                # axis -> no re-DMA between consecutive row tiles of the same image.
                pl.BlockSpec((1, Hp_, Wp_, Cp), lambda b, i: (b, 0, 0, 0)),
                pl.BlockSpec((KS, KS, Cp), lambda b, i: (0, 0, 0)),
                pl.BlockSpec((1, Cp), lambda b, i: (0, 0)),
                pl.BlockSpec((Cp, HIDp), lambda b, i: (0, 0)),
                pl.BlockSpec((1, HIDp), lambda b, i: (0, 0)),
                pl.BlockSpec((HIDp, Cp), lambda b, i: (0, 0)),
                pl.BlockSpec((1, Cp), lambda b, i: (0, 0)),
            ],
            out_specs=pl.BlockSpec((1, tile_h, W, Cp), lambda b, i: (b, i, 0, 0)),
        ),
        compiler_params=pltpu.CompilerParams(
            dimension_semantics=("parallel", "parallel"),
            vmem_limit_bytes=int(vmem_cap * 0.75)),
    )(xpad, dw_wp, dw_bp, w1p, b1p, w2p, b2p)
    return out[..., :C]


def convnext_block(x_nchw, dw_w, dw_b, ln_w, ln_b, w1, b1, w2, b2, gamma,
                   *, tile_h=None):
    """PyTorch-convention NCHW wrapper (transposes exist only for interface parity)."""
    x_nhwc = jnp.transpose(x_nchw, (0, 2, 3, 1))
    out_nhwc = convnext_block_nhwc(x_nhwc, dw_w, dw_b, ln_w, ln_b,
                                   w1, b1, w2, b2, gamma, tile_h=tile_h)
    return jnp.transpose(out_nhwc, (0, 3, 1, 2))


def reference(x, dw_w, dw_b, ln_w, ln_b, w1, b1, w2, b2, gamma):
    """Pure-JAX all-f32 reference of ConvNeXtBlock.forward (conv_mlp=True), NCHW, exact GELU."""
    B, C, H, W = x.shape
    w_oihw = jnp.transpose(dw_w, (2, 0, 1))[:, None, :, :]       # (C, 1, 7, 7)
    y = jax.lax.conv_general_dilated(
        x, w_oihw, (1, 1), ((PAD, PAD), (PAD, PAD)),
        feature_group_count=C,
        dimension_numbers=('NCHW', 'OIHW', 'NCHW'))
    y = y + dw_b[0][None, :, None, None]
    mean = y.mean(1, keepdims=True)
    var = ((y - mean) ** 2).mean(1, keepdims=True)
    yn = (y - mean) * jax.lax.rsqrt(var + EPS)
    yn = yn * ln_w[0][None, :, None, None] + ln_b[0][None, :, None, None]
    h = jnp.einsum('bchw,cd->bdhw', yn, w1) + b1[0][None, :, None, None]
    h = jax.nn.gelu(h, approximate=False)
    z = jnp.einsum('bdhw,dc->bchw', h, w2) + b2[0][None, :, None, None]
    z = z * gamma[0][None, :, None, None]
    return z + x


if __name__ == "__main__":
    B, C, H, W = 2, 4, 16, 16
    mlp_ratio = 4
    HID = mlp_ratio * C

    key = jax.random.PRNGKey(0)
    ks = jax.random.split(key, 10)

    x = jax.random.normal(ks[0], (B, C, H, W), jnp.float32)

    # Parameter shapes follow the module __init__ (stored in kernel layout):
    #   conv_dw: Conv2d(C, C, 7, padding=3, groups=C)  -> (7, 7, C) weight, (C,) bias
    #   norm:    LayerNorm2d(C)                        -> (C,) weight, (C,) bias
    #   mlp.fc1: Conv2d(C, 4C, 1)                      -> (C, 4C) weight, (4C,) bias
    #   mlp.fc2: Conv2d(4C, C, 1)                      -> (4C, C) weight, (C,) bias
    #   gamma:   (C,) layer scale
    dw_w = 0.1 * jax.random.normal(ks[1], (KS, KS, C), jnp.float32)
    dw_b = 0.1 * jax.random.normal(ks[2], (1, C), jnp.float32)
    ln_w = 1.0 + 0.1 * jax.random.normal(ks[3], (1, C), jnp.float32)
    ln_b = 0.1 * jax.random.normal(ks[4], (1, C), jnp.float32)
    w1 = 0.1 * jax.random.normal(ks[5], (C, HID), jnp.float32)
    b1 = 0.1 * jax.random.normal(ks[6], (1, HID), jnp.float32)
    w2 = 0.1 * jax.random.normal(ks[7], (HID, C), jnp.float32)
    b2 = 0.1 * jax.random.normal(ks[8], (1, C), jnp.float32)
    gamma = 0.5 * jnp.ones((1, C), jnp.float32)

    ref = jax.block_until_ready(
        reference(x, dw_w, dw_b, ln_w, ln_b, w1, b1, w2, b2, gamma))

    # tile_h=8 -> 2 row tiles per image: exercises the in-kernel halo / row0 offset path.
    out = convnext_block(x, dw_w, dw_b, ln_w, ln_b, w1, b1, w2, b2, gamma, tile_h=8)
    out = jax.block_until_ready(out)
    # Accepted numeric contract: bf16 MXU operands (f32 accum) + tanh-approx GELU
    # (+ bf16 elementwise on v6e/v7x) vs the all-f32 exact-erf reference.
    np.testing.assert_allclose(np.asarray(out), np.asarray(ref), rtol=1e-2, atol=1e-2)

    # Auto (VMEM-budget) tile selection path.
    out2 = convnext_block(x, dw_w, dw_b, ln_w, ln_b, w1, b1, w2, b2, gamma)
    out2 = jax.block_until_ready(out2)
    np.testing.assert_allclose(np.asarray(out2), np.asarray(ref), rtol=1e-2, atol=1e-2)

    print("KERNEL_OK")
</pallas_src>

<mosaic_0001>
module attributes {stable_mosaic.version = 11 : i64} {
  func.func @convnext_block_kernel(%arg0: i32, %arg1: i32, %arg2: memref<1x22x22x128xf32, #tpu.memory_space<vmem>>, %arg3: memref<7x7x128xf32, #tpu.memory_space<vmem>>, %arg4: memref<1x128xf32, #tpu.memory_space<vmem>>, %arg5: memref<128x128xbf16, #tpu.memory_space<vmem>>, %arg6: memref<1x128xf32, #tpu.memory_space<vmem>>, %arg7: memref<128x128xbf16, #tpu.memory_space<vmem>>, %arg8: memref<1x128xf32, #tpu.memory_space<vmem>>, %arg9: memref<1x8x16x128xf32, #tpu.memory_space<vmem>>) attributes {dimension_semantics = [#tpu.dimension_semantics<parallel>, #tpu.dimension_semantics<parallel>], iteration_bounds = array<i64: 2, 2>, scalar_prefetch = 0 : i64, scratch_operands = 0 : i64, tpu.core_type = #tpu.core_type<tc>, window_params = [{transform_indices = @transform_0, window_bounds = array<i64: 1, 22, 22, 128>}, {pipeline_mode = #tpu.pipeline_mode<synchronous>, transform_indices = @transform_1, window_bounds = array<i64: 7, 7, 128>}, {pipeline_mode = #tpu.pipeline_mode<synchronous>, transform_indices = @transform_2, window_bounds = array<i64: 1, 128>}, {pipeline_mode = #tpu.pipeline_mode<synchronous>, transform_indices = @transform_3, window_bounds = array<i64: 128, 128>}, {pipeline_mode = #tpu.pipeline_mode<synchronous>, transform_indices = @transform_4, window_bounds = array<i64: 1, 128>}, {pipeline_mode = #tpu.pipeline_mode<synchronous>, transform_indices = @transform_5, window_bounds = array<i64: 128, 128>}, {pipeline_mode = #tpu.pipeline_mode<synchronous>, transform_indices = @transform_6, window_bounds = array<i64: 1, 128>}, {transform_indices = @transform_7, window_bounds = array<i64: 1, 8, 16, 128>}]} {
    %c8_i32 = arith.constant 8 : i32
    %0 = arith.muli %arg1, %c8_i32 : i32
    %c0 = arith.constant 0 : index
    %c0_0 = arith.constant 0 : index
    %c0_1 = arith.constant 0 : index
    %1 = vector.load %arg3[%c0, %c0_0, %c0_1] : memref<7x7x128xf32, #tpu.memory_space<vmem>>, vector<7x7x128xf32>
    %cst = arith.constant 0.000000e+00 : f32
    %2 = vector.broadcast %cst : f32 to vector<8x16x128xf32>
    %c0_2 = arith.constant 0 : index
    %3 = arith.index_cast %0 : i32 to index
    %c0_3 = arith.constant 0 : index
    %c0_4 = arith.constant 0 : index
    %4 = vector.load %arg2[%c0_2, %3, %c0_3, %c0_4] : memref<1x22x22x128xf32, #tpu.memory_space<vmem>>, vector<1x14x16x128xf32>
    %5 = vector.shape_cast %4 : vector<1x14x16x128xf32> to vector<14x16x128xf32>
    %6 = vector.extract_strided_slice %5 {offsets = [0, 0, 0], sizes = [8, 16, 128], strides = [1, 1, 1]} : vector<14x16x128xf32> to vector<8x16x128xf32>
    %7 = vector.extract_strided_slice %1 {offsets = [0, 0, 0], sizes = [1, 1, 128], strides = [1, 1, 1]} : vector<7x7x128xf32> to vector<1x1x128xf32>
    %8 = vector.shape_cast %7 : vector<1x1x128xf32> to vector<128xf32>
    %9 = vector.shape_cast %8 : vector<128xf32> to vector<1x1x128xf32>
    %10 = vector.broadcast %9 : vector<1x1x128xf32> to vector<8x16x128xf32>
    %11 = arith.mulf %6, %10 : vector<8x16x128xf32>
    %12 = arith.addf %2, %11 : vector<8x16x128xf32>
    %13 = vector.extract_strided_slice %5 {offsets = [1, 0, 0], sizes = [8, 16, 128], strides = [1, 1, 1]} : vector<14x16x128xf32> to vector<8x16x128xf32>
    %14 = vector.extract_strided_slice %1 {offsets = [1, 0, 0], sizes = [1, 1, 128], strides = [1, 1, 1]} : vector<7x7x128xf32> to vector<1x1x128xf32>
    %15 = vector.shape_cast %14 : vector<1x1x128xf32> to vector<128xf32>
    %16 = vector.shape_cast %15 : vector<128xf32> to vector<1x1x128xf32>
    %17 = vector.broadcast %16 : vector<1x1x128xf32> to vector<8x16x128xf32>
    %18 = arith.mulf %13, %17 : vector<8x16x128xf32>
    %19 = arith.addf %12, %18 : vector<8x16x128xf32>
    %20 = vector.extract_strided_slice %5 {offsets = [2, 0, 0], sizes = [8, 16, 128], strides = [1, 1, 1]} : vector<14x16x128xf32> to vector<8x16x128xf32>
    %21 = vector.extract_strided_slice %1 {offsets = [2, 0, 0], sizes = [1, 1, 128], strides = [1, 1, 1]} : vector<7x7x128xf32> to vector<1x1x128xf32>
    %22 = vector.shape_cast %21 : vector<1x1x128xf32> to vector<128xf32>
    %23 = vector.shape_cast %22 : vector<128xf32> to vector<1x1x128xf32>
    %24 = vector.broadcast %23 : vector<1x1x128xf32> to vector<8x16x128xf32>
    %25 = arith.mulf %20, %24 : vector<8x16x128xf32>
    %26 = arith.addf %19, %25 : vector<8x16x128xf32>
    %27 = vector.extract_strided_slice %5 {offsets = [3, 0, 0], sizes = [8, 16, 128], strides = [1, 1, 1]} : vector<14x16x128xf32> to vector<8x16x128xf32>
    %28 = vector.extract_strided_slice %1 {offsets = [3, 0, 0], sizes = [1, 1, 128], strides = [1, 1, 1]} : vector<7x7x128xf32> to vector<1x1x128xf32>
    %29 = vector.shape_cast %28 : vector<1x1x128xf32> to vector<128xf32>
    %30 = vector.shape_cast %29 : vector<128xf32> to vector<1x1x128xf32>
    %31 = vector.broadcast %30 : vector<1x1x128xf32> to vector<8x16x128xf32>
    %32 = arith.mulf %27, %31 : vector<8x16x128xf32>
    %33 = arith.addf %26, %32 : vector<8x16x128xf32>
    %34 = vector.extract_strided_slice %5 {offsets = [4, 0, 0], sizes = [8, 16, 128], strides = [1, 1, 1]} : vector<14x16x128xf32> to vector<8x16x128xf32>
    %35 = vector.extract_strided_slice %1 {offsets = [4, 0, 0], sizes = [1, 1, 128], strides = [1, 1, 1]} : vector<7x7x128xf32> to vector<1x1x128xf32>
    %36 = vector.shape_cast %35 : vector<1x1x128xf32> to vector<128xf32>
    %37 = vector.shape_cast %36 : vector<128xf32> to vector<1x1x128xf32>
    %38 = vector.broadcast %37 : vector<1x1x128xf32> to vector<8x16x128xf32>
    %39 = arith.mulf %34, %38 : vector<8x16x128xf32>
    %40 = arith.addf %33, %39 : vector<8x16x128xf32>
    %41 = vector.extract_strided_slice %5 {offsets = [5, 0, 0], sizes = [8, 16, 128], strides = [1, 1, 1]} : vector<14x16x128xf32> to vector<8x16x128xf32>
    %42 = vector.extract_strided_slice %1 {offsets = [5, 0, 0], sizes = [1, 1, 128], strides = [1, 1, 1]} : vector<7x7x128xf32> to vector<1x1x128xf32>
    %43 = vector.shape_cast %42 : vector<1x1x128xf32> to vector<128xf32>
    %44 = vector.shape_cast %43 : vector<128xf32> to vector<1x1x128xf32>
    %45 = vector.broadcast %44 : vector<1x1x128xf32> to vector<8x16x128xf32>
    %46 = arith.mulf %41, %45 : vector<8x16x128xf32>
    %47 = arith.addf %40, %46 : vector<8x16x128xf32>
    %48 = vector.extract_strided_slice %5 {offsets = [6, 0, 0], sizes = [8, 16, 128], strides = [1, 1, 1]} : vector<14x16x128xf32> to vector<8x16x128xf32>
    %49 = vector.extract_strided_slice %1 {offsets = [6, 0, 0], sizes = [1, 1, 128], strides = [1, 1, 1]} : vector<7x7x128xf32> to vector<1x1x128xf32>
    %50 = vector.shape_cast %49 : vector<1x1x128xf32> to vector<128xf32>
    %51 = vector.shape_cast %50 : vector<128xf32> to vector<1x1x128xf32>
    %52 = vector.broadcast %51 : vector<1x1x128xf32> to vector<8x16x128xf32>
    %53 = arith.mulf %48, %52 : vector<8x16x128xf32>
    %54 = arith.addf %47, %53 : vector<8x16x128xf32>
    %c0_5 = arith.constant 0 : index
    %55 = arith.index_cast %0 : i32 to index
    %c1 = arith.constant 1 : index
    %c0_6 = arith.constant 0 : index
    %56 = vector.load %arg2[%c0_5, %55, %c1, %c0_6] : memref<1x22x22x128xf32, #tpu.memory_space<vmem>>, vector<1x14x16x128xf32>
    %57 = vector.shape_cast %56 : vector<1x14x16x128xf32> to vector<14x16x128xf32>
    %58 = vector.extract_strided_slice %57 {offsets = [0, 0, 0], sizes = [8, 16, 128], strides = [1, 1, 1]} : vector<14x16x128xf32> to vector<8x16x128xf32>
    %59 = vector.extract_strided_slice %1 {offsets = [0, 1, 0], sizes = [1, 1, 128], strides = [1, 1, 1]} : vector<7x7x128xf32> to vector<1x1x128xf32>
    %60 = vector.shape_cast %59 : vector<1x1x128xf32> to vector<128xf32>
    %61 = vector.shape_cast %60 : vector<128xf32> to vector<1x1x128xf32>
    %62 = vector.broadcast %61 : vector<1x1x128xf32> to vector<8x16x128xf32>
    %63 = arith.mulf %58, %62 : vector<8x16x128xf32>
    %64 = arith.addf %54, %63 : vector<8x16x128xf32>
    %65 = vector.extract_strided_slice %57 {offsets = [1, 0, 0], sizes = [8, 16, 128], strides = [1, 1, 1]} : vector<14x16x128xf32> to vector<8x16x128xf32>
    %66 = vector.extract_strided_slice %1 {offsets = [1, 1, 0], sizes = [1, 1, 128], strides = [1, 1, 1]} : vector<7x7x128xf32> to vector<1x1x128xf32>
    %67 = vector.shape_cast %66 : vector<1x1x128xf32> to vector<128xf32>
    %68 = vector.shape_cast %67 : vector<128xf32> to vector<1x1x128xf32>
    %69 = vector.broadcast %68 : vector<1x1x128xf32> to vector<8x16x128xf32>
    %70 = arith.mulf %65, %69 : vector<8x16x128xf32>
    %71 = arith.addf %64, %70 : vector<8x16x128xf32>
    %72 = vector.extract_strided_slice %57 {offsets = [2, 0, 0], sizes = [8, 16, 128], strides = [1, 1, 1]} : vector<14x16x128xf32> to vector<8x16x128xf32>
    %73 = vector.extract_strided_slice %1 {offsets = [2, 1, 0], sizes = [1, 1, 128], strides = [1, 1, 1]} : vector<7x7x128xf32> to vector<1x1x128xf32>
    %74 = vector.shape_cast %73 : vector<1x1x128xf32> to vector<128xf32>
    %75 = vector.shape_cast %74 : vector<128xf32> to vector<1x1x128xf32>
    %76 = vector.broadcast %75 : vector<1x1x128xf32> to vector<8x16x128xf32>
    %77 = arith.mulf %72, %76 : vector<8x16x128xf32>
    %78 = arith.addf %71, %77 : vector<8x16x128xf32>
    %79 = vector.extract_strided_slice %57 {offsets = [3, 0, 0], sizes = [8, 16, 128], strides = [1, 1, 1]} : vector<14x16x128xf32> to vector<8x16x128xf32>
    %80 = vector.extract_strided_slice %1 {offsets = [3, 1, 0], sizes = [1, 1, 128], strides = [1, 1, 1]} : vector<7x7x128xf32> to vector<1x1x128xf32>
    %81 = vector.shape_cast %80 : vector<1x1x128xf32> to vector<128xf32>
    %82 = vector.shape_cast %81 : vector<128xf32> to vector<1x1x128xf32>
    %83 = vector.broadcast %82 : vector<1x1x128xf32> to vector<8x16x128xf32>
    %84 = arith.mulf %79, %83 : vector<8x16x128xf32>
    %85 = arith.addf %78, %84 : vector<8x16x128xf32>
    %86 = vector.extract_strided_slice %57 {offsets = [4, 0, 0], sizes = [8, 16, 128], strides = [1, 1, 1]} : vector<14x16x128xf32> to vector<8x16x128xf32>
    %87 = vector.extract_strided_slice %1 {offsets = [4, 1, 0], sizes = [1, 1, 128], strides = [1, 1, 1]} : vector<7x7x128xf32> to vector<1x1x128xf32>
    %88 = vector.shape_cast %87 : vector<1x1x128xf32> to vector<128xf32>
    %89 = vector.shape_cast %88 : vector<128xf32> to vector<1x1x128xf32>
    %90 = vector.broadcast %89 : vector<1x1x128xf32> to vector<8x16x128xf32>
    %91 = arith.mulf %86, %90 : vector<8x16x128xf32>
    %92 = arith.addf %85, %91 : vector<8x16x128xf32>
    %93 = vector.extract_strided_slice %57 {offsets = [5, 0, 0], sizes = [8, 16, 128], strides = [1, 1, 1]} : vector<14x16x128xf32> to vector<8x16x128xf32>
    %94 = vector.extract_strided_slice %1 {offsets = [5, 1, 0], sizes = [1, 1, 128], strides = [1, 1, 1]} : vector<7x7x128xf32> to vector<1x1x128xf32>
    %95 = vector.shape_cast %94 : vector<1x1x128xf32> to vector<128xf32>
    %96 = vector.shape_cast %95 : vector<128xf32> to vector<1x1x128xf32>
    %97 = vector.broadcast %96 : vector<1x1x128xf32> to vector<8x16x128xf32>
    %98 = arith.mulf %93, %97 : vector<8x16x128xf32>
    %99 = arith.addf %92, %98 : vector<8x16x128xf32>
    %100 = vector.extract_strided_slice %57 {offsets = [6, 0, 0], sizes = [8, 16, 128], strides = [1, 1, 1]} : vector<14x16x128xf32> to vector<8x16x128xf32>
    %101 = vector.extract_strided_slice %1 {offsets = [6, 1, 0], sizes = [1, 1, 128], strides = [1, 1, 1]} : vector<7x7x128xf32> to vector<1x1x128xf32>
    %102 = vector.shape_cast %101 : vector<1x1x128xf32> to vector<128xf32>
    %103 = vector.shape_cast %102 : vector<128xf32> to vector<1x1x128xf32>
    %104 = vector.broadcast %103 : vector<1x1x128xf32> to vector<8x16x128xf32>
    %105 = arith.mulf %100, %104 : vector<8x16x128xf32>
    %106 = arith.addf %99, %105 : vector<8x16x128xf32>
    %c0_7 = arith.constant 0 : index
    %107 = arith.index_cast %0 : i32 to index
    %c2 = arith.constant 2 : index
    %c0_8 = arith.constant 0 : index
    %108 = vector.load %arg2[%c0_7, %107, %c2, %c0_8] : memref<1x22x22x128xf32, #tpu.memory_space<vmem>>, vector<1x14x16x128xf32>
    %109 = vector.shape_cast %108 : vector<1x14x16x128xf32> to vector<14x16x128xf32>
    %110 = vector.extract_strided_slice %109 {offsets = [0, 0, 0], sizes = [8, 16, 128], strides = [1, 1, 1]} : vector<14x16x128xf32> to vector<8x16x128xf32>
    %111 = vector.extract_strided_slice %1 {offsets = [0, 2, 0], sizes = [1, 1, 128], strides = [1, 1, 1]} : vector<7x7x128xf32> to vector<1x1x128xf32>
    %112 = vector.shape_cast %111 : vector<1x1x128xf32> to vector<128xf32>
    %113 = vector.shape_cast %112 : vector<128xf32> to vector<1x1x128xf32>
    %114 = vector.broadcast %113 : vector<1x1x128xf32> to vector<8x16x128xf32>
    %115 = arith.mulf %110, %114 : vector<8x16x128xf32>
    %116 = arith.addf %106, %115 : vector<8x16x128xf32>
    %117 = vector.extract_strided_slice %109 {offsets = [1, 0, 0], sizes = [8, 16, 128], strides = [1, 1, 1]} : vector<14x16x128xf32> to vector<8x16x128xf32>
    %118 = vector.extract_strided_slice %1 {offsets = [1, 2, 0], sizes = [1, 1, 128], strides = [1, 1, 1]} : vector<7x7x128xf32> to vector<1x1x128xf32>
    %119 = vector.shape_cast %118 : vector<1x1x128xf32> to vector<128xf32>
    %120 = vector.shape_cast %119 : vector<128xf32> to vector<1x1x128xf32>
    %121 = vector.broadcast %120 : vector<1x1x128xf32> to vector<8x16x128xf32>
    %122 = arith.mulf %117, %121 : vector<8x16x128xf32>
    %123 = arith.addf %116, %122 : vector<8x16x128xf32>
    %124 = vector.extract_strided_slice %109 {offsets = [2, 0, 0], sizes = [8, 16, 128], strides = [1, 1, 1]} : vector<14x16x128xf32> to vector<8x16x128xf32>
    %125 = vector.extract_strided_slice %1 {offsets = [2, 2, 0], sizes = [1, 1, 128], strides = [1, 1, 1]} : vector<7x7x128xf32> to vector<1x1x128xf32>
    %126 = vector.shape_cast %125 : vector<1x1x128xf32> to vector<128xf32>
    %127 = vector.shape_cast %126 : vector<128xf32> to vector<1x1x128xf32>
    %128 = vector.broadcast %127 : vector<1x1x128xf32> to vector<8x16x128xf32>
    %129 = arith.mulf %124, %128 : vector<8x16x128xf32>
    %130 = arith.addf %123, %129 : vector<8x16x128xf32>
    %131 = vector.extract_strided_slice %109 {offsets = [3, 0, 0], sizes = [8, 16, 128], strides = [1, 1, 1]} : vector<14x16x128xf32> to vector<8x16x128xf32>
    %132 = vector.extract_strided_slice %1 {offsets = [3, 2, 0], sizes = [1, 1, 128], strides = [1, 1, 1]} : vector<7x7x128xf32> to vector<1x1x128xf32>
    %133 = vector.shape_cast %132 : vector<1x1x128xf32> to vector<128xf32>
    %134 = vector.shape_cast %133 : vector<128xf32> to vector<1x1x128xf32>
    %135 = vector.broadcast %134 : vector<1x1x128xf32> to vector<8x16x128xf32>
    %136 = arith.mulf %131, %135 : vector<8x16x128xf32>
    %137 = arith.addf %130, %136 : vector<8x16x128xf32>
    %138 = vector.extract_strided_slice %109 {offsets = [4, 0, 0], sizes = [8, 16, 128], strides = [1, 1, 1]} : vector<14x16x128xf32> to vector<8x16x128xf32>
    %139 = vector.extract_strided_slice %1 {offsets = [4, 2, 0], sizes = [1, 1, 128], strides = [1, 1, 1]} : vector<7x7x128xf32> to vector<1x1x128xf32>
    %140 = vector.shape_cast %139 : vector<1x1x128xf32> to vector<128xf32>
    %141 = vector.shape_cast %140 : vector<128xf32> to vector<1x1x128xf32>
    %142 = vector.broadcast %141 : vector<1x1x128xf32> to vector<8x16x128xf32>
    %143 = arith.mulf %138, %142 : vector<8x16x128xf32>
    %144 = arith.addf %137, %143 : vector<8x16x128xf32>
    %145 = vector.extract_strided_slice %109 {offsets = [5, 0, 0], sizes = [8, 16, 128], strides = [1, 1, 1]} : vector<14x16x128xf32> to vector<8x16x128xf32>
    %146 = vector.extract_strided_slice %1 {offsets = [5, 2, 0], sizes = [1, 1, 128], strides = [1, 1, 1]} : vector<7x7x128xf32> to vector<1x1x128xf32>
    %147 = vector.shape_cast %146 : vector<1x1x128xf32> to vector<128xf32>
    %148 = vector.shape_cast %147 : vector<128xf32> to vector<1x1x128xf32>
    %149 = vector.broadcast %148 : vector<1x1x128xf32> to vector<8x16x128xf32>
    %150 = arith.mulf %145, %149 : vector<8x16x128xf32>
    %151 = arith.addf %144, %150 : vector<8x16x128xf32>
    %152 = vector.extract_strided_slice %109 {offsets = [6, 0, 0], sizes = [8, 16, 128], strides = [1, 1, 1]} : vector<14x16x128xf32> to vector<8x16x128xf32>
    %153 = vector.extract_strided_slice %1 {offsets = [6, 2, 0], sizes = [1, 1, 128], strides = [1, 1, 1]} : vector<7x7x128xf32> to vector<1x1x128xf32>
    %154 = vector.shape_cast %153 : vector<1x1x128xf32> to vector<128xf32>
    %155 = vector.shape_cast %154 : vector<128xf32> to vector<1x1x128xf32>
    %156 = vector.broadcast %155 : vector<1x1x128xf32> to vector<8x16x128xf32>
    %157 = arith.mulf %152, %156 : vector<8x16x128xf32>
    %158 = arith.addf %151, %157 : vector<8x16x128xf32>
    %c0_9 = arith.constant 0 : index
    %159 = arith.index_cast %0 : i32 to index
    %c3 = arith.constant 3 : index
    %c0_10 = arith.constant 0 : index
    %160 = vector.load %arg2[%c0_9, %159, %c3, %c0_10] : memref<1x22x22x128xf32, #tpu.memory_space<vmem>>, vector<1x14x16x128xf32>
    %161 = vector.shape_cast %160 : vector<1x14x16x128xf32> to vector<14x16x128xf32>
    %162 = vector.extract_strided_slice %161 {offsets = [0, 0, 0], sizes = [8, 16, 128], strides = [1, 1, 1]} : vector<14x16x128xf32> to vector<8x16x128xf32>
    %163 = vector.extract_strided_slice %1 {offsets = [0, 3, 0], sizes = [1, 1, 128], strides = [1, 1, 1]} : vector<7x7x128xf32> to vector<1x1x128xf32>
    %164 = vector.shape_cast %163 : vector<1x1x128xf32> to vector<128xf32>
    %165 = vector.shape_cast %164 : vector<128xf32> to vector<1x1x128xf32>
    %166 = vector.broadcast %165 : vector<1x1x128xf32> to vector<8x16x128xf32>
    %167 = arith.mulf %162, %166 : vector<8x16x128xf32>
    %168 = arith.addf %158, %167 : vector<8x16x128xf32>
    %169 = vector.extract_strided_slice %161 {offsets = [1, 0, 0], sizes = [8, 16, 128], strides = [1, 1, 1]} : vector<14x16x128xf32> to vector<8x16x128xf32>
    %170 = vector.extract_strided_slice %1 {offsets = [1, 3, 0], sizes = [1, 1, 128], strides = [1, 1, 1]} : vector<7x7x128xf32> to vector<1x1x128xf32>
    %171 = vector.shape_cast %170 : vector<1x1x128xf32> to vector<128xf32>
    %172 = vector.shape_cast %171 : vector<128xf32> to vector<1x1x128xf32>
    %173 = vector.broadcast %172 : vector<1x1x128xf32> to vector<8x16x128xf32>
    %174 = arith.mulf %169, %173 : vector<8x16x128xf32>
    %175 = arith.addf %168, %174 : vector<8x16x128xf32>
    %176 = vector.extract_strided_slice %161 {offsets = [2, 0, 0], sizes = [8, 16, 128], strides = [1, 1, 1]} : vector<14x16x128xf32> to vector<8x16x128xf32>
    %177 = vector.extract_strided_slice %1 {offsets = [2, 3, 0], sizes = [1, 1, 128], strides = [1, 1, 1]} : vector<7x7x128xf32> to vector<1x1x128xf32>
    %178 = vector.shape_cast %177 : vector<1x1x128xf32> to vector<128xf32>
    %179 = vector.shape_cast %178 : vector<128xf32> to vector<1x1x128xf32>
    %180 = vector.broadcast %179 : vector<1x1x128xf32> to vector<8x16x128xf32>
    %181 = arith.mulf %176, %180 : vector<8x16x128xf32>
    %182 = arith.addf %175, %181 : vector<8x16x128xf32>
    %183 = vector.extract_strided_slice %161 {offsets = [3, 0, 0], sizes = [8, 16, 128], strides = [1, 1, 1]} : vector<14x16x128xf32> to vector<8x16x128xf32>
    %184 = vector.extract_strided_slice %1 {offsets = [3, 3, 0], sizes = [1, 1, 128], strides = [1, 1, 1]} : vector<7x7x128xf32> to vector<1x1x128xf32>
    %185 = vector.shape_cast %184 : vector<1x1x128xf32> to vector<128xf32>
    %186 = vector.shape_cast %185 : vector<128xf32> to vector<1x1x128xf32>
    %187 = vector.broadcast %186 : vector<1x1x128xf32> to vector<8x16x128xf32>
    %188 = arith.mulf %183, %187 : vector<8x16x128xf32>
    %189 = arith.addf %182, %188 : vector<8x16x128xf32>
    %190 = vector.extract_strided_slice %161 {offsets = [4, 0, 0], sizes = [8, 16, 128], strides = [1, 1, 1]} : vector<14x16x128xf32> to vector<8x16x128xf32>
    %191 = vector.extract_strided_slice %1 {offsets = [4, 3, 0], sizes = [1, 1, 128], strides = [1, 1, 1]} : vector<7x7x128xf32> to vector<1x1x128xf32>
    %192 = vector.shape_cast %191 : vector<1x1x128xf32> to vector<128xf32>
    %193 = vector.shape_cast %192 : vector<128xf32> to vector<1x1x128xf32>
    %194 = vector.broadcast %193 : vector<1x1x128xf32> to vector<8x16x128xf32>
    %195 = arith.mulf %190, %194 : vector<8x16x128xf32>
    %196 = arith.addf %189, %195 : vector<8x16x128xf32>
    %197 = vector.extract_strided_slice %161 {offsets = [5, 0, 0], sizes = [8, 16, 128], strides = [1, 1, 1]} : vector<14x16x128xf32> to vector<8x16x128xf32>
    %198 = vector.extract_strided_slice %1 {offsets = [5, 3, 0], sizes = [1, 1, 128], strides = [1, 1, 1]} : vector<7x7x128xf32> to vector<1x1x128xf32>
    %199 = vector.shape_cast %198 : vector<1x1x128xf32> to vector<128xf32>
    %200 = vector.shape_cast %199 : vector<128xf32> to vector<1x1x128xf32>
    %201 = vector.broadcast %200 : vector<1x1x128xf32> to vector<8x16x128xf32>
    %202 = arith.mulf %197, %201 : vector<8x16x128xf32>
    %203 = arith.addf %196, %202 : vector<8x16x128xf32>
    %204 = vector.extract_strided_slice %161 {offsets = [6, 0, 0], sizes = [8, 16, 128], strides = [1, 1, 1]} : vector<14x16x128xf32> to vector<8x16x128xf32>
    %205 = vector.extract_strided_slice %1 {offsets = [6, 3, 0], sizes = [1, 1, 128], strides = [1, 1, 1]} : vector<7x7x128xf32> to vector<1x1x128xf32>
    %206 = vector.shape_cast %205 : vector<1x1x128xf32> to vector<128xf32>
    %207 = vector.shape_cast %206 : vector<128xf32> to vector<1x1x128xf32>
    %208 = vector.broadcast %207 : vector<1x1x128xf32> to vector<8x16x128xf32>
    %209 = arith.mulf %204, %208 : vector<8x16x128xf32>
    %210 = arith.addf %203, %209 : vector<8x16x128xf32>
    %c0_11 = arith.constant 0 : index
    %211 = arith.index_cast %0 : i32 to index
    %c4 = arith.constant 4 : index
    %c0_12 = arith.constant 0 : index
    %212 = vector.load %arg2[%c0_11, %211, %c4, %c0_12] : memref<1x22x22x128xf32, #tpu.memory_space<vmem>>, vector<1x14x16x128xf32>
    %213 = vector.shape_cast %212 : vector<1x14x16x128xf32> to vector<14x16x128xf32>
    %214 = vector.extract_strided_slice %213 {offsets = [0, 0, 0], sizes = [8, 16, 128], strides = [1, 1, 1]} : vector<14x16x128xf32> to vector<8x16x128xf32>
    %215 = vector.extract_strided_slice %1 {offsets = [0, 4, 0], sizes = [1, 1, 128], strides = [1, 1, 1]} : vector<7x7x128xf32> to vector<1x1x128xf32>
    %216 = vector.shape_cast %215 : vector<1x1x128xf32> to vector<128xf32>
    %217 = vector.shape_cast %216 : vector<128xf32> to vector<1x1x128xf32>
    %218 = vector.broadcast %217 : vector<1x1x128xf32> to vector<8x16x128xf32>
    %219 = arith.mulf %214, %218 : vector<8x16x128xf32>
    %220 = arith.addf %210, %219 : vector<8x16x128xf32>
    %221 = vector.extract_strided_slice %213 {offsets = [1, 0, 0], sizes = [8, 16, 128], strides = [1, 1, 1]} : vector<14x16x128xf32> to vector<8x16x128xf32>
    %222 = vector.extract_strided_slice %1 {offsets = [1, 4, 0], sizes = [1, 1, 128], strides = [1, 1, 1]} : vector<7x7x128xf32> to vector<1x1x128xf32>
    %223 = vector.shape_cast %222 : vector<1x1x128xf32> to vector<128xf32>
    %224 = vector.shape_cast %223 : vector<128xf32> to vector<1x1x128xf32>
    %225 = vector.broadcast %224 : vector<1x1x128xf32> to vector<8x16x128xf32>
    %226 = arith.mulf %221, %225 : vector<8x16x128xf32>
    %227 = arith.addf %220, %226 : vector<8x16x128xf32>
    %228 = vector.extract_strided_slice %213 {offsets = [2, 0, 0], sizes = [8, 16, 128], strides = [1, 1, 1]} : vector<14x16x128xf32> to vector<8x16x128xf32>
    %229 = vector.extract_strided_slice %1 {offsets = [2, 4, 0], sizes = [1, 1, 128], strides = [1, 1, 1]} : vector<7x7x128xf32> to vector<1x1x128xf32>
    %230 = vector.shape_cast %229 : vector<1x1x128xf32> to vector<128xf32>
    %231 = vector.shape_cast %230 : vector<128xf32> to vector<1x1x128xf32>
    %232 = vector.broadcast %231 : vector<1x1x128xf32> to vector<8x16x128xf32>
    %233 = arith.mulf %228, %232 : vector<8x16x128xf32>
    %234 = arith.addf %227, %233 : vector<8x16x128xf32>
    %235 = vector.extract_strided_slice %213 {offsets = [3, 0, 0], sizes = [8, 16, 128], strides = [1, 1, 1]} : vector<14x16x128xf32> to vector<8x16x128xf32>
    %236 = vector.extract_strided_slice %1 {offsets = [3, 4, 0], sizes = [1, 1, 128], strides = [1, 1, 1]} : vector<7x7x128xf32> to vector<1x1x128xf32>
    %237 = vector.shape_cast %236 : vector<1x1x128xf32> to vector<128xf32>
    %238 = vector.shape_cast %237 : vector<128xf32> to vector<1x1x128xf32>
    %239 = vector.broadcast %238 : vector<1x1x128xf32> to vector<8x16x128xf32>
    %240 = arith.mulf %235, %239 : vector<8x16x128xf32>
    %241 = arith.addf %234, %240 : vector<8x16x128xf32>
    %242 = vector.extract_strided_slice %213 {offsets = [4, 0, 0], sizes = [8, 16, 128], strides = [1, 1, 1]} : vector<14x16x128xf32> to vector<8x16x128xf32>
    %243 = vector.extract_strided_slice %1 {offsets = [4, 4, 0], sizes = [1, 1, 128], strides = [1, 1, 1]} : vector<7x7x128xf32> to vector<1x1x128xf32>
    %244 = vector.shape_cast %243 : vector<1x1x128xf32> to vector<128xf32>
    %245 = vector.shape_cast %244 : vector<128xf32> to vector<1x1x128xf32>
    %246 = vector.broadcast %245 : vector<1x1x128xf32> to vector<8x16x128xf32>
    %247 = arith.mulf %242, %246 : vector<8x16x128xf32>
    %248 = arith.addf %241, %247 : vector<8x16x128xf32>
    %249 = vector.extract_strided_slice %213 {offsets = [5, 0, 0], sizes = [8, 16, 128], strides = [1, 1, 1]} : vector<14x16x128xf32> to vector<8x16x128xf32>
    %250 = vector.extract_strided_slice %1 {offsets = [5, 4, 0], sizes = [1, 1, 128], strides = [1, 1, 1]} : vector<7x7x128xf32> to vector<1x1x128xf32>
    %251 = vector.shape_cast %250 : vector<1x1x128xf32> to vector<128xf32>
    %252 = vector.shape_cast %251 : vector<128xf32> to vector<1x1x128xf32>
    %253 = vector.broadcast %252 : vector<1x1x128xf32> to vector<8x16x128xf32>
    %254 = arith.mulf %249, %253 : vector<8x16x128xf32>
    %255 = arith.addf %248, %254 : vector<8x16x128xf32>
    %256 = vector.extract_strided_slice %213 {offsets = [6, 0, 0], sizes = [8, 16, 128], strides = [1, 1, 1]} : vector<14x16x128xf32> to vector<8x16x128xf32>
    %257 = vector.extract_strided_slice %1 {offsets = [6, 4, 0], sizes = [1, 1, 128], strides = [1, 1, 1]} : vector<7x7x128xf32> to vector<1x1x128xf32>
    %258 = vector.shape_cast %257 : vector<1x1x128xf32> to vector<128xf32>
    %259 = vector.shape_cast %258 : vector<128xf32> to vector<1x1x128xf32>
    %260 = vector.broadcast %259 : vector<1x1x128xf32> to vector<8x16x128xf32>
    %261 = arith.mulf %256, %260 : vector<8x16x128xf32>
    %262 = arith.addf %255, %261 : vector<8x16x128xf32>
    %c0_13 = arith.constant 0 : index
    %263 = arith.index_cast %0 : i32 to index
    %c5 = arith.constant 5 : index
    %c0_14 = arith.constant 0 : index
    %264 = vector.load %arg2[%c0_13, %263, %c5, %c0_14] : memref<1x22x22x128xf32, #tpu.memory_space<vmem>>, vector<1x14x16x128xf32>
    %265 = vector.shape_cast %264 : vector<1x14x16x128xf32> to vector<14x16x128xf32>
    %266 = vector.extract_strided_slice %265 {offsets = [0, 0, 0], sizes = [8, 16, 128], strides = [1, 1, 1]} : vector<14x16x128xf32> to vector<8x16x128xf32>
    %267 = vector.extract_strided_slice %1 {offsets = [0, 5, 0], sizes = [1, 1, 128], strides = [1, 1, 1]} : vector<7x7x128xf32> to vector<1x1x128xf32>
    %268 = vector.shape_cast %267 : vector<1x1x128xf32> to vector<128xf32>
    %269 = vector.shape_cast %268 : vector<128xf32> to vector<1x1x128xf32>
    %270 = vector.broadcast %269 : vector<1x1x128xf32> to vector<8x16x128xf32>
    %271 = arith.mulf %266, %270 : vector<8x16x128xf32>
    %272 = arith.addf %262, %271 : vector<8x16x128xf32>
    %273 = vector.extract_strided_slice %265 {offsets = [1, 0, 0], sizes = [8, 16, 128], strides = [1, 1, 1]} : vector<14x16x128xf32> to vector<8x16x128xf32>
    %274 = vector.extract_strided_slice %1 {offsets = [1, 5, 0], sizes = [1, 1, 128], strides = [1, 1, 1]} : vector<7x7x128xf32> to vector<1x1x128xf32>
    %275 = vector.shape_cast %274 : vector<1x1x128xf32> to vector<128xf32>
    %276 = vector.shape_cast %275 : vector<128xf32> to vector<1x1x128xf32>
    %277 = vector.broadcast %276 : vector<1x1x128xf32> to vector<8x16x128xf32>
    %278 = arith.mulf %273, %277 : vector<8x16x128xf32>
    %279 = arith.addf %272, %278 : vector<8x16x128xf32>
    %280 = vector.extract_strided_slice %265 {offsets = [2, 0, 0], sizes = [8, 16, 128], strides = [1, 1, 1]} : vector<14x16x128xf32> to vector<8x16x128xf32>
    %281 = vector.extract_strided_slice %1 {offsets = [2, 5, 0], sizes = [1, 1, 128], strides = [1, 1, 1]} : vector<7x7x128xf32> to vector<1x1x128xf32>
    %282 = vector.shape_cast %281 : vector<1x1x128xf32> to vector<128xf32>
    %283 = vector.shape_cast %282 : vector<128xf32> to vector<1x1x128xf32>
    %284 = vector.broadcast %283 : vector<1x1x128xf32> to vector<8x16x128xf32>
    %285 = arith.mulf %280, %284 : vector<8x16x128xf32>
    %286 = arith.addf %279, %285 : vector<8x16x128xf32>
    %287 = vector.extract_strided_slice %265 {offsets = [3, 0, 0], sizes = [8, 16, 128], strides = [1, 1, 1]} : vector<14x16x128xf32> to vector<8x16x128xf32>
    %288 = vector.extract_strided_slice %1 {offsets = [3, 5, 0], sizes = [1, 1, 128], strides = [1, 1, 1]} : vector<7x7x128xf32> to vector<1x1x128xf32>
    %289 = vector.shape_cast %288 : vector<1x1x128xf32> to vector<128xf32>
    %290 = vector.shape_cast %289 : vector<128xf32> to vector<1x1x128xf32>
    %291 = vector.broadcast %290 : vector<1x1x128xf32> to vector<8x16x128xf32>
    %292 = arith.mulf %287, %291 : vector<8x16x128xf32>
    %293 = arith.addf %286, %292 : vector<8x16x128xf32>
    %294 = vector.extract_strided_slice %265 {offsets = [4, 0, 0], sizes = [8, 16, 128], strides = [1, 1, 1]} : vector<14x16x128xf32> to vector<8x16x128xf32>
    %295 = vector.extract_strided_slice %1 {offsets = [4, 5, 0], sizes = [1, 1, 128], strides = [1, 1, 1]} : vector<7x7x128xf32> to vector<1x1x128xf32>
    %296 = vector.shape_cast %295 : vector<1x1x128xf32> to vector<128xf32>
    %297 = vector.shape_cast %296 : vector<128xf32> to vector<1x1x128xf32>
    %298 = vector.broadcast %297 : vector<1x1x128xf32> to vector<8x16x128xf32>
    %299 = arith.mulf %294, %298 : vector<8x16x128xf32>
    %300 = arith.addf %293, %299 : vector<8x16x128xf32>
    %301 = vector.extract_strided_slice %265 {offsets = [5, 0, 0], sizes = [8, 16, 128], strides = [1, 1, 1]} : vector<14x16x128xf32> to vector<8x16x128xf32>
    %302 = vector.extract_strided_slice %1 {offsets = [5, 5, 0], sizes = [1, 1, 128], strides = [1, 1, 1]} : vector<7x7x128xf32> to vector<1x1x128xf32>
    %303 = vector.shape_cast %302 : vector<1x1x128xf32> to vector<128xf32>
    %304 = vector.shape_cast %303 : vector<128xf32> to vector<1x1x128xf32>
    %305 = vector.broadcast %304 : vector<1x1x128xf32> to vector<8x16x128xf32>
    %306 = arith.mulf %301, %305 : vector<8x16x128xf32>
    %307 = arith.addf %300, %306 : vector<8x16x128xf32>
    %308 = vector.extract_strided_slice %265 {offsets = [6, 0, 0], sizes = [8, 16, 128], strides = [1, 1, 1]} : vector<14x16x128xf32> to vector<8x16x128xf32>
    %309 = vector.extract_strided_slice %1 {offsets = [6, 5, 0], sizes = [1, 1, 128], strides = [1, 1, 1]} : vector<7x7x128xf32> to vector<1x1x128xf32>
    %310 = vector.shape_cast %309 : vector<1x1x128xf32> to vector<128xf32>
    %311 = vector.shape_cast %310 : vector<128xf32> to vector<1x1x128xf32>
    %312 = vector.broadcast %311 : vector<1x1x128xf32> to vector<8x16x128xf32>
    %313 = arith.mulf %308, %312 : vector<8x16x128xf32>
    %314 = arith.addf %307, %313 : vector<8x16x128xf32>
    %c0_15 = arith.constant 0 : index
    %315 = arith.index_cast %0 : i32 to index
    %c6 = arith.constant 6 : index
    %c0_16 = arith.constant 0 : index
    %316 = vector.load %arg2[%c0_15, %315, %c6, %c0_16] : memref<1x22x22x128xf32, #tpu.memory_space<vmem>>, vector<1x14x16x128xf32>
    %317 = vector.shape_cast %316 : vector<1x14x16x128xf32> to vector<14x16x128xf32>
    %318 = vector.extract_strided_slice %317 {offsets = [0, 0, 0], sizes = [8, 16, 128], strides = [1, 1, 1]} : vector<14x16x128xf32> to vector<8x16x128xf32>
    %319 = vector.extract_strided_slice %1 {offsets = [0, 6, 0], sizes = [1, 1, 128], strides = [1, 1, 1]} : vector<7x7x128xf32> to vector<1x1x128xf32>
    %320 = vector.shape_cast %319 : vector<1x1x128xf32> to vector<128xf32>
    %321 = vector.shape_cast %320 : vector<128xf32> to vector<1x1x128xf32>
    %322 = vector.broadcast %321 : vector<1x1x128xf32> to vector<8x16x128xf32>
    %323 = arith.mulf %318, %322 : vector<8x16x128xf32>
    %324 = arith.addf %314, %323 : vector<8x16x128xf32>
    %325 = vector.extract_strided_slice %317 {offsets = [1, 0, 0], sizes = [8, 16, 128], strides = [1, 1, 1]} : vector<14x16x128xf32> to vector<8x16x128xf32>
    %326 = vector.extract_strided_slice %1 {offsets = [1, 6, 0], sizes = [1, 1, 128], strides = [1, 1, 1]} : vector<7x7x128xf32> to vector<1x1x128xf32>
    %327 = vector.shape_cast %326 : vector<1x1x128xf32> to vector<128xf32>
    %328 = vector.shape_cast %327 : vector<128xf32> to vector<1x1x128xf32>
    %329 = vector.broadcast %328 : vector<1x1x128xf32> to vector<8x16x128xf32>
    %330 = arith.mulf %325, %329 : vector<8x16x128xf32>
    %331 = arith.addf %324, %330 : vector<8x16x128xf32>
    %332 = vector.extract_strided_slice %317 {offsets = [2, 0, 0], sizes = [8, 16, 128], strides = [1, 1, 1]} : vector<14x16x128xf32> to vector<8x16x128xf32>
    %333 = vector.extract_strided_slice %1 {offsets = [2, 6, 0], sizes = [1, 1, 128], strides = [1, 1, 1]} : vector<7x7x128xf32> to vector<1x1x128xf32>
    %334 = vector.shape_cast %333 : vector<1x1x128xf32> to vector<128xf32>
    %335 = vector.shape_cast %334 : vector<128xf32> to vector<1x1x128xf32>
    %336 = vector.broadcast %335 : vector<1x1x128xf32> to vector<8x16x128xf32>
    %337 = arith.mulf %332, %336 : vector<8x16x128xf32>
    %338 = arith.addf %331, %337 : vector<8x16x128xf32>
    %339 = vector.extract_strided_slice %317 {offsets = [3, 0, 0], sizes = [8, 16, 128], strides = [1, 1, 1]} : vector<14x16x128xf32> to vector<8x16x128xf32>
    %340 = vector.extract_strided_slice %1 {offsets = [3, 6, 0], sizes = [1, 1, 128], strides = [1, 1, 1]} : vector<7x7x128xf32> to vector<1x1x128xf32>
    %341 = vector.shape_cast %340 : vector<1x1x128xf32> to vector<128xf32>
    %342 = vector.shape_cast %341 : vector<128xf32> to vector<1x1x128xf32>
    %343 = vector.broadcast %342 : vector<1x1x128xf32> to vector<8x16x128xf32>
    %344 = arith.mulf %339, %343 : vector<8x16x128xf32>
    %345 = arith.addf %338, %344 : vector<8x16x128xf32>
    %346 = vector.extract_strided_slice %317 {offsets = [4, 0, 0], sizes = [8, 16, 128], strides = [1, 1, 1]} : vector<14x16x128xf32> to vector<8x16x128xf32>
    %347 = vector.extract_strided_slice %1 {offsets = [4, 6, 0], sizes = [1, 1, 128], strides = [1, 1, 1]} : vector<7x7x128xf32> to vector<1x1x128xf32>
    %348 = vector.shape_cast %347 : vector<1x1x128xf32> to vector<128xf32>
    %349 = vector.shape_cast %348 : vector<128xf32> to vector<1x1x128xf32>
    %350 = vector.broadcast %349 : vector<1x1x128xf32> to vector<8x16x128xf32>
    %351 = arith.mulf %346, %350 : vector<8x16x128xf32>
    %352 = arith.addf %345, %351 : vector<8x16x128xf32>
    %353 = vector.extract_strided_slice %317 {offsets = [5, 0, 0], sizes = [8, 16, 128], strides = [1, 1, 1]} : vector<14x16x128xf32> to vector<8x16x128xf32>
    %354 = vector.extract_strided_slice %1 {offsets = [5, 6, 0], sizes = [1, 1, 128], strides = [1, 1, 1]} : vector<7x7x128xf32> to vector<1x1x128xf32>
    %355 = vector.shape_cast %354 : vector<1x1x128xf32> to vector<128xf32>
    %356 = vector.shape_cast %355 : vector<128xf32> to vector<1x1x128xf32>
    %357 = vector.broadcast %356 : vector<1x1x128xf32> to vector<8x16x128xf32>
    %358 = arith.mulf %353, %357 : vector<8x16x128xf32>
    %359 = arith.addf %352, %358 : vector<8x16x128xf32>
    %360 = vector.extract_strided_slice %317 {offsets = [6, 0, 0], sizes = [8, 16, 128], strides = [1, 1, 1]} : vector<14x16x128xf32> to vector<8x16x128xf32>
    %361 = vector.extract_strided_slice %1 {offsets = [6, 6, 0], sizes = [1, 1, 128], strides = [1, 1, 1]} : vector<7x7x128xf32> to vector<1x1x128xf32>
    %362 = vector.shape_cast %361 : vector<1x1x128xf32> to vector<128xf32>
    %363 = vector.shape_cast %362 : vector<128xf32> to vector<1x1x128xf32>
    %364 = vector.broadcast %363 : vector<1x1x128xf32> to vector<8x16x128xf32>
    %365 = arith.mulf %360, %364 : vector<8x16x128xf32>
    %366 = arith.addf %359, %365 : vector<8x16x128xf32>
    %c0_17 = arith.constant 0 : index
    %c0_18 = arith.constant 0 : index
    %367 = vector.load %arg4[%c0_17, %c0_18] : memref<1x128xf32, #tpu.memory_space<vmem>>, vector<1x128xf32>
    %368 = vector.shape_cast %367 : vector<1x128xf32> to vector<128xf32>
    %369 = vector.shape_cast %368 : vector<128xf32> to vector<1x1x128xf32>
    %370 = vector.broadcast %369 : vector<1x1x128xf32> to vector<8x16x128xf32>
    %371 = arith.addf %366, %370 : vector<8x16x128xf32>
    %cst_19 = arith.constant dense<0.000000e+00> : vector<8x16xf32>
    %372 = vector.multi_reduction <add>, %371, %cst_19 [2] : vector<8x16x128xf32> to vector<8x16xf32>
    %373 = vector.shape_cast %372 : vector<8x16xf32> to vector<8x16x1xf32>
    %374 = arith.mulf %371, %371 : vector<8x16x128xf32>
    %cst_20 = arith.constant dense<0.000000e+00> : vector<8x16xf32>
    %375 = vector.multi_reduction <add>, %374, %cst_20 [2] : vector<8x16x128xf32> to vector<8x16xf32>
    %376 = vector.shape_cast %375 : vector<8x16xf32> to vector<8x16x1xf32>
    %cst_21 = arith.constant 2.500000e-01 : f32
    %377 = vector.broadcast %cst_21 : f32 to vector<8x16x1xf32>
    %378 = arith.mulf %373, %377 : vector<8x16x1xf32>
    %cst_22 = arith.constant 2.500000e-01 : f32
    %379 = vector.broadcast %cst_22 : f32 to vector<8x16x1xf32>
    %380 = arith.mulf %376, %379 : vector<8x16x1xf32>
    %381 = arith.mulf %378, %378 : vector<8x16x1xf32>
    %382 = arith.subf %380, %381 : vector<8x16x1xf32>
    %383 = vector.broadcast %378 : vector<8x16x1xf32> to vector<8x16x128xf32>
    %384 = arith.subf %371, %383 : vector<8x16x128xf32>
    %cst_23 = arith.constant 9.99999997E-7 : f32
    %385 = vector.broadcast %cst_23 : f32 to vector<8x16x1xf32>
    %386 = arith.addf %382, %385 : vector<8x16x1xf32>
    %387 = math.rsqrt %386 : vector<8x16x1xf32>
    %388 = vector.broadcast %387 : vector<8x16x1xf32> to vector<8x16x128xf32>
    %389 = arith.mulf %384, %388 : vector<8x16x128xf32>
    %390 = vector.shape_cast %389 : vector<8x16x128xf32> to vector<128x128xf32>
    %391 = arith.truncf %390 : vector<128x128xf32> to vector<128x128xbf16>
    %c0_24 = arith.constant 0 : index
    %c0_25 = arith.constant 0 : index
    %392 = vector.load %arg5[%c0_24, %c0_25] : memref<128x128xbf16, #tpu.memory_space<vmem>>, vector<128x128xbf16>
    %cst_26 = arith.constant dense<0.000000e+00> : vector<128x128xf32>
    %393 = tpu.matmul %391, %392, %cst_26 {dimension_numbers = #tpu.dot_dimension_numbers<[1], [0], [0], [1], [0, 0, 1, 1], [], []>} : vector<128x128xbf16>, vector<128x128xbf16>, vector<128x128xf32> -> vector<128x128xf32>
    %c0_27 = arith.constant 0 : index
    %c0_28 = arith.constant 0 : index
    %394 = vector.load %arg6[%c0_27, %c0_28] : memref<1x128xf32, #tpu.memory_space<vmem>>, vector<1x128xf32>
    %395 = vector.shape_cast %394 : vector<1x128xf32> to vector<128xf32>
    %396 = vector.shape_cast %395 : vector<128xf32> to vector<1x128xf32>
    %397 = vector.broadcast %396 : vector<1x128xf32> to vector<128x128xf32>
    %398 = arith.addf %393, %397 : vector<128x128xf32>
    %399 = arith.mulf %398, %398 : vector<128x128xf32>
    %400 = arith.mulf %398, %399 : vector<128x128xf32>
    %cst_29 = arith.constant 4.471500e-02 : f32
    %401 = vector.broadcast %cst_29 : f32 to vector<128x128xf32>
    %402 = arith.mulf %401, %400 : vector<128x128xf32>
    %403 = arith.addf %398, %402 : vector<128x128xf32>
    %cst_30 = arith.constant 0.797884583 : f32
    %404 = vector.broadcast %cst_30 : f32 to vector<128x128xf32>
    %405 = arith.mulf %404, %403 : vector<128x128xf32>
    %406 = math.tanh %405 : vector<128x128xf32>
    %cst_31 = arith.constant 1.000000e+00 : f32
    %407 = vector.broadcast %cst_31 : f32 to vector<128x128xf32>
    %408 = arith.addf %407, %406 : vector<128x128xf32>
    %cst_32 = arith.constant 5.000000e-01 : f32
    %409 = vector.broadcast %cst_32 : f32 to vector<128x128xf32>
    %410 = arith.mulf %409, %408 : vector<128x128xf32>
    %411 = arith.mulf %398, %410 : vector<128x128xf32>
    %412 = arith.truncf %411 : vector<128x128xf32> to vector<128x128xbf16>
    %c0_33 = arith.constant 0 : index
    %c0_34 = arith.constant 0 : index
    %413 = vector.load %arg7[%c0_33, %c0_34] : memref<128x128xbf16, #tpu.memory_space<vmem>>, vector<128x128xbf16>
    %cst_35 = arith.constant dense<0.000000e+00> : vector<128x128xf32>
    %414 = tpu.matmul %412, %413, %cst_35 {dimension_numbers = #tpu.dot_dimension_numbers<[1], [0], [0], [1], [0, 0, 1, 1], [], []>} : vector<128x128xbf16>, vector<128x128xbf16>, vector<128x128xf32> -> vector<128x128xf32>
    %c0_36 = arith.constant 0 : index
    %c0_37 = arith.constant 0 : index
    %415 = vector.load %arg8[%c0_36, %c0_37] : memref<1x128xf32, #tpu.memory_space<vmem>>, vector<1x128xf32>
    %416 = vector.shape_cast %415 : vector<1x128xf32> to vector<128xf32>
    %417 = vector.shape_cast %416 : vector<128xf32> to vector<1x128xf32>
    %418 = vector.broadcast %417 : vector<1x128xf32> to vector<128x128xf32>
    %419 = arith.addf %414, %418 : vector<128x128xf32>
    %420 = vector.shape_cast %419 : vector<128x128xf32> to vector<8x16x128xf32>
    %c3_i32 = arith.constant 3 : i32
    %421 = arith.addi %0, %c3_i32 : i32
    %c0_38 = arith.constant 0 : index
    %422 = arith.index_cast %421 : i32 to index
    %c3_39 = arith.constant 3 : index
    %c0_40 = arith.constant 0 : index
    %423 = vector.load %arg2[%c0_38, %422, %c3_39, %c0_40] : memref<1x22x22x128xf32, #tpu.memory_space<vmem>>, vector<1x8x16x128xf32>
    %424 = vector.shape_cast %423 : vector<1x8x16x128xf32> to vector<8x16x128xf32>
    %425 = arith.addf %420, %424 : vector<8x16x128xf32>
    %c0_41 = arith.constant 0 : index
    %c0_42 = arith.constant 0 : index
    %c0_43 = arith.constant 0 : index
    %c0_44 = arith.constant 0 : index
    %426 = vector.load %arg9[%c0_41, %c0_42, %c0_43, %c0_44] : memref<1x8x16x128xf32, #tpu.memory_space<vmem>>, vector<1x8x16x128xf32>
    %427 = vector.shape_cast %426 : vector<1x8x16x128xf32> to vector<8x16x128xf32>
    %428 = vector.shape_cast %425 : vector<8x16x128xf32> to vector<1x8x16x128xf32>
    tpu.vector_store %arg9[%c0_41, %c0_42, %c0_43, %c0_44], %428 {strides = array<i32>} : memref<1x8x16x128xf32, #tpu.memory_space<vmem>>, vector<1x8x16x128xf32>,
    return
  }
  func.func @transform_0(%arg0: i32, %arg1: i32) -> (i32, i32, i32, i32) {
    %c0_i32 = arith.constant 0 : i32
    %c0_i32_0 = arith.constant 0 : i32
    %c0_i32_1 = arith.constant 0 : i32
    %c0_i32_2 = arith.constant 0 : i32
    return %arg0, %c0_i32, %c0_i32_0, %c0_i32_1 : i32, i32, i32, i32
  }
  func.func @transform_1(%arg0: i32, %arg1: i32) -> (i32, i32, i32) {
    %c0_i32 = arith.constant 0 : i32
    %c0_i32_0 = arith.constant 0 : i32
    %c0_i32_1 = arith.constant 0 : i32
    %c0_i32_2 = arith.constant 0 : i32
    return %c0_i32, %c0_i32_0, %c0_i32_1 : i32, i32, i32
  }
  func.func @transform_2(%arg0: i32, %arg1: i32) -> (i32, i32) {
    %c0_i32 = arith.constant 0 : i32
    %c0_i32_0 = arith.constant 0 : i32
    %c0_i32_1 = arith.constant 0 : i32
    return %c0_i32, %c0_i32_0 : i32, i32
  }
  func.func @transform_3(%arg0: i32, %arg1: i32) -> (i32, i32) {
    %c0_i32 = arith.constant 0 : i32
    %c0_i32_0 = arith.constant 0 : i32
    %c0_i32_1 = arith.constant 0 : i32
    return %c0_i32, %c0_i32_0 : i32, i32
  }
  func.func @transform_4(%arg0: i32, %arg1: i32) -> (i32, i32) {
    %c0_i32 = arith.constant 0 : i32
    %c0_i32_0 = arith.constant 0 : i32
    %c0_i32_1 = arith.constant 0 : i32
    return %c0_i32, %c0_i32_0 : i32, i32
  }
  func.func @transform_5(%arg0: i32, %arg1: i32) -> (i32, i32) {
    %c0_i32 = arith.constant 0 : i32
    %c0_i32_0 = arith.constant 0 : i32
    %c0_i32_1 = arith.constant 0 : i32
    return %c0_i32, %c0_i32_0 : i32, i32
  }
  func.func @transform_6(%arg0: i32, %arg1: i32) -> (i32, i32) {
    %c0_i32 = arith.constant 0 : i32
    %c0_i32_0 = arith.constant 0 : i32
    %c0_i32_1 = arith.constant 0 : i32
    return %c0_i32, %c0_i32_0 : i32, i32
  }
  func.func @transform_7(%arg0: i32, %arg1: i32) -> (i32, i32, i32, i32) {
    %c0_i32 = arith.constant 0 : i32
    %c0_i32_0 = arith.constant 0 : i32
    %c0_i32_1 = arith.constant 0 : i32
    return %arg0, %arg1, %c0_i32, %c0_i32_0 : i32, i32, i32, i32
  }
}

</mosaic_0001>

<bundles_post_ra>
// kernel: tpu_custom_call.1
= control target key start
LH: loop header
LB: loop body
LE: loop exit
PB: predicated region body
PF: predicated region fallthrough
CT: control target
= control target key end

     0   :  { %12 = vsyncpa [#allocation3], 0  ;;  %s7041_s0 = inlined_call_operand.vmem [shape: f32[2,22,22,128], index: 0, kind: input, shape index: {}]   ;;  %s7042_s1 = inlined_call_operand.vmem [shape: f32[7,7,128], index: 1, kind: input, shape index: {}]   ;;  %s7043_s2 = inlined_call_operand.vmem [shape: f32[1,128], index: 2, kind: input, shape index: {}]   ;;  %s7044_s3 = inlined_call_operand.vmem [shape: bf16[128,128], index: 3, kind: input, shape index: {}]   ;;  %s7045_s4 = inlined_call_operand.vmem [shape: f32[1,128], index: 4, kind: input, shape index: {}]   ;;  %s7046_s5 = inlined_call_operand.vmem [shape: bf16[128,128], index: 5, kind: input, shape index: {}]   ;;  %s7047_s6 = inlined_call_operand.vmem [shape: f32[1,128], index: 6, kind: input, shape index: {}]   ;;  %s7048_s7 = inlined_call_operand.hbm [shape: f32[2,16,16,128], index: 7, kind: output, shape index: {}]  }
   0x1   :  { %14 = vsyncpa [#allocation3 + $0x1], 0  ;;  %s3722_s24 = smov 0   ;;  %s3724_s25 = smov 0  }
   0x2   :  { %s3726_s26 = smov 0   ;;  %s3728_s27 = smov 0  }
   0x3   :  { %s3730_s28 = smov 0   ;;  %s3732_s29 = smov 0  }
   0x4   :  { %s3734_s30 = smov 0   ;;  %s3736_s8 = smov 0  }
   0x5 LB: > { %s3140_s9 = sadd.s32 4294967295, %s3677_s8   ;;  %s3141_s10 = sadd.s32 4294967294, %s3677_s8   ;;  %s3677_s8 = sphi %s3736_s8, %s20_s8   ;;  %s3673_s30 = sphi %s3734_s30, %s8645_s30   ;;  %s3669_s29 = sphi %s3732_s29, %s8644_s29   ;;  %s3665_s28 = sphi %s3730_s28, %s8643_s28   ;;  %s3661_s27 = sphi %s3728_s27, %s8642_s27   ;;  %s3657_s26 = sphi %s3726_s26, %s8641_s26   ;;  %s3653_s25 = sphi %s3724_s25, %s8640_s25   ;;  %s3649_s24 = sphi %s3722_s24, %s8639_s24  }
   0x6   : > { %s29_s11 = sadd.s32 1, %s3669_s29  ;;  %s32_s12 = sadd.s32 1, %s3673_s30 }
   0x7   : > { %p30_p0 = scmp.ge.s32.totalorder %s29_s11, 2  ;;  %p203_p1 = scmp.ne.s32.totalorder %s3657_s26, %s3653_s25 }
   0x8   : > { %p204_p2 = scmp.eq.s32.totalorder %s3140_s9, 3  ;;  %p209_p5 = scmp.ne.s32.totalorder %s3653_s25, %s3649_s24 }
   0x9   : > { %s8647_s11 = smov (%p30_p0, %s29_s11), 0  ;;  %s8649_s12 = smov (!%p30_p0, %s32_s12), %s3673_s30 }
   0xa   : > { %7637 = sst [smem:[#allocation5_spill]] %s8647_s11  ;;  %s189_s13 = ssub.s32 %s3669_s29, %s8647_s11 }
   0xb   : > { %p3773_p3 = por %p204_p2, %p203_p1  ;;  %p34_p4 = scmp.ge.s32.totalorder %s8649_s12, 2 }
   0xc   : > { %p210_p6 = scmp.eq.s32.totalorder %s3141_s10, 3  ;;  %p3144_p7 = scmp.ge.s32.totalorder %s3677_s8, 1 }
   0xd   : > { %s8651_s12 = smov (%p34_p4, %s8649_s12), 0  ;;  %p254_p9 = scmp.lt.s32.totalorder %s3677_s8, 5 }
   0xe   : > { %7639 = sst [smem:[#allocation6_spill]] %s8651_s12  ;;  %p3782_p8 = por %p210_p6, %p209_p5 }
   0xf   : > { %s188_s16 = ssub.s32 %s3673_s30, %s8651_s12  ;;  %s193_s17 = sadd.s32 1, %s3657_s26 }
  0x10   : > { %s190_s18 = sor.u32 %s189_s13, %s188_s16  ;;  %p255_p10 = pnand %p3144_p7, %p254_p9 }
  0x11   : > { %p191_p11 = scmp.eq.s32.totalorder %s190_s18, 0 }
  0x12   : > { %258 = sbr.rel (%p255_p10) target bundleno = 1164 (0x48c), region = 48 }
  0x13   : > { %s3791_s19 = scalar_select %p191_p11, %s3657_s26, %s193_s17  }
  0x17   : > { %p286_p12 = scmp.lt.s32.totalorder %s3665_s28, 1  ;;  %v331_v0 = vlaneseq  ;;  %s3148_s20 = smul.u32 192, %s3661_s27  ;;  %v3799_v1 = vld [vmem:[%s7042_s1] sm:$0x7f]  ;;  %v3804_v2 = vld [vmem:[%s7042_s1 + $0x8] sm:$0x7f] }
  0x18   : > { %v3811_v4 = vld [vmem:[%s7042_s1 + $0x10] sm:$0x7f]  ;;  %v3816_v5 = vld [vmem:[%s7042_s1 + $0x18] sm:$0x7f]  ;;  %v3822_v7 = vld [vmem:[%s7042_s1 + $0x20] sm:$0x7f] }
  0x19   : > { %s287_s21 = scalar_select %p286_p12, %s3665_s28, 1  ;;  %v3806_v3 = vshrl.u32 %v331_v0, 7  ;;  %v3830_v8 = vld [vmem:[%s7042_s1 + $0x28] sm:$0x7f]  ;;  %v3870_v21 = vld [vmem:[%s7042_s1 + $0x30] sm:$0x7f] }
  0x1a   : > { %s283_s13 = sand.u32 1, %s3653_s25   ;;  %s3189_s18 = sshll.u32 %s3665_s28, 5 }
  0x1b   : > { %s3290_s17 = smul.u32 528, %s287_s21  ;;  %v333_v6 = vsub.s32 0, %v3806_v3  ;;  %v613_v26 = vsub.s32 1, %v3806_v3  ;;  %v1733_v44 = vsub.s32 5, %v3806_v3  ;;  %v893_v53 = vsub.s32 2, %v3806_v3  ;;  %s6990_s16 = scalar_lea.sflag [#allocation3], %s283_s13 }
  0x1c   : > { %v2013_v55 = vsub.s32 6, %v3806_v3 }
  0x1d   : > { %s290_s11 = scalar_lea.vmem %s7041_s0, %s3290_s17  ;;  %v3833_v9 = vrot.slane %v3799_v1, %v333_v6  ;;  %v3836_v10 = vrot.slane %v3804_v2, %v333_v6  ;;  %v3839_v11 = vrot.slane %v3811_v4, %v333_v6  ;;  %v3844_v12 = vrot.slane %v3816_v5, %v333_v6  ;;  %s3193_s17 = sshll.u32 %s3661_s27, 4 }
  0x1e   : > { %s3841_s12 = scalar_lea.vmem %s290_s11, %s3148_s20  ;;  %v3865_v20 = vrot.slane %v3822_v7, %v333_v6  ;;  %v3878_v25 = vrot.slane %v3830_v8, %v333_v6  ;;  %v3887_v30 = vrot.slane %v3870_v21, %v333_v6  ;;  %v3893_v34 = vrot.slane %v3799_v1, %v613_v26  ;;  %s3145_s20 = sshll.u32 %s283_s13, 7 }
  0x1f   : > { %7641 = vst [vmem:[#allocation7_spill] sm:$0xff] %v3833_v9  ;;  %7642 = vst [vmem:[#allocation8_spill] sm:$0xff] %v3836_v10  ;;  %v3847_v13 = vld [vmem:[%s3841_s12 + $0x18] sm:$0xff]  ;;  %v3850_v14 = vld [vmem:[%s3841_s12 + $0x30] sm:$0xff]  ;;  %v3900_v38 = vrot.slane %v3804_v2, %v613_v26  ;;  %v3908_v42 = vrot.slane %v3811_v4, %v613_v26  ;;  %v3917_v47 = vrot.slane %v3816_v5, %v613_v26  ;;  %s6933_s21 = scalar_lea.vmem [#allocation2], %s3145_s20  ;;  %s3055_s22 = sadd.s32 %s3193_s17, %s3189_s18 }
  0x20   : > { %7643 = vst [vmem:[#allocation9_spill] sm:$0xff] %v3839_v11  ;;  %7644 = vst [vmem:[#allocation10_spill] sm:$0xff] %v3844_v12  ;;  %v3853_v15 = vld [vmem:[%s3841_s12 + $0x48] sm:$0xff]  ;;  %v3856_v16 = vld [vmem:[%s3841_s12 + $0x60] sm:$0xff]  ;;  %v337_v17 = vmul.f32 %v3833_v9, %v3847_v13  ;;  %v373_v18 = vmul.f32 %v3836_v10, %v3850_v14  ;;  %v3925_v51 = vrot.slane %v3822_v7, %v613_v26  ;;  %s3190_s27 = sshll.u32 %s3055_s22, 7  ;;  %s3058_s28 = sshll.u32 %s6933_s21, 4  ;;  %s6984_s28 = int_to_ptr.vmem [resolvable:$true] %s3058_s28 }
  0x21   : > { %v409_v19 = vmul.f32 %v3839_v11, %v3853_v15  ;;  %7645 = vst [vmem:[#allocation11_spill] sm:$0xff] %v3865_v20  ;;  %v3873_v22 = vld [vmem:[%s3841_s12 + $0x78] sm:$0xff]  ;;  %v445_v24 = vmul.f32 %v3844_v12, %v3856_v16  ;;  %7646 = vst [vmem:[#allocation12_spill] sm:$0xff] %v3878_v25  ;;  %v3882_v27 = vld [vmem:[%s3841_s12 + $0x90] sm:$0xff]  ;;  %v3932_v54 = vrot.slane %v3799_v1, %v1733_v44  ;;  %s6982_s10 = scalar_lea.hbm %s7048_s7, %s3190_s27  ;;  %s3679_s11 = smov [#allocation2]  }
  0x22   : > { %v389_v23 = vadd.f32 %v373_v18, %v337_v17  ;;  %v481_v29 = vmul.f32 %v3865_v20, %v3873_v22  ;;  %7647 = vst [vmem:[#allocation13_spill] sm:$0xff] %v3887_v30  ;;  %v317_v31 = vld [vmem:[%s3841_s12 + $0xa8] sm:$0xff]  ;;  %v517_v33 = vmul.f32 %v3878_v25, %v3882_v27  ;;  %7648 = vst [vmem:[#allocation14_spill] sm:$0xff] %v3893_v34  ;;  %v3896_v35 = vld [vmem:[%s3841_s12 + $0x19] sm:$0xff]  ;;  %s3589_s20 = sshll.u32 %s3679_s11, 4  ;;  %s3590_s20 = int_to_ptr.vmem [resolvable:$false] %s3589_s20 }
  0x23   : > { %v553_v37 = vmul.f32 %v3887_v30, %v317_v31  ;;  %7649 = vst [vmem:[#allocation15_spill] sm:$0xff] %v3900_v38  ;;  %v3903_v39 = vld [vmem:[%s3841_s12 + $0x31] sm:$0xff]  ;;  %v617_v41 = vmul.f32 %v3893_v34, %v3896_v35  ;;  %7650 = vst [vmem:[#allocation16_spill] sm:$0xff] %v3908_v42  ;;  %v3911_v43 = vld [vmem:[%s3841_s12 + $0x49] sm:$0xff]  ;;  %v3938_v58 = vrot.slane %v3830_v8, %v613_v26  ;;  %s3591_s17 = scalar_lea.vmem %s3590_s20, 4096  ;;  %p3592_p2 = scmp.lt.s32.totalorder %s6984_s28, %s3590_s20 }
  0x24   : > { %v425_v28 = vadd.f32 %v409_v19, %v389_v23  ;;  %v653_v46 = vmul.f32 %v3900_v38, %v3903_v39  ;;  %7651 = vst [vmem:[#allocation17_spill] sm:$0xff] %v3917_v47  ;;  %v3920_v48 = vld [vmem:[%s3841_s12 + $0x61] sm:$0xff]  ;;  %v689_v50 = vmul.f32 %v3908_v42, %v3911_v43  ;;  %7652 = vst [vmem:[#allocation18_spill] sm:$0xff] %v3925_v51  ;;  %v3928_v52 = vld [vmem:[%s3841_s12 + $0x79] sm:$0xff] }
  0x25   : > { %7653 = vst [vmem:[#allocation19_spill] sm:$0xff] %v3932_v54  ;;  %v725_v57 = vmul.f32 %v3917_v47, %v3920_v48  ;;  %7654 = vst [vmem:[#allocation20_spill] sm:$0xff] %v3938_v58  ;;  %v3941_v59 = vrot.slane %v3804_v2, %v1733_v44  ;;  %v3944_v60 = vld [vmem:[%s3841_s12 + $0x91] sm:$0xff]  ;;  %v3947_v61 = vrot.slane %v3870_v21, %v613_v26  ;;  %v597_v6 = vld [vmem:[%s3841_s12 + $0xa9] sm:$0xff] }
  0x26   : > { %v461_v32 = vadd.f32 %v445_v24, %v425_v28  ;;  %v3950_v62 = vrot.slane %v3811_v4, %v1733_v44  ;;  %v3953_v63 = vrot.slane %v3816_v5, %v1733_v44  ;;  %v3956_v0 = vrot.slane %v3822_v7, %v1733_v44 }
  0x27   : > { %7655 = vst [vmem:[#allocation21_spill] sm:$0xff] %v3941_v59  ;;  %v761_v18 = vmul.f32 %v3925_v51, %v3928_v52  ;;  %v3962_v19 = vrot.slane %v3830_v8, %v1733_v44  ;;  %v3965_v23 = vrot.slane %v3870_v21, %v1733_v44  ;;  %v3968_v24 = vrot.slane %v3799_v1, %v2013_v55 }
  0x28   : > { %v497_v36 = vadd.f32 %v481_v29, %v461_v32  ;;  %7656 = vst [vmem:[#allocation22_spill] sm:$0xff] %v3950_v62  ;;  %7657 = vst [vmem:[#allocation23_spill] sm:$0xff] %v3953_v63  ;;  %v797_v28 = vmul.f32 %v3938_v58, %v3944_v60  ;;  %v3973_v29 = vrot.slane %v3799_v1, %v893_v53  ;;  %v303_v32 = vld [vmem:[%s3841_s12] sm:$0xff] }
  0x29   : > { %7658 = vst [vmem:[#allocation24_spill] sm:$0xff] %v3956_v0  ;;  %7659 = vst [vmem:[#allocation25_spill] sm:$0xff] %v3962_v19  ;;  %v3976_v31 = vrot.slane %v3804_v2, %v2013_v55 }
  0x2a   : > { %v533_v40 = vadd.f32 %v517_v33, %v497_v36  ;;  %7660 = vst [vmem:[#allocation26_spill] sm:$0xff] %v3965_v23  ;;  %7661 = vst [vmem:[#allocation27_spill] sm:$0xff] %v3968_v24  ;;  %v833_v33 = vmul.f32 %v3947_v61, %v597_v6  ;;  %v3981_v36 = vld [vmem:[%s3841_s12 + $0x1a] sm:$0xff] }
  0x2b   : > { %7662 = vst [vmem:[#allocation28_spill] sm:$0xff] %v3973_v29  ;;  %7663 = vst [vmem:[#allocation29_spill] sm:$0xff] %v3976_v31  ;;  %v897_v6 = vmul.f32 %v3973_v29, %v3981_v36  ;;  %v4089_v31 = vld [vmem:[%s3841_s12 + $0x7b] sm:$0xff] }
  0x2c   : > { %v569_v45 = vadd.f32 %v553_v37, %v533_v40  ;;  %7664 = vst [vmem:[#allocation30_spill] sm:$0xff] %v3981_v36  ;;  %v3984_v37 = vrot.slane %v3811_v4, %v2013_v55  ;;  %v3987_v40 = vrot.slane %v3816_v5, %v2013_v55  ;;  %v4032_v36 = vrot.slane %v3830_v8, %v893_v53 }
  0x2d   : > { %7690 = vst [vmem:[#allocation56_spill] sm:$0xff] %v4089_v31 }
  0x2e   : > { %v633_v49 = vadd.f32 %v617_v41, %v569_v45  ;;  %7665 = vst [vmem:[#allocation31_spill] sm:$0xff] %v3984_v37  ;;  %7666 = vst [vmem:[#allocation32_spill] sm:$0xff] %v3987_v40  ;;  %v3990_v41 = vrot.slane %v3822_v7, %v2013_v55  ;;  %v3993_v45 = vrot.slane %v3804_v2, %v893_v53  ;;  %v4035_v37 = vld [vmem:[%s3841_s12 + $0x7a] sm:$0xff] }
  0x2f   : > { %v4029_v40 = vrot.slane %v3822_v7, %v893_v53  ;;  %7677 = vst [vmem:[#allocation43_spill] sm:$0xff] %v4032_v36  ;;  %7678 = vst [vmem:[#allocation44_spill] sm:$0xff] %v4035_v37 }
  0x30   : > { %v669_v56 = vadd.f32 %v653_v46, %v633_v49  ;;  %7667 = vst [vmem:[#allocation33_spill] sm:$0xff] %v3990_v41  ;;  %7668 = vst [vmem:[#allocation34_spill] sm:$0xff] %v3993_v45  ;;  %v3996_v46 = vrot.slane %v3830_v8, %v2013_v55  ;;  %v3999_v49 = vrot.slane %v3870_v21, %v2013_v55 }
  0x31   : > { %v4016_v55 = vrot.slane %v3816_v5, %v893_v53  ;;  %7676 = vst [vmem:[#allocation42_spill] sm:$0xff] %v4029_v40 }
  0x32   : > { %v705_v17 = vadd.f32 %v689_v50, %v669_v56  ;;  %7669 = vst [vmem:[#allocation35_spill] sm:$0xff] %v3996_v46  ;;  %7670 = vst [vmem:[#allocation36_spill] sm:$0xff] %v3999_v49  ;;  %v4002_v50 = vld [vmem:[%s3841_s12 + $0x32] sm:$0xff]  ;;  %v335_v56 = vmul.f32 %v3833_v9, %v303_v32  ;;  %v1173_v49 = vsub.s32 3, %v3806_v3 }
  0x33   : > { %7671 = vst [vmem:[#allocation37_spill] sm:$0xff] %v4002_v50  ;;  %7674 = vst [vmem:[#allocation40_spill] sm:$0xff] %v4016_v55  ;;  %v933_v46 = vmul.f32 %v3993_v45, %v4002_v50  ;;  %v4047_v50 = vrot.slane %v3870_v21, %v893_v53 }
  0x34   : > { %v741_v26 = vadd.f32 %v725_v57, %v705_v17  ;;  %v4008_v17 = vrot.slane %v3811_v4, %v893_v53  ;;  %v4050_v45 = vrot.slane %v3799_v1, %v1173_v49  ;;  %v515_v53 = vmul.f32 %v3878_v25, %v3873_v22  ;;  %v4080_v22 = vld [vmem:[%s3841_s12 + $0x63] sm:$0xff] }
  0x35   : > { %7680 = vst [vmem:[#allocation46_spill] sm:$0xff] %v4047_v50  ;;  %7688 = vst [vmem:[#allocation54_spill] sm:$0xff] %v4080_v22 }
  0x36   : > { %v777_v44 = vadd.f32 %v761_v18, %v741_v26  ;;  %7672 = vst [vmem:[#allocation38_spill] sm:$0xff] %v4008_v17  ;;  %v371_v18 = vmul.f32 %v3836_v10, %v3847_v13  ;;  %v4013_v26 = vld [vmem:[%s3841_s12 + $0x4a] sm:$0xff]  ;;  %v443_v13 = vmul.f32 %v3844_v12, %v3853_v15  ;;  %7681 = vst [vmem:[#allocation47_spill] sm:$0xff] %v4050_v45 }
  0x37   : > { %7673 = vst [vmem:[#allocation39_spill] sm:$0xff] %v4013_v26 }
  0x38   : > { %v813_v57 = vadd.f32 %v797_v28, %v777_v44  ;;  %v407_v28 = vmul.f32 %v3839_v11, %v3850_v14  ;;  %v4022_v44 = vld [vmem:[%s3841_s12 + $0x62] sm:$0xff]  ;;  %v387_v41 = vadd.f32 %v371_v18, %v335_v56  ;;  %v4038_v14 = vld [vmem:[%s3841_s12 + $0x92] sm:$0xff]  ;;  %v479_v18 = vmul.f32 %v3865_v20, %v3856_v16 }
  0x39   : > { %7675 = vst [vmem:[#allocation41_spill] sm:$0xff] %v4022_v44  ;;  %7679 = vst [vmem:[#allocation45_spill] sm:$0xff] %v4038_v14  ;;  %v1005_v15 = vmul.f32 %v4016_v55, %v4022_v44  ;;  %v4058_v16 = vrot.slane %v3804_v2, %v1173_v49  ;;  %v1041_v44 = vmul.f32 %v4029_v40, %v4035_v37 }
  0x3a   : > { %v849_v32 = vadd.f32 %v833_v33, %v813_v57  ;;  %v969_v57 = vmul.f32 %v4008_v17, %v4013_v26  ;;  %v423_v56 = vadd.f32 %v407_v28, %v387_v41  ;;  %v4055_v41 = vld [vmem:[%s3841_s12 + $0x1b] sm:$0xff]  ;;  %v1077_v55 = vmul.f32 %v4032_v36, %v4038_v14  ;;  %v4067_v17 = vld [vmem:[%s3841_s12 + $0x33] sm:$0xff] }
  0x3b   : > { %7682 = vst [vmem:[#allocation48_spill] sm:$0xff] %v4055_v41  ;;  %7683 = vst [vmem:[#allocation49_spill] sm:$0xff] %v4058_v16  ;;  %v4083_v37 = vrot.slane %v3822_v7, %v1173_v49  ;;  %v551_v36 = vmul.f32 %v3887_v30, %v3882_v27  ;;  %v1177_v24 = vmul.f32 %v4050_v45, %v4055_v41 }
  0x3c   : > { %v913_v33 = vadd.f32 %v897_v6, %v849_v32  ;;  %v1453_v6 = vsub.s32 4, %v3806_v3  ;;  %v877_v32 = vld [vmem:[%s3841_s12 + $0xaa] sm:$0xff]  ;;  %v459_v28 = vadd.f32 %v443_v13, %v423_v56  ;;  %7684 = vst [vmem:[#allocation50_spill] sm:$0xff] %v4067_v17  ;;  %v4070_v3 = vrot.slane %v3811_v4, %v1173_v49  ;;  %v583_v13 = vld [vmem:[%s3841_s12 + $0x1] sm:$0xff] }
  0x3d   : > { %v4077_v56 = vld [vmem:[%s3841_s12 + $0x4b] sm:$0xff]  ;;  %7689 = vst [vmem:[#allocation55_spill] sm:$0xff] %v4083_v37  ;;  %v1113_v40 = vmul.f32 %v4047_v50, %v877_v32  ;;  %v1213_v27 = vmul.f32 %v4058_v16, %v4067_v17  ;;  %v615_v50 = vmul.f32 %v3893_v34, %v583_v13  ;;  %v4128_v13 = vld [vmem:[%s3841_s12 + $0x34] sm:$0xff] }
  0x3e   : > { %v949_v26 = vadd.f32 %v933_v46, %v913_v33  ;;  %7685 = vst [vmem:[#allocation51_spill] sm:$0xff] %v4070_v3  ;;  %v4073_v46 = vrot.slane %v3816_v5, %v1173_v49  ;;  %7687 = vst [vmem:[#allocation53_spill] sm:$0xff] %v4077_v56  ;;  %v495_v14 = vadd.f32 %v479_v18, %v459_v28  ;;  %v4100_v18 = vld [vmem:[%s3841_s12 + $0x93] sm:$0xff]  ;;  %v1157_v28 = vld [vmem:[%s3841_s12 + $0xab] sm:$0xff] }
  0x3f   : > { %7693 = vst [vmem:[#allocation59_spill] sm:$0xff] %v4100_v18  ;;  %v4108_v41 = vmul.f32 %v4070_v3, %v4077_v56  ;;  %7697 = vst [vmem:[#allocation63_spill] sm:$0xff] %v4128_v13  ;;  %v1437_v56 = vld [vmem:[%s3841_s12 + $0xac] sm:$0xff]  ;;  %v4190_v3 = vld [vmem:[%s3841_s12 + $0x35] sm:$0xff] }
  0x40   : > { %7686 = vst [vmem:[#allocation52_spill] sm:$0xff] %v4073_v46  ;;  %v985_v33 = vadd.f32 %v969_v57, %v949_v26  ;;  %v4094_v26 = vrot.slane %v3830_v8, %v1173_v49  ;;  %v4097_v57 = vrot.slane %v3870_v21, %v1173_v49  ;;  %v531_v32 = vadd.f32 %v515_v53, %v495_v14  ;;  %v4125_v53 = vld [vmem:[%s3841_s12 + $0x1c] sm:$0xff]  ;;  %v4193_v16 = vld [vmem:[%s3841_s12 + $0x4d] sm:$0xff] }
  0x41   : > { %v4112_v49 = vmul.f32 %v4073_v46, %v4080_v22  ;;  %v4122_v14 = vmul.f32 %v4083_v37, %v4089_v31  ;;  %7696 = vst [vmem:[#allocation62_spill] sm:$0xff] %v4125_v53  ;;  %v4143_v31 = vld [vmem:[%s3841_s12 + $0x64] sm:$0xff]  ;;  %v4146_v37 = vrot.slane %v3811_v4, %v1453_v6  ;;  %v687_v4 = vmul.f32 %v3908_v42, %v3903_v39  ;;  %v4169_v46 = vld [vmem:[%s3841_s12 + $0x94] sm:$0xff] }
  0x42   : > { %7691 = vst [vmem:[#allocation57_spill] sm:$0xff] %v4094_v26  ;;  %7692 = vst [vmem:[#allocation58_spill] sm:$0xff] %v4097_v57  ;;  %v1021_v29 = vadd.f32 %v1005_v15, %v985_v33  ;;  %v4115_v15 = vrot.slane %v3799_v1, %v1453_v6  ;;  %v4118_v33 = vrot.slane %v3804_v2, %v1453_v6 }
  0x43   : > { %v567_v22 = vadd.f32 %v551_v36, %v531_v32  ;;  %v651_v1 = vmul.f32 %v3900_v38, %v3896_v35  ;;  %v4134_v2 = vmul.f32 %v4094_v26, %v4100_v18  ;;  %7699 = vst [vmem:[#allocation65_spill] sm:$0xff] %v4143_v31  ;;  %7700 = vst [vmem:[#allocation66_spill] sm:$0xff] %v4146_v37  ;;  %v4152_v35 = vld [vmem:[%s3841_s12 + $0x20] sm:$0xff]  ;;  %v4163_v26 = vld [vmem:[%s3841_s12 + $0x38] sm:$0xff] }
  0x44   : > { %7694 = vst [vmem:[#allocation60_spill] sm:$0xff] %v4115_v15  ;;  %7695 = vst [vmem:[#allocation61_spill] sm:$0xff] %v4118_v33  ;;  %v1057_v17 = vadd.f32 %v1041_v44, %v1021_v29  ;;  %v4137_v29 = vmul.f32 %v4097_v57, %v1157_v28  ;;  %v4140_v44 = vld [vmem:[%s3841_s12 + $0x4c] sm:$0xff]  ;;  %v4149_v36 = vrot.slane %v3816_v5, %v1453_v6  ;;  %v4155_v18 = vld [vmem:[%s3841_s12 + $0x7c] sm:$0xff] }
  0x45   : > { %7698 = vst [vmem:[#allocation64_spill] sm:$0xff] %v4140_v44  ;;  %7702 = vst [vmem:[#allocation68_spill] sm:$0xff] %v4152_v35  ;;  %v4158_v28 = vrot.slane %v3822_v7, %v1453_v6  ;;  %v631_v57 = vadd.f32 %v615_v50, %v567_v22  ;;  %v4166_v5 = vld [vmem:[%s3841_s12 + $0x50] sm:$0xff]  ;;  %v4178_v7 = vmul.f32 %v4118_v33, %v4128_v13  ;;  %v4198_v33 = vld [vmem:[%s3841_s12 + $0x68] sm:$0xff] }
  0x46   : > { %7701 = vst [vmem:[#allocation67_spill] sm:$0xff] %v4149_v36  ;;  %v1093_v32 = vadd.f32 %v1077_v55, %v1057_v17  ;;  %7703 = vst [vmem:[#allocation69_spill] sm:$0xff] %v4155_v18  ;;  %v4174_v17 = vmul.f32 %v4115_v15, %v4125_v53  ;;  %v4181_v50 = vrot.slane %v3830_v8, %v1453_v6  ;;  %v4187_v55 = vld [vmem:[%s3841_s12 + $0x1d] sm:$0xff] }
  0x47   : > { %7704 = vst [vmem:[#allocation70_spill] sm:$0xff] %v4158_v28  ;;  %7705 = vst [vmem:[#allocation71_spill] sm:$0xff] %v4163_v26  ;;  %v4184_v39 = vrot.slane %v3870_v21, %v1453_v6  ;;  %v667_v53 = vadd.f32 %v651_v1, %v631_v57  ;;  %v723_v13 = vmul.f32 %v3917_v47, %v3911_v43  ;;  %v4201_v8 = vld [vmem:[%s3841_s12 + $0x80] sm:$0xff] }
  0x48   : > { %7706 = vst [vmem:[#allocation72_spill] sm:$0xff] %v4166_v5  ;;  %7707 = vst [vmem:[#allocation73_spill] sm:$0xff] %v4181_v50  ;;  %v1129_v22 = vadd.f32 %v1113_v40, %v1093_v32  ;;  %v338_v21 = vmul.f32 %v3833_v9, %v4152_v35  ;;  %v4207_v40 = vmul.f32 %v4146_v37, %v4140_v44  ;;  %v4214_v57 = vld [vmem:[%s3841_s12 + $0x65] sm:$0xff]  ;;  %v4225_v44 = vld [vmem:[%s3841_s12 + $0x7d] sm:$0xff] }
  0x49   : > { %7708 = vst [vmem:[#allocation74_spill] sm:$0xff] %v4184_v39  ;;  %7709 = vst [vmem:[#allocation75_spill] sm:$0xff] %v4198_v33  ;;  %v4211_v6 = vmul.f32 %v4149_v36, %v4143_v31  ;;  %v374_v43 = vmul.f32 %v3836_v10, %v4163_v26  ;;  %v410_v1 = vmul.f32 %v3839_v11, %v4166_v5  ;;  %v4228_v37 = vld [vmem:[%s3841_s12 + $0x95] sm:$0xff]  ;;  %v4251_v5 = vld [vmem:[%s3841_s12 + $0x1e] sm:$0xff] }
  0x4a   : > { %7710 = vst [vmem:[#allocation76_spill] sm:$0xff] %v4201_v8  ;;  %7712 = vst [vmem:[#allocation78_spill] sm:$0xff] %v4214_v57  ;;  %v1193_v32 = vadd.f32 %v1177_v24, %v1129_v22  ;;  %v4222_v35 = vmul.f32 %v4158_v28, %v4155_v18  ;;  %v703_v31 = vadd.f32 %v687_v4, %v667_v53  ;;  %v1717_v18 = vld [vmem:[%s3841_s12 + $0xad] sm:$0xff]  ;;  %v4254_v11 = vld [vmem:[%s3841_s12 + $0x36] sm:$0xff] }
  0x4b   : > { %7711 = vst [vmem:[#allocation77_spill] sm:$0xff] %v4211_v6  ;;  %7714 = vst [vmem:[#allocation80_spill] sm:$0xff] %v4225_v44  ;;  %v759_v36 = vmul.f32 %v3925_v51, %v3920_v48  ;;  %v4233_v6 = vld [vmem:[%s3841_s12 + $0x98] sm:$0xff]  ;;  %v4237_v24 = vmul.f32 %v4181_v50, %v4169_v46  ;;  %v4240_v22 = vmul.f32 %v4184_v39, %v1437_v56 }
  0x4c   : > { %7713 = vst [vmem:[#allocation79_spill] sm:$0xff] %v4222_v35  ;;  %7715 = vst [vmem:[#allocation81_spill] sm:$0xff] %v4228_v37  ;;  %v863_v35 = vld [vmem:[%s3841_s12 + $0x2] sm:$0xff]  ;;  %v390_v28 = vadd.f32 %v374_v43, %v338_v21  ;;  %v446_v53 = vmul.f32 %v3844_v12, %v4198_v33  ;;  %v1229_v4 = vadd.f32 %v1213_v27, %v1193_v32  ;;  %v4270_v43 = vld [vmem:[%s3841_s12 + $0x4e] sm:$0xff] }
  0x4d   : > { %7716 = vst [vmem:[#allocation82_spill] sm:$0xff] %v4233_v6  ;;  %7717 = vst [vmem:[#allocation83_spill] sm:$0xff] %v4237_v24  ;;  %v4248_v48 = vmul.f32 %v3932_v54, %v4187_v55  ;;  %v739_v24 = vadd.f32 %v723_v13, %v703_v31  ;;  %v795_v56 = vmul.f32 %v3938_v58, %v3928_v52 }
  0x4e   : > { %7718 = vst [vmem:[#allocation84_spill] sm:$0xff] %v4240_v22  ;;  %7720 = vst [vmem:[#allocation86_spill] sm:$0xff] %v4251_v5  ;;  %v4259_v22 = vld [vmem:[%s3841_s12 + $0xb0] sm:$0xff]  ;;  %v4263_v21 = vmul.f32 %v3941_v59, %v4190_v3  ;;  %v4267_v27 = vmul.f32 %v3950_v62, %v4193_v16  ;;  %v426_v32 = vadd.f32 %v410_v1, %v390_v28 }
  0x4f   : > { %7719 = vst [vmem:[#allocation85_spill] sm:$0xff] %v4248_v48  ;;  %7721 = vst [vmem:[#allocation87_spill] sm:$0xff] %v4254_v11  ;;  %v482_v31 = vmul.f32 %v3865_v20, %v4201_v8  ;;  %v1265_v52 = vadd.f32 %v4108_v41, %v1229_v4  ;;  %v4277_v13 = vmul.f32 %v3953_v63, %v4214_v57  ;;  %v4306_v57 = vld [vmem:[%s3841_s12 + $0x96] sm:$0xff] }
  0x50   : > { %7722 = vst [vmem:[#allocation88_spill] sm:$0xff] %v4259_v22  ;;  %7723 = vst [vmem:[#allocation89_spill] sm:$0xff] %v4263_v21  ;;  %v4280_v21 = vld [vmem:[%s3841_s12 + $0x66] sm:$0xff]  ;;  %v775_v48 = vadd.f32 %v759_v36, %v739_v24  ;;  %v4286_v28 = vmul.f32 %v3956_v0, %v4225_v44  ;;  %v4290_v1 = vmul.f32 %v3962_v19, %v4228_v37  ;;  %v4327_v37 = vld [vmem:[%s3841_s12 + $0x39] sm:$0xff] }
  0x51   : > { %7724 = vst [vmem:[#allocation90_spill] sm:$0xff] %v4267_v27  ;;  %7725 = vst [vmem:[#allocation91_spill] sm:$0xff] %v4270_v43  ;;  %v831_v27 = vmul.f32 %v3947_v61, %v3944_v60  ;;  %v462_v41 = vadd.f32 %v446_v53, %v426_v32  ;;  %v518_v4 = vmul.f32 %v3878_v25, %v4233_v6  ;;  %v4299_v60 = vld [vmem:[%s3841_s12 + $0x7e] sm:$0xff]  ;;  %v7732_v44 = vld [vmem:[#allocation28_spill] sm:$0xff] }
  0x52   : > { %7726 = vst [vmem:[#allocation92_spill] sm:$0xff] %v4277_v13  ;;  %7727 = vst [vmem:[#allocation93_spill] sm:$0xff] %v4280_v21  ;;  %v1301_v13 = vadd.f32 %v4112_v49, %v1265_v52  ;;  %v4296_v36 = vmul.f32 %v3965_v23, %v1717_v18  ;;  %v811_v24 = vadd.f32 %v795_v56, %v775_v48  ;;  %v4303_v0 = vld [vmem:[%s3841_s12 + $0x21] sm:$0xff]  ;;  %v1997_v48 = vld [vmem:[%s3841_s12 + $0xae] sm:$0xff] }
  0x53   : > { %7728 = vst [vmem:[#allocation94_spill] sm:$0xff] %v4286_v28  ;;  %7729 = vst [vmem:[#allocation95_spill] sm:$0xff] %v4290_v1  ;;  %v895_v28 = vmul.f32 %v7732_v44, %v863_v35  ;;  %v7735_v53 = vld [vmem:[#allocation27_spill] sm:$0xff]  ;;  %v7737_v1 = vld [vmem:[#allocation29_spill] sm:$0xff]  ;;  %v498_v52 = vadd.f32 %v482_v31, %v462_v41  ;;  %v554_v18 = vmul.f32 %v3887_v30, %v4259_v22 }
  0x54   : > { %7730 = vst [vmem:[#allocation96_spill] sm:$0xff] %v4296_v36  ;;  %7731 = vst [vmem:[#allocation97_spill] sm:$0xff] %v4299_v60  ;;  %v4310_v32 = vmul.f32 %v7735_v53, %v4251_v5  ;;  %v4314_v49 = vmul.f32 %v7737_v1, %v4254_v11  ;;  %v1337_v35 = vadd.f32 %v4122_v14, %v1301_v13  ;;  %v7739_v56 = vld [vmem:[#allocation31_spill] sm:$0xff]  ;;  %v7741_v5 = vld [vmem:[#allocation30_spill] sm:$0xff] }
  0x55   : > { %7733 = vst [vmem:[#allocation98_spill] sm:$0xff] %v4303_v0  ;;  %7734 = vst [vmem:[#allocation99_spill] sm:$0xff] %v4306_v57  ;;  %v4322_v36 = vmul.f32 %v7739_v56, %v4270_v43  ;;  %v847_v23 = vadd.f32 %v831_v27, %v811_v24  ;;  %v7744_v31 = vld [vmem:[#allocation32_spill] sm:$0xff]  ;;  %v7746_v22 = vld [vmem:[#allocation33_spill] sm:$0xff]  ;;  %v534_v14 = vadd.f32 %v518_v4, %v498_v52 }
  0x56   : > { %7736 = vst [vmem:[#allocation100_spill] sm:$0xff] %v4310_v32  ;;  %7738 = vst [vmem:[#allocation101_spill] sm:$0xff] %v4314_v49  ;;  %v7742_v32 = vld [vmem:[#allocation34_spill] sm:$0xff]  ;;  %v4331_v41 = vmul.f32 %v7744_v31, %v4280_v21  ;;  %v4335_v49 = vmul.f32 %v7746_v22, %v4299_v60  ;;  %v618_v13 = vmul.f32 %v3893_v34, %v4303_v0  ;;  %v7748_v24 = vld [vmem:[#allocation35_spill] sm:$0xff] }
  0x57   : > { %7740 = vst [vmem:[#allocation102_spill] sm:$0xff] %v4322_v36  ;;  %v931_v53 = vmul.f32 %v7742_v32, %v7741_v5  ;;  %7743 = vst [vmem:[#allocation30_spill] sm:$0xff] %v4327_v37  ;;  %v1373_v27 = vadd.f32 %v4134_v2, %v1337_v35  ;;  %v4342_v5 = vmul.f32 %v7748_v24, %v4306_v57  ;;  %v7750_v43 = vld [vmem:[#allocation37_spill] sm:$0xff]  ;;  %v7751_v56 = vld [vmem:[#allocation38_spill] sm:$0xff] }
  0x58   : > { %7745 = vst [vmem:[#allocation103_spill] sm:$0xff] %v4331_v41  ;;  %7747 = vst [vmem:[#allocation104_spill] sm:$0xff] %v4335_v49  ;;  %v911_v36 = vadd.f32 %v895_v28, %v847_v23  ;;  %v967_v21 = vmul.f32 %v7751_v56, %v7750_v43  ;;  %v1143_v41 = vld [vmem:[%s3841_s12 + $0x3] sm:$0xff]  ;;  %v4348_v31 = vld [vmem:[%s3841_s12 + $0x51] sm:$0xff]  ;;  %v570_v11 = vadd.f32 %v554_v18, %v534_v14 }
  0x59   : > { %7749 = vst [vmem:[#allocation105_spill] sm:$0xff] %v4342_v5  ;;  %7752 = vst [vmem:[#allocation37_spill] sm:$0xff] %v4348_v31  ;;  %v7753_v60 = vld [vmem:[#allocation36_spill] sm:$0xff]  ;;  %v7755_v4 = vld [vmem:[#allocation39_spill] sm:$0xff]  ;;  %v654_v2 = vmul.f32 %v3900_v38, %v4327_v37  ;;  %v1409_v23 = vadd.f32 %v4137_v29, %v1373_v27  ;;  %v1175_v18 = vmul.f32 %v4050_v45, %v1143_v41 }
  0x5a   : > { %v4351_v49 = vmul.f32 %v7753_v60, %v1997_v48  ;;  %v7756_v52 = vld [vmem:[#allocation40_spill] sm:$0xff]  ;;  %v947_v28 = vadd.f32 %v931_v53, %v911_v36  ;;  %v7757_v43 = vld [vmem:[#allocation41_spill] sm:$0xff]  ;;  %v7758_v35 = vld [vmem:[#allocation42_spill] sm:$0xff]  ;;  %v634_v14 = vadd.f32 %v618_v13, %v570_v11  ;;  %v690_v37 = vmul.f32 %v3908_v42, %v4348_v31 }
  0x5b   : > { %v1003_v22 = vmul.f32 %v7756_v52, %v7755_v4  ;;  %v1039_v5 = vmul.f32 %v7758_v35, %v7757_v43  ;;  %v7759_v57 = vld [vmem:[#allocation44_spill] sm:$0xff]  ;;  %v7760_v24 = vld [vmem:[#allocation43_spill] sm:$0xff]  ;;  %v7762_v60 = vld [vmem:[#allocation45_spill] sm:$0xff]  ;;  %v1473_v29 = vadd.f32 %v4174_v17, %v1409_v23 }
  0x5c   : > { %7754 = vst [vmem:[#allocation106_spill] sm:$0xff] %v4351_v49  ;;  %v1075_v48 = vmul.f32 %v7760_v24, %v7759_v57  ;;  %v4363_v49 = vld [vmem:[%s3841_s12 + $0x69] sm:$0xff]  ;;  %v7763_v4 = vld [vmem:[#allocation46_spill] sm:$0xff]  ;;  %v983_v36 = vadd.f32 %v967_v21, %v947_v28  ;;  %v7767_v57 = vld [vmem:[#allocation51_spill] sm:$0xff]  ;;  %v670_v21 = vadd.f32 %v654_v2, %v634_v14 }
  0x5d   : > { %7761 = vst [vmem:[#allocation39_spill] sm:$0xff] %v4363_v49  ;;  %v1111_v1 = vmul.f32 %v7763_v4, %v7762_v60  ;;  %v7764_v53 = vld [vmem:[#allocation48_spill] sm:$0xff]  ;;  %v7765_v27 = vld [vmem:[#allocation49_spill] sm:$0xff]  ;;  %v7766_v35 = vld [vmem:[#allocation50_spill] sm:$0xff]  ;;  %v726_v23 = vmul.f32 %v3917_v47, %v4363_v49  ;;  %v1509_v28 = vadd.f32 %v4178_v7, %v1473_v29 }
  0x5e   : > { %v1211_v43 = vmul.f32 %v7765_v27, %v7764_v53  ;;  %v4375_v24 = vmul.f32 %v7767_v57, %v7766_v35  ;;  %v1423_v38 = vld [vmem:[%s3841_s12 + $0x4] sm:$0xff]  ;;  %v7769_v41 = vld [vmem:[#allocation53_spill] sm:$0xff]  ;;  %v7771_v45 = vld [vmem:[#allocation54_spill] sm:$0xff]  ;;  %v1019_v35 = vadd.f32 %v1003_v22, %v983_v36  ;;  %v706_v2 = vadd.f32 %v690_v37, %v670_v21 }
  0x5f   : > { %v4379_v0 = vld [vmem:[%s3841_s12 + $0x81] sm:$0xff]  ;;  %v7774_v57 = vld [vmem:[#allocation57_spill] sm:$0xff]  ;;  %v7776_v42 = vld [vmem:[#allocation58_spill] sm:$0xff]  ;;  %v1545_v22 = vadd.f32 %v4207_v40, %v1509_v28 }
  0x60   : > { %7768 = vst [vmem:[#allocation41_spill] sm:$0xff] %v4379_v0  ;;  %v304_v60 = vld [vmem:[%s3841_s12 + $0x8] sm:$0xff]  ;;  %v7772_v4 = vld [vmem:[#allocation55_spill] sm:$0xff]  ;;  %v762_v14 = vmul.f32 %v3925_v51, %v4379_v0  ;;  %v1055_v29 = vadd.f32 %v1039_v5, %v1019_v35  ;;  %v4412_v36 = vld [vmem:[%s3841_s12 + $0xb1] sm:$0xff]  ;;  %v742_v40 = vadd.f32 %v726_v23, %v706_v2 }
  0x61   : > { %v7770_v11 = vld [vmem:[#allocation52_spill] sm:$0xff]  ;;  %v4388_v17 = vmul.f32 %v7772_v4, %v7771_v45  ;;  %v7775_v31 = vld [vmem:[#allocation59_spill] sm:$0xff]  ;;  %v4405_v45 = vmul.f32 %v4115_v15, %v1423_v38  ;;  %v336_v7 = vmul.f32 %v3833_v9, %v304_v60  ;;  %7778 = vst [vmem:[#allocation45_spill] sm:$0xff] %v4412_v36  ;;  %v7781_v4 = vld [vmem:[#allocation62_spill] sm:$0xff] }
  0x62   : > { %v4384_v13 = vmul.f32 %v7770_v11, %v7769_v41  ;;  %v7773_v53 = vld [vmem:[#allocation56_spill] sm:$0xff]  ;;  %v4399_v52 = vmul.f32 %v7776_v42, %v7775_v31  ;;  %v4402_v41 = vld [vmem:[%s3841_s12 + $0x99] sm:$0xff]  ;;  %v7780_v42 = vld [vmem:[#allocation9_spill] sm:$0xff]  ;;  %v778_v2 = vadd.f32 %v762_v14, %v742_v40 }
  0x63   : > { %v4395_v27 = vmul.f32 %v7774_v57, %v7773_v53  ;;  %7777 = vst [vmem:[#allocation44_spill] sm:$0xff] %v4402_v41  ;;  %v7779_v53 = vld [vmem:[#allocation68_spill] sm:$0xff]  ;;  %v408_v57 = vmul.f32 %v7780_v42, %v4163_v26  ;;  %v7782_v38 = vld [vmem:[#allocation61_spill] sm:$0xff]  ;;  %v7784_v21 = vld [vmem:[#allocation63_spill] sm:$0xff]  ;;  %v798_v5 = vmul.f32 %v3938_v58, %v4402_v41 }
  0x64   : > { %v372_v31 = vmul.f32 %v3836_v10, %v7779_v53  ;;  %v4420_v37 = vmul.f32 %v7782_v38, %v7781_v4  ;;  %v7785_v15 = vld [vmem:[#allocation66_spill] sm:$0xff]  ;;  %v7786_v28 = vld [vmem:[#allocation77_spill] sm:$0xff]  ;;  %v1091_v53 = vadd.f32 %v1075_v48, %v1055_v29  ;;  %v4430_v10 = vld [vmem:[%s3841_s12 + $0x22] sm:$0xff] }
  0x65   : > { %v4424_v60 = vmul.f32 %v7785_v15, %v7784_v21  ;;  %v1581_v35 = vadd.f32 %v7786_v28, %v1545_v22  ;;  %v7787_v9 = vld [vmem:[#allocation72_spill] sm:$0xff]  ;;  %v7789_v38 = vld [vmem:[#allocation67_spill] sm:$0xff]  ;;  %v7791_v11 = vld [vmem:[#allocation65_spill] sm:$0xff]  ;;  %v834_v22 = vmul.f32 %v3947_v61, %v4412_v36  ;;  %v814_v14 = vadd.f32 %v798_v5, %v778_v2 }
  0x66   : > { %7783 = vst [vmem:[#allocation48_spill] sm:$0xff] %v4420_v37  ;;  %v388_v42 = vadd.f32 %v372_v31, %v336_v7  ;;  %v444_v26 = vmul.f32 %v3844_v12, %v7787_v9  ;;  %v7788_v4 = vld [vmem:[#allocation64_spill] sm:$0xff]  ;;  %v7792_v21 = vld [vmem:[#allocation70_spill] sm:$0xff]  ;;  %v7793_v48 = vld [vmem:[#allocation79_spill] sm:$0xff]  ;;  %v1127_v28 = vadd.f32 %v1111_v1, %v1091_v53  ;;  %v898_v1 = vmul.f32 %v7732_v44, %v4430_v10 }
  0x67   : > { %v4436_v37 = vmul.f32 %v7789_v38, %v7788_v4  ;;  %v4440_v23 = vmul.f32 %v7792_v21, %v7791_v11  ;;  %v1617_v29 = vadd.f32 %v7793_v48, %v1581_v35  ;;  %v1703_v7 = vld [vmem:[%s3841_s12 + $0x5] sm:$0xff]  ;;  %v4447_v31 = vld [vmem:[%s3841_s12 + $0x3a] sm:$0xff]  ;;  %v480_v4 = vmul.f32 %v3865_v20, %v4198_v33  ;;  %v7794_v38 = vld [vmem:[#allocation69_spill] sm:$0xff] }
  0x68   : > { %v424_v15 = vadd.f32 %v408_v57, %v388_v42  ;;  %v4457_v11 = vmul.f32 %v4184_v39, %v4169_v46  ;;  %v7795_v40 = vld [vmem:[#allocation83_spill] sm:$0xff]  ;;  %v1191_v53 = vadd.f32 %v1175_v18, %v1127_v28  ;;  %v4463_v42 = vld [vmem:[%s3841_s12 + $0x52] sm:$0xff]  ;;  %v516_v48 = vmul.f32 %v3878_v25, %v4201_v8  ;;  %v584_v18 = vld [vmem:[%s3841_s12 + $0x9] sm:$0xff] }
  0x69   : > { %7790 = vst [vmem:[#allocation50_spill] sm:$0xff] %v4436_v37  ;;  %v4453_v37 = vmul.f32 %v4181_v50, %v7794_v38  ;;  %v1653_v35 = vadd.f32 %v7795_v40, %v1617_v29  ;;  %7796 = vst [vmem:[#allocation53_spill] sm:$0xff] %v4463_v42  ;;  %v4468_v38 = vmul.f32 %v3932_v54, %v1703_v7  ;;  %v7797_v29 = vld [vmem:[#allocation84_spill] sm:$0xff]  ;;  %v7812_v39 = vld [vmem:[#allocation15_spill] sm:$0xff] }
  0x6a   : > { %v460_v57 = vadd.f32 %v444_v26, %v424_v15  ;;  %v4472_v46 = vmul.f32 %v3941_v59, %v4187_v55  ;;  %v850_v5 = vadd.f32 %v834_v22, %v814_v14  ;;  %v934_v2 = vmul.f32 %v7742_v32, %v4447_v31  ;;  %v4479_v15 = vld [vmem:[%s3841_s12 + $0x6a] sm:$0xff]  ;;  %v7823_v21 = vld [vmem:[#allocation86_spill] sm:$0xff] }
  0x6b   : > { %v1689_v28 = vadd.f32 %v7797_v29, %v1653_v35  ;;  %v1227_v26 = vadd.f32 %v1211_v43, %v1191_v53  ;;  %7798 = vst [vmem:[#allocation54_spill] sm:$0xff] %v4479_v15  ;;  %v552_v7 = vmul.f32 %v3887_v30, %v4233_v6  ;;  %v4485_v36 = vmul.f32 %v3950_v62, %v4190_v3  ;;  %v7801_v43 = vld [vmem:[#allocation85_spill] sm:$0xff]  ;;  %v1983_v53 = vld [vmem:[%s3841_s12 + $0x6] sm:$0xff]  ;;  %v7803_v62 = vld [vmem:[#allocation78_spill] sm:$0xff] }
  0x6c   : > { %v496_v40 = vadd.f32 %v480_v4, %v460_v57  ;;  %v4489_v55 = vmul.f32 %v3953_v63, %v4193_v16  ;;  %v914_v22 = vadd.f32 %v898_v1, %v850_v5  ;;  %v970_v14 = vmul.f32 %v7751_v56, %v4463_v42  ;;  %v4497_v57 = vld [vmem:[%s3841_s12 + $0x82] sm:$0xff] }
  0x6d   : > { %7799 = vst [vmem:[#allocation56_spill] sm:$0xff] %v4485_v36  ;;  %v1753_v35 = vadd.f32 %v7801_v43, %v1689_v28  ;;  %v1263_v4 = vadd.f32 %v4375_v24, %v1227_v26  ;;  %7802 = vst [vmem:[#allocation68_spill] sm:$0xff] %v4497_v57  ;;  %v616_v3 = vmul.f32 %v3893_v34, %v584_v18  ;;  %v7804_v59 = vld [vmem:[#allocation24_spill] sm:$0xff]  ;;  %v7809_v24 = vld [vmem:[#allocation89_spill] sm:$0xff] }
  0x6e   : > { %7800 = vst [vmem:[#allocation59_spill] sm:$0xff] %v4489_v55  ;;  %v532_v29 = vadd.f32 %v516_v48, %v496_v40  ;;  %v4502_v54 = vmul.f32 %v7804_v59, %v7803_v62  ;;  %v7806_v16 = vld [vmem:[#allocation80_spill] sm:$0xff]  ;;  %v950_v5 = vadd.f32 %v934_v2, %v914_v22  ;;  %v4513_v48 = vld [vmem:[%s3841_s12 + $0x9a] sm:$0xff]  ;;  %v7813_v62 = vld [vmem:[#allocation81_spill] sm:$0xff] }
  0x6f   : > { %v4506_v1 = vmul.f32 %v3962_v19, %v7806_v16  ;;  %v7808_v28 = vld [vmem:[#allocation40_spill] sm:$0xff]  ;;  %v1789_v26 = vadd.f32 %v7809_v24, %v1753_v35  ;;  %v1299_v63 = vadd.f32 %v4384_v13, %v1263_v4  ;;  %7810 = vst [vmem:[#allocation77_spill] sm:$0xff] %v4513_v48  ;;  %v7811_v40 = vld [vmem:[#allocation98_spill] sm:$0xff]  ;;  %v7816_v16 = vld [vmem:[#allocation27_spill] sm:$0xff] }
  0x70   : > { %7805 = vst [vmem:[#allocation62_spill] sm:$0xff] %v4502_v54  ;;  %v1006_v43 = vmul.f32 %v7808_v28, %v4479_v15  ;;  %v568_v18 = vadd.f32 %v552_v7, %v532_v29  ;;  %v652_v55 = vmul.f32 %v7812_v39, %v7811_v40  ;;  %v7814_v59 = vld [vmem:[#allocation26_spill] sm:$0xff]  ;;  %v4522_v2 = vmul.f32 %v7816_v16, %v1983_v53  ;;  %v7826_v53 = vld [vmem:[#allocation87_spill] sm:$0xff] }
  0x71   : > { %7807 = vst [vmem:[#allocation63_spill] sm:$0xff] %v4506_v1  ;;  %v4519_v54 = vmul.f32 %v7814_v59, %v7813_v62  ;;  %v986_v22 = vadd.f32 %v970_v14, %v950_v5  ;;  %v7818_v19 = vld [vmem:[#allocation42_spill] sm:$0xff]  ;;  %v1335_v4 = vadd.f32 %v4388_v17, %v1299_v63  ;;  %v7822_v1 = vld [vmem:[#allocation16_spill] sm:$0xff]  ;;  %v7824_v62 = vld [vmem:[#allocation29_spill] sm:$0xff] }
  0x72   : > { %7817 = vst [vmem:[#allocation65_spill] sm:$0xff] %v4522_v2  ;;  %v1042_v35 = vmul.f32 %v7818_v19, %v4497_v57  ;;  %v7819_v24 = vld [vmem:[#allocation90_spill] sm:$0xff]  ;;  %v632_v29 = vadd.f32 %v616_v3, %v568_v18  ;;  %v4535_v59 = vmul.f32 %v7824_v62, %v7823_v21  ;;  %v7827_v14 = vld [vmem:[#allocation31_spill] sm:$0xff] }
  0x73   : > { %7815 = vst [vmem:[#allocation64_spill] sm:$0xff] %v4519_v54  ;;  %v1825_v13 = vadd.f32 %v7819_v24, %v1789_v26  ;;  %v4529_v7 = vld [vmem:[%s3841_s12 + $0xb2] sm:$0xff]  ;;  %v4539_v5 = vmul.f32 %v7827_v14, %v7826_v53  ;;  %v1022_v26 = vadd.f32 %v1006_v43, %v986_v22  ;;  %v7829_v63 = vld [vmem:[#allocation43_spill] sm:$0xff]  ;;  %v7830_v24 = vld [vmem:[#allocation92_spill] sm:$0xff]  ;;  %v1371_v18 = vadd.f32 %v4395_v27, %v1335_v4 }
  0x74   : > { %7820 = vst [vmem:[#allocation79_spill] sm:$0xff] %v4529_v7  ;;  %v7821_v40 = vld [vmem:[#allocation30_spill] sm:$0xff]  ;;  %7825 = vst [vmem:[#allocation69_spill] sm:$0xff] %v4535_v59  ;;  %v1078_v17 = vmul.f32 %v7829_v63, %v4513_v48  ;;  %v4546_v16 = vld [vmem:[%s3841_s12 + $0x23] sm:$0xff]  ;;  %v668_v2 = vadd.f32 %v652_v55, %v632_v29 }
  0x75   : > { %v688_v50 = vmul.f32 %v7822_v1, %v7821_v40  ;;  %7828 = vst [vmem:[#allocation83_spill] sm:$0xff] %v4539_v5  ;;  %v1861_v3 = vadd.f32 %v7830_v24, %v1825_v13  ;;  %v7831_v54 = vld [vmem:[#allocation37_spill] sm:$0xff]  ;;  %v7832_v62 = vld [vmem:[#allocation91_spill] sm:$0xff]  ;;  %v7833_v59 = vld [vmem:[#allocation32_spill] sm:$0xff]  ;;  %v1058_v22 = vadd.f32 %v1042_v35, %v1022_v26  ;;  %v1407_v55 = vadd.f32 %v4399_v52, %v1371_v18 }
  0x76   : > { %v724_v21 = vmul.f32 %v3917_v47, %v7831_v54  ;;  %v4552_v36 = vmul.f32 %v7833_v59, %v7832_v62  ;;  %v7835_v53 = vld [vmem:[#allocation93_spill] sm:$0xff]  ;;  %v7838_v13 = vld [vmem:[#allocation46_spill] sm:$0xff]  ;;  %v7844_v35 = vld [vmem:[#allocation35_spill] sm:$0xff] }
  0x77   : > { %v7836_v14 = vld [vmem:[#allocation33_spill] sm:$0xff]  ;;  %v1114_v24 = vmul.f32 %v7838_v13, %v4529_v7  ;;  %v7839_v27 = vld [vmem:[#allocation94_spill] sm:$0xff]  ;;  %v704_v59 = vadd.f32 %v688_v50, %v668_v2  ;;  %v7846_v7 = vld [vmem:[#allocation99_spill] sm:$0xff]  ;;  %v1471_v1 = vadd.f32 %v4405_v45, %v1407_v55 }
  0x78   : > { %7834 = vst [vmem:[#allocation84_spill] sm:$0xff] %v4552_v36  ;;  %v4556_v43 = vmul.f32 %v7836_v14, %v7835_v53  ;;  %v1897_v4 = vadd.f32 %v7839_v27, %v1861_v3  ;;  %v4563_v29 = vld [vmem:[%s3841_s12 + $0x3b] sm:$0xff]  ;;  %v4566_v5 = vld [vmem:[%s3841_s12 + $0x53] sm:$0xff]  ;;  %v4569_v62 = vld [vmem:[%s3841_s12 + $0x6b] sm:$0xff]  ;;  %v760_v53 = vmul.f32 %v3925_v51, %v4363_v49  ;;  %v1094_v27 = vadd.f32 %v1078_v17, %v1058_v22 }
  0x79   : > { %7840 = vst [vmem:[#allocation78_spill] sm:$0xff] %v4563_v29  ;;  %7841 = vst [vmem:[#allocation80_spill] sm:$0xff] %v4566_v5  ;;  %v7843_v14 = vld [vmem:[#allocation97_spill] sm:$0xff]  ;;  %v7849_v52 = vld [vmem:[#allocation47_spill] sm:$0xff]  ;;  %v740_v2 = vadd.f32 %v724_v21, %v704_v59  ;;  %v796_v51 = vmul.f32 %v3938_v58, %v4379_v0  ;;  %v832_v21 = vmul.f32 %v3947_v61, %v4402_v41 }
  0x7a   : > { %7837 = vst [vmem:[#allocation85_spill] sm:$0xff] %v4556_v43  ;;  %7842 = vst [vmem:[#allocation89_spill] sm:$0xff] %v4569_v62  ;;  %v4575_v26 = vmul.f32 %v7844_v35, %v7843_v14  ;;  %v7847_v43 = vld [vmem:[#allocation36_spill] sm:$0xff]  ;;  %v1178_v18 = vmul.f32 %v7849_v52, %v4546_v16  ;;  %v7850_v36 = vld [vmem:[#allocation95_spill] sm:$0xff]  ;;  %v1130_v35 = vadd.f32 %v1114_v24, %v1094_v27 }
  0x7b   : > { %v4579_v3 = vmul.f32 %v7847_v43, %v7846_v7  ;;  %v1933_v47 = vadd.f32 %v7850_v36, %v1897_v4  ;;  %v4586_v50 = vld [vmem:[%s3841_s12 + $0x83] sm:$0xff]  ;;  %v7852_v7 = vld [vmem:[#allocation49_spill] sm:$0xff]  ;;  %v776_v59 = vadd.f32 %v760_v53, %v740_v2 }
  0x7c   : > { %7845 = vst [vmem:[#allocation98_spill] sm:$0xff] %v4575_v26  ;;  %7851 = vst [vmem:[#allocation90_spill] sm:$0xff] %v4586_v50  ;;  %v864_v14 = vld [vmem:[%s3841_s12 + $0xa] sm:$0xff]  ;;  %v1214_v43 = vmul.f32 %v7852_v7, %v4563_v29  ;;  %v7853_v17 = vld [vmem:[#allocation51_spill] sm:$0xff]  ;;  %v1194_v58 = vadd.f32 %v1178_v18, %v1130_v35  ;;  %v932_v18 = vmul.f32 %v7742_v32, %v4430_v10 }
  0x7d   : > { %7848 = vst [vmem:[#allocation81_spill] sm:$0xff] %v4579_v3  ;;  %v1250_v22 = vmul.f32 %v7853_v17, %v4566_v5  ;;  %v7854_v3 = vld [vmem:[#allocation52_spill] sm:$0xff]  ;;  %v7857_v24 = vld [vmem:[#allocation55_spill] sm:$0xff]  ;;  %v896_v29 = vmul.f32 %v7732_v44, %v864_v14  ;;  %v7863_v14 = vld [vmem:[#allocation9_spill] sm:$0xff] }
  0x7e   : > { %v1286_v36 = vmul.f32 %v7854_v3, %v4569_v62  ;;  %v7855_v4 = vld [vmem:[#allocation96_spill] sm:$0xff]  ;;  %v1322_v27 = vmul.f32 %v7857_v24, %v4586_v50  ;;  %v7858_v0 = vld [vmem:[#allocation71_spill] sm:$0xff]  ;;  %v1230_v35 = vadd.f32 %v1214_v43, %v1194_v58  ;;  %v7867_v58 = vld [vmem:[#allocation57_spill] sm:$0xff]  ;;  %v968_v43 = vmul.f32 %v7751_v56, %v4447_v31 }
  0x7f   : > { %v1969_v45 = vadd.f32 %v7855_v4, %v1933_v47  ;;  %v7856_v55 = vld [vmem:[#allocation48_spill] sm:$0xff]  ;;  %v7859_v5 = vld [vmem:[#allocation7_spill] sm:$0xff] }
  0x80   : > { %v1507_v26 = vadd.f32 %v7856_v55, %v1471_v1  ;;  %v340_v17 = vmul.f32 %v7859_v5, %v7858_v0  ;;  %v7860_v7 = vld [vmem:[#allocation100_spill] sm:$0xff]  ;;  %v4609_v4 = vld [vmem:[%s3841_s12 + $0x9b] sm:$0xff]  ;;  %v812_v1 = vadd.f32 %v796_v51, %v776_v59  ;;  %v412_v55 = vmul.f32 %v7863_v14, %v4198_v33  ;;  %v4622_v51 = vld [vmem:[%s3841_s12 + $0xb3] sm:$0xff] }
  0x81   : > { %v2033_v62 = vadd.f32 %v7860_v7, %v1969_v45  ;;  %7861 = vst [vmem:[#allocation30_spill] sm:$0xff] %v4609_v4  ;;  %v7862_v53 = vld [vmem:[#allocation8_spill] sm:$0xff]  ;;  %v448_v0 = vmul.f32 %v3844_v12, %v4201_v8  ;;  %v7864_v7 = vld [vmem:[#allocation101_spill] sm:$0xff]  ;;  %7866 = vst [vmem:[#allocation86_spill] sm:$0xff] %v4622_v51  ;;  %v1358_v10 = vmul.f32 %v7867_v58, %v4609_v4 }
  0x82   : > { %v1543_v47 = vadd.f32 %v4424_v60, %v1507_v26  ;;  %v376_v2 = vmul.f32 %v7862_v53, %v7787_v9  ;;  %v7865_v26 = vld [vmem:[#allocation50_spill] sm:$0xff]  ;;  %v848_v59 = vadd.f32 %v832_v21, %v812_v1  ;;  %v1266_v53 = vadd.f32 %v1250_v22, %v1230_v35  ;;  %v4636_v21 = vld [vmem:[%s3841_s12 + $0xc8] sm:$0xff] }
  0x83   : > { %v2069_v60 = vadd.f32 %v7864_v7, %v2033_v62  ;;  %v484_v33 = vmul.f32 %v3865_v20, %v4233_v6  ;;  %v7868_v8 = vld [vmem:[#allocation102_spill] sm:$0xff]  ;;  %7869 = vst [vmem:[#allocation87_spill] sm:$0xff] %v4636_v21  ;;  %v1004_v35 = vmul.f32 %v7808_v28, %v4463_v42 }
  0x84   : > { %v1579_v45 = vadd.f32 %v7865_v26, %v1543_v47  ;;  %v392_v9 = vadd.f32 %v376_v2, %v340_v17  ;;  %v4633_v47 = vld [vmem:[%s3841_s12 + $0x24] sm:$0xff]  ;;  %v912_v7 = vadd.f32 %v896_v29, %v848_v59  ;;  %v1302_v22 = vadd.f32 %v1286_v36, %v1266_v53  ;;  %v7870_v1 = vld [vmem:[#allocation58_spill] sm:$0xff] }
  0x85   : > { %v2105_v12 = vadd.f32 %v7868_v8, %v2069_v60  ;;  %v1394_v2 = vmul.f32 %v7870_v1, %v4622_v51  ;;  %v7871_v26 = vld [vmem:[#allocation88_spill] sm:$0xff]  ;;  %v7872_v8 = vld [vmem:[#allocation103_spill] sm:$0xff] }
  0x86   : > { %v1615_v62 = vadd.f32 %v4440_v23, %v1579_v45  ;;  %v428_v17 = vadd.f32 %v412_v55, %v392_v9  ;;  %v520_v6 = vmul.f32 %v3878_v25, %v7871_v26  ;;  %v4647_v45 = vld [vmem:[%s3841_s12 + $0x3c] sm:$0xff]  ;;  %v948_v29 = vadd.f32 %v932_v18, %v912_v7  ;;  %v7873_v36 = vld [vmem:[#allocation60_spill] sm:$0xff] }
  0x87   : > { %v2141_v60 = vadd.f32 %v7872_v8, %v2105_v12  ;;  %v1338_v9 = vadd.f32 %v1322_v27, %v1302_v22  ;;  %v1458_v53 = vmul.f32 %v7873_v36, %v4633_v47  ;;  %v1040_v55 = vmul.f32 %v7818_v19, %v4479_v15  ;;  %v7874_v51 = vld [vmem:[#allocation104_spill] sm:$0xff]  ;;  %v7876_v27 = vld [vmem:[#allocation61_spill] sm:$0xff] }
  0x88   : > { %v1651_v23 = vadd.f32 %v4453_v37, %v1615_v62  ;;  %v464_v59 = vadd.f32 %v448_v0, %v428_v17  ;;  %v556_v26 = vmul.f32 %v3887_v30, %v4636_v21  ;;  %v4658_v62 = vld [vmem:[%s3841_s12 + $0x54] sm:$0xff]  ;;  %v984_v18 = vadd.f32 %v968_v43, %v948_v29 }
  0x89   : > { %v2177_v12 = vadd.f32 %v7874_v51, %v2141_v60  ;;  %7875 = vst [vmem:[#allocation92_spill] sm:$0xff] %v4658_v62  ;;  %v1374_v7 = vadd.f32 %v1358_v10, %v1338_v9  ;;  %v1494_v17 = vmul.f32 %v7876_v27, %v4647_v45  ;;  %v1076_v22 = vmul.f32 %v7829_v63, %v4497_v57  ;;  %v7877_v21 = vld [vmem:[#allocation105_spill] sm:$0xff] }
  0x8a   : > { %v1687_v37 = vadd.f32 %v4457_v11, %v1651_v23  ;;  %v500_v0 = vadd.f32 %v484_v33, %v464_v59  ;;  %v620_v8 = vmul.f32 %v3893_v34, %v7821_v40  ;;  %v4669_v60 = vld [vmem:[%s3841_s12 + $0x6c] sm:$0xff]  ;;  %v1020_v43 = vadd.f32 %v1004_v35, %v984_v18  ;;  %v4675_v23 = vld [vmem:[%s7043_s2] ss:$0 sm:$0xff]  ;;  %v7880_v59 = vld [vmem:[#allocation66_spill] sm:$0xff] }
  0x8b   : > { %v2213_v51 = vadd.f32 %v7877_v21, %v2177_v12  ;;  %7878 = vst [vmem:[#allocation91_spill] sm:$0xff] %v4669_v60  ;;  %v1144_v33 = vld [vmem:[%s3841_s12 + $0xb] sm:$0xff]  ;;  %7879 = vst [vmem:[#allocation93_spill] sm:$0xff] %v4675_v23  ;;  %v1410_v29 = vadd.f32 %v1394_v2, %v1374_v7  ;;  %v1530_v9 = vmul.f32 %v7880_v59, %v4658_v62  ;;  %v7881_v21 = vld [vmem:[#allocation106_spill] sm:$0xff] }
  0x8c   : > { %v1751_v11 = vadd.f32 %v4468_v38, %v1687_v37  ;;  %v536_v10 = vadd.f32 %v520_v6, %v500_v0  ;;  %v1112_v40 = vmul.f32 %v7838_v13, %v4513_v48  ;;  %v656_v38 = vmul.f32 %v7812_v39, %v7831_v54  ;;  %v4686_v12 = vld [vmem:[%s3841_s12 + $0x84] sm:$0xff]  ;;  %v4689_v37 = vld [vmem:[%s3841_s12 + $0x9c] sm:$0xff] }
  0x8d   : > { %v2249_v35 = vadd.f32 %v7881_v21, %v2213_v51  ;;  %7882 = vst [vmem:[#allocation94_spill] sm:$0xff] %v4686_v12  ;;  %7883 = vst [vmem:[#allocation97_spill] sm:$0xff] %v4689_v37  ;;  %v1056_v2 = vadd.f32 %v1040_v55, %v1020_v43  ;;  %v1474_v0 = vadd.f32 %v1458_v53, %v1410_v29  ;;  %v7884_v7 = vld [vmem:[#allocation67_spill] sm:$0xff]  ;;  %v7885_v54 = vld [vmem:[#allocation16_spill] sm:$0xff] }
  0x8e   : > { %v1787_v6 = vadd.f32 %v4472_v46, %v1751_v11  ;;  %v572_v18 = vadd.f32 %v556_v26, %v536_v10  ;;  %v1566_v34 = vmul.f32 %v7884_v7, %v4669_v60  ;;  %v1176_v30 = vmul.f32 %v7849_v52, %v1144_v33  ;;  %v7887_v46 = vld [vmem:[#allocation56_spill] sm:$0xff]  ;;  %v4701_v21 = vld [vmem:[%s3841_s12 + $0xb4] sm:$0xff] }
  0x8f   : > { %v692_v39 = vmul.f32 %v7885_v54, %v4363_v49  ;;  %v4697_v51 = vadd.f32 %v4675_v23, %v2249_v35  ;;  %7888 = vst [vmem:[#allocation95_spill] sm:$0xff] %v4701_v21  ;;  %v4704_v55 = vld [vmem:[%s3841_s12 + $0x25] sm:$0xff]  ;;  %v1092_v26 = vadd.f32 %v1076_v22, %v1056_v2  ;;  %v1510_v43 = vadd.f32 %v1494_v17, %v1474_v0  ;;  %v7890_v10 = vld [vmem:[#allocation70_spill] sm:$0xff]  ;;  %v7891_v33 = vld [vmem:[#allocation73_spill] sm:$0xff] }
  0x90   : > { %v1823_v11 = vadd.f32 %v7887_v46, %v1787_v6  ;;  %7889 = vst [vmem:[#allocation96_spill] sm:$0xff] %v4704_v55  ;;  %v636_v53 = vadd.f32 %v620_v8, %v572_v18  ;;  %v1602_v29 = vmul.f32 %v7890_v10, %v4686_v12  ;;  %v1638_v49 = vmul.f32 %v7891_v33, %v4689_v37  ;;  %v7892_v35 = vld [vmem:[#allocation49_spill] sm:$0xff]  ;;  %v7893_v6 = vld [vmem:[#allocation59_spill] sm:$0xff]  ;;  %v7898_v37 = vld [vmem:[#allocation74_spill] sm:$0xff] }
  0x91   : > { %7886 = vst [vmem:[#allocation99_spill] sm:$0xff] %v4697_v51  ;;  %v1212_v54 = vmul.f32 %v7892_v35, %v4546_v16  ;;  %2290 = vadd.xlane.f32.xlu1 %v4697_v51  ;;  %v4715_v23 = vld [vmem:[%s3841_s12 + $0x3d] sm:$0xff]  ;;  %v4718_v22 = vld [vmem:[%s3841_s12 + $0x55] sm:$0xff]  ;;  %v1128_v17 = vadd.f32 %v1112_v40, %v1092_v26  ;;  %v1546_v52 = vadd.f32 %v1530_v9, %v1510_v43  ;;  %v4730_v40 = vld [vmem:[%s3841_s12 + $0x6d] sm:$0xff] }
  0x92   : > { %v1859_v46 = vadd.f32 %v7893_v6, %v1823_v11  ;;  %7894 = vst [vmem:[#allocation48_spill] sm:$0xff] %v4715_v23  ;;  %7895 = vst [vmem:[#allocation71_spill] sm:$0xff] %v4718_v22  ;;  %v672_v8 = vadd.f32 %v656_v38, %v636_v53  ;;  %v7896_v2 = vld [vmem:[#allocation41_spill] sm:$0xff]  ;;  %v1674_v33 = vmul.f32 %v7898_v37, %v4701_v21  ;;  %v7899_v16 = vld [vmem:[#allocation19_spill] sm:$0xff] }
  0x93   : > { %v7897_v18 = vld [vmem:[#allocation17_spill] sm:$0xff]  ;;  %v1738_v51 = vmul.f32 %v7899_v16, %v4704_v55  ;;  %v7900_v11 = vld [vmem:[#allocation78_spill] sm:$0xff]  ;;  %v7901_v6 = vld [vmem:[#allocation51_spill] sm:$0xff]  ;;  %7903 = vst [vmem:[#allocation100_spill] sm:$0xff] %v4730_v40  ;;  %v1192_v26 = vadd.f32 %v1176_v30, %v1128_v17 }
  0x94   : > { %v728_v0 = vmul.f32 %v7897_v18, %v7896_v2  ;;  %v1248_v35 = vmul.f32 %v7901_v6, %v7900_v11  ;;  %v7902_v12 = vld [vmem:[#allocation62_spill] sm:$0xff]  ;;  %v4733_v38 = vld [vmem:[%s3841_s12 + $0x85] sm:$0xff]  ;;  %v708_v53 = vadd.f32 %v692_v39, %v672_v8  ;;  %v1582_v2 = vadd.f32 %v1566_v34, %v1546_v52  ;;  %v7906_v21 = vld [vmem:[#allocation21_spill] sm:$0xff] }
  0x95   : > { %v1895_v13 = vadd.f32 %v7902_v12, %v1859_v46  ;;  %7904 = vst [vmem:[#allocation101_spill] sm:$0xff] %v4733_v38  ;;  %v7905_v9 = vld [vmem:[#allocation18_spill] sm:$0xff]  ;;  %v1774_v18 = vmul.f32 %v7906_v21, %v4715_v23  ;;  %v7908_v6 = vld [vmem:[#allocation80_spill] sm:$0xff]  ;;  %v7910_v37 = vld [vmem:[#allocation63_spill] sm:$0xff]  ;;  %v1228_v34 = vadd.f32 %v1212_v54, %v1192_v26 }
  0x96   : > { %v764_v43 = vmul.f32 %v7905_v9, %v4402_v41  ;;  %v7907_v55 = vld [vmem:[#allocation22_spill] sm:$0xff]  ;;  %v1284_v12 = vmul.f32 %v7854_v3, %v7908_v6  ;;  %v4744_v46 = vld [vmem:[%s3841_s12 + $0xc9] sm:$0xff]  ;;  %v744_v52 = vadd.f32 %v728_v0, %v708_v53  ;;  %v1618_v23 = vadd.f32 %v1602_v29, %v1582_v2 }
  0x97   : > { %v1810_v16 = vmul.f32 %v7907_v55, %v4718_v22  ;;  %7909 = vst [vmem:[#allocation50_spill] sm:$0xff] %v4744_v46  ;;  %v1931_v30 = vadd.f32 %v7910_v37, %v1895_v13  ;;  %v4748_v39 = vld [vmem:[%s3841_s12 + $0x9d] sm:$0xff]  ;;  %v4751_v17 = vld [vmem:[%s3841_s12 + $0xb5] sm:$0xff]  ;;  %v7914_v41 = vld [vmem:[#allocation20_spill] sm:$0xff]  ;;  %v1264_v54 = vadd.f32 %v1248_v35, %v1228_v34  ;;  %v836_v29 = vmul.f32 %v3947_v61, %v4744_v46 }
  0x98   : > { %7911 = vst [vmem:[#allocation102_spill] sm:$0xff] %v4748_v39  ;;  %7912 = vst [vmem:[#allocation103_spill] sm:$0xff] %v4751_v17  ;;  %v7913_v8 = vld [vmem:[#allocation45_spill] sm:$0xff]  ;;  %v7915_v22 = vld [vmem:[#allocation23_spill] sm:$0xff]  ;;  %v780_v26 = vadd.f32 %v764_v43, %v744_v52  ;;  %v1654_v2 = vadd.f32 %v1638_v49, %v1618_v23  ;;  %v900_v52 = vmul.f32 %v7732_v44, %v4447_v31 }
  0x99   : > { %v800_v9 = vmul.f32 %v7914_v41, %v7913_v8  ;;  %v1846_v55 = vmul.f32 %v7915_v22, %v4730_v40  ;;  %v7916_v21 = vld [vmem:[#allocation24_spill] sm:$0xff]  ;;  %v7917_v6 = vld [vmem:[#allocation89_spill] sm:$0xff]  ;;  %v1300_v34 = vadd.f32 %v1284_v12, %v1264_v54  ;;  %v7922_v23 = vld [vmem:[#allocation27_spill] sm:$0xff]  ;;  %v936_v31 = vmul.f32 %v7742_v32, %v4463_v42 }
  0x9a   : > { %v4759_v3 = vmul.f32 %v7916_v21, %v4733_v38  ;;  %v1320_v13 = vmul.f32 %v7857_v24, %v7917_v6  ;;  %v7918_v37 = vld [vmem:[#allocation64_spill] sm:$0xff]  ;;  %v7919_v53 = vld [vmem:[#allocation25_spill] sm:$0xff]  ;;  %v7920_v38 = vld [vmem:[#allocation26_spill] sm:$0xff]  ;;  %v1690_v49 = vadd.f32 %v1674_v33, %v1654_v2  ;;  %v972_v54 = vmul.f32 %v7751_v56, %v4479_v15 }
  0x9b   : > { %v1967_v11 = vadd.f32 %v7918_v37, %v1931_v30  ;;  %v4765_v10 = vld [vmem:[%s3841_s12 + $0x26] sm:$0xff]  ;;  %v4772_v8 = vmul.f32 %v7919_v53, %v4748_v39  ;;  %v4776_v21 = vmul.f32 %v7920_v38, %v4751_v17  ;;  %v1356_v30 = vmul.f32 %v7867_v58, %v4586_v50  ;;  %v7921_v37 = vld [vmem:[#allocation65_spill] sm:$0xff] }
  0x9c   : > { %v1424_v0 = vld [vmem:[%s3841_s12 + $0xc] sm:$0xff]  ;;  %v816_v43 = vadd.f32 %v800_v9, %v780_v26  ;;  %v4785_v46 = vmul.f32 %v7922_v23, %v4765_v10  ;;  %v1392_v17 = vmul.f32 %v7870_v1, %v4609_v4  ;;  %v1754_v33 = vadd.f32 %v1738_v51, %v1690_v49 }
  0x9d   : > { %v2031_v35 = vadd.f32 %v7921_v37, %v1967_v11  ;;  %v1456_v38 = vmul.f32 %v7873_v36, %v1424_v0  ;;  %v7923_v39 = vld [vmem:[#allocation69_spill] sm:$0xff]  ;;  %v1336_v11 = vadd.f32 %v1320_v13, %v1300_v34  ;;  %v1492_v9 = vmul.f32 %v7876_v27, %v4633_v47  ;;  %v7924_v0 = vld [vmem:[#allocation83_spill] sm:$0xff]  ;;  %v4801_v13 = vld [vmem:[%s3841_s12 + $0x48] sm:$0xff] }
  0x9e   : > { %v852_v12 = vadd.f32 %v836_v29, %v816_v43  ;;  %v3444_v26 = vld [vmem:[%s3841_s12 + $0x30] sm:$0xff]  ;;  %7925 = vst [vmem:[#allocation104_spill] sm:$0xff] %v4801_v13  ;;  %v7926_v29 = vld [vmem:[#allocation8_spill] sm:$0xff]  ;;  %v1790_v51 = vadd.f32 %v1774_v18, %v1754_v33  ;;  %v1008_v47 = vmul.f32 %v7808_v28, %v4497_v57  ;;  %v4808_v43 = vld [vmem:[%s3841_s12 + $0x60] sm:$0xff]  ;;  %v1528_v57 = vmul.f32 %v7880_v59, %v4647_v45 }
  0x9f   : > { %v2067_v53 = vadd.f32 %v7923_v39, %v2031_v35  ;;  %v339_v2 = vmul.f32 %v3444_v26, %v7859_v5  ;;  %v1372_v39 = vadd.f32 %v1356_v30, %v1336_v11  ;;  %v375_v34 = vmul.f32 %v4801_v13, %v7926_v29  ;;  %7927 = vst [vmem:[#allocation105_spill] sm:$0xff] %v4808_v43  ;;  %v7929_v30 = vld [vmem:[#allocation10_spill] sm:$0xff]  ;;  %v7930_v11 = vld [vmem:[#allocation84_spill] sm:$0xff]  ;;  %v7932_v13 = vld [vmem:[#allocation85_spill] sm:$0xff] }
  0xa0   : > { %v916_v35 = vadd.f32 %v900_v52, %v852_v12  ;;  %v411_v49 = vmul.f32 %v4808_v43, %v7863_v14  ;;  %v1826_v33 = vadd.f32 %v1810_v16, %v1790_v51  ;;  %v1044_v15 = vmul.f32 %v7818_v19, %v4513_v48  ;;  %v4823_v43 = vld [vmem:[%s3841_s12 + $0x90] sm:$0xff]  ;;  %v4839_v51 = vld [vmem:[%s3841_s12 + $0xa8] sm:$0xff] }
  0xa1   : > { %v2103_v37 = vadd.f32 %v7924_v0, %v2067_v53  ;;  %v4813_v53 = vld [vmem:[%s3841_s12 + $0x78] sm:$0xff]  ;;  %v1408_v26 = vadd.f32 %v1392_v17, %v1372_v39  ;;  %v391_v18 = vadd.f32 %v375_v34, %v339_v2  ;;  %7931 = vst [vmem:[#allocation56_spill] sm:$0xff] %v4823_v43  ;;  %v483_v42 = vmul.f32 %v4823_v43, %v3865_v20 }
  0xa2   : > { %7928 = vst [vmem:[#allocation106_spill] sm:$0xff] %v4813_v53  ;;  %v447_v52 = vmul.f32 %v4813_v53, %v7929_v30  ;;  %v952_v0 = vadd.f32 %v936_v31, %v916_v35  ;;  %v4832_v31 = vld [vmem:[%s3841_s12 + $0xc0] sm:$0xff]  ;;  %v1862_v2 = vadd.f32 %v1846_v55, %v1826_v33  ;;  %v1564_v39 = vmul.f32 %v7884_v7, %v4658_v62 }
  0xa3   : > { %v2139_v12 = vadd.f32 %v7930_v11, %v2103_v37  ;;  %v1472_v28 = vadd.f32 %v1456_v38, %v1408_v26  ;;  %v4829_v37 = vld [vmem:[%s3841_s12 + $0xca] sm:$0xff]  ;;  %7934 = vst [vmem:[#allocation62_spill] sm:$0xff] %v4832_v31  ;;  %v427_v16 = vadd.f32 %v411_v49, %v391_v18  ;;  %v7935_v35 = vld [vmem:[#allocation79_spill] sm:$0xff]  ;;  %7936 = vst [vmem:[#allocation63_spill] sm:$0xff] %v4839_v51 }
  0xa4   : > { %7933 = vst [vmem:[#allocation59_spill] sm:$0xff] %v4829_v37  ;;  %v988_v17 = vadd.f32 %v972_v54, %v952_v0  ;;  %v1080_v34 = vmul.f32 %v7829_v63, %v7935_v35  ;;  %v7937_v38 = vld [vmem:[#allocation98_spill] sm:$0xff]  ;;  %v1898_v55 = vadd.f32 %v4759_v3, %v1862_v2  ;;  %v7940_v35 = vld [vmem:[#allocation13_spill] sm:$0xff] }
  0xa5   : > { %v2175_v53 = vadd.f32 %v7932_v13, %v2139_v12  ;;  %v519_v13 = vmul.f32 %v4839_v51, %v3878_v25  ;;  %v1508_v54 = vadd.f32 %v1492_v9, %v1472_v28  ;;  %v463_v26 = vadd.f32 %v447_v52, %v427_v16  ;;  %v7938_v49 = vld [vmem:[#allocation70_spill] sm:$0xff]  ;;  %v7941_v51 = vld [vmem:[#allocation81_spill] sm:$0xff] }
  0xa6   : > { %v1024_v12 = vadd.f32 %v1008_v47, %v988_v17  ;;  %v1600_v0 = vmul.f32 %v7938_v49, %v4669_v60  ;;  %v7939_v18 = vld [vmem:[#allocation46_spill] sm:$0xff]  ;;  %v555_v48 = vmul.f32 %v7940_v35, %v4832_v31  ;;  %v1934_v52 = vadd.f32 %v4772_v8, %v1898_v55  ;;  %v7943_v17 = vld [vmem:[#allocation73_spill] sm:$0xff] }
  0xa7   : > { %v2211_v11 = vadd.f32 %v7937_v38, %v2175_v53  ;;  %v1116_v33 = vmul.f32 %v7939_v18, %v4829_v37  ;;  %v4853_v53 = vld [vmem:[%s3841_s12 + $0x3e] sm:$0xff]  ;;  %v1544_v28 = vadd.f32 %v1528_v57, %v1508_v54  ;;  %v499_v47 = vadd.f32 %v483_v42, %v463_v26  ;;  %v3450_v37 = vld [vmem:[%s3841_s12 + $0x31] sm:$0xff] }
  0xa8   : > { %v1060_v9 = vadd.f32 %v1044_v15, %v1024_v12  ;;  %v7942_v3 = vld [vmem:[#allocation94_spill] sm:$0xff]  ;;  %v7945_v38 = vld [vmem:[#allocation47_spill] sm:$0xff]  ;;  %v7947_v31 = vld [vmem:[#allocation93_spill] sm:$0xff]  ;;  %v1970_v54 = vadd.f32 %v4776_v21, %v1934_v52 }
  0xa9   : > { %v2247_v43 = vadd.f32 %v7941_v51, %v2211_v11  ;;  %v1636_v16 = vmul.f32 %v7943_v17, %v7942_v3  ;;  %v7944_v2 = vld [vmem:[#allocation78_spill] sm:$0xff]  ;;  %v1580_v15 = vadd.f32 %v1564_v39, %v1544_v28  ;;  %v1704_v42 = vld [vmem:[%s3841_s12 + $0xd] sm:$0xff]  ;;  %v535_v8 = vadd.f32 %v519_v13, %v499_v47  ;;  %v7957_v21 = vld [vmem:[#allocation15_spill] sm:$0xff] }
  0xaa   : > { %v1180_v63 = vmul.f32 %v7945_v38, %v7944_v2  ;;  %v7946_v18 = vld [vmem:[#allocation14_spill] sm:$0xff]  ;;  %v1096_v57 = vadd.f32 %v1080_v34, %v1060_v9  ;;  %v7950_v12 = vld [vmem:[#allocation29_spill] sm:$0xff]  ;;  %v2034_v47 = vadd.f32 %v4785_v46, %v1970_v54  ;;  %v7958_v52 = vld [vmem:[#allocation31_spill] sm:$0xff] }
  0xab   : > { %v619_v25 = vmul.f32 %v3450_v37, %v7946_v18  ;;  %v4863_v51 = vadd.f32 %v7947_v31, %v2247_v43  ;;  %v4866_v11 = vld [vmem:[%s3841_s12 + $0x56] sm:$0xff]  ;;  %v2054_v26 = vmul.f32 %v7950_v12, %v4853_v53  ;;  %v7953_v37 = vld [vmem:[#allocation80_spill] sm:$0xff]  ;;  %v1616_v39 = vadd.f32 %v1600_v0, %v1580_v15 }
  0xac   : > { %7949 = vst [vmem:[#allocation65_spill] sm:$0xff] %v4866_v11  ;;  %v7951_v55 = vld [vmem:[#allocation97_spill] sm:$0xff]  ;;  %v7952_v2 = vld [vmem:[#allocation74_spill] sm:$0xff]  ;;  %v1132_v34 = vadd.f32 %v1116_v33, %v1096_v57  ;;  %v571_v13 = vadd.f32 %v555_v48, %v535_v8  ;;  %v4892_v0 = vld [vmem:[%s3841_s12 + $0x86] sm:$0xff] }
  0xad   : > { %7948 = vst [vmem:[#allocation64_spill] sm:$0xff] %v4863_v51  ;;  %v1672_v38 = vmul.f32 %v7952_v2, %v7951_v55  ;;  %v7954_v18 = vld [vmem:[#allocation49_spill] sm:$0xff]  ;;  %2286 = vadd.xlane.f32.xlu0 %v4863_v51  ;;  %v2090_v2 = vmul.f32 %v7958_v52, %v4866_v11  ;;  %v7960_v51 = vld [vmem:[#allocation51_spill] sm:$0xff]  ;;  %7961 = vst [vmem:[#allocation84_spill] sm:$0xff] %v4892_v0  ;;  %v1652_v48 = vadd.f32 %v1636_v16, %v1616_v39 }
  0xae   : > { %v1216_v35 = vmul.f32 %v7954_v18, %v7953_v37  ;;  %v4878_v43 = vld [vmem:[%s3841_s12 + $0x6e] sm:$0xff]  ;;  %v7959_v37 = vld [vmem:[#allocation19_spill] sm:$0xff]  ;;  %v1252_v17 = vmul.f32 %v7960_v51, %v7917_v6  ;;  %v1196_v33 = vadd.f32 %v1180_v63, %v1132_v34  ;;  %v635_v15 = vadd.f32 %v619_v25, %v571_v13 }
  0xaf   : > { %7955 = vst [vmem:[#allocation69_spill] sm:$0xff] %v4878_v43  ;;  %v4881_v28 = vld [vmem:[%s3841_s12 + $0x49] sm:$0xff]  ;;  %v1736_v18 = vmul.f32 %v7959_v37, %v1704_v42  ;;  %v4895_v57 = vld [vmem:[%s3841_s12 + $0x61] sm:$0xff]  ;;  %v2070_v54 = vadd.f32 %v2054_v26, %v2034_v47  ;;  %v1688_v25 = vadd.f32 %v1672_v38, %v1652_v48  ;;  %v4909_v34 = vld [vmem:[%s3841_s12 + $0x79] sm:$0xff] }
  0xb0   : > { %7956 = vst [vmem:[#allocation83_spill] sm:$0xff] %v4881_v28  ;;  %v655_v9 = vmul.f32 %v4881_v28, %v7957_v21  ;;  %7962 = vst [vmem:[#allocation85_spill] sm:$0xff] %v4895_v57  ;;  %v7963_v8 = vld [vmem:[#allocation16_spill] sm:$0xff]  ;;  %v7966_v37 = vld [vmem:[#allocation21_spill] sm:$0xff]  ;;  %v1232_v16 = vadd.f32 %v1216_v35, %v1196_v33 }
  0xb1   : > { %v691_v46 = vmul.f32 %v4895_v57, %v7963_v8  ;;  %v7964_v28 = vld [vmem:[#allocation32_spill] sm:$0xff]  ;;  %v4906_v63 = vld [vmem:[%s3841_s12 + $0x9e] sm:$0xff]  ;;  %7969 = vst [vmem:[#allocation81_spill] sm:$0xff] %v4909_v34  ;;  %v7970_v13 = vld [vmem:[#allocation17_spill] sm:$0xff]  ;;  %v2106_v47 = vadd.f32 %v2090_v2, %v2070_v54  ;;  %v1752_v35 = vadd.f32 %v1736_v18, %v1688_v25 }
  0xb2   : > { %v2126_v42 = vmul.f32 %v7964_v28, %v4878_v43  ;;  %v7965_v21 = vld [vmem:[#allocation96_spill] sm:$0xff]  ;;  %7968 = vst [vmem:[#allocation98_spill] sm:$0xff] %v4906_v63  ;;  %v671_v39 = vadd.f32 %v655_v9, %v635_v15  ;;  %v727_v26 = vmul.f32 %v4909_v34, %v7970_v13  ;;  %v7971_v57 = vld [vmem:[#allocation33_spill] sm:$0xff]  ;;  %v1268_v48 = vadd.f32 %v1252_v17, %v1232_v16  ;;  %v7977_v2 = vld [vmem:[#allocation18_spill] sm:$0xff] }
  0xb3   : > { %v1772_v11 = vmul.f32 %v7966_v37, %v7965_v21  ;;  %v7967_v6 = vld [vmem:[#allocation52_spill] sm:$0xff]  ;;  %v2162_v8 = vmul.f32 %v7971_v57, %v4892_v0  ;;  %v7973_v37 = vld [vmem:[#allocation22_spill] sm:$0xff] }
  0xb4   : > { %v1288_v51 = vmul.f32 %v7967_v6, %v4586_v50  ;;  %v7972_v21 = vld [vmem:[#allocation48_spill] sm:$0xff]  ;;  %v1324_v50 = vmul.f32 %v7857_v24, %v4609_v4  ;;  %v4920_v38 = vld [vmem:[%s3841_s12 + $0xb6] sm:$0xff]  ;;  %v707_v33 = vadd.f32 %v691_v46, %v671_v39  ;;  %v2142_v34 = vadd.f32 %v2126_v42, %v2106_v47  ;;  %v7978_v6 = vld [vmem:[#allocation35_spill] sm:$0xff] }
  0xb5   : > { %v1808_v43 = vmul.f32 %v7973_v37, %v7972_v21  ;;  %7974 = vst [vmem:[#allocation78_spill] sm:$0xff] %v4920_v38  ;;  %v4923_v9 = vld [vmem:[%s3841_s12 + $0xcb] sm:$0xff]  ;;  %v2198_v13 = vmul.f32 %v7978_v6, %v4906_v63  ;;  %v7979_v37 = vld [vmem:[#allocation71_spill] sm:$0xff]  ;;  %v7980_v24 = vld [vmem:[#allocation86_spill] sm:$0xff]  ;;  %v1788_v17 = vadd.f32 %v1772_v11, %v1752_v35 }
  0xb6   : > { %7975 = vst [vmem:[#allocation96_spill] sm:$0xff] %v4923_v9  ;;  %v4926_v15 = vld [vmem:[%s3841_s12 + $0x91] sm:$0xff]  ;;  %v1844_v4 = vmul.f32 %v7915_v22, %v7979_v37  ;;  %v1360_v18 = vmul.f32 %v7867_v58, %v7980_v24  ;;  %v4937_v25 = vld [vmem:[%s3841_s12 + $0xc1] sm:$0xff]  ;;  %v1304_v46 = vadd.f32 %v1288_v51, %v1268_v48  ;;  %v743_v16 = vadd.f32 %v727_v26, %v707_v33  ;;  %v4940_v39 = vld [vmem:[%s3841_s12 + $0xa9] sm:$0xff] }
  0xb7   : > { %7976 = vst [vmem:[#allocation48_spill] sm:$0xff] %v4926_v15  ;;  %v763_v54 = vmul.f32 %v4926_v15, %v7977_v2  ;;  %7981 = vst [vmem:[#allocation107_spill] sm:$0xff] %v4937_v25  ;;  %v799_v15 = vmul.f32 %v4940_v39, %v7914_v41  ;;  %v2178_v42 = vadd.f32 %v2162_v8, %v2142_v34  ;;  %v7983_v47 = vld [vmem:[#allocation36_spill] sm:$0xff]  ;;  %v7985_v33 = vld [vmem:[#allocation101_spill] sm:$0xff] }
  0xb8   : > { %7982 = vst [vmem:[#allocation108_spill] sm:$0xff] %v4940_v39  ;;  %v2234_v2 = vmul.f32 %v7983_v47, %v4920_v38  ;;  %v7984_v22 = vld [vmem:[#allocation24_spill] sm:$0xff]  ;;  %v1396_v24 = vmul.f32 %v7870_v1, %v4923_v9  ;;  %v1824_v58 = vadd.f32 %v1808_v43, %v1788_v17  ;;  %v1340_v51 = vadd.f32 %v1324_v50, %v1304_v46  ;;  %v7986_v8 = vld [vmem:[#allocation25_spill] sm:$0xff]  ;;  %v7987_v39 = vld [vmem:[#allocation102_spill] sm:$0xff] }
  0xb9   : > { %v1880_v37 = vmul.f32 %v7984_v22, %v4730_v40  ;;  %v1984_v11 = vld [vmem:[%s3841_s12 + $0xe] sm:$0xff]  ;;  %v779_v26 = vadd.f32 %v763_v54, %v743_v16  ;;  %v835_v35 = vmul.f32 %v3947_v61, %v4937_v25  ;;  %v2214_v48 = vadd.f32 %v2198_v13, %v2178_v42  ;;  %v7988_v38 = vld [vmem:[#allocation26_spill] sm:$0xff] }
  0xba   : > { %v1916_v34 = vmul.f32 %v7986_v8, %v7985_v33  ;;  %v1952_v41 = vmul.f32 %v7988_v38, %v7987_v39  ;;  %v1460_v22 = vmul.f32 %v7873_v36, %v4647_v45  ;;  %v1860_v40 = vadd.f32 %v1844_v4, %v1824_v58  ;;  %v3456_v17 = vld [vmem:[%s3841_s12 + $0x32] sm:$0xff]  ;;  %v4967_v45 = vld [vmem:[%s3841_s12 + $0x4a] sm:$0xff] }
  0xbb   : > { %v1376_v9 = vadd.f32 %v1360_v18, %v1340_v51  ;;  %v815_v43 = vadd.f32 %v799_v15, %v779_v26  ;;  %v899_v50 = vmul.f32 %v3456_v17, %v7732_v44  ;;  %v2250_v54 = vadd.f32 %v2234_v2, %v2214_v48  ;;  %7989 = vst [vmem:[#allocation109_spill] sm:$0xff] %v4967_v45  ;;  %v7991_v15 = vld [vmem:[#allocation72_spill] sm:$0xff]  ;;  %v7992_v18 = vld [vmem:[#allocation75_spill] sm:$0xff] }
  0xbc   : > { %v2016_v13 = vmul.f32 %v7922_v23, %v1984_v11  ;;  %v1496_v46 = vmul.f32 %v7876_v27, %v4658_v62  ;;  %v1532_v16 = vmul.f32 %v7880_v59, %v4669_v60  ;;  %v1896_v42 = vadd.f32 %v1880_v37, %v1860_v40  ;;  %v7993_v51 = vld [vmem:[#allocation76_spill] sm:$0xff] }
  0xbd   : > { %v1412_v25 = vadd.f32 %v1396_v24, %v1376_v9  ;;  %v851_v1 = vadd.f32 %v835_v35, %v815_v43  ;;  %v935_v4 = vmul.f32 %v4967_v45, %v7742_v32  ;;  %v4972_v58 = vadd.f32 %v7947_v31, %v2250_v54  ;;  %v4981_v26 = vld [vmem:[%s3841_s12 + $0x62] sm:$0xff]  ;;  %v7995_v54 = vld [vmem:[#allocation82_spill] sm:$0xff] }
  0xbe   : > { %v342_v2 = vmul.f32 %v7859_v5, %v7991_v15  ;;  %v378_v11 = vmul.f32 %v7926_v29, %v7992_v18  ;;  %v414_v40 = vmul.f32 %v7863_v14, %v7993_v51  ;;  %v1932_v24 = vadd.f32 %v1916_v34, %v1896_v42  ;;  %7994 = vst [vmem:[#allocation72_spill] sm:$0xff] %v4981_v26  ;;  %v7997_v42 = vld [vmem:[#allocation40_spill] sm:$0xff] }
  0xbf   : > { %7990 = vst [vmem:[#allocation110_spill] sm:$0xff] %v4972_v58  ;;  %v1476_v37 = vadd.f32 %v1460_v22, %v1412_v25  ;;  %v915_v9 = vadd.f32 %v899_v50, %v851_v1  ;;  %v971_v35 = vmul.f32 %v4981_v26, %v7751_v56  ;;  %2292 = vadd.xlane.f32.xlu1 %v4972_v58  ;;  %v4993_v50 = vld [vmem:[%s3841_s12 + $0x7a] sm:$0xff]  ;;  %v8002_v58 = vld [vmem:[#allocation65_spill] sm:$0xff]  ;;  %v8007_v60 = vld [vmem:[#allocation12_spill] sm:$0xff] }
  0xc0   : > { %v2052_v48 = vmul.f32 %v7950_v12, %v4765_v10  ;;  %v1568_v43 = vmul.f32 %v7884_v7, %v7942_v3  ;;  %v394_v17 = vadd.f32 %v378_v11, %v342_v2  ;;  %v450_v22 = vmul.f32 %v7929_v30, %v7995_v54  ;;  %7996 = vst [vmem:[#allocation75_spill] sm:$0xff] %v4993_v50  ;;  %v7998_v11 = vld [vmem:[#allocation88_spill] sm:$0xff]  ;;  %v5012_v54 = vld [vmem:[%s3841_s12 + $0xe0] sm:$0xff]  ;;  %v8010_v26 = vld [vmem:[#allocation69_spill] sm:$0xff] }
  0xc1   : > { %v1968_v1 = vadd.f32 %v1952_v41, %v1932_v24  ;;  %v1512_v25 = vadd.f32 %v1496_v46, %v1476_v37  ;;  %v951_v34 = vadd.f32 %v935_v4, %v915_v9  ;;  %v1007_v15 = vmul.f32 %v4993_v50, %v7997_v42  ;;  %v5004_v46 = vld [vmem:[%s3841_s12 + $0xcc] sm:$0xff]  ;;  %8001 = vst [vmem:[#allocation88_spill] sm:$0xff] %v5012_v54 }
  0xc2   : > { %v2088_v10 = vmul.f32 %v7958_v52, %v4853_v53  ;;  %v1604_v18 = vmul.f32 %v7938_v49, %v7951_v55  ;;  %v430_v2 = vadd.f32 %v414_v40, %v394_v17  ;;  %v486_v51 = vmul.f32 %v3865_v20, %v7998_v11  ;;  %7999 = vst [vmem:[#allocation76_spill] sm:$0xff] %v5004_v46  ;;  %v5007_v37 = vld [vmem:[%s3841_s12 + $0x92] sm:$0xff]  ;;  %v8003_v40 = vld [vmem:[#allocation95_spill] sm:$0xff]  ;;  %v5024_v50 = vld [vmem:[%s3841_s12 + $0xaa] sm:$0xff] }
  0xc3   : > { %v2032_v41 = vadd.f32 %v2016_v13, %v1968_v1  ;;  %v1548_v4 = vadd.f32 %v1532_v16, %v1512_v25  ;;  %v987_v24 = vadd.f32 %v971_v35, %v951_v34  ;;  %8000 = vst [vmem:[#allocation82_spill] sm:$0xff] %v5007_v37  ;;  %v1043_v9 = vmul.f32 %v5007_v37, %v7818_v19  ;;  %v8004_v17 = vld [vmem:[#allocation73_spill] sm:$0xff]  ;;  %v5019_v11 = vld [vmem:[%s3841_s12 + $0xc2] sm:$0xff] }
  0xc4   : > { %v2124_v55 = vmul.f32 %v7964_v28, %v8002_v58  ;;  %v1640_v3 = vmul.f32 %v8004_v17, %v8003_v40  ;;  %8005 = vst [vmem:[#allocation111_spill] sm:$0xff] %v5019_v11  ;;  %v466_v13 = vadd.f32 %v450_v22, %v430_v2  ;;  %v8006_v1 = vld [vmem:[#allocation87_spill] sm:$0xff]  ;;  %8008 = vst [vmem:[#allocation112_spill] sm:$0xff] %v5024_v50  ;;  %v8011_v40 = vld [vmem:[#allocation74_spill] sm:$0xff] }
  0xc5   : > { %v522_v16 = vmul.f32 %v8007_v60, %v8006_v1  ;;  %v2068_v35 = vadd.f32 %v2052_v48, %v2032_v41  ;;  %v1584_v25 = vadd.f32 %v1568_v43, %v1548_v4  ;;  %v1023_v34 = vadd.f32 %v1007_v15, %v987_v24  ;;  %v8009_v37 = vld [vmem:[#allocation43_spill] sm:$0xff]  ;;  %v8012_v22 = vld [vmem:[#allocation13_spill] sm:$0xff]  ;;  %v8013_v15 = vld [vmem:[#allocation46_spill] sm:$0xff] }
  0xc6   : > { %v1079_v62 = vmul.f32 %v5024_v50, %v8009_v37  ;;  %v2160_v45 = vmul.f32 %v7971_v57, %v8010_v26  ;;  %v1676_v17 = vmul.f32 %v8011_v40, %v5004_v46  ;;  %v502_v49 = vadd.f32 %v486_v51, %v466_v13  ;;  %v8014_v24 = vld [vmem:[#allocation19_spill] sm:$0xff]  ;;  %v8015_v57 = vld [vmem:[#allocation37_spill] sm:$0xff]  ;;  %v8016_v46 = vld [vmem:[#allocation14_spill] sm:$0xff] }
  0xc7   : > { %v558_v2 = vmul.f32 %v8012_v22, %v5012_v54  ;;  %v2104_v1 = vadd.f32 %v2088_v10, %v2068_v35  ;;  %v1620_v48 = vadd.f32 %v1604_v18, %v1584_v25  ;;  %v1059_v43 = vadd.f32 %v1043_v9, %v1023_v34  ;;  %v3462_v10 = vld [vmem:[%s3841_s12 + $0x33] sm:$0xff]  ;;  %v8017_v18 = vld [vmem:[#allocation47_spill] sm:$0xff] }
  0xc8   : > { %v1115_v41 = vmul.f32 %v8013_v15, %v5019_v11  ;;  %v2196_v4 = vmul.f32 %v7978_v6, %v4892_v0  ;;  %v1740_v50 = vmul.f32 %v8014_v24, %v7972_v21  ;;  %v538_v37 = vadd.f32 %v522_v16, %v502_v49  ;;  %v8018_v25 = vld [vmem:[#allocation71_spill] sm:$0xff]  ;;  %v8019_v34 = vld [vmem:[#allocation21_spill] sm:$0xff] }
  0xc9   : > { %v622_v51 = vmul.f32 %v8016_v46, %v8015_v57  ;;  %v2140_v13 = vadd.f32 %v2124_v55, %v2104_v1  ;;  %v1656_v40 = vadd.f32 %v1640_v3, %v1620_v48  ;;  %v1095_v54 = vadd.f32 %v1079_v62, %v1059_v43  ;;  %v8020_v6 = vld [vmem:[#allocation39_spill] sm:$0xff]  ;;  %v5051_v55 = vld [vmem:[%s3841_s12 + $0x4b] sm:$0xff]  ;;  %v8025_v48 = vld [vmem:[#allocation22_spill] sm:$0xff] }
  0xca   : > { %v1179_v9 = vmul.f32 %v3462_v10, %v8017_v18  ;;  %v2232_v35 = vmul.f32 %v7983_v47, %v4906_v63  ;;  %v1776_v11 = vmul.f32 %v8019_v34, %v8018_v25  ;;  %v574_v15 = vadd.f32 %v558_v2, %v538_v37  ;;  %v8021_v21 = vld [vmem:[#allocation15_spill] sm:$0xff]  ;;  %8022 = vst [vmem:[#allocation37_spill] sm:$0xff] %v5051_v55  ;;  %v8023_v62 = vld [vmem:[#allocation49_spill] sm:$0xff]  ;;  %v8024_v1 = vld [vmem:[#allocation100_spill] sm:$0xff] }
  0xcb   : > { %v658_v49 = vmul.f32 %v8021_v21, %v8020_v6  ;;  %v2176_v16 = vadd.f32 %v2160_v45, %v2140_v13  ;;  %v1692_v24 = vadd.f32 %v1676_v17, %v1656_v40  ;;  %v1131_v57 = vadd.f32 %v1115_v41, %v1095_v54  ;;  %v8026_v18 = vld [vmem:[#allocation41_spill] sm:$0xff]  ;;  %v8027_v47 = vld [vmem:[#allocation16_spill] sm:$0xff]  ;;  %v8029_v54 = vld [vmem:[#allocation51_spill] sm:$0xff] }
  0xcc   : > { %v1215_v3 = vmul.f32 %v5051_v55, %v8023_v62  ;;  %v1812_v43 = vmul.f32 %v8025_v48, %v8024_v1  ;;  %v638_v10 = vadd.f32 %v622_v51, %v574_v15  ;;  %v694_v25 = vmul.f32 %v8027_v47, %v8026_v18  ;;  %v5060_v45 = vld [vmem:[%s3841_s12 + $0x63] sm:$0xff]  ;;  %v8032_v1 = vld [vmem:[#allocation17_spill] sm:$0xff] }
  0xcd   : > { %v2212_v37 = vadd.f32 %v2196_v4, %v2176_v16  ;;  %v1756_v2 = vadd.f32 %v1740_v50, %v1692_v24  ;;  %v1195_v6 = vadd.f32 %v1179_v9, %v1131_v57  ;;  %8028 = vst [vmem:[#allocation39_spill] sm:$0xff] %v5060_v45  ;;  %v1251_v40 = vmul.f32 %v5060_v45, %v8029_v54  ;;  %v8030_v17 = vld [vmem:[#allocation23_spill] sm:$0xff]  ;;  %v8031_v55 = vld [vmem:[#allocation44_spill] sm:$0xff]  ;;  %v8036_v54 = vld [vmem:[#allocation45_spill] sm:$0xff] }
  0xce   : > { %v1848_v41 = vmul.f32 %v8030_v17, %v7985_v33  ;;  %v674_v13 = vadd.f32 %v658_v49, %v638_v10  ;;  %v730_v15 = vmul.f32 %v8032_v1, %v8031_v55  ;;  %v5069_v24 = vld [vmem:[%s3841_s12 + $0x7b] sm:$0xff]  ;;  %v8034_v18 = vld [vmem:[#allocation52_spill] sm:$0xff] }
  0xcf   : > { %v2248_v51 = vadd.f32 %v2232_v35, %v2212_v37  ;;  %v1792_v4 = vadd.f32 %v1776_v11, %v1756_v2  ;;  %v1231_v50 = vadd.f32 %v1215_v3, %v1195_v6  ;;  %8033 = vst [vmem:[#allocation49_spill] sm:$0xff] %v5069_v24  ;;  %v1287_v9 = vmul.f32 %v5069_v24, %v8034_v18  ;;  %v8035_v16 = vld [vmem:[#allocation24_spill] sm:$0xff]  ;;  %v8037_v33 = vld [vmem:[#allocation18_spill] sm:$0xff]  ;;  %v8041_v37 = vld [vmem:[#allocation55_spill] sm:$0xff] }
  0xd0   : > { %v1884_v57 = vmul.f32 %v8035_v16, %v7987_v39  ;;  %v710_v45 = vadd.f32 %v694_v25, %v674_v13  ;;  %v766_v49 = vmul.f32 %v8037_v33, %v8036_v54  ;;  %v5081_v55 = vld [vmem:[%s3841_s12 + $0xcd] sm:$0xff]  ;;  %v5089_v6 = vld [vmem:[%s3841_s12 + $0xe1] sm:$0xff]  ;;  %v8044_v13 = vld [vmem:[#allocation50_spill] sm:$0xff] }
  0xd1   : > { %v5078_v10 = vadd.f32 %v7947_v31, %v2248_v51  ;;  %8039 = vst [vmem:[#allocation16_spill] sm:$0xff] %v5081_v55  ;;  %v1828_v11 = vadd.f32 %v1812_v43, %v1792_v4  ;;  %v1267_v35 = vadd.f32 %v1251_v40, %v1231_v50  ;;  %v5084_v3 = vld [vmem:[%s3841_s12 + $0x93] sm:$0xff]  ;;  %8042 = vst [vmem:[#allocation45_spill] sm:$0xff] %v5089_v6  ;;  %v5092_v24 = vld [vmem:[%s3841_s12 + $0xc3] sm:$0xff] }
  0xd2   : > { %8040 = vst [vmem:[#allocation44_spill] sm:$0xff] %v5084_v3  ;;  %v1323_v2 = vmul.f32 %v5084_v3, %v8041_v37  ;;  %8043 = vst [vmem:[#allocation113_spill] sm:$0xff] %v5092_v24  ;;  %v746_v25 = vadd.f32 %v730_v15, %v710_v45  ;;  %v8045_v39 = vld [vmem:[#allocation20_spill] sm:$0xff]  ;;  %v8046_v18 = vld [vmem:[#allocation103_spill] sm:$0xff]  ;;  %v1956_v37 = vmul.f32 %v7988_v38, %v5081_v55 }
  0xd3   : > { %8038 = vst [vmem:[#allocation41_spill] sm:$0xff] %v5078_v10  ;;  %v802_v54 = vmul.f32 %v8045_v39, %v8044_v13  ;;  %2288 = vadd.xlane.f32.xlu0 %v5078_v10  ;;  %v1864_v51 = vadd.f32 %v1848_v41, %v1828_v11  ;;  %v1920_v43 = vmul.f32 %v7986_v8, %v8046_v18  ;;  %v5100_v4 = vld [vmem:[%s3841_s12 + $0xab] sm:$0xff]  ;;  %v8049_v41 = vld [vmem:[#allocation58_spill] sm:$0xff] }
  0xd4   : > { %v1303_v40 = vadd.f32 %v1287_v9, %v1267_v35  ;;  %8047 = vst [vmem:[#allocation114_spill] sm:$0xff] %v5100_v4  ;;  %v8048_v50 = vld [vmem:[#allocation57_spill] sm:$0xff]  ;;  %v782_v45 = vadd.f32 %v766_v49, %v746_v25  ;;  %v838_v15 = vmul.f32 %v3947_v61, %v5089_v6  ;;  %v1395_v11 = vmul.f32 %v8049_v41, %v5092_v24  ;;  %v8050_v9 = vld [vmem:[#allocation104_spill] sm:$0xff]  ;;  %v8053_v49 = vld [vmem:[#allocation106_spill] sm:$0xff] }
  0xd5   : > { %v1359_v3 = vmul.f32 %v5100_v4, %v8048_v50  ;;  %v1900_v13 = vadd.f32 %v1884_v57, %v1864_v51  ;;  %v341_v35 = vmul.f32 %v8050_v9, %v7859_v5  ;;  %v8051_v39 = vld [vmem:[#allocation53_spill] sm:$0xff]  ;;  %v413_v25 = vmul.f32 %v8053_v49, %v7863_v14  ;;  %v8055_v24 = vld [vmem:[#allocation56_spill] sm:$0xff] }
  0xd6   : > { %v1339_v10 = vadd.f32 %v1323_v2, %v1303_v40  ;;  %v818_v18 = vadd.f32 %v802_v54, %v782_v45  ;;  %v902_v4 = vmul.f32 %v7732_v44, %v8051_v39  ;;  %v8052_v50 = vld [vmem:[#allocation105_spill] sm:$0xff]  ;;  %v2020_v57 = vmul.f32 %v7922_v23, %v4853_v53  ;;  %v8054_v54 = vld [vmem:[#allocation54_spill] sm:$0xff] }
  0xd7   : > { %v377_v55 = vmul.f32 %v8052_v50, %v7926_v29  ;;  %v1936_v6 = vadd.f32 %v1920_v43, %v1900_v13  ;;  %v3468_v51 = vld [vmem:[%s3841_s12 + $0x34] sm:$0xff]  ;;  %v938_v45 = vmul.f32 %v7742_v32, %v8054_v54  ;;  %v449_v50 = vmul.f32 %v8055_v24, %v7929_v30  ;;  %v5129_v53 = vld [vmem:[%s3841_s12 + $0x4c] sm:$0xff]  ;;  %v8075_v24 = vld [vmem:[#allocation35_spill] sm:$0xff] }
  0xd8   : > { %v1375_v2 = vadd.f32 %v1359_v3, %v1339_v10  ;;  %v1459_v40 = vmul.f32 %v3468_v51, %v7873_v36  ;;  %v854_v9 = vadd.f32 %v838_v15, %v818_v18  ;;  %v2056_v13 = vmul.f32 %v7950_v12, %v8002_v58  ;;  %8056 = vst [vmem:[#allocation104_spill] sm:$0xff] %v5129_v53  ;;  %v8057_v3 = vld [vmem:[#allocation68_spill] sm:$0xff] }
  0xd9   : > { %v393_v39 = vadd.f32 %v377_v55, %v341_v35  ;;  %v1972_v41 = vadd.f32 %v1956_v37, %v1936_v6  ;;  %v1495_v10 = vmul.f32 %v5129_v53, %v7876_v27  ;;  %v974_v15 = vmul.f32 %v7751_v56, %v8057_v3  ;;  %v8058_v35 = vld [vmem:[#allocation63_spill] sm:$0xff]  ;;  %v5145_v53 = vld [vmem:[%s3841_s12 + $0xd8] sm:$0xff] }
  0xda   : > { %v1411_v43 = vadd.f32 %v1395_v11, %v1375_v2  ;;  %v918_v18 = vadd.f32 %v902_v4, %v854_v9  ;;  %v485_v51 = vmul.f32 %v8058_v35, %v3865_v20  ;;  %v2092_v37 = vmul.f32 %v7958_v52, %v8010_v26  ;;  %v5140_v11 = vld [vmem:[%s3841_s12 + $0x64] sm:$0xff]  ;;  %8060 = vst [vmem:[#allocation54_spill] sm:$0xff] %v5145_v53  ;;  %v8061_v9 = vld [vmem:[#allocation77_spill] sm:$0xff]  ;;  %v8062_v3 = vld [vmem:[#allocation62_spill] sm:$0xff] }
  0xdb   : > { %v429_v55 = vadd.f32 %v413_v25, %v393_v39  ;;  %v2036_v54 = vadd.f32 %v2020_v57, %v1972_v41  ;;  %8059 = vst [vmem:[#allocation53_spill] sm:$0xff] %v5140_v11  ;;  %v1531_v2 = vmul.f32 %v5140_v11, %v7880_v59  ;;  %v1010_v25 = vmul.f32 %v7997_v42, %v8061_v9  ;;  %v5154_v11 = vld [vmem:[%s3841_s12 + $0x7c] sm:$0xff] }
  0xdc   : > { %v1475_v6 = vadd.f32 %v1459_v40, %v1411_v43  ;;  %v954_v4 = vadd.f32 %v938_v45, %v918_v18  ;;  %v521_v41 = vmul.f32 %v8007_v60, %v8062_v3  ;;  %v2128_v40 = vmul.f32 %v7964_v28, %v4892_v0  ;;  %8063 = vst [vmem:[#allocation68_spill] sm:$0xff] %v5154_v11  ;;  %v8064_v26 = vld [vmem:[#allocation79_spill] sm:$0xff] }
  0xdd   : > { %v465_v39 = vadd.f32 %v449_v50, %v429_v55  ;;  %v2072_v57 = vadd.f32 %v2056_v13, %v2036_v54  ;;  %v1567_v45 = vmul.f32 %v5154_v11, %v7884_v7  ;;  %v1046_v50 = vmul.f32 %v7818_v19, %v8064_v26  ;;  %v8065_v54 = vld [vmem:[#allocation33_spill] sm:$0xff]  ;;  %v5170_v11 = vld [vmem:[%s3841_s12 + $0xe2] sm:$0xff] }
  0xde   : > { %v1511_v43 = vadd.f32 %v1495_v10, %v1475_v6  ;;  %v990_v18 = vadd.f32 %v974_v15, %v954_v4  ;;  %v557_v9 = vmul.f32 %v8012_v22, %v5145_v53  ;;  %v2164_v3 = vmul.f32 %v8065_v54, %v4906_v63  ;;  %v5165_v10 = vld [vmem:[%s3841_s12 + $0x94] sm:$0xff]  ;;  %8068 = vst [vmem:[#allocation79_spill] sm:$0xff] %v5170_v11  ;;  %v5176_v26 = vld [vmem:[%s3841_s12 + $0xc4] sm:$0xff] }
  0xdf   : > { %v501_v55 = vadd.f32 %v485_v51, %v465_v39  ;;  %v2108_v13 = vadd.f32 %v2092_v37, %v2072_v57  ;;  %8066 = vst [vmem:[#allocation77_spill] sm:$0xff] %v5165_v10  ;;  %v8067_v6 = vld [vmem:[#allocation70_spill] sm:$0xff]  ;;  %v5173_v15 = vld [vmem:[%s3841_s12 + $0xce] sm:$0xff]  ;;  %8070 = vst [vmem:[#allocation116_spill] sm:$0xff] %v5176_v26 }
  0xe0   : > { %v1547_v0 = vadd.f32 %v1531_v2, %v1511_v43  ;;  %v1603_v35 = vmul.f32 %v5165_v10, %v8067_v6  ;;  %8069 = vst [vmem:[#allocation115_spill] sm:$0xff] %v5173_v15  ;;  %v1026_v51 = vadd.f32 %v1010_v25, %v990_v18  ;;  %v8071_v4 = vld [vmem:[#allocation59_spill] sm:$0xff]  ;;  %v8074_v43 = vld [vmem:[#allocation78_spill] sm:$0xff]  ;;  %v5185_v10 = vld [vmem:[%s3841_s12 + $0xac] sm:$0xff] }
  0xe1   : > { %v8072_v39 = vld [vmem:[#allocation43_spill] sm:$0xff]  ;;  %v537_v37 = vadd.f32 %v521_v41, %v501_v55  ;;  %v2144_v2 = vadd.f32 %v2128_v40, %v2108_v13  ;;  %v2200_v49 = vmul.f32 %v8075_v24, %v8074_v43  ;;  %v8077_v6 = vld [vmem:[#allocation73_spill] sm:$0xff]  ;;  %v8078_v25 = vld [vmem:[#allocation46_spill] sm:$0xff] }
  0xe2   : > { %v1082_v53 = vmul.f32 %v8072_v39, %v8071_v4  ;;  %v8073_v57 = vld [vmem:[#allocation83_spill] sm:$0xff]  ;;  %v1583_v58 = vadd.f32 %v1567_v45, %v1547_v0  ;;  %v1639_v7 = vmul.f32 %v5185_v10, %v8077_v6  ;;  %v1062_v19 = vadd.f32 %v1046_v50, %v1026_v51  ;;  %v8079_v55 = vld [vmem:[#allocation85_spill] sm:$0xff]  ;;  %v8080_v13 = vld [vmem:[#allocation36_spill] sm:$0xff] }
  0xe3   : > { %v621_v63 = vmul.f32 %v8073_v57, %v8016_v46  ;;  %8076 = vst [vmem:[#allocation83_spill] sm:$0xff] %v5185_v10  ;;  %v1118_v18 = vmul.f32 %v8078_v25, %v5170_v11  ;;  %v573_v41 = vadd.f32 %v557_v9, %v537_v37  ;;  %v657_v57 = vmul.f32 %v8079_v55, %v8021_v21  ;;  %v8081_v45 = vld [vmem:[#allocation74_spill] sm:$0xff]  ;;  %v8082_v46 = vld [vmem:[#allocation80_spill] sm:$0xff]  ;;  %v8083_v10 = vld [vmem:[#allocation47_spill] sm:$0xff] }
  0xe4   : > { %v2180_v40 = vadd.f32 %v2164_v3, %v2144_v2  ;;  %v2236_v43 = vmul.f32 %v8080_v13, %v5173_v15  ;;  %v1619_v0 = vadd.f32 %v1603_v35, %v1583_v58  ;;  %v1675_v4 = vmul.f32 %v8081_v45, %v5176_v26  ;;  %v8084_v11 = vld [vmem:[#allocation81_spill] sm:$0xff]  ;;  %v8085_v55 = vld [vmem:[#allocation19_spill] sm:$0xff] }
  0xe5   : > { %v1098_v39 = vadd.f32 %v1082_v53, %v1062_v19  ;;  %v1182_v50 = vmul.f32 %v8083_v10, %v8082_v46  ;;  %v637_v51 = vadd.f32 %v621_v63, %v573_v41  ;;  %v693_v9 = vmul.f32 %v8084_v11, %v8027_v47  ;;  %v3474_v2 = vld [vmem:[%s3841_s12 + $0x35] sm:$0xff]  ;;  %v5204_v58 = vld [vmem:[%s3841_s12 + $0x4d] sm:$0xff] }
  0xe6   : > { %v2216_v37 = vadd.f32 %v2200_v49, %v2180_v40  ;;  %v1655_v3 = vadd.f32 %v1639_v7, %v1619_v0  ;;  %v1739_v15 = vmul.f32 %v3474_v2, %v8085_v55  ;;  %8086 = vst [vmem:[#allocation80_spill] sm:$0xff] %v5204_v58  ;;  %v1775_v19 = vmul.f32 %v5204_v58, %v8019_v34  ;;  %v8087_v35 = vld [vmem:[#allocation89_spill] sm:$0xff]  ;;  %v8088_v41 = vld [vmem:[#allocation48_spill] sm:$0xff]  ;;  %v5218_v2 = vld [vmem:[%s3841_s12 + $0x7d] sm:$0xff] }
  0xe7   : > { %v1134_v53 = vadd.f32 %v1118_v18, %v1098_v39  ;;  %v1218_v46 = vmul.f32 %v8023_v62, %v8087_v35  ;;  %v673_v63 = vadd.f32 %v657_v57, %v637_v51  ;;  %v729_v26 = vmul.f32 %v8088_v41, %v8032_v1  ;;  %v5213_v40 = vld [vmem:[%s3841_s12 + $0x65] sm:$0xff]  ;;  %8090 = vst [vmem:[#allocation117_spill] sm:$0xff] %v5218_v2  ;;  %v8092_v51 = vld [vmem:[#allocation90_spill] sm:$0xff]  ;;  %v5238_v11 = vld [vmem:[%s3841_s12 + $0xad] sm:$0xff] }
  0xe8   : > { %v2252_v49 = vadd.f32 %v2236_v43, %v2216_v37  ;;  %v1691_v7 = vadd.f32 %v1675_v4, %v1655_v3  ;;  %8089 = vst [vmem:[#allocation89_spill] sm:$0xff] %v5213_v40  ;;  %v1811_v0 = vmul.f32 %v5213_v40, %v8025_v48  ;;  %v1847_v39 = vmul.f32 %v5218_v2, %v8030_v17  ;;  %v5223_v18 = vld [vmem:[%s3841_s12 + $0xc5] sm:$0xff]  ;;  %v5233_v40 = vld [vmem:[%s3841_s12 + $0x95] sm:$0xff] }
  0xe9   : > { %8091 = vst [vmem:[#allocation118_spill] sm:$0xff] %v5223_v18  ;;  %v1198_v57 = vadd.f32 %v1182_v50, %v1134_v53  ;;  %v8093_v35 = vld [vmem:[#allocation51_spill] sm:$0xff]  ;;  %v709_v41 = vadd.f32 %v693_v9, %v673_v63  ;;  %v8094_v4 = vld [vmem:[#allocation108_spill] sm:$0xff]  ;;  %8096 = vst [vmem:[#allocation119_spill] sm:$0xff] %v5233_v40  ;;  %v1883_v2 = vmul.f32 %v5233_v40, %v8035_v16 }
  0xea   : > { %v1254_v58 = vmul.f32 %v8093_v35, %v8092_v51  ;;  %v765_v43 = vmul.f32 %v8094_v4, %v8037_v33  ;;  %v5230_v37 = vadd.f32 %v7947_v31, %v2252_v49  ;;  %v1755_v3 = vadd.f32 %v1739_v15, %v1691_v7  ;;  %8097 = vst [vmem:[#allocation120_spill] sm:$0xff] %v5238_v11  ;;  %v5243_v9 = vld [vmem:[%s3841_s12 + $0xd9] sm:$0xff]  ;;  %v8100_v51 = vld [vmem:[#allocation52_spill] sm:$0xff] }
  0xeb   : > { %v1919_v50 = vmul.f32 %v5238_v11, %v7986_v8  ;;  %8098 = vst [vmem:[#allocation121_spill] sm:$0xff] %v5243_v9  ;;  %v1234_v53 = vadd.f32 %v1218_v46, %v1198_v57  ;;  %v8099_v63 = vld [vmem:[#allocation30_spill] sm:$0xff]  ;;  %v745_v4 = vadd.f32 %v729_v26, %v709_v41  ;;  %v8101_v15 = vld [vmem:[#allocation107_spill] sm:$0xff]  ;;  %v8102_v7 = vld [vmem:[#allocation20_spill] sm:$0xff]  ;;  %v1955_v11 = vmul.f32 %v7988_v38, %v5223_v18 }
  0xec   : > { %8095 = vst [vmem:[#allocation90_spill] sm:$0xff] %v5230_v37  ;;  %v1290_v49 = vmul.f32 %v8100_v51, %v8099_v63  ;;  %v801_v31 = vmul.f32 %v8102_v7, %v8101_v15  ;;  %2296 = vadd.xlane.f32.xlu1 %v5230_v37  ;;  %v1791_v40 = vadd.f32 %v1775_v19, %v1755_v3  ;;  %v3480_v8 = vld [vmem:[%s3841_s12 + $0x36] sm:$0xff]  ;;  %v5255_v57 = vld [vmem:[%s3841_s12 + $0x4e] sm:$0xff]  ;;  %v8105_v15 = vld [vmem:[#allocation55_spill] sm:$0xff] }
  0xed   : > { %v2019_v46 = vmul.f32 %v3480_v8, %v7922_v23  ;;  %8103 = vst [vmem:[#allocation30_spill] sm:$0xff] %v5255_v57  ;;  %v5259_v63 = vmul.f32 %v5255_v57, %v7950_v12  ;;  %v1270_v26 = vadd.f32 %v1254_v58, %v1234_v53  ;;  %v8104_v41 = vld [vmem:[#allocation86_spill] sm:$0xff]  ;;  %v781_v37 = vadd.f32 %v765_v43, %v745_v4  ;;  %v5266_v18 = vld [vmem:[%s3841_s12 + $0xe3] sm:$0xff] }
  0xee   : > { %v1326_v51 = vmul.f32 %v8105_v15, %v8104_v41  ;;  %v837_v19 = vmul.f32 %v3947_v61, %v5243_v9  ;;  %v1827_v3 = vadd.f32 %v1811_v0, %v1791_v40  ;;  %8106 = vst [vmem:[#allocation86_spill] sm:$0xff] %v5266_v18  ;;  %v3482_v8 = vld [vmem:[%s3841_s12 + $0x68] sm:$0xff]  ;;  %v5271_v38 = vld [vmem:[%s3841_s12 + $0x80] sm:$0xff]  ;;  %v5276_v53 = vld [vmem:[%s3841_s12 + $0x98] sm:$0xff] }
  0xef   : > { %v344_v23 = vmul.f32 %v3482_v8, %v7859_v5  ;;  %8107 = vst [vmem:[#allocation122_spill] sm:$0xff] %v5271_v38  ;;  %v380_v58 = vmul.f32 %v5271_v38, %v7926_v29  ;;  %8108 = vst [vmem:[#allocation123_spill] sm:$0xff] %v5276_v53  ;;  %v416_v4 = vmul.f32 %v5276_v53, %v7863_v14  ;;  %v8109_v41 = vld [vmem:[#allocation96_spill] sm:$0xff]  ;;  %v8110_v40 = vld [vmem:[#allocation57_spill] sm:$0xff] }
  0xf0   : > { %v1306_v43 = vadd.f32 %v1290_v49, %v1270_v26  ;;  %v1362_v0 = vmul.f32 %v8110_v40, %v8109_v41  ;;  %v817_v57 = vadd.f32 %v801_v31, %v781_v37  ;;  %v8111_v9 = vld [vmem:[#allocation109_spill] sm:$0xff]  ;;  %v1863_v8 = vadd.f32 %v1847_v39, %v1827_v3  ;;  %v5285_v5 = vld [vmem:[%s3841_s12 + $0x66] sm:$0xff]  ;;  %v8114_v31 = vld [vmem:[#allocation58_spill] sm:$0xff] }
  0xf1   : > { %v901_v12 = vmul.f32 %v8111_v9, %v7732_v44  ;;  %8112 = vst [vmem:[#allocation57_spill] sm:$0xff] %v5285_v5  ;;  %v2091_v38 = vmul.f32 %v5285_v5, %v7958_v52  ;;  %v396_v29 = vadd.f32 %v380_v58, %v344_v23  ;;  %v5290_v15 = vld [vmem:[%s3841_s12 + $0xb0] sm:$0xff]  ;;  %v1398_v37 = vmul.f32 %v8114_v31, %v5266_v18  ;;  %v8115_v39 = vld [vmem:[#allocation72_spill] sm:$0xff]  ;;  %v5299_v41 = vld [vmem:[%s3841_s12 + $0x7e] sm:$0xff] }
  0xf2   : > { %8113 = vst [vmem:[#allocation109_spill] sm:$0xff] %v5290_v15  ;;  %v452_v49 = vmul.f32 %v5290_v15, %v7929_v30  ;;  %v1342_v26 = vadd.f32 %v1326_v51, %v1306_v43  ;;  %v853_v53 = vadd.f32 %v837_v19, %v817_v57  ;;  %v937_v9 = vmul.f32 %v8115_v39, %v7742_v32  ;;  %v8117_v5 = vld [vmem:[#allocation87_spill] sm:$0xff]  ;;  %v8118_v51 = vld [vmem:[#allocation92_spill] sm:$0xff]  ;;  %v5310_v18 = vld [vmem:[%s3841_s12 + $0xf8] sm:$0xff] }
  0xf3   : > { %v1899_v3 = vadd.f32 %v1883_v2, %v1863_v8  ;;  %8116 = vst [vmem:[#allocation124_spill] sm:$0xff] %v5299_v41  ;;  %v2127_v23 = vmul.f32 %v5299_v41, %v7964_v28  ;;  %v432_v58 = vadd.f32 %v416_v4, %v396_v29  ;;  %v488_v15 = vmul.f32 %v3865_v20, %v8117_v5  ;;  %v8119_v19 = vld [vmem:[#allocation75_spill] sm:$0xff]  ;;  %v5313_v8 = vld [vmem:[%s3841_s12 + $0x96] sm:$0xff]  ;;  %v8122_v41 = vld [vmem:[#allocation88_spill] sm:$0xff] }
  0xf4   : > { %v1378_v52 = vadd.f32 %v1362_v0, %v1342_v26  ;;  %v1462_v43 = vmul.f32 %v7873_v36, %v8118_v51  ;;  %v917_v57 = vadd.f32 %v901_v12, %v853_v53  ;;  %v973_v39 = vmul.f32 %v8119_v19, %v7751_v56  ;;  %8120 = vst [vmem:[#allocation87_spill] sm:$0xff] %v5310_v18  ;;  %v5320_v0 = vld [vmem:[%s3841_s12 + $0xc6] sm:$0xff]  ;;  %v5327_v28 = vld [vmem:[%s3841_s12 + $0xae] sm:$0xff] }
  0xf5   : > { %v1935_v2 = vadd.f32 %v1919_v50, %v1899_v3  ;;  %8121 = vst [vmem:[#allocation92_spill] sm:$0xff] %v5313_v8  ;;  %v2163_v29 = vmul.f32 %v5313_v8, %v8065_v54  ;;  %v468_v4 = vadd.f32 %v452_v49, %v432_v58  ;;  %v524_v5 = vmul.f32 %v8007_v60, %v8122_v41  ;;  %v8124_v12 = vld [vmem:[#allocation91_spill] sm:$0xff]  ;;  %v8125_v50 = vld [vmem:[#allocation82_spill] sm:$0xff] }
  0xf6   : > { %8123 = vst [vmem:[#allocation125_spill] sm:$0xff] %v5320_v0  ;;  %v1414_v26 = vadd.f32 %v1398_v37, %v1378_v52  ;;  %v1498_v53 = vmul.f32 %v7876_v27, %v8124_v12  ;;  %v953_v51 = vadd.f32 %v937_v9, %v917_v57  ;;  %v1009_v3 = vmul.f32 %v8125_v50, %v7997_v42  ;;  %v8127_v37 = vld [vmem:[#allocation94_spill] sm:$0xff]  ;;  %v8129_v57 = vld [vmem:[#allocation112_spill] sm:$0xff] }
  0xf7   : > { %v1971_v19 = vadd.f32 %v1955_v11, %v1935_v2  ;;  %8126 = vst [vmem:[#allocation91_spill] sm:$0xff] %v5327_v28  ;;  %v2199_v49 = vmul.f32 %v5327_v28, %v8075_v24  ;;  %v504_v58 = vadd.f32 %v488_v15, %v468_v4  ;;  %v560_v8 = vmul.f32 %v8012_v22, %v5310_v18  ;;  %v8128_v9 = vld [vmem:[#allocation42_spill] sm:$0xff]  ;;  %v3490_v15 = vld [vmem:[%s3841_s12 + $0x69] sm:$0xff] }
  0xf8   : > { %v1478_v52 = vadd.f32 %v1462_v43, %v1414_v26  ;;  %v1534_v12 = vmul.f32 %v7880_v59, %v8127_v37  ;;  %v989_v41 = vadd.f32 %v973_v39, %v953_v51  ;;  %v1045_v50 = vmul.f32 %v8129_v57, %v8128_v9  ;;  %v5340_v2 = vld [vmem:[%s3841_s12 + $0xda] sm:$0xff]  ;;  %v5345_v18 = vld [vmem:[%s3841_s12 + $0xe4] sm:$0xff]  ;;  %v8133_v26 = vld [vmem:[#allocation97_spill] sm:$0xff] }
  0xf9   : > { %v2035_v54 = vadd.f32 %v2019_v46, %v1971_v19  ;;  %v2235_v11 = vmul.f32 %v8080_v13, %v5320_v0  ;;  %8130 = vst [vmem:[#allocation94_spill] sm:$0xff] %v5340_v2  ;;  %v540_v28 = vadd.f32 %v524_v5, %v504_v58  ;;  %v8131_v4 = vld [vmem:[#allocation14_spill] sm:$0xff]  ;;  %8132 = vst [vmem:[#allocation126_spill] sm:$0xff] %v5345_v18  ;;  %v8134_v37 = vld [vmem:[#allocation67_spill] sm:$0xff] }
  0xfa   : > { %v624_v24 = vmul.f32 %v3490_v15, %v8131_v4  ;;  %v1514_v43 = vadd.f32 %v1498_v53, %v1478_v52  ;;  %v1570_v39 = vmul.f32 %v8134_v37, %v8133_v26  ;;  %v1025_v51 = vadd.f32 %v1009_v3, %v989_v41  ;;  %v8135_v59 = vld [vmem:[#allocation111_spill] sm:$0xff]  ;;  %v8138_v13 = vld [vmem:[#allocation70_spill] sm:$0xff]  ;;  %v8140_v52 = vld [vmem:[#allocation76_spill] sm:$0xff] }
  0xfb   : > { %v8136_v57 = vld [vmem:[#allocation43_spill] sm:$0xff]  ;;  %v2071_v19 = vadd.f32 %v5259_v63, %v2035_v54  ;;  %v576_v5 = vadd.f32 %v560_v8, %v540_v28  ;;  %v1642_v26 = vmul.f32 %v8077_v6, %v8140_v52  ;;  %v1117_v3 = vmul.f32 %v8078_v25, %v5340_v2 }
  0xfc   : > { %v1081_v46 = vmul.f32 %v8136_v57, %v8135_v59  ;;  %v8137_v0 = vld [vmem:[#allocation95_spill] sm:$0xff]  ;;  %v1550_v53 = vadd.f32 %v1534_v12, %v1514_v43  ;;  %v1061_v41 = vadd.f32 %v1045_v50, %v1025_v51  ;;  %v1678_v54 = vmul.f32 %v8081_v45, %v5345_v18  ;;  %v8143_v50 = vld [vmem:[#allocation37_spill] sm:$0xff] }
  0xfd   : > { %v1606_v22 = vmul.f32 %v8138_v13, %v8137_v0  ;;  %v5355_v58 = vld [vmem:[%s3841_s12 + $0x81] sm:$0xff]  ;;  %v2107_v59 = vadd.f32 %v2091_v38, %v2071_v19  ;;  %v640_v63 = vadd.f32 %v624_v24, %v576_v5  ;;  %v5366_v28 = vld [vmem:[%s3841_s12 + $0x99] sm:$0xff]  ;;  %v1181_v51 = vmul.f32 %v8143_v50, %v8083_v10  ;;  %v5377_v24 = vld [vmem:[%s3841_s12 + $0xb1] sm:$0xff] }
  0xfe   : > { %8139 = vst [vmem:[#allocation97_spill] sm:$0xff] %v5355_v58  ;;  %v660_v15 = vmul.f32 %v5355_v58, %v8021_v21  ;;  %8141 = vst [vmem:[#allocation43_spill] sm:$0xff] %v5366_v28  ;;  %v696_v8 = vmul.f32 %v5366_v28, %v8027_v47  ;;  %v1586_v0 = vadd.f32 %v1570_v39, %v1550_v53  ;;  %v8142_v12 = vld [vmem:[#allocation71_spill] sm:$0xff]  ;;  %v8144_v38 = vld [vmem:[#allocation100_spill] sm:$0xff] }
  0xff   : > { %v1742_v43 = vmul.f32 %v8085_v55, %v8142_v12  ;;  %v1097_v52 = vadd.f32 %v1081_v46, %v1061_v41  ;;  %v2143_v58 = vadd.f32 %v2127_v23, %v2107_v59  ;;  %v1778_v19 = vmul.f32 %v8019_v34, %v8144_v38  ;;  %8145 = vst [vmem:[#allocation95_spill] sm:$0xff] %v5377_v24  ;;  %v8146_v39 = vld [vmem:[#allocation101_spill] sm:$0xff]  ;;  %v8147_v46 = vld [vmem:[#allocation39_spill] sm:$0xff]  ;;  %v8149_v23 = vld [vmem:[#allocation102_spill] sm:$0xff] }
 0x100   : > { %v676_v18 = vadd.f32 %v660_v15, %v640_v63  ;;  %v732_v5 = vmul.f32 %v5377_v24, %v8032_v1  ;;  %v1622_v28 = vadd.f32 %v1606_v22, %v1586_v0  ;;  %v1814_v53 = vmul.f32 %v8025_v48, %v8146_v39  ;;  %v5386_v59 = vld [vmem:[%s3841_s12 + $0xe5] sm:$0xff]  ;;  %v8150_v38 = vld [vmem:[#allocation50_spill] sm:$0xff] }
 0x101   : > { %v1133_v12 = vadd.f32 %v1117_v3, %v1097_v52  ;;  %v1217_v41 = vmul.f32 %v8147_v46, %v8023_v62  ;;  %v2179_v50 = vadd.f32 %v2163_v29, %v2143_v58  ;;  %8148 = vst [vmem:[#allocation71_spill] sm:$0xff] %v5386_v59  ;;  %v1850_v15 = vmul.f32 %v8030_v17, %v8149_v23  ;;  %v8151_v24 = vld [vmem:[#allocation103_spill] sm:$0xff]  ;;  %v8152_v52 = vld [vmem:[#allocation49_spill] sm:$0xff]  ;;  %v8154_v58 = vld [vmem:[#allocation16_spill] sm:$0xff] }
 0x102   : > { %v712_v63 = vadd.f32 %v696_v8, %v676_v18  ;;  %v768_v2 = vmul.f32 %v8037_v33, %v8150_v38  ;;  %v1658_v34 = vadd.f32 %v1642_v26, %v1622_v28  ;;  %v1886_v22 = vmul.f32 %v8035_v16, %v8151_v24  ;;  %v5397_v39 = vld [vmem:[%s3841_s12 + $0xf9] sm:$0xff]  ;;  %v8155_v46 = vld [vmem:[#allocation25_spill] sm:$0xff]  ;;  %v8159_v38 = vld [vmem:[#allocation44_spill] sm:$0xff] }
 0x103   : > { %v1197_v0 = vadd.f32 %v1181_v51, %v1133_v12  ;;  %v1253_v3 = vmul.f32 %v8152_v52, %v8093_v35  ;;  %8153 = vst [vmem:[#allocation37_spill] sm:$0xff] %v5397_v39  ;;  %v2215_v29 = vadd.f32 %v2199_v49, %v2179_v50  ;;  %v1922_v48 = vmul.f32 %v8155_v46, %v8154_v58  ;;  %v8156_v18 = vld [vmem:[#allocation45_spill] sm:$0xff]  ;;  %v8157_v28 = vld [vmem:[#allocation26_spill] sm:$0xff]  ;;  %v8158_v12 = vld [vmem:[#allocation52_spill] sm:$0xff] }
 0x104   : > { %v748_v23 = vadd.f32 %v732_v5, %v712_v63  ;;  %v804_v8 = vmul.f32 %v8102_v7, %v8156_v18  ;;  %v1694_v26 = vadd.f32 %v1678_v54, %v1658_v34  ;;  %v5405_v24 = vmul.f32 %v8157_v28, %v5386_v59  ;;  %v8160_v17 = vld [vmem:[#allocation65_spill] sm:$0xff]  ;;  %v8161_v49 = vld [vmem:[#allocation27_spill] sm:$0xff]  ;;  %v8163_v18 = vld [vmem:[#allocation114_spill] sm:$0xff] }
 0x105   : > { %v1233_v51 = vadd.f32 %v1217_v41, %v1197_v0  ;;  %v1289_v52 = vmul.f32 %v8159_v38, %v8158_v12  ;;  %v2251_v16 = vadd.f32 %v2235_v11, %v2215_v29  ;;  %v5411_v50 = vmul.f32 %v8161_v49, %v8160_v17  ;;  %v8162_v54 = vld [vmem:[#allocation55_spill] sm:$0xff]  ;;  %v3494_v28 = vld [vmem:[%s3841_s12 + $0x6a] sm:$0xff] }
 0x106   : > { %v784_v58 = vadd.f32 %v768_v2, %v748_v23  ;;  %v840_v5 = vmul.f32 %v3947_v61, %v5397_v39  ;;  %v1758_v63 = vadd.f32 %v1742_v43, %v1694_v26  ;;  %v1325_v59 = vmul.f32 %v8163_v18, %v8162_v54  ;;  %v8164_v0 = vld [vmem:[#allocation93_spill] sm:$0xff]  ;;  %v5423_v11 = vld [vmem:[%s3841_s12 + $0xdb] sm:$0xff]  ;;  %v8169_v49 = vld [vmem:[#allocation8_spill] sm:$0xff] }
 0x107   : > { %v1269_v34 = vadd.f32 %v1253_v3, %v1233_v51  ;;  %v904_v41 = vmul.f32 %v3494_v28, %v7732_v44  ;;  %v5420_v38 = vadd.f32 %v8164_v0, %v2251_v16  ;;  %8166 = vst [vmem:[#allocation101_spill] sm:$0xff] %v5423_v11  ;;  %v8167_v29 = vld [vmem:[#allocation7_spill] sm:$0xff]  ;;  %v8168_v2 = vld [vmem:[#allocation105_spill] sm:$0xff]  ;;  %v8170_v39 = vld [vmem:[#allocation106_spill] sm:$0xff] }
 0x108   : > { %v820_v17 = vadd.f32 %v804_v8, %v784_v58  ;;  %v343_v23 = vmul.f32 %v8168_v2, %v8167_v29  ;;  %v379_v43 = vmul.f32 %v8170_v39, %v8169_v49  ;;  %v1794_v3 = vadd.f32 %v1778_v19, %v1758_v63  ;;  %v8171_v51 = vld [vmem:[#allocation113_spill] sm:$0xff]  ;;  %v8172_v28 = vld [vmem:[#allocation56_spill] sm:$0xff]  ;;  %v8174_v39 = vld [vmem:[#allocation63_spill] sm:$0xff] }
 0x109   : > { %8165 = vst [vmem:[#allocation100_spill] sm:$0xff] %v5420_v38  ;;  %v1305_v26 = vadd.f32 %v1289_v52, %v1269_v34  ;;  %v1361_v18 = vmul.f32 %v8110_v40, %v8171_v51  ;;  %v415_v44 = vmul.f32 %v8172_v28, %v7863_v14  ;;  %2294 = vadd.xlane.f32.xlu0 %v5420_v38  ;;  %v5435_v0 = vld [vmem:[%s3841_s12 + $0x82] sm:$0xff]  ;;  %v8175_v63 = vld [vmem:[#allocation69_spill] sm:$0xff] }
 0x10a   : > { %v856_v16 = vadd.f32 %v840_v5, %v820_v17  ;;  %8173 = vst [vmem:[#allocation102_spill] sm:$0xff] %v5435_v0  ;;  %v940_v58 = vmul.f32 %v5435_v0, %v7742_v32  ;;  %v395_v8 = vadd.f32 %v379_v43, %v343_v23  ;;  %v451_v19 = vmul.f32 %v8174_v39, %v7929_v30  ;;  %v8176_v34 = vld [vmem:[#allocation29_spill] sm:$0xff]  ;;  %v5446_v17 = vld [vmem:[%s3841_s12 + $0x9a] sm:$0xff]  ;;  %v8179_v30 = vld [vmem:[#allocation84_spill] sm:$0xff] }
 0x10b   : > { %v1830_v52 = vadd.f32 %v1814_v53, %v1794_v3  ;;  %v2058_v2 = vmul.f32 %v8176_v34, %v8175_v63  ;;  %v1341_v51 = vadd.f32 %v1325_v59, %v1305_v26  ;;  %v1397_v28 = vmul.f32 %v8114_v31, %v5423_v11  ;;  %8177 = vst [vmem:[#allocation50_spill] sm:$0xff] %v5446_v17  ;;  %v8178_v23 = vld [vmem:[#allocation62_spill] sm:$0xff]  ;;  %v8180_v53 = vld [vmem:[#allocation31_spill] sm:$0xff]  ;;  %v8181_v59 = vld [vmem:[#allocation104_spill] sm:$0xff] }
 0x10c   : > { %v920_v5 = vadd.f32 %v904_v41, %v856_v16  ;;  %v976_v38 = vmul.f32 %v5446_v17, %v7751_v56  ;;  %v431_v0 = vadd.f32 %v415_v44, %v395_v8  ;;  %v487_v43 = vmul.f32 %v3865_v20, %v8178_v23  ;;  %v5457_v63 = vld [vmem:[%s3841_s12 + $0xf0] sm:$0xff]  ;;  %v8184_v23 = vld [vmem:[#allocation54_spill] sm:$0xff] }
 0x10d   : > { %v1866_v39 = vadd.f32 %v1850_v15, %v1830_v52  ;;  %v2094_v3 = vmul.f32 %v8180_v53, %v8179_v30  ;;  %v1377_v32 = vadd.f32 %v1361_v18, %v1341_v51  ;;  %v1461_v26 = vmul.f32 %v8181_v59, %v7873_v36  ;;  %8182 = vst [vmem:[#allocation103_spill] sm:$0xff] %v5457_v63  ;;  %v5460_v16 = vld [vmem:[%s3841_s12 + $0xb2] sm:$0xff]  ;;  %v8186_v18 = vld [vmem:[#allocation32_spill] sm:$0xff] }
 0x10e   : > { %v956_v41 = vadd.f32 %v940_v58, %v920_v5  ;;  %8183 = vst [vmem:[#allocation65_spill] sm:$0xff] %v5460_v16  ;;  %v1012_v44 = vmul.f32 %v5460_v16, %v7997_v42  ;;  %v467_v8 = vadd.f32 %v451_v19, %v431_v0  ;;  %v523_v15 = vmul.f32 %v8007_v60, %v8184_v23  ;;  %v8185_v30 = vld [vmem:[#allocation98_spill] sm:$0xff]  ;;  %v8187_v59 = vld [vmem:[#allocation53_spill] sm:$0xff]  ;;  %v8188_v5 = vld [vmem:[#allocation59_spill] sm:$0xff] }
 0x10f   : > { %v1902_v52 = vadd.f32 %v1886_v22, %v1866_v39  ;;  %v2130_v51 = vmul.f32 %v8186_v18, %v8185_v30  ;;  %v1413_v17 = vadd.f32 %v1397_v28, %v1377_v32  ;;  %v1497_v11 = vmul.f32 %v8187_v59, %v7876_v27  ;;  %v8189_v16 = vld [vmem:[#allocation13_spill] sm:$0xff]  ;;  %v8190_v42 = vld [vmem:[#allocation78_spill] sm:$0xff]  ;;  %v8193_v30 = vld [vmem:[#allocation68_spill] sm:$0xff] }
 0x110   : > { %v992_v58 = vadd.f32 %v976_v38, %v956_v41  ;;  %v1048_v53 = vmul.f32 %v8128_v9, %v8188_v5  ;;  %v503_v34 = vadd.f32 %v487_v43, %v467_v8  ;;  %v559_v0 = vmul.f32 %v8189_v16, %v5457_v63  ;;  %v8191_v23 = vld [vmem:[#allocation33_spill] sm:$0xff]  ;;  %v8192_v60 = vld [vmem:[#allocation66_spill] sm:$0xff]  ;;  %v5482_v59 = vld [vmem:[%s3841_s12 + $0xe6] sm:$0xff] }
 0x111   : > { %v1938_v19 = vadd.f32 %v1922_v48, %v1902_v52  ;;  %v2166_v22 = vmul.f32 %v8191_v23, %v8190_v42  ;;  %v1477_v39 = vadd.f32 %v1461_v26, %v1413_v17  ;;  %v1533_v32 = vmul.f32 %v8193_v30, %v8192_v60  ;;  %v5479_v28 = vld [vmem:[%s3841_s12 + $0xfa] sm:$0xff]  ;;  %8195 = vst [vmem:[#allocation93_spill] sm:$0xff] %v5482_v59  ;;  %v8197_v5 = vld [vmem:[#allocation85_spill] sm:$0xff] }
 0x112   : > { %8194 = vst [vmem:[#allocation55_spill] sm:$0xff] %v5479_v28  ;;  %v1028_v38 = vadd.f32 %v1012_v44, %v992_v58  ;;  %v8196_v41 = vld [vmem:[#allocation79_spill] sm:$0xff]  ;;  %v539_v8 = vadd.f32 %v523_v15, %v503_v34  ;;  %v623_v48 = vmul.f32 %v8197_v5, %v8131_v4  ;;  %v8200_v30 = vld [vmem:[#allocation77_spill] sm:$0xff]  ;;  %v1120_v58 = vmul.f32 %v8078_v25, %v5479_v28 }
 0x113   : > { %v1084_v43 = vmul.f32 %v8136_v57, %v8196_v41  ;;  %v1974_v52 = vadd.f32 %v5405_v24, %v1938_v19  ;;  %v8198_v42 = vld [vmem:[#allocation115_spill] sm:$0xff]  ;;  %v1513_v63 = vadd.f32 %v1497_v11, %v1477_v39  ;;  %v1569_v23 = vmul.f32 %v8200_v30, %v8134_v37  ;;  %v8202_v15 = vld [vmem:[#allocation81_spill] sm:$0xff]  ;;  %v8203_v19 = vld [vmem:[#allocation36_spill] sm:$0xff] }
 0x114   : > { %v8199_v17 = vld [vmem:[#allocation35_spill] sm:$0xff]  ;;  %v1064_v44 = vadd.f32 %v1048_v53, %v1028_v38  ;;  %v575_v34 = vadd.f32 %v559_v0, %v539_v8  ;;  %v659_v5 = vmul.f32 %v8202_v15, %v8021_v21  ;;  %v8205_v0 = vld [vmem:[#allocation48_spill] sm:$0xff] }
 0x115   : > { %v2202_v26 = vmul.f32 %v8199_v17, %v8198_v42  ;;  %v5494_v18 = vld [vmem:[%s3841_s12 + $0xdc] sm:$0xff]  ;;  %v2038_v24 = vadd.f32 %v5411_v50, %v1974_v52  ;;  %v2238_v42 = vmul.f32 %v8203_v19, %v5482_v59  ;;  %v1549_v11 = vadd.f32 %v1533_v32, %v1513_v63  ;;  %v3498_v17 = vld [vmem:[%s3841_s12 + $0x6b] sm:$0xff] }
 0x116   : > { %8201 = vst [vmem:[#allocation7_spill] sm:$0xff] %v5494_v18  ;;  %v8204_v39 = vld [vmem:[#allocation83_spill] sm:$0xff]  ;;  %v1100_v30 = vadd.f32 %v1084_v43, %v1064_v44  ;;  %v1184_v53 = vmul.f32 %v3498_v17, %v8083_v10  ;;  %v639_v38 = vadd.f32 %v623_v48, %v575_v34  ;;  %v695_v8 = vmul.f32 %v8205_v0, %v8027_v47  ;;  %v8206_v21 = vld [vmem:[#allocation116_spill] sm:$0xff]  ;;  %v8211_v0 = vld [vmem:[#allocation89_spill] sm:$0xff] }
 0x117   : > { %v1605_v41 = vmul.f32 %v8204_v39, %v8138_v13  ;;  %v2074_v28 = vadd.f32 %v2058_v2, %v2038_v24  ;;  %v1585_v15 = vadd.f32 %v1569_v23, %v1549_v11  ;;  %v1641_v50 = vmul.f32 %v8077_v6, %v8206_v21  ;;  %v5514_v52 = vld [vmem:[%s3841_s12 + $0x83] sm:$0xff]  ;;  %v8210_v11 = vld [vmem:[#allocation21_spill] sm:$0xff]  ;;  %v5525_v59 = vld [vmem:[%s3841_s12 + $0x9b] sm:$0xff] }
 0x118   : > { %v1677_v63 = vmul.f32 %v8081_v45, %v5494_v18  ;;  %v1136_v32 = vadd.f32 %v1120_v58, %v1100_v30  ;;  %8207 = vst [vmem:[#allocation105_spill] sm:$0xff] %v5514_v52  ;;  %v1220_v43 = vmul.f32 %v5514_v52, %v8023_v62  ;;  %v675_v48 = vadd.f32 %v659_v5, %v639_v38  ;;  %v8208_v17 = vld [vmem:[#allocation108_spill] sm:$0xff]  ;;  %v8213_v38 = vld [vmem:[#allocation107_spill] sm:$0xff] }
 0x119   : > { %v731_v44 = vmul.f32 %v8208_v17, %v8032_v1  ;;  %v2110_v2 = vadd.f32 %v2094_v3, %v2074_v28  ;;  %v1621_v23 = vadd.f32 %v1605_v41, %v1585_v15  ;;  %v8209_v34 = vld [vmem:[#allocation80_spill] sm:$0xff]  ;;  %v1777_v30 = vmul.f32 %v8211_v0, %v8210_v11  ;;  %8212 = vst [vmem:[#allocation8_spill] sm:$0xff] %v5525_v59  ;;  %v8214_v28 = vld [vmem:[#allocation22_spill] sm:$0xff]  ;;  %v8215_v41 = vld [vmem:[#allocation117_spill] sm:$0xff] }
 0x11a   : > { %v1741_v24 = vmul.f32 %v8209_v34, %v8085_v55  ;;  %v1200_v58 = vadd.f32 %v1184_v53, %v1136_v32  ;;  %v1256_v52 = vmul.f32 %v5525_v59, %v8093_v35  ;;  %v711_v5 = vadd.f32 %v695_v8, %v675_v48  ;;  %v8216_v21 = vld [vmem:[#allocation23_spill] sm:$0xff]  ;;  %v5536_v55 = vld [vmem:[%s3841_s12 + $0xf1] sm:$0xff] }
 0x11b   : > { %v767_v18 = vmul.f32 %v8037_v33, %v8213_v38  ;;  %v2146_v17 = vadd.f32 %v2130_v51, %v2110_v2  ;;  %v1657_v3 = vadd.f32 %v1641_v50, %v1621_v23  ;;  %v1813_v15 = vmul.f32 %v8215_v41, %v8214_v28  ;;  %v8217_v34 = vld [vmem:[#allocation119_spill] sm:$0xff]  ;;  %8218 = vst [vmem:[#allocation106_spill] sm:$0xff] %v5536_v55  ;;  %v5542_v0 = vld [vmem:[%s3841_s12 + $0xb3] sm:$0xff]  ;;  %v8222_v38 = vld [vmem:[#allocation24_spill] sm:$0xff] }
 0x11c   : > { %v1849_v39 = vmul.f32 %v8217_v34, %v8216_v21  ;;  %v5539_v53 = vld [vmem:[%s3841_s12 + $0xdd] sm:$0xff]  ;;  %v1236_v32 = vadd.f32 %v1220_v43, %v1200_v58  ;;  %8220 = vst [vmem:[#allocation63_spill] sm:$0xff] %v5542_v0  ;;  %v1292_v8 = vmul.f32 %v5542_v0, %v8158_v12  ;;  %v747_v48 = vadd.f32 %v731_v44, %v711_v5  ;;  %v8221_v51 = vld [vmem:[#allocation121_spill] sm:$0xff]  ;;  %v8223_v41 = vld [vmem:[#allocation120_spill] sm:$0xff] }
 0x11d   : > { %8219 = vst [vmem:[#allocation56_spill] sm:$0xff] %v5539_v53  ;;  %v803_v50 = vmul.f32 %v8102_v7, %v8221_v51  ;;  %v2182_v2 = vadd.f32 %v2166_v22, %v2146_v17  ;;  %v1693_v23 = vadd.f32 %v1677_v63, %v1657_v3  ;;  %v1885_v34 = vmul.f32 %v8223_v41, %v8222_v38  ;;  %v8224_v59 = vld [vmem:[#allocation118_spill] sm:$0xff]  ;;  %v8225_v43 = vld [vmem:[#allocation96_spill] sm:$0xff] }
 0x11e   : > { %v1921_v21 = vmul.f32 %v8155_v46, %v8224_v59  ;;  %v1272_v28 = vadd.f32 %v1256_v52, %v1236_v32  ;;  %v1328_v58 = vmul.f32 %v8162_v54, %v8225_v43  ;;  %v783_v33 = vadd.f32 %v767_v18, %v747_v48  ;;  %v8226_v51 = vld [vmem:[#allocation26_spill] sm:$0xff]  ;;  %v8229_v32 = vld [vmem:[#allocation28_spill] sm:$0xff] }
 0x11f   : > { %v839_v0 = vmul.f32 %v3947_v61, %v5536_v55  ;;  %v2218_v44 = vadd.f32 %v2202_v26, %v2182_v2  ;;  %v1757_v5 = vadd.f32 %v1741_v24, %v1693_v23  ;;  %v1957_v22 = vmul.f32 %v8226_v51, %v5539_v53  ;;  %v5559_v63 = vld [vmem:[%s3841_s12 + $0xfb] sm:$0xff]  ;;  %v8230_v59 = vld [vmem:[#allocation72_spill] sm:$0xff]  ;;  %v8233_v53 = vld [vmem:[#allocation109_spill] sm:$0xff] }
 0x120   : > { %8227 = vst [vmem:[#allocation69_spill] sm:$0xff] %v5559_v63  ;;  %v8228_v17 = vld [vmem:[#allocation86_spill] sm:$0xff]  ;;  %v1308_v41 = vadd.f32 %v1292_v8, %v1272_v28  ;;  %v819_v52 = vadd.f32 %v803_v50, %v783_v33  ;;  %v903_v43 = vmul.f32 %v8230_v59, %v8229_v32  ;;  %v8232_v2 = vld [vmem:[#allocation123_spill] sm:$0xff]  ;;  %v418_v55 = vmul.f32 %v8233_v53, %v7863_v14 }
 0x121   : > { %v1364_v3 = vmul.f32 %v8110_v40, %v8228_v17  ;;  %v8231_v18 = vld [vmem:[#allocation122_spill] sm:$0xff]  ;;  %v2254_v26 = vadd.f32 %v2238_v42, %v2218_v44  ;;  %v1793_v24 = vadd.f32 %v1777_v30, %v1757_v5  ;;  %v382_v23 = vmul.f32 %v8232_v2, %v8169_v49  ;;  %v8235_v50 = vld [vmem:[#allocation75_spill] sm:$0xff]  ;;  %v5584_v5 = vld [vmem:[%s3841_s12 + $0xc8] sm:$0xff] }
 0x122   : > { %v346_v48 = vmul.f32 %v8231_v18, %v8167_v29  ;;  %v1344_v51 = vadd.f32 %v1328_v58, %v1308_v41  ;;  %v1400_v28 = vmul.f32 %v8114_v31, %v5559_v63  ;;  %v855_v33 = vadd.f32 %v839_v0, %v819_v52  ;;  %v8234_v8 = vld [vmem:[#allocation34_spill] sm:$0xff]  ;;  %v5578_v18 = vld [vmem:[%s7043_s2] ss:$0 sm:$0xff]  ;;  %8237 = vst [vmem:[#allocation84_spill] sm:$0xff] %v5584_v5  ;;  %v3504_v52 = vld [vmem:[%s3841_s12 + $0x6c] sm:$0xff] }
 0x123   : > { %v939_v59 = vmul.f32 %v8235_v50, %v8234_v8  ;;  %v5581_v42 = vadd.f32 %v5578_v18, %v2254_v26  ;;  %v1829_v30 = vadd.f32 %v1813_v15, %v1793_v24  ;;  %v8238_v41 = vld [vmem:[#allocation10_spill] sm:$0xff]  ;;  %v1464_v50 = vmul.f32 %v3504_v52, %v7873_v36  ;;  %v8240_v15 = vld [vmem:[#allocation27_spill] sm:$0xff]  ;;  %v8242_v17 = vld [vmem:[#allocation88_spill] sm:$0xff] }
 0x124   : > { %v398_v44 = vadd.f32 %v382_v23, %v346_v48  ;;  %v454_v58 = vmul.f32 %v5584_v5, %v8238_v41  ;;  %v1380_v0 = vadd.f32 %v1364_v3, %v1344_v51  ;;  %v919_v53 = vadd.f32 %v903_v43, %v855_v33  ;;  %v8239_v2 = vld [vmem:[#allocation82_spill] sm:$0xff]  ;;  %v5598_v51 = vld [vmem:[%s3841_s12 + $0x84] sm:$0xff] }
 0x125   : > { %8236 = vst [vmem:[#allocation62_spill] sm:$0xff] %v5581_v42  ;;  %v975_v63 = vmul.f32 %v8239_v2, %v7751_v56  ;;  %2300 = vadd.xlane.f32.xlu1 %v5581_v42  ;;  %v1865_v26 = vadd.f32 %v1849_v39, %v1829_v30  ;;  %v8241_v48 = vld [vmem:[#allocation30_spill] sm:$0xff]  ;;  %v490_v5 = vmul.f32 %v3865_v20, %v8242_v17  ;;  %8243 = vst [vmem:[#allocation104_spill] sm:$0xff] %v5598_v51  ;;  %v8244_v2 = vld [vmem:[#allocation40_spill] sm:$0xff] }
 0x126   : > { %v2021_v24 = vmul.f32 %v8241_v48, %v8240_v15  ;;  %v434_v23 = vadd.f32 %v418_v55, %v398_v44  ;;  %v1416_v41 = vadd.f32 %v1400_v28, %v1380_v0  ;;  %v1500_v3 = vmul.f32 %v5598_v51, %v7876_v27  ;;  %v8245_v33 = vld [vmem:[#allocation112_spill] sm:$0xff]  ;;  %v5605_v42 = vld [vmem:[%s3841_s12 + $0x110] sm:$0xff]  ;;  %v8249_v17 = vld [vmem:[#allocation87_spill] sm:$0xff] }
 0x127   : > { %v955_v43 = vadd.f32 %v939_v59, %v919_v53  ;;  %v1011_v52 = vmul.f32 %v8245_v33, %v8244_v2  ;;  %8246 = vst [vmem:[#allocation98_spill] sm:$0xff] %v5605_v42  ;;  %v1901_v39 = vadd.f32 %v1885_v34, %v1865_v26  ;;  %v8247_v30 = vld [vmem:[#allocation29_spill] sm:$0xff]  ;;  %v8250_v28 = vld [vmem:[#allocation12_spill] sm:$0xff]  ;;  %v5612_v20 = vld [vmem:[%s3841_s12 + $0x9c] sm:$0xff] }
 0x128   : > { %v8248_v55 = vld [vmem:[#allocation57_spill] sm:$0xff]  ;;  %v470_v48 = vadd.f32 %v454_v58, %v434_v23  ;;  %v526_v0 = vmul.f32 %v8250_v28, %v8249_v17  ;;  %v1480_v15 = vadd.f32 %v1464_v50, %v1416_v41  ;;  %8251 = vst [vmem:[#allocation59_spill] sm:$0xff] %v5612_v20  ;;  %v1536_v53 = vmul.f32 %v5612_v20, %v8192_v60  ;;  %v8252_v51 = vld [vmem:[#allocation111_spill] sm:$0xff]  ;;  %v8254_v34 = vld [vmem:[#allocation124_spill] sm:$0xff] }
 0x129   : > { %v2057_v44 = vmul.f32 %v8248_v55, %v8247_v30  ;;  %v991_v59 = vadd.f32 %v975_v63, %v955_v43  ;;  %v1047_v33 = vmul.f32 %v8128_v9, %v8252_v51  ;;  %v1937_v2 = vadd.f32 %v1921_v21, %v1901_v39  ;;  %v8253_v56 = vld [vmem:[#allocation31_spill] sm:$0xff]  ;;  %v5621_v27 = vld [vmem:[%s3841_s12 + $0xf2] sm:$0xff]  ;;  %v8259_v55 = vld [vmem:[#allocation92_spill] sm:$0xff] }
 0x12a   : > { %v2093_v26 = vmul.f32 %v8254_v34, %v8253_v56  ;;  %8255 = vst [vmem:[#allocation78_spill] sm:$0xff] %v5621_v27  ;;  %v506_v58 = vadd.f32 %v490_v5, %v470_v48  ;;  %v562_v23 = vmul.f32 %v8189_v16, %v5605_v42  ;;  %v1516_v41 = vadd.f32 %v1500_v3, %v1480_v15  ;;  %v5626_v50 = vld [vmem:[%s3841_s12 + $0xb4] sm:$0xff]  ;;  %v8258_v34 = vld [vmem:[#allocation32_spill] sm:$0xff]  ;;  %v8263_v16 = vld [vmem:[#allocation91_spill] sm:$0xff] }
 0x12b   : > { %8256 = vst [vmem:[#allocation85_spill] sm:$0xff] %v5626_v50  ;;  %v1572_v63 = vmul.f32 %v5626_v50, %v8134_v37  ;;  %v1027_v43 = vadd.f32 %v1011_v52, %v991_v59  ;;  %v8257_v51 = vld [vmem:[#allocation94_spill] sm:$0xff]  ;;  %v1973_v39 = vadd.f32 %v1957_v22, %v1937_v2  ;;  %v2129_v17 = vmul.f32 %v8259_v55, %v8258_v34  ;;  %v8260_v48 = vld [vmem:[#allocation97_spill] sm:$0xff]  ;;  %v8261_v15 = vld [vmem:[#allocation76_spill] sm:$0xff] }
 0x12c   : > { %v1083_v21 = vmul.f32 %v8136_v57, %v8257_v51  ;;  %v542_v5 = vadd.f32 %v526_v0, %v506_v58  ;;  %v626_v42 = vmul.f32 %v8260_v48, %v8131_v4  ;;  %v1552_v20 = vadd.f32 %v1536_v53, %v1516_v41  ;;  %v8262_v59 = vld [vmem:[#allocation33_spill] sm:$0xff]  ;;  %v5643_v22 = vld [vmem:[%s3841_s12 + $0xfc] sm:$0xff] }
 0x12d   : > { %v1608_v3 = vmul.f32 %v8138_v13, %v8261_v15  ;;  %v1063_v56 = vadd.f32 %v1047_v33, %v1027_v43  ;;  %v1119_v50 = vmul.f32 %v8078_v25, %v5621_v27  ;;  %v2037_v52 = vadd.f32 %v2021_v24, %v1973_v39  ;;  %8264 = vst [vmem:[#allocation81_spill] sm:$0xff] %v5643_v22  ;;  %v8265_v55 = vld [vmem:[#allocation15_spill] sm:$0xff]  ;;  %v8268_v41 = vld [vmem:[#allocation126_spill] sm:$0xff]  ;;  %v8270_v15 = vld [vmem:[#allocation125_spill] sm:$0xff] }
 0x12e   : > { %v2165_v51 = vmul.f32 %v8263_v16, %v8262_v59  ;;  %v578_v2 = vadd.f32 %v562_v23, %v542_v5  ;;  %v8266_v0 = vld [vmem:[#allocation43_spill] sm:$0xff]  ;;  %v1588_v53 = vadd.f32 %v1572_v63, %v1552_v20  ;;  %v1644_v33 = vmul.f32 %v8077_v6, %v8268_v41 }
 0x12f   : > { %v662_v58 = vmul.f32 %v8266_v0, %v8265_v55  ;;  %v5648_v34 = vld [vmem:[%s3841_s12 + $0xde] sm:$0xff]  ;;  %v1099_v43 = vadd.f32 %v1083_v21, %v1063_v56  ;;  %v2073_v39 = vadd.f32 %v2057_v44, %v2037_v52  ;;  %v1680_v20 = vmul.f32 %v8081_v45, %v5643_v22  ;;  %v8273_v56 = vld [vmem:[#allocation49_spill] sm:$0xff] }
 0x130   : > { %8267 = vst [vmem:[#allocation48_spill] sm:$0xff] %v5648_v34  ;;  %v8269_v48 = vld [vmem:[#allocation39_spill] sm:$0xff]  ;;  %v642_v23 = vadd.f32 %v626_v42, %v578_v2  ;;  %v1624_v59 = vadd.f32 %v1608_v3, %v1588_v53  ;;  %v1219_v21 = vmul.f32 %v8273_v56, %v8023_v62  ;;  %v2237_v44 = vmul.f32 %v8203_v19, %v5648_v34  ;;  %v3509_v2 = vld [vmem:[%s3841_s12 + $0x6d] sm:$0xff]  ;;  %v8281_v22 = vld [vmem:[#allocation22_spill] sm:$0xff] }
 0x131   : > { %v1183_v24 = vmul.f32 %v8269_v48, %v8083_v10  ;;  %v8271_v16 = vld [vmem:[#allocation35_spill] sm:$0xff]  ;;  %v1135_v63 = vadd.f32 %v1119_v50, %v1099_v43  ;;  %v2109_v41 = vadd.f32 %v2093_v26, %v2073_v39  ;;  %v5665_v48 = vld [vmem:[%s3841_s12 + $0xc9] sm:$0xff] }
 0x132   : > { %v2201_v27 = vmul.f32 %v8271_v16, %v8270_v15  ;;  %v8272_v5 = vld [vmem:[#allocation95_spill] sm:$0xff]  ;;  %v678_v52 = vadd.f32 %v662_v58, %v642_v23  ;;  %8274 = vst [vmem:[#allocation108_spill] sm:$0xff] %v5665_v48  ;;  %v734_v42 = vmul.f32 %v5665_v48, %v8032_v1  ;;  %v1660_v3 = vadd.f32 %v1644_v33, %v1624_v59  ;;  %v8276_v56 = vld [vmem:[#allocation44_spill] sm:$0xff]  ;;  %v8278_v34 = vld [vmem:[#allocation45_spill] sm:$0xff] }
 0x133   : > { %v698_v0 = vmul.f32 %v8272_v5, %v8027_v47  ;;  %v8275_v53 = vld [vmem:[#allocation19_spill] sm:$0xff]  ;;  %v1199_v43 = vadd.f32 %v1183_v24, %v1135_v63  ;;  %v1255_v26 = vmul.f32 %v8276_v56, %v8093_v35  ;;  %v2145_v39 = vadd.f32 %v2129_v17, %v2109_v41  ;;  %v8279_v48 = vld [vmem:[#allocation18_spill] sm:$0xff] }
 0x134   : > { %v1744_v50 = vmul.f32 %v3509_v2, %v8275_v53  ;;  %v5674_v15 = vld [vmem:[%s3841_s12 + $0x85] sm:$0xff]  ;;  %v770_v5 = vmul.f32 %v8279_v48, %v8278_v34  ;;  %v1696_v59 = vadd.f32 %v1680_v20, %v1660_v3  ;;  %v5681_v33 = vld [vmem:[%s3841_s12 + $0x9d] sm:$0xff]  ;;  %v5688_v17 = vld [vmem:[%s3841_s12 + $0x111] sm:$0xff] }
 0x135   : > { %8277 = vst [vmem:[#allocation80_spill] sm:$0xff] %v5674_v15  ;;  %v1780_v58 = vmul.f32 %v5674_v15, %v8210_v11  ;;  %v714_v23 = vadd.f32 %v698_v0, %v678_v52  ;;  %8280 = vst [vmem:[#allocation107_spill] sm:$0xff] %v5681_v33  ;;  %v1816_v24 = vmul.f32 %v5681_v33, %v8281_v22  ;;  %v8282_v2 = vld [vmem:[#allocation114_spill] sm:$0xff]  ;;  %v8285_v15 = vld [vmem:[#allocation23_spill] sm:$0xff] }
 0x136   : > { %v1235_v63 = vadd.f32 %v1219_v21, %v1199_v43  ;;  %v1291_v56 = vmul.f32 %v8282_v2, %v8158_v12  ;;  %8283 = vst [vmem:[#allocation24_spill] sm:$0xff] %v5688_v17  ;;  %v2181_v41 = vadd.f32 %v2165_v51, %v2145_v39  ;;  %v5691_v35 = vld [vmem:[%s3841_s12 + $0xb5] sm:$0xff]  ;;  %v1760_v33 = vadd.f32 %v1744_v50, %v1696_v59  ;;  %v8288_v21 = vld [vmem:[#allocation16_spill] sm:$0xff]  ;;  %v8290_v22 = vld [vmem:[#allocation71_spill] sm:$0xff] }
 0x137   : > { %8284 = vst [vmem:[#allocation96_spill] sm:$0xff] %v5691_v35  ;;  %v1852_v0 = vmul.f32 %v5691_v35, %v8285_v15  ;;  %v5696_v52 = vld [vmem:[%s3841_s12 + $0xf3] sm:$0xff]  ;;  %v750_v34 = vadd.f32 %v734_v42, %v714_v23  ;;  %v1888_v43 = vmul.f32 %v8222_v38, %v8288_v21  ;;  %v1924_v35 = vmul.f32 %v8155_v46, %v8290_v22 }
 0x138   : > { %8286 = vst [vmem:[#allocation72_spill] sm:$0xff] %v5696_v52  ;;  %v8287_v20 = vld [vmem:[#allocation37_spill] sm:$0xff]  ;;  %v1271_v2 = vadd.f32 %v1255_v26, %v1235_v63  ;;  %v2217_v39 = vadd.f32 %v2201_v27, %v2181_v41  ;;  %v842_v42 = vmul.f32 %v3947_v61, %v5688_v17  ;;  %v1796_v23 = vadd.f32 %v1780_v58, %v1760_v33  ;;  %v8292_v27 = vld [vmem:[#allocation102_spill] sm:$0xff] }
 0x139   : > { %v806_v3 = vmul.f32 %v8102_v7, %v8287_v20  ;;  %v8289_v12 = vld [vmem:[#allocation113_spill] sm:$0xff]  ;;  %v786_v15 = vadd.f32 %v770_v5, %v750_v34  ;;  %v1399_v26 = vmul.f32 %v8114_v31, %v5696_v52  ;;  %v906_v41 = vmul.f32 %v8292_v27, %v8229_v32  ;;  %v3513_v20 = vld [vmem:[%s3841_s12 + $0x78] sm:$0xff] }
 0x13a   : > { %v1327_v51 = vmul.f32 %v8162_v54, %v8289_v12  ;;  %v1307_v50 = vadd.f32 %v1291_v56, %v1271_v2  ;;  %v8291_v59 = vld [vmem:[#allocation101_spill] sm:$0xff]  ;;  %v2253_v63 = vadd.f32 %v2237_v44, %v2217_v39  ;;  %v345_v5 = vmul.f32 %v3513_v20, %v8167_v29  ;;  %v5717_v34 = vld [vmem:[%s3841_s12 + $0xfd] sm:$0xff]  ;;  %v5725_v2 = vld [vmem:[%s3841_s12 + $0xa8] sm:$0xff] }
 0x13b   : > { %v1363_v21 = vmul.f32 %v8110_v40, %v8291_v59  ;;  %v822_v12 = vadd.f32 %v806_v3, %v786_v15  ;;  %8293 = vst [vmem:[#allocation122_spill] sm:$0xff] %v5717_v34  ;;  %v1832_v22 = vadd.f32 %v1816_v24, %v1796_v23  ;;  %v5720_v33 = vld [vmem:[%s3841_s12 + $0x90] sm:$0xff]  ;;  %8295 = vst [vmem:[#allocation82_spill] sm:$0xff] %v5725_v2  ;;  %v8298_v24 = vld [vmem:[#allocation50_spill] sm:$0xff] }
 0x13c   : > { %v1343_v58 = vadd.f32 %v1327_v51, %v1307_v50  ;;  %8294 = vst [vmem:[#allocation75_spill] sm:$0xff] %v5720_v33  ;;  %v381_v56 = vmul.f32 %v5720_v33, %v8169_v49  ;;  %v417_v15 = vmul.f32 %v5725_v2, %v7863_v14  ;;  %v5730_v44 = vadd.f32 %v5578_v18, %v2253_v63  ;;  %v8297_v3 = vld [vmem:[#allocation53_spill] sm:$0xff]  ;;  %v5737_v33 = vld [vmem:[%s3841_s12 + $0xc0] sm:$0xff]  ;;  %v8300_v52 = vld [vmem:[#allocation10_spill] sm:$0xff] }
 0x13d   : > { %v1463_v20 = vmul.f32 %v8297_v3, %v7873_v36  ;;  %v858_v39 = vadd.f32 %v842_v42, %v822_v12  ;;  %v942_v51 = vmul.f32 %v8298_v24, %v8234_v8  ;;  %v1868_v23 = vadd.f32 %v1852_v0, %v1832_v22  ;;  %8299 = vst [vmem:[#allocation88_spill] sm:$0xff] %v5737_v33  ;;  %v8301_v63 = vld [vmem:[#allocation26_spill] sm:$0xff]  ;;  %v8302_v42 = vld [vmem:[#allocation61_spill] sm:$0xff]  ;;  %v8303_v12 = vld [vmem:[#allocation68_spill] sm:$0xff] }
 0x13e   : > { %8296 = vst [vmem:[#allocation30_spill] sm:$0xff] %v5730_v44  ;;  %v1379_v50 = vadd.f32 %v1363_v21, %v1343_v58  ;;  %v397_v27 = vadd.f32 %v381_v56, %v345_v5  ;;  %v453_v2 = vmul.f32 %v5737_v33, %v8300_v52  ;;  %2298 = vadd.xlane.f32.xlu0 %v5730_v44  ;;  %v8304_v24 = vld [vmem:[#allocation38_spill] sm:$0xff]  ;;  %v8305_v22 = vld [vmem:[#allocation65_spill] sm:$0xff]  ;;  %v8307_v36 = vld [vmem:[#allocation11_spill] sm:$0xff] }
 0x13f   : > { %v1960_v3 = vmul.f32 %v8301_v63, %v5717_v34  ;;  %v1499_v59 = vmul.f32 %v8303_v12, %v8302_v42  ;;  %v922_v17 = vadd.f32 %v906_v41, %v858_v39  ;;  %v978_v0 = vmul.f32 %v8305_v22, %v8304_v24  ;;  %v8306_v56 = vld [vmem:[#allocation54_spill] sm:$0xff]  ;;  %v3517_v52 = vld [vmem:[%s3841_s12 + $0x6e] sm:$0xff]  ;;  %v8308_v8 = vld [vmem:[#allocation27_spill] sm:$0xff] }
 0x140   : > { %v1904_v21 = vadd.f32 %v1888_v43, %v1868_v23  ;;  %v1415_v5 = vadd.f32 %v1399_v26, %v1379_v50  ;;  %v433_v58 = vadd.f32 %v417_v15, %v397_v27  ;;  %v489_v33 = vmul.f32 %v8307_v36, %v8306_v56  ;;  %v8309_v46 = vld [vmem:[#allocation77_spill] sm:$0xff]  ;;  %v8311_v41 = vld [vmem:[#allocation40_spill] sm:$0xff]  ;;  %v8313_v50 = vld [vmem:[#allocation103_spill] sm:$0xff] }
 0x141   : > { %v2024_v44 = vmul.f32 %v3517_v52, %v8308_v8  ;;  %v1535_v34 = vmul.f32 %v8309_v46, %v8192_v60  ;;  %v958_v63 = vadd.f32 %v942_v51, %v922_v17  ;;  %v5755_v12 = vld [vmem:[%s3841_s12 + $0xca] sm:$0xff]  ;;  %v525_v27 = vmul.f32 %v8250_v28, %v8313_v50  ;;  %v8315_v17 = vld [vmem:[#allocation83_spill] sm:$0xff] }
 0x142   : > { %8310 = vst [vmem:[#allocation112_spill] sm:$0xff] %v5755_v12  ;;  %v1014_v39 = vmul.f32 %v5755_v12, %v8311_v41  ;;  %v5760_v43 = vld [vmem:[%s3841_s12 + $0x108] sm:$0xff]  ;;  %v1940_v26 = vadd.f32 %v1924_v35, %v1904_v21  ;;  %v1479_v15 = vadd.f32 %v1463_v20, %v1415_v5  ;;  %v469_v23 = vadd.f32 %v453_v2, %v433_v58  ;;  %v8316_v12 = vld [vmem:[#allocation79_spill] sm:$0xff]  ;;  %v5774_v20 = vld [vmem:[%s3841_s12 + $0x112] sm:$0xff] }
 0x143   : > { %8312 = vst [vmem:[#allocation12_spill] sm:$0xff] %v5760_v43  ;;  %v5765_v52 = vld [vmem:[%s3841_s12 + $0x86] sm:$0xff]  ;;  %v1571_v51 = vmul.f32 %v8315_v17, %v8134_v37  ;;  %v994_v56 = vadd.f32 %v978_v0, %v958_v63  ;;  %v1050_v22 = vmul.f32 %v8128_v9, %v8316_v12  ;;  %8317 = vst [vmem:[#allocation97_spill] sm:$0xff] %v5774_v20  ;;  %v8318_v5 = vld [vmem:[#allocation13_spill] sm:$0xff] }
 0x144   : > { %8314 = vst [vmem:[#allocation111_spill] sm:$0xff] %v5765_v52  ;;  %v2060_v46 = vmul.f32 %v5765_v52, %v8247_v30  ;;  %v1976_v35 = vadd.f32 %v1960_v3, %v1940_v26  ;;  %v1515_v2 = vadd.f32 %v1499_v59, %v1479_v15  ;;  %v505_v21 = vadd.f32 %v489_v33, %v469_v23  ;;  %v5779_v50 = vld [vmem:[%s3841_s12 + $0x9e] sm:$0xff]  ;;  %v8321_v17 = vld [vmem:[#allocation116_spill] sm:$0xff]  ;;  %v5788_v12 = vld [vmem:[%s3841_s12 + $0xf4] sm:$0xff] }
 0x145   : > { %v561_v58 = vmul.f32 %v8318_v5, %v5760_v43  ;;  %8319 = vst [vmem:[#allocation76_spill] sm:$0xff] %v5779_v50  ;;  %v8320_v52 = vld [vmem:[#allocation31_spill] sm:$0xff]  ;;  %v1607_v63 = vmul.f32 %v8138_v13, %v8321_v17  ;;  %v1030_v0 = vadd.f32 %v1014_v39, %v994_v56  ;;  %8323 = vst [vmem:[#allocation39_spill] sm:$0xff] %v5788_v12  ;;  %v5793_v43 = vld [vmem:[%s3841_s12 + $0xb6] sm:$0xff] }
 0x146   : > { %v2096_v30 = vmul.f32 %v5779_v50, %v8320_v52  ;;  %v8322_v37 = vld [vmem:[#allocation55_spill] sm:$0xff]  ;;  %v2040_v59 = vadd.f32 %v2024_v44, %v1976_v35  ;;  %v1551_v33 = vadd.f32 %v1535_v34, %v1515_v2  ;;  %v541_v26 = vadd.f32 %v525_v27, %v505_v21  ;;  %8324 = vst [vmem:[#allocation35_spill] sm:$0xff] %v5793_v43  ;;  %v8325_v50 = vld [vmem:[#allocation32_spill] sm:$0xff]  ;;  %v5802_v2 = vld [vmem:[%s3841_s12 + $0x91] sm:$0xff] }
 0x147   : > { %v1086_v3 = vmul.f32 %v8136_v57, %v8322_v37  ;;  %v3521_v15 = vld [vmem:[%s3841_s12 + $0x79] sm:$0xff]  ;;  %v2132_v52 = vmul.f32 %v5793_v43, %v8325_v50  ;;  %v1066_v56 = vadd.f32 %v1050_v22, %v1030_v0  ;;  %v1122_v44 = vmul.f32 %v8078_v25, %v5774_v20  ;;  %8327 = vst [vmem:[#allocation49_spill] sm:$0xff] %v5802_v2  ;;  %v8329_v37 = vld [vmem:[#allocation33_spill] sm:$0xff] }
 0x148   : > { %v625_v23 = vmul.f32 %v3521_v15, %v8131_v4  ;;  %v8326_v17 = vld [vmem:[#allocation7_spill] sm:$0xff]  ;;  %v2076_v35 = vadd.f32 %v2060_v46, %v2040_v59  ;;  %v1587_v34 = vadd.f32 %v1571_v51, %v1551_v33  ;;  %v577_v27 = vadd.f32 %v561_v58, %v541_v26  ;;  %v8330_v22 = vld [vmem:[#allocation105_spill] sm:$0xff] }
 0x149   : > { %v1643_v39 = vmul.f32 %v8077_v6, %v8326_v17  ;;  %v661_v21 = vmul.f32 %v5802_v2, %v8265_v55  ;;  %v8328_v15 = vld [vmem:[#allocation115_spill] sm:$0xff]  ;;  %v1679_v43 = vmul.f32 %v8081_v45, %v5788_v12  ;;  %v1102_v17 = vadd.f32 %v1086_v3, %v1066_v56  ;;  %v5816_v59 = vld [vmem:[%s3841_s12 + $0xa9] sm:$0xff] }
 0x14a   : > { %v2168_v4 = vmul.f32 %v8329_v37, %v8328_v15  ;;  %v1186_v0 = vmul.f32 %v8330_v22, %v8083_v10  ;;  %v5813_v20 = vld [vmem:[%s3841_s12 + $0xfe] sm:$0xff]  ;;  %v2112_v46 = vadd.f32 %v2096_v30, %v2076_v35  ;;  %v1623_v51 = vadd.f32 %v1607_v63, %v1587_v34  ;;  %8332 = vst [vmem:[#allocation45_spill] sm:$0xff] %v5816_v59  ;;  %v8333_v26 = vld [vmem:[#allocation93_spill] sm:$0xff]  ;;  %v8335_v56 = vld [vmem:[#allocation8_spill] sm:$0xff] }
 0x14b   : > { %8331 = vst [vmem:[#allocation44_spill] sm:$0xff] %v5813_v20  ;;  %v641_v58 = vadd.f32 %v625_v23, %v577_v27  ;;  %v697_v33 = vmul.f32 %v5816_v59, %v8027_v47  ;;  %v2204_v15 = vmul.f32 %v8271_v16, %v8333_v26  ;;  %v8334_v12 = vld [vmem:[#allocation89_spill] sm:$0xff]  ;;  %v1138_v3 = vadd.f32 %v1122_v44, %v1102_v17  ;;  %v5827_v23 = vld [vmem:[%s3841_s12 + $0xc1] sm:$0xff] }
 0x14c   : > { %v1743_v2 = vmul.f32 %v8334_v12, %v8275_v53  ;;  %v1222_v22 = vmul.f32 %v8335_v56, %v8023_v62  ;;  %v2148_v45 = vadd.f32 %v2132_v52, %v2112_v46  ;;  %v1659_v30 = vadd.f32 %v1643_v39, %v1623_v51  ;;  %8336 = vst [vmem:[#allocation114_spill] sm:$0xff] %v5827_v23  ;;  %v8337_v27 = vld [vmem:[#allocation117_spill] sm:$0xff]  ;;  %v8338_v44 = vld [vmem:[#allocation51_spill] sm:$0xff]  ;;  %v8341_v51 = vld [vmem:[#allocation22_spill] sm:$0xff] }
 0x14d   : > { %v677_v63 = vadd.f32 %v661_v21, %v641_v58  ;;  %v733_v35 = vmul.f32 %v5827_v23, %v8032_v1  ;;  %v2240_v34 = vmul.f32 %v8203_v19, %v5813_v20  ;;  %v1779_v12 = vmul.f32 %v8337_v27, %v8210_v11  ;;  %v8339_v26 = vld [vmem:[#allocation63_spill] sm:$0xff]  ;;  %v8340_v46 = vld [vmem:[#allocation121_spill] sm:$0xff]  ;;  %v8344_v20 = vld [vmem:[#allocation52_spill] sm:$0xff] }
 0x14e   : > { %v1202_v17 = vadd.f32 %v1186_v0, %v1138_v3  ;;  %v1258_v56 = vmul.f32 %v8339_v26, %v8338_v44  ;;  %v2184_v59 = vadd.f32 %v2168_v4, %v2148_v45  ;;  %v1695_v52 = vadd.f32 %v1679_v43, %v1659_v30  ;;  %v8342_v58 = vld [vmem:[#allocation119_spill] sm:$0xff]  ;;  %v5842_v53 = vld [vmem:[%s3841_s12 + $0xcb] sm:$0xff]  ;;  %v8346_v43 = vld [vmem:[#allocation106_spill] sm:$0xff] }
 0x14f   : > { %v713_v39 = vadd.f32 %v697_v33, %v677_v63  ;;  %v769_v21 = vmul.f32 %v8279_v48, %v8340_v46  ;;  %v1815_v23 = vmul.f32 %v8342_v58, %v8341_v51  ;;  %8343 = vst [vmem:[#allocation16_spill] sm:$0xff] %v5842_v53  ;;  %v1294_v27 = vmul.f32 %v5842_v53, %v8344_v20  ;;  %v5847_v0 = vld [vmem:[%s3841_s12 + $0x109] sm:$0xff]  ;;  %v8347_v30 = vld [vmem:[#allocation23_spill] sm:$0xff]  ;;  %v8349_v58 = vld [vmem:[#allocation86_spill] sm:$0xff] }
 0x150   : > { %v1238_v1 = vadd.f32 %v1222_v22, %v1202_v17  ;;  %8345 = vst [vmem:[#allocation113_spill] sm:$0xff] %v5847_v0  ;;  %v2220_v3 = vadd.f32 %v2204_v15, %v2184_v59  ;;  %v1759_v45 = vadd.f32 %v1743_v2, %v1695_v52  ;;  %v805_v33 = vmul.f32 %v8102_v7, %v8346_v43  ;;  %v8348_v63 = vld [vmem:[#allocation120_spill] sm:$0xff]  ;;  %v5856_v53 = vld [vmem:[%s3841_s12 + $0x113] sm:$0xff] }
 0x151   : > { %v749_v4 = vadd.f32 %v733_v35, %v713_v39  ;;  %v1851_v46 = vmul.f32 %v8348_v63, %v8347_v30  ;;  %v1330_v22 = vmul.f32 %v8162_v54, %v8349_v58  ;;  %8350 = vst [vmem:[#allocation102_spill] sm:$0xff] %v5856_v53  ;;  %v841_v2 = vmul.f32 %v3947_v61, %v5847_v0  ;;  %v8351_v59 = vld [vmem:[#allocation118_spill] sm:$0xff]  ;;  %v8352_v52 = vld [vmem:[#allocation69_spill] sm:$0xff]  ;;  %v8363_v0 = vld [vmem:[#allocation104_spill] sm:$0xff] }
 0x152   : > { %v1274_v26 = vadd.f32 %v1258_v56, %v1238_v1  ;;  %v2256_v17 = vadd.f32 %v2240_v34, %v2220_v3  ;;  %v1795_v51 = vadd.f32 %v1779_v12, %v1759_v45  ;;  %v1887_v15 = vmul.f32 %v8222_v38, %v8351_v59  ;;  %v3527_v1 = vld [vmem:[%s3841_s12 + $0x7a] sm:$0xff]  ;;  %v8357_v59 = vld [vmem:[#allocation84_spill] sm:$0xff] }
 0x153   : > { %v785_v20 = vadd.f32 %v769_v21, %v749_v4  ;;  %v1366_v39 = vmul.f32 %v8110_v40, %v8352_v52  ;;  %v905_v56 = vmul.f32 %v3527_v1, %v8229_v32  ;;  %v8354_v21 = vld [vmem:[#allocation123_spill] sm:$0xff]  ;;  %v5872_v4 = vld [vmem:[%s3841_s12 + $0xf5] sm:$0xff]  ;;  %v8362_v52 = vld [vmem:[#allocation60_spill] sm:$0xff] }
 0x154   : > { %v1310_v35 = vadd.f32 %v1294_v27, %v1274_v26  ;;  %v5867_v34 = vadd.f32 %v5578_v18, %v2256_v17  ;;  %v1831_v12 = vadd.f32 %v1815_v23, %v1795_v51  ;;  %v348_v45 = vmul.f32 %v8354_v21, %v8167_v29  ;;  %8355 = vst [vmem:[#allocation68_spill] sm:$0xff] %v5872_v4  ;;  %v8356_v27 = vld [vmem:[#allocation109_spill] sm:$0xff]  ;;  %v8358_v23 = vld [vmem:[#allocation56_spill] sm:$0xff] }
 0x155   : > { %v821_v3 = vadd.f32 %v805_v33, %v785_v20  ;;  %v1402_v26 = vmul.f32 %v8114_v31, %v5856_v53  ;;  %v384_v58 = vmul.f32 %v8356_v27, %v8169_v49  ;;  %v420_v17 = vmul.f32 %v8357_v59, %v7863_v14  ;;  %v8359_v51 = vld [vmem:[#allocation25_spill] sm:$0xff]  ;;  %v5891_v31 = vld [vmem:[%s3841_s12 + $0xe0] sm:$0xff]  ;;  %v8365_v59 = vld [vmem:[#allocation10_spill] sm:$0xff] }
 0x156   : > { %8353 = vst [vmem:[#allocation53_spill] sm:$0xff] %v5867_v34  ;;  %v1346_v63 = vadd.f32 %v1330_v22, %v1310_v35  ;;  %2304 = vadd.xlane.f32.xlu1 %v5867_v34  ;;  %v1867_v20 = vadd.f32 %v1851_v46, %v1831_v12  ;;  %v1923_v33 = vmul.f32 %v8359_v51, %v8358_v23  ;;  %v5884_v21 = vld [vmem:[%s3841_s12 + $0x92] sm:$0xff]  ;;  %8364 = vst [vmem:[#allocation77_spill] sm:$0xff] %v5891_v31  ;;  %v5898_v23 = vld [vmem:[%s3841_s12 + $0xaa] sm:$0xff] }
 0x157   : > { %v857_v1 = vadd.f32 %v841_v2, %v821_v3  ;;  %8360 = vst [vmem:[#allocation54_spill] sm:$0xff] %v5884_v21  ;;  %v8361_v22 = vld [vmem:[#allocation34_spill] sm:$0xff]  ;;  %v1466_v27 = vmul.f32 %v8363_v0, %v8362_v52  ;;  %v400_v43 = vadd.f32 %v384_v58, %v348_v45  ;;  %v456_v46 = vmul.f32 %v5891_v31, %v8365_v59  ;;  %v8368_v0 = vld [vmem:[#allocation59_spill] sm:$0xff] }
 0x158   : > { %v941_v35 = vmul.f32 %v5884_v21, %v8361_v22  ;;  %v1382_v53 = vadd.f32 %v1366_v39, %v1346_v63  ;;  %v1903_v12 = vadd.f32 %v1887_v15, %v1867_v20  ;;  %v8366_v2 = vld [vmem:[#allocation26_spill] sm:$0xff]  ;;  %8367 = vst [vmem:[#allocation83_spill] sm:$0xff] %v5898_v23  ;;  %v977_v39 = vmul.f32 %v5898_v23, %v8304_v24  ;;  %v8369_v21 = vld [vmem:[#allocation87_spill] sm:$0xff]  ;;  %v8370_v15 = vld [vmem:[#allocation57_spill] sm:$0xff] }
 0x159   : > { %v1959_v3 = vmul.f32 %v8366_v2, %v5872_v4  ;;  %v921_v34 = vadd.f32 %v905_v56, %v857_v1  ;;  %v1502_v45 = vmul.f32 %v8368_v0, %v8302_v42  ;;  %v436_v58 = vadd.f32 %v420_v17, %v400_v43  ;;  %v5909_v1 = vld [vmem:[%s3841_s12 + $0xc2] sm:$0xff]  ;;  %v8373_v43 = vld [vmem:[#allocation85_spill] sm:$0xff] }
 0x15a   : > { %v1418_v63 = vadd.f32 %v1402_v26, %v1382_v53  ;;  %v492_v52 = vmul.f32 %v8307_v36, %v8369_v21  ;;  %v1939_v31 = vadd.f32 %v1923_v33, %v1903_v12  ;;  %v2023_v20 = vmul.f32 %v8370_v15, %v8308_v8  ;;  %8371 = vst [vmem:[#allocation79_spill] sm:$0xff] %v5909_v1  ;;  %v5914_v53 = vld [vmem:[%s3841_s12 + $0x128] sm:$0xff]  ;;  %v8374_v21 = vld [vmem:[#allocation98_spill] sm:$0xff]  ;;  %v8375_v23 = vld [vmem:[#allocation29_spill] sm:$0xff] }
 0x15b   : > { %v957_v56 = vadd.f32 %v941_v35, %v921_v34  ;;  %v1013_v4 = vmul.f32 %v5909_v1, %v8311_v41  ;;  %8372 = vst [vmem:[#allocation13_spill] sm:$0xff] %v5914_v53  ;;  %v1538_v17 = vmul.f32 %v8373_v43, %v8192_v60  ;;  %v472_v0 = vadd.f32 %v456_v46, %v436_v58  ;;  %v8376_v15 = vld [vmem:[#allocation124_spill] sm:$0xff]  ;;  %v8377_v35 = vld [vmem:[#allocation94_spill] sm:$0xff]  ;;  %v8381_v58 = vld [vmem:[#allocation31_spill] sm:$0xff] }
 0x15c   : > { %v1482_v26 = vadd.f32 %v1466_v27, %v1418_v63  ;;  %v528_v33 = vmul.f32 %v8250_v28, %v8374_v21  ;;  %v1975_v12 = vadd.f32 %v1959_v3, %v1939_v31  ;;  %v2059_v42 = vmul.f32 %v8376_v15, %v8375_v23  ;;  %v5925_v1 = vld [vmem:[%s3841_s12 + $0xcc] sm:$0xff]  ;;  %v8379_v27 = vld [vmem:[#allocation67_spill] sm:$0xff]  ;;  %v8383_v21 = vld [vmem:[#allocation78_spill] sm:$0xff] }
 0x15d   : > { %v993_v34 = vadd.f32 %v977_v39, %v957_v56  ;;  %v1049_v8 = vmul.f32 %v8128_v9, %v8377_v35  ;;  %8378 = vst [vmem:[#allocation116_spill] sm:$0xff] %v5925_v1  ;;  %v1574_v63 = vmul.f32 %v5925_v1, %v8379_v27  ;;  %v5930_v43 = vld [vmem:[%s3841_s12 + $0x10a] sm:$0xff]  ;;  %v508_v46 = vadd.f32 %v492_v52, %v472_v0  ;;  %v8384_v35 = vld [vmem:[#allocation126_spill] sm:$0xff]  ;;  %v8386_v60 = vld [vmem:[#allocation43_spill] sm:$0xff] }
 0x15e   : > { %v1518_v36 = vadd.f32 %v1502_v45, %v1482_v26  ;;  %8380 = vst [vmem:[#allocation115_spill] sm:$0xff] %v5930_v43  ;;  %v564_v31 = vmul.f32 %v8318_v5, %v5914_v53  ;;  %v2039_v3 = vadd.f32 %v2023_v20, %v1975_v12  ;;  %v8382_v15 = vld [vmem:[#allocation92_spill] sm:$0xff]  ;;  %v1085_v45 = vmul.f32 %v8136_v57, %v8383_v21  ;;  %v8385_v27 = vld [vmem:[#allocation14_spill] sm:$0xff]  ;;  %v8387_v20 = vld [vmem:[#allocation91_spill] sm:$0xff] }
 0x15f   : > { %v2095_v39 = vmul.f32 %v8382_v15, %v8381_v58  ;;  %v1029_v56 = vadd.f32 %v1013_v4, %v993_v34  ;;  %v1610_v9 = vmul.f32 %v8138_v13, %v8384_v35  ;;  %v544_v1 = vadd.f32 %v528_v33, %v508_v46  ;;  %v5945_v53 = vld [vmem:[%s3841_s12 + $0x114] sm:$0xff]  ;;  %v8390_v46 = vld [vmem:[#allocation95_spill] sm:$0xff] }
 0x160   : > { %v1554_v26 = vadd.f32 %v1538_v17, %v1518_v36  ;;  %v628_v52 = vmul.f32 %v8386_v60, %v8385_v27  ;;  %v2075_v0 = vadd.f32 %v2059_v42, %v2039_v3  ;;  %v2131_v12 = vmul.f32 %v8387_v20, %v8325_v50  ;;  %8388 = vst [vmem:[#allocation105_spill] sm:$0xff] %v5945_v53  ;;  %v8389_v17 = vld [vmem:[#allocation81_spill] sm:$0xff]  ;;  %v3533_v21 = vld [vmem:[%s3841_s12 + $0x7b] sm:$0xff] }
 0x161   : > { %v1065_v4 = vadd.f32 %v1049_v8, %v1029_v56  ;;  %v1121_v34 = vmul.f32 %v8078_v25, %v5930_v43  ;;  %v1646_v15 = vmul.f32 %v8077_v6, %v8389_v17  ;;  %v580_v33 = vadd.f32 %v564_v31, %v544_v1  ;;  %v8391_v42 = vld [vmem:[#allocation125_spill] sm:$0xff]  ;;  %v8394_v31 = vld [vmem:[#allocation108_spill] sm:$0xff] }
 0x162   : > { %v1590_v36 = vadd.f32 %v1574_v63, %v1554_v26  ;;  %v664_v35 = vmul.f32 %v8390_v46, %v8265_v55  ;;  %v2111_v60 = vadd.f32 %v2095_v39, %v2075_v0  ;;  %v2167_v3 = vmul.f32 %v8329_v37, %v8391_v42  ;;  %v5958_v56 = vld [vmem:[%s3841_s12 + $0xf6] sm:$0xff]  ;;  %v8395_v0 = vld [vmem:[#allocation48_spill] sm:$0xff] }
 0x163   : > { %v1101_v20 = vadd.f32 %v1085_v45, %v1065_v4  ;;  %v1185_v8 = vmul.f32 %v3533_v21, %v8083_v10  ;;  %8392 = vst [vmem:[#allocation89_spill] sm:$0xff] %v5958_v56  ;;  %v8393_v26 = vld [vmem:[#allocation74_spill] sm:$0xff]  ;;  %v644_v1 = vadd.f32 %v628_v52, %v580_v33  ;;  %v700_v46 = vmul.f32 %v8394_v31, %v8027_v47  ;;  %v5974_v52 = vld [vmem:[%s3841_s12 + $0xe1] sm:$0xff]  ;;  %v8400_v33 = vld [vmem:[#allocation17_spill] sm:$0xff] }
 0x164   : > { %v1626_v63 = vadd.f32 %v1610_v9, %v1590_v36  ;;  %v1682_v17 = vmul.f32 %v8393_v26, %v5945_v53  ;;  %v2147_v39 = vadd.f32 %v2131_v12, %v2111_v60  ;;  %v2203_v42 = vmul.f32 %v8271_v16, %v8395_v0  ;;  %v5967_v4 = vld [vmem:[%s3841_s12 + $0x93] sm:$0xff]  ;;  %v8397_v9 = vld [vmem:[#allocation19_spill] sm:$0xff]  ;;  %v8398_v36 = vld [vmem:[#allocation80_spill] sm:$0xff]  ;;  %8399 = vst [vmem:[#allocation51_spill] sm:$0xff] %v5974_v52 }
 0x165   : > { %v1137_v45 = vadd.f32 %v1121_v34, %v1101_v20  ;;  %8396 = vst [vmem:[#allocation117_spill] sm:$0xff] %v5967_v4  ;;  %v1221_v21 = vmul.f32 %v5967_v4, %v8023_v62  ;;  %v1746_v10 = vmul.f32 %v8398_v36, %v8397_v9  ;;  %v680_v53 = vadd.f32 %v664_v35, %v644_v1  ;;  %v5981_v0 = vld [vmem:[%s3841_s12 + $0xab] sm:$0xff]  ;;  %v8402_v35 = vld [vmem:[#allocation107_spill] sm:$0xff] }
 0x166   : > { %v1662_v43 = vadd.f32 %v1646_v15, %v1626_v63  ;;  %v736_v12 = vmul.f32 %v5974_v52, %v8400_v33  ;;  %v2183_v60 = vadd.f32 %v2167_v3, %v2147_v39  ;;  %v2239_v34 = vmul.f32 %v8203_v19, %v5958_v56  ;;  %8401 = vst [vmem:[#allocation121_spill] sm:$0xff] %v5981_v0  ;;  %v8403_v4 = vld [vmem:[#allocation37_spill] sm:$0xff]  ;;  %v8404_v3 = vld [vmem:[#allocation22_spill] sm:$0xff]  ;;  %v8405_v39 = vld [vmem:[#allocation96_spill] sm:$0xff] }
 0x167   : > { %v1201_v20 = vadd.f32 %v1185_v8, %v1137_v45  ;;  %v1257_v15 = vmul.f32 %v5981_v0, %v8338_v44  ;;  %v1782_v1 = vmul.f32 %v8402_v35, %v8210_v11  ;;  %v716_v36 = vadd.f32 %v700_v46, %v680_v53  ;;  %v5992_v8 = vld [vmem:[%s3841_s12 + $0xc3] sm:$0xff]  ;;  %v8412_v35 = vld [vmem:[#allocation101_spill] sm:$0xff] }
 0x168   : > { %v1698_v63 = vadd.f32 %v1682_v17, %v1662_v43  ;;  %v772_v31 = vmul.f32 %v8279_v48, %v8403_v4  ;;  %v2219_v52 = vadd.f32 %v2203_v42, %v2183_v60  ;;  %v1818_v9 = vmul.f32 %v8405_v39, %v8404_v3  ;;  %8406 = vst [vmem:[#allocation119_spill] sm:$0xff] %v5992_v8  ;;  %v8407_v45 = vld [vmem:[#allocation52_spill] sm:$0xff] }
 0x169   : > { %v1237_v56 = vadd.f32 %v1221_v21, %v1201_v20  ;;  %v1293_v19 = vmul.f32 %v5992_v8, %v8407_v45  ;;  %v5997_v0 = vld [vmem:[%s3841_s12 + $0x129] sm:$0xff]  ;;  %v752_v46 = vadd.f32 %v736_v12, %v716_v36  ;;  %v8411_v21 = vld [vmem:[#allocation71_spill] sm:$0xff]  ;;  %v1329_v8 = vmul.f32 %v8162_v54, %v8412_v35 }
 0x16a   : > { %8408 = vst [vmem:[#allocation120_spill] sm:$0xff] %v5997_v0  ;;  %v1762_v43 = vadd.f32 %v1746_v10, %v1698_v63  ;;  %v6000_v17 = vld [vmem:[%s3841_s12 + $0xcd] sm:$0xff]  ;;  %v2255_v60 = vadd.f32 %v2239_v34, %v2219_v52  ;;  %v1890_v20 = vmul.f32 %v8222_v38, %v8411_v21  ;;  %v844_v12 = vmul.f32 %v3947_v61, %v5997_v0  ;;  %v8416_v34 = vld [vmem:[#allocation50_spill] sm:$0xff] }
 0x16b   : > { %8409 = vst [vmem:[#allocation86_spill] sm:$0xff] %v6000_v17  ;;  %v1854_v53 = vmul.f32 %v6000_v17, %v8347_v30  ;;  %v8410_v42 = vld [vmem:[#allocation24_spill] sm:$0xff]  ;;  %v1273_v39 = vadd.f32 %v1257_v15, %v1237_v56  ;;  %v788_v17 = vadd.f32 %v772_v31, %v752_v46  ;;  %v908_v56 = vmul.f32 %v8416_v34, %v8229_v32  ;;  %v8417_v15 = vld [vmem:[#allocation75_spill] sm:$0xff]  ;;  %v8419_v31 = vld [vmem:[#allocation82_spill] sm:$0xff] }
 0x16c   : > { %v808_v4 = vmul.f32 %v8102_v7, %v8410_v42  ;;  %v1798_v45 = vadd.f32 %v1782_v1, %v1762_v43  ;;  %v6011_v10 = vld [vmem:[%s3841_s12 + $0x10b] sm:$0xff]  ;;  %v6018_v36 = vadd.f32 %v5578_v18, %v2255_v60  ;;  %v347_v35 = vmul.f32 %v8417_v15, %v8167_v29  ;;  %v6025_v1 = vld [vmem:[%s3841_s12 + $0x115] sm:$0xff] }
 0x16d   : > { %8413 = vst [vmem:[#allocation118_spill] sm:$0xff] %v6011_v10  ;;  %v8414_v63 = vld [vmem:[#allocation72_spill] sm:$0xff]  ;;  %v1309_v52 = vadd.f32 %v1293_v19, %v1273_v39  ;;  %8418 = vst [vmem:[#allocation109_spill] sm:$0xff] %v6025_v1  ;;  %v383_v46 = vmul.f32 %v8419_v31, %v8169_v49  ;;  %v8421_v19 = vld [vmem:[#allocation122_spill] sm:$0xff] }
 0x16e   : > { %v1365_v3 = vmul.f32 %v8110_v40, %v8414_v63  ;;  %8415 = vst [vmem:[#allocation123_spill] sm:$0xff] %v6018_v36  ;;  %v1834_v43 = vadd.f32 %v1818_v9, %v1798_v45  ;;  %v824_v21 = vadd.f32 %v808_v4, %v788_v17  ;;  %v8420_v63 = vld [vmem:[#allocation88_spill] sm:$0xff]  ;;  %2302 = vadd.xlane.f32.xlu0 %v6018_v36  ;;  %v8422_v0 = vld [vmem:[#allocation58_spill] sm:$0xff]  ;;  %v8423_v42 = vld [vmem:[#allocation65_spill] sm:$0xff] }
 0x16f   : > { %v419_v60 = vmul.f32 %v8420_v63, %v7863_v14  ;;  %v1926_v39 = vmul.f32 %v8359_v51, %v8421_v19  ;;  %v1345_v34 = vadd.f32 %v1329_v8, %v1309_v52  ;;  %v1401_v15 = vmul.f32 %v8422_v0, %v6011_v10  ;;  %v6039_v31 = vld [vmem:[%s3841_s12 + $0xd8] sm:$0xff]  ;;  %v8425_v10 = vld [vmem:[#allocation60_spill] sm:$0xff]  ;;  %v8429_v14 = vld [vmem:[#allocation27_spill] sm:$0xff] }
 0x170   : > { %v944_v9 = vmul.f32 %v8423_v42, %v8361_v22  ;;  %v1870_v45 = vadd.f32 %v1854_v53, %v1834_v43  ;;  %v860_v17 = vadd.f32 %v844_v12, %v824_v21  ;;  %v399_v4 = vadd.f32 %v383_v46, %v347_v35  ;;  %8424 = vst [vmem:[#allocation104_spill] sm:$0xff] %v6039_v31  ;;  %v3540_v63 = vld [vmem:[%s3841_s12 + $0x7c] sm:$0xff]  ;;  %v8426_v42 = vld [vmem:[#allocation112_spill] sm:$0xff] }
 0x171   : > { %v455_v36 = vmul.f32 %v6039_v31, %v8365_v59  ;;  %v1962_v8 = vmul.f32 %v8366_v2, %v6025_v1  ;;  %v1381_v52 = vadd.f32 %v1365_v3, %v1345_v34  ;;  %v1465_v19 = vmul.f32 %v3540_v63, %v8425_v10  ;;  %v8427_v21 = vld [vmem:[#allocation103_spill] sm:$0xff]  ;;  %v6054_v1 = vld [vmem:[%s3841_s12 + $0x94] sm:$0xff] }
 0x172   : > { %v980_v53 = vmul.f32 %v8426_v42, %v8304_v24  ;;  %v1906_v43 = vadd.f32 %v1890_v20, %v1870_v45  ;;  %v924_v12 = vadd.f32 %v908_v56, %v860_v17  ;;  %v435_v35 = vadd.f32 %v419_v60, %v399_v4  ;;  %v8428_v46 = vld [vmem:[#allocation11_spill] sm:$0xff]  ;;  %8431 = vst [vmem:[#allocation26_spill] sm:$0xff] %v6054_v1  ;;  %v8432_v3 = vld [vmem:[#allocation61_spill] sm:$0xff]  ;;  %v8435_v4 = vld [vmem:[#allocation12_spill] sm:$0xff] }
 0x173   : > { %v491_v51 = vmul.f32 %v8428_v46, %v8427_v21  ;;  %v8430_v31 = vld [vmem:[#allocation111_spill] sm:$0xff]  ;;  %v1417_v22 = vadd.f32 %v1401_v15, %v1381_v52  ;;  %v1501_v63 = vmul.f32 %v6054_v1, %v8432_v3  ;;  %v8436_v15 = vld [vmem:[#allocation76_spill] sm:$0xff]  ;;  %v8438_v1 = vld [vmem:[#allocation66_spill] sm:$0xff] }
 0x174   : > { %v2026_v59 = vmul.f32 %v8430_v31, %v8429_v14  ;;  %v6059_v34 = vld [vmem:[%s3841_s12 + $0xe2] sm:$0xff]  ;;  %v1942_v60 = vadd.f32 %v1926_v39, %v1906_v43  ;;  %v960_v45 = vadd.f32 %v944_v9, %v924_v12  ;;  %v471_v17 = vadd.f32 %v455_v36, %v435_v35  ;;  %v6071_v42 = vld [vmem:[%s3841_s12 + $0xac] sm:$0xff] }
 0x175   : > { %8433 = vst [vmem:[#allocation87_spill] sm:$0xff] %v6059_v34  ;;  %v1016_v20 = vmul.f32 %v6059_v34, %v8311_v41  ;;  %v6064_v56 = vld [vmem:[%s3841_s12 + $0x120] sm:$0xff]  ;;  %v527_v31 = vmul.f32 %v8250_v28, %v8435_v4  ;;  %v2062_v52 = vmul.f32 %v8436_v15, %v8375_v23  ;;  %v1481_v21 = vadd.f32 %v1465_v19, %v1417_v22  ;;  %v8440_v34 = vld [vmem:[#allocation42_spill] sm:$0xff]  ;;  %v6078_v43 = vld [vmem:[%s3841_s12 + $0x12a] sm:$0xff] }
 0x176   : > { %8434 = vst [vmem:[#allocation57_spill] sm:$0xff] %v6064_v56  ;;  %8437 = vst [vmem:[#allocation124_spill] sm:$0xff] %v6071_v42  ;;  %v1537_v14 = vmul.f32 %v6071_v42, %v8438_v1  ;;  %v8439_v3 = vld [vmem:[#allocation55_spill] sm:$0xff]  ;;  %v1978_v39 = vadd.f32 %v1962_v8, %v1942_v60  ;;  %v996_v36 = vadd.f32 %v980_v53, %v960_v45  ;;  %v8445_v23 = vld [vmem:[#allocation97_spill] sm:$0xff] }
 0x177   : > { %v1052_v41 = vmul.f32 %v8440_v34, %v8439_v3  ;;  %8441 = vst [vmem:[#allocation94_spill] sm:$0xff] %v6078_v43  ;;  %v507_v9 = vadd.f32 %v491_v51, %v471_v17  ;;  %v563_v12 = vmul.f32 %v8318_v5, %v6064_v56  ;;  %v8442_v35 = vld [vmem:[#allocation35_spill] sm:$0xff]  ;;  %v1517_v19 = vadd.f32 %v1501_v63, %v1481_v21  ;;  %v8446_v51 = vld [vmem:[#allocation49_spill] sm:$0xff] }
 0x178   : > { %v2098_v22 = vmul.f32 %v8442_v35, %v8381_v58  ;;  %v6085_v15 = vld [vmem:[%s3841_s12 + $0xc4] sm:$0xff]  ;;  %v1088_v8 = vmul.f32 %v8136_v57, %v8445_v23  ;;  %v2042_v3 = vadd.f32 %v2026_v59, %v1978_v39  ;;  %v1032_v60 = vadd.f32 %v1016_v20, %v996_v36  ;;  %v6094_v17 = vld [vmem:[%s3841_s12 + $0xce] sm:$0xff] }
 0x179   : > { %8443 = vst [vmem:[#allocation31_spill] sm:$0xff] %v6085_v15  ;;  %v8444_v4 = vld [vmem:[#allocation67_spill] sm:$0xff]  ;;  %v543_v53 = vadd.f32 %v527_v31, %v507_v9  ;;  %v627_v45 = vmul.f32 %v8446_v51, %v8385_v27  ;;  %8447 = vst [vmem:[#allocation92_spill] sm:$0xff] %v6094_v17  ;;  %v2134_v63 = vmul.f32 %v6094_v17, %v8325_v50  ;;  %v6103_v59 = vld [vmem:[%s3841_s12 + $0x10c] sm:$0xff] }
 0x17a   : > { %v1573_v42 = vmul.f32 %v6085_v15, %v8444_v4  ;;  %v1553_v21 = vadd.f32 %v1537_v14, %v1517_v19  ;;  %v8448_v35 = vld [vmem:[#allocation7_spill] sm:$0xff]  ;;  %v1124_v15 = vmul.f32 %v8078_v25, %v6078_v43  ;;  %v2078_v23 = vadd.f32 %v2062_v52, %v2042_v3  ;;  %8449 = vst [vmem:[#allocation126_spill] sm:$0xff] %v6103_v59  ;;  %v8450_v39 = vld [vmem:[#allocation45_spill] sm:$0xff]  ;;  %v8454_v50 = vld [vmem:[#allocation8_spill] sm:$0xff] }
 0x17b   : > { %v1609_v56 = vmul.f32 %v8138_v13, %v8448_v35  ;;  %v1068_v20 = vadd.f32 %v1052_v41, %v1032_v60  ;;  %v579_v31 = vadd.f32 %v563_v12, %v543_v53  ;;  %v663_v36 = vmul.f32 %v8450_v39, %v8265_v55  ;;  %v8451_v9 = vld [vmem:[#allocation93_spill] sm:$0xff]  ;;  %v8452_v14 = vld [vmem:[#allocation39_spill] sm:$0xff]  ;;  %v8456_v3 = vld [vmem:[#allocation114_spill] sm:$0xff] }
 0x17c   : > { %v2170_v51 = vmul.f32 %v8329_v37, %v8451_v9  ;;  %v1589_v17 = vadd.f32 %v1573_v42, %v1553_v21  ;;  %v1645_v19 = vmul.f32 %v8077_v6, %v8452_v14  ;;  %v8453_v35 = vld [vmem:[#allocation47_spill] sm:$0xff]  ;;  %v6114_v43 = vld [vmem:[%s3841_s12 + $0x116] sm:$0xff]  ;;  %v2114_v52 = vadd.f32 %v2098_v22, %v2078_v23  ;;  %v8457_v53 = vld [vmem:[#allocation44_spill] sm:$0xff] }
 0x17d   : > { %v1188_v13 = vmul.f32 %v8454_v50, %v8453_v35  ;;  %8455 = vst [vmem:[#allocation14_spill] sm:$0xff] %v6114_v43  ;;  %v1104_v41 = vadd.f32 %v1088_v8, %v1068_v20  ;;  %v643_v12 = vadd.f32 %v627_v45, %v579_v31  ;;  %v699_v60 = vmul.f32 %v8456_v3, %v8027_v47  ;;  %v8458_v21 = vld [vmem:[#allocation63_spill] sm:$0xff]  ;;  %v8460_v45 = vld [vmem:[#allocation36_spill] sm:$0xff] }
 0x17e   : > { %v2206_v9 = vmul.f32 %v8271_v16, %v8457_v53  ;;  %v1625_v39 = vadd.f32 %v1609_v56, %v1589_v17  ;;  %v1681_v42 = vmul.f32 %v8393_v26, %v6103_v59  ;;  %v1224_v14 = vmul.f32 %v8458_v21, %v8023_v62  ;;  %v6125_v22 = vld [vmem:[%s3841_s12 + $0xd9] sm:$0xff]  ;;  %v8462_v21 = vld [vmem:[#allocation16_spill] sm:$0xff] }
 0x17f   : > { %v2150_v50 = vadd.f32 %v2134_v63, %v2114_v52  ;;  %v1140_v37 = vadd.f32 %v1124_v15, %v1104_v41  ;;  %v679_v23 = vadd.f32 %v663_v36, %v643_v12  ;;  %8459 = vst [vmem:[#allocation43_spill] sm:$0xff] %v6125_v22  ;;  %v735_v8 = vmul.f32 %v6125_v22, %v8400_v33  ;;  %v3547_v20 = vld [vmem:[%s3841_s12 + $0x7d] sm:$0xff]  ;;  %v6138_v22 = vld [vmem:[%s3841_s12 + $0x95] sm:$0xff]  ;;  %v8472_v59 = vld [vmem:[#allocation56_spill] sm:$0xff] }
 0x180   : > { %v2242_v56 = vmul.f32 %v8460_v45, %v6114_v43  ;;  %v1661_v17 = vadd.f32 %v1645_v19, %v1625_v39  ;;  %v8461_v31 = vld [vmem:[#allocation19_spill] sm:$0xff]  ;;  %v1260_v63 = vmul.f32 %v8462_v21, %v8338_v44  ;;  %v8463_v41 = vld [vmem:[#allocation106_spill] sm:$0xff]  ;;  %8464 = vst [vmem:[#allocation91_spill] sm:$0xff] %v6138_v22  ;;  %v1781_v43 = vmul.f32 %v6138_v22, %v8210_v11  ;;  %v6143_v39 = vld [vmem:[%s3841_s12 + $0xad] sm:$0xff] }
 0x181   : > { %v1745_v53 = vmul.f32 %v3547_v20, %v8461_v31  ;;  %v2186_v15 = vadd.f32 %v2170_v51, %v2150_v50  ;;  %v1204_v52 = vadd.f32 %v1188_v13, %v1140_v37  ;;  %v715_v36 = vadd.f32 %v699_v60, %v679_v23  ;;  %8465 = vst [vmem:[#allocation95_spill] sm:$0xff] %v6143_v39  ;;  %v8466_v19 = vld [vmem:[#allocation22_spill] sm:$0xff]  ;;  %v6148_v21 = vld [vmem:[%s3841_s12 + $0xe3] sm:$0xff]  ;;  %v8470_v23 = vld [vmem:[#allocation113_spill] sm:$0xff] }
 0x182   : > { %v771_v12 = vmul.f32 %v8279_v48, %v8463_v41  ;;  %v1697_v3 = vadd.f32 %v1681_v42, %v1661_v17  ;;  %v1817_v20 = vmul.f32 %v6143_v39, %v8466_v19  ;;  %8467 = vst [vmem:[#allocation125_spill] sm:$0xff] %v6148_v21  ;;  %v8468_v13 = vld [vmem:[#allocation52_spill] sm:$0xff]  ;;  %v807_v17 = vmul.f32 %v8102_v7, %v8470_v23  ;;  %v8473_v11 = vld [vmem:[#allocation69_spill] sm:$0xff] }
 0x183   : > { %v1296_v37 = vmul.f32 %v6148_v21, %v8468_v13  ;;  %v6153_v51 = vld [vmem:[%s3841_s12 + $0x121] sm:$0xff]  ;;  %v2222_v60 = vadd.f32 %v2206_v9, %v2186_v15  ;;  %v1240_v42 = vadd.f32 %v1224_v14, %v1204_v52  ;;  %v751_v50 = vadd.f32 %v735_v8, %v715_v36  ;;  %v6167_v9 = vld [vmem:[%s3841_s12 + $0x12b] sm:$0xff]  ;;  %v8475_v15 = vld [vmem:[#allocation102_spill] sm:$0xff] }
 0x184   : > { %8469 = vst [vmem:[#allocation74_spill] sm:$0xff] %v6153_v51  ;;  %v1761_v41 = vadd.f32 %v1745_v53, %v1697_v3  ;;  %v6158_v22 = vld [vmem:[%s3841_s12 + $0xc5] sm:$0xff]  ;;  %v1889_v19 = vmul.f32 %v8222_v38, %v8472_v59  ;;  %v1332_v21 = vmul.f32 %v8162_v54, %v8473_v11  ;;  %8474 = vst [vmem:[#allocation17_spill] sm:$0xff] %v6167_v9  ;;  %v8476_v36 = vld [vmem:[#allocation54_spill] sm:$0xff] }
 0x185   : > { %8471 = vst [vmem:[#allocation80_spill] sm:$0xff] %v6158_v22  ;;  %v1853_v39 = vmul.f32 %v6158_v22, %v8347_v30  ;;  %v2258_v13 = vadd.f32 %v2242_v56, %v2222_v60  ;;  %v1276_v14 = vadd.f32 %v1260_v63, %v1240_v42  ;;  %v787_v8 = vadd.f32 %v771_v12, %v751_v50  ;;  %v3552_v59 = vld [vmem:[%s3841_s12 + $0xb0] sm:$0xff]  ;;  %v8478_v60 = vld [vmem:[#allocation84_spill] sm:$0xff] }
 0x186   : > { %v843_v3 = vmul.f32 %v3947_v61, %v6153_v51  ;;  %v1797_v53 = vadd.f32 %v1781_v43, %v1761_v41  ;;  %v1368_v52 = vmul.f32 %v8110_v40, %v8475_v15  ;;  %v907_v22 = vmul.f32 %v8476_v36, %v8229_v32  ;;  %v8479_v41 = vld [vmem:[#allocation34_spill] sm:$0xff]  ;;  %v8480_v15 = vld [vmem:[#allocation83_spill] sm:$0xff]  ;;  %v8481_v36 = vld [vmem:[#allocation9_spill] sm:$0xff] }
 0x187   : > { %v350_v11 = vmul.f32 %v3552_v59, %v8167_v29  ;;  %v6178_v56 = vadd.f32 %v5578_v18, %v2258_v13  ;;  %v1312_v63 = vadd.f32 %v1296_v37, %v1276_v14  ;;  %v823_v12 = vadd.f32 %v807_v17, %v787_v8  ;;  %v8482_v23 = vld [vmem:[#allocation77_spill] sm:$0xff]  ;;  %v3553_v17 = vld [vmem:[%s3841_s12 + $0xf8] sm:$0xff] }
 0x188   : > { %v386_v42 = vmul.f32 %v8478_v60, %v8169_v49  ;;  %v1833_v50 = vadd.f32 %v1817_v20, %v1797_v53  ;;  %v1404_v43 = vmul.f32 %v8422_v0, %v6167_v9  ;;  %v943_v51 = vmul.f32 %v8480_v15, %v8479_v41  ;;  %v6190_v59 = vld [vmem:[%s3841_s12 + $0x10d] sm:$0xff]  ;;  %v8484_v20 = vld [vmem:[#allocation10_spill] sm:$0xff]  ;;  %v8487_v15 = vld [vmem:[#allocation59_spill] sm:$0xff] }
 0x189   : > { %8477 = vst [vmem:[#allocation37_spill] sm:$0xff] %v6178_v56  ;;  %v422_v32 = vmul.f32 %v8482_v23, %v8481_v36  ;;  %2308 = vadd.xlane.f32.xlu1 %v6178_v56  ;;  %8483 = vst [vmem:[#allocation71_spill] sm:$0xff] %v6190_v59  ;;  %v1348_v18 = vadd.f32 %v1332_v21, %v1312_v63  ;;  %v859_v13 = vadd.f32 %v843_v3, %v823_v12  ;;  %v8485_v53 = vld [vmem:[#allocation68_spill] sm:$0xff]  ;;  %v8486_v60 = vld [vmem:[#allocation25_spill] sm:$0xff] }
 0x18a   : > { %v402_v37 = vadd.f32 %v386_v42, %v350_v11  ;;  %v458_v14 = vmul.f32 %v3553_v17, %v8484_v20  ;;  %v1869_v8 = vadd.f32 %v1853_v39, %v1833_v50  ;;  %v1925_v9 = vmul.f32 %v8486_v60, %v8485_v53  ;;  %v8488_v23 = vld [vmem:[#allocation79_spill] sm:$0xff]  ;;  %v8489_v3 = vld [vmem:[#allocation98_spill] sm:$0xff]  ;;  %v8490_v42 = vld [vmem:[#allocation61_spill] sm:$0xff] }
 0x18b   : > { %v1468_v41 = vmul.f32 %v8487_v15, %v8425_v10  ;;  %v979_v56 = vmul.f32 %v8488_v23, %v8304_v24  ;;  %v1384_v36 = vadd.f32 %v1368_v52, %v1348_v18  ;;  %v923_v21 = vadd.f32 %v907_v22, %v859_v13  ;;  %v8491_v50 = vld [vmem:[#allocation85_spill] sm:$0xff]  ;;  %v6207_v53 = vld [vmem:[%s3841_s12 + $0xda] sm:$0xff]  ;;  %v8493_v15 = vld [vmem:[#allocation40_spill] sm:$0xff] }
 0x18c   : > { %v438_v63 = vadd.f32 %v422_v32, %v402_v37  ;;  %v494_v11 = vmul.f32 %v8428_v46, %v8489_v3  ;;  %v1905_v12 = vadd.f32 %v1889_v19, %v1869_v8  ;;  %v1961_v39 = vmul.f32 %v8366_v2, %v6190_v59  ;;  %8492 = vst [vmem:[#allocation101_spill] sm:$0xff] %v6207_v53  ;;  %v330_v24 = vld [vmem:[%s3841_s12 + $0x140] sm:$0xff]  ;;  %v8494_v18 = vld [vmem:[#allocation13_spill] sm:$0xff]  ;;  %v8497_v46 = vld [vmem:[#allocation78_spill] sm:$0xff] }
 0x18d   : > { %v1504_v17 = vmul.f32 %v8491_v50, %v8490_v42  ;;  %v1015_v23 = vmul.f32 %v6207_v53, %v8493_v15  ;;  %v1420_v22 = vadd.f32 %v1404_v43, %v1384_v36  ;;  %v959_v32 = vadd.f32 %v943_v51, %v923_v21  ;;  %v3555_v37 = vld [vmem:[%s3841_s12 + $0x7e] sm:$0xff]  ;;  %v8496_v50 = vld [vmem:[#allocation116_spill] sm:$0xff]  ;;  %v8500_v21 = vld [vmem:[#allocation29_spill] sm:$0xff] }
 0x18e   : > { %v474_v52 = vadd.f32 %v458_v14, %v438_v63  ;;  %v530_v19 = vmul.f32 %v8250_v28, %v8494_v18  ;;  %v1941_v13 = vadd.f32 %v1925_v9, %v1905_v12  ;;  %v8495_v8 = vld [vmem:[#allocation27_spill] sm:$0xff]  ;;  %v1540_v59 = vmul.f32 %v8496_v50, %v8438_v1  ;;  %v6225_v9 = vld [vmem:[%s3841_s12 + $0x96] sm:$0xff] }
 0x18f   : > { %v2025_v3 = vmul.f32 %v3555_v37, %v8495_v8  ;;  %v1051_v53 = vmul.f32 %v8440_v34, %v8497_v46  ;;  %v1484_v15 = vadd.f32 %v1468_v41, %v1420_v22  ;;  %v6221_v42 = vld [vmem:[%s3841_s12 + $0x122] sm:$0xff]  ;;  %v995_v51 = vadd.f32 %v979_v56, %v959_v32  ;;  %8499 = vst [vmem:[#allocation75_spill] sm:$0xff] %v6225_v9  ;;  %v8504_v37 = vld [vmem:[#allocation81_spill] sm:$0xff] }
 0x190   : > { %8498 = vst [vmem:[#allocation50_spill] sm:$0xff] %v6221_v42  ;;  %v510_v43 = vadd.f32 %v494_v11, %v474_v52  ;;  %v566_v36 = vmul.f32 %v8318_v5, %v330_v24  ;;  %v1977_v14 = vadd.f32 %v1961_v39, %v1941_v13  ;;  %v2061_v63 = vmul.f32 %v6225_v9, %v8500_v21  ;;  %v6230_v12 = vld [vmem:[%s3841_s12 + $0xe4] sm:$0xff]  ;;  %v3558_v24 = vld [vmem:[%s3841_s12 + $0xb1] sm:$0xff] }
 0x191   : > { %8501 = vst [vmem:[#allocation58_spill] sm:$0xff] %v6230_v12  ;;  %v1576_v46 = vmul.f32 %v6230_v12, %v8444_v4  ;;  %v8502_v41 = vld [vmem:[#allocation115_spill] sm:$0xff]  ;;  %v1520_v18 = vadd.f32 %v1504_v17, %v1484_v15  ;;  %v1031_v56 = vadd.f32 %v1015_v23, %v995_v51  ;;  %v630_v39 = vmul.f32 %v3558_v24, %v8385_v27  ;;  %v6239_v52 = vld [vmem:[%s3841_s12 + $0xae] sm:$0xff]  ;;  %v8505_v9 = vld [vmem:[#allocation70_spill] sm:$0xff] }
 0x192   : > { %v1087_v22 = vmul.f32 %v8136_v57, %v8502_v41  ;;  %v546_v11 = vadd.f32 %v530_v19, %v510_v43  ;;  %v2041_v32 = vadd.f32 %v2025_v3, %v1977_v14  ;;  %8503 = vst [vmem:[#allocation65_spill] sm:$0xff] %v6239_v52  ;;  %v2097_v13 = vmul.f32 %v6239_v52, %v8381_v58  ;;  %v6248_v41 = vld [vmem:[%s3841_s12 + $0x12c] sm:$0xff] }
 0x193   : > { %v1612_v50 = vmul.f32 %v8505_v9, %v8504_v37  ;;  %v1123_v12 = vmul.f32 %v8078_v25, %v6221_v42  ;;  %8506 = vst [vmem:[#allocation103_spill] sm:$0xff] %v6248_v41  ;;  %v1556_v17 = vadd.f32 %v1540_v59, %v1520_v18  ;;  %v1067_v23 = vadd.f32 %v1051_v53, %v1031_v56  ;;  %v8507_v19 = vld [vmem:[#allocation108_spill] sm:$0xff]  ;;  %v8510_v37 = vld [vmem:[#allocation105_spill] sm:$0xff] }
 0x194   : > { %v582_v15 = vadd.f32 %v566_v36, %v546_v11  ;;  %v666_v3 = vmul.f32 %v8507_v19, %v8265_v55  ;;  %v2077_v51 = vadd.f32 %v2061_v63, %v2041_v32  ;;  %v6253_v43 = vld [vmem:[%s3841_s12 + $0xc6] sm:$0xff]  ;;  %v1648_v52 = vmul.f32 %v8077_v6, %v8510_v37  ;;  %v8511_v42 = vld [vmem:[#allocation117_spill] sm:$0xff] }
 0x195   : > { %8508 = vst [vmem:[#allocation111_spill] sm:$0xff] %v6253_v43  ;;  %v8509_v14 = vld [vmem:[#allocation32_spill] sm:$0xff]  ;;  %v1187_v25 = vmul.f32 %v8511_v42, %v8453_v35  ;;  %v1592_v59 = vadd.f32 %v1576_v46, %v1556_v17  ;;  %v1103_v53 = vadd.f32 %v1087_v22, %v1067_v23  ;;  %v8512_v36 = vld [vmem:[#allocation51_spill] sm:$0xff]  ;;  %v8514_v32 = vld [vmem:[#allocation33_spill] sm:$0xff]  ;;  %v1684_v55 = vmul.f32 %v8393_v26, %v6248_v41 }
 0x196   : > { %v2133_v24 = vmul.f32 %v6253_v43, %v8509_v14  ;;  %v646_v18 = vadd.f32 %v630_v39, %v582_v15  ;;  %v702_v56 = vmul.f32 %v8512_v36, %v8027_v47  ;;  %v2113_v11 = vadd.f32 %v2097_v13, %v2077_v51  ;;  %v8513_v63 = vld [vmem:[#allocation48_spill] sm:$0xff]  ;;  %v8515_v43 = vld [vmem:[#allocation121_spill] sm:$0xff]  ;;  %v3561_v22 = vld [vmem:[%s3841_s12 + $0xf9] sm:$0xff] }
 0x197   : > { %v2169_v19 = vmul.f32 %v8514_v32, %v8513_v63  ;;  %v1223_v14 = vmul.f32 %v8515_v43, %v8023_v62  ;;  %v6270_v37 = vld [vmem:[%s3841_s12 + $0x10e] sm:$0xff]  ;;  %v1628_v6 = vadd.f32 %v1612_v50, %v1592_v59  ;;  %v1139_v42 = vadd.f32 %v1123_v12, %v1103_v53  ;;  %v8518_v15 = vld [vmem:[#allocation107_spill] sm:$0xff] }
 0x198   : > { %8516 = vst [vmem:[#allocation66_spill] sm:$0xff] %v6270_v37  ;;  %v682_v46 = vadd.f32 %v666_v3, %v646_v18  ;;  %v738_v39 = vmul.f32 %v3561_v22, %v8400_v33  ;;  %v2149_v13 = vadd.f32 %v2133_v24, %v2113_v11  ;;  %v8517_v17 = vld [vmem:[#allocation89_spill] sm:$0xff]  ;;  %v1748_v51 = vmul.f32 %v8518_v15, %v8461_v31  ;;  %v8519_v36 = vld [vmem:[#allocation119_spill] sm:$0xff]  ;;  %v8520_v12 = vld [vmem:[#allocation24_spill] sm:$0xff] }
 0x199   : > { %v2205_v23 = vmul.f32 %v8271_v16, %v8517_v17  ;;  %v1259_v63 = vmul.f32 %v8519_v36, %v8338_v44  ;;  %v1664_v43 = vadd.f32 %v1648_v52, %v1628_v6  ;;  %v1203_v50 = vadd.f32 %v1187_v25, %v1139_v42  ;;  %v8521_v18 = vld [vmem:[#allocation21_spill] sm:$0xff]  ;;  %v8522_v11 = vld [vmem:[#allocation96_spill] sm:$0xff]  ;;  %v6287_v17 = vld [vmem:[%s3841_s12 + $0xdb] sm:$0xff] }
 0x19a   : > { %v718_v59 = vadd.f32 %v702_v56, %v682_v46  ;;  %v774_v3 = vmul.f32 %v8279_v48, %v8520_v12  ;;  %v2185_v53 = vadd.f32 %v2169_v19, %v2149_v13  ;;  %v2241_v24 = vmul.f32 %v8460_v45, %v6270_v37  ;;  %8523 = vst [vmem:[#allocation55_spill] sm:$0xff] %v6287_v17  ;;  %v8524_v15 = vld [vmem:[#allocation52_spill] sm:$0xff]  ;;  %v8526_v13 = vld [vmem:[#allocation22_spill] sm:$0xff] }
 0x19b   : > { %v1784_v22 = vmul.f32 %v8522_v11, %v8521_v18  ;;  %v1295_v36 = vmul.f32 %v6287_v17, %v8524_v15  ;;  %v610_v6 = vld [vmem:[%s3841_s12 + $0x141] sm:$0xff]  ;;  %v1700_v52 = vadd.f32 %v1684_v55, %v1664_v43  ;;  %v1239_v25 = vadd.f32 %v1223_v14, %v1203_v50  ;;  %v8527_v12 = vld [vmem:[#allocation86_spill] sm:$0xff] }
 0x19c   : > { %v754_v56 = vadd.f32 %v738_v39, %v718_v59  ;;  %v8525_v42 = vld [vmem:[#allocation120_spill] sm:$0xff]  ;;  %v2221_v46 = vadd.f32 %v2205_v23, %v2185_v53  ;;  %v1820_v37 = vmul.f32 %v8527_v12, %v8526_v13  ;;  %v846_v39 = vmul.f32 %v3947_v61, %v610_v6  ;;  %v8531_v50 = vld [vmem:[#allocation122_spill] sm:$0xff] }
 0x19d   : > { %v810_v19 = vmul.f32 %v8102_v7, %v8525_v42  ;;  %v6297_v41 = vld [vmem:[%s3841_s12 + $0xe5] sm:$0xff]  ;;  %v1764_v15 = vadd.f32 %v1748_v51, %v1700_v52  ;;  %v1275_v43 = vadd.f32 %v1259_v63, %v1239_v25  ;;  %v1892_v59 = vmul.f32 %v8222_v38, %v8531_v50  ;;  %v8532_v53 = vld [vmem:[#allocation118_spill] sm:$0xff] }
 0x19e   : > { %8528 = vst [vmem:[#allocation42_spill] sm:$0xff] %v6297_v41  ;;  %v1856_v11 = vmul.f32 %v6297_v41, %v8347_v30  ;;  %v8529_v48 = vld [vmem:[#allocation72_spill] sm:$0xff]  ;;  %v790_v14 = vadd.f32 %v774_v3, %v754_v56  ;;  %v2257_v23 = vadd.f32 %v2241_v24, %v2221_v46  ;;  %v1367_v42 = vmul.f32 %v8110_v40, %v8532_v53  ;;  %v3564_v12 = vld [vmem:[%s3841_s12 + $0xb2] sm:$0xff]  ;;  %v6318_v3 = vld [vmem:[%s7043_s2] ss:$0 sm:$0xff] }
 0x19f   : > { %v1331_v17 = vmul.f32 %v8162_v54, %v8529_v48  ;;  %v6304_v55 = vld [vmem:[%s3841_s12 + $0x123] sm:$0xff]  ;;  %v1800_v7 = vadd.f32 %v1784_v22, %v1764_v15  ;;  %v1311_v48 = vadd.f32 %v1295_v36, %v1275_v43  ;;  %v8534_v52 = vld [vmem:[#allocation82_spill] sm:$0xff]  ;;  %v8537_v36 = vld [vmem:[#allocation9_spill] sm:$0xff] }
 0x1a0   : > { %8530 = vst [vmem:[#allocation67_spill] sm:$0xff] %v6304_v55  ;;  %v8533_v41 = vld [vmem:[#allocation28_spill] sm:$0xff]  ;;  %v826_v51 = vadd.f32 %v810_v19, %v790_v14  ;;  %v349_v63 = vmul.f32 %v8534_v52, %v8167_v29  ;;  %v6321_v24 = vadd.f32 %v6318_v3, %v2257_v23  ;;  %v1403_v6 = vmul.f32 %v8422_v0, %v6304_v55  ;;  %v8540_v43 = vld [vmem:[#allocation34_spill] sm:$0xff]  ;;  %v8542_v23 = vld [vmem:[#allocation109_spill] sm:$0xff] }
 0x1a1   : > { %v910_v30 = vmul.f32 %v3564_v12, %v8533_v41  ;;  %v8536_v25 = vld [vmem:[#allocation88_spill] sm:$0xff]  ;;  %v1836_v29 = vadd.f32 %v1820_v37, %v1800_v7  ;;  %v1347_v46 = vadd.f32 %v1331_v17, %v1311_v48  ;;  %v1928_v52 = vmul.f32 %v8486_v60, %v8542_v23  ;;  %v8543_v55 = vld [vmem:[#allocation26_spill] sm:$0xff]  ;;  %v8545_v48 = vld [vmem:[#allocation87_spill] sm:$0xff] }
 0x1a2   : > { %8535 = vst [vmem:[#allocation49_spill] sm:$0xff] %v6321_v24  ;;  %v385_v22 = vmul.f32 %v8536_v25, %v8169_v49  ;;  %v8538_v15 = vld [vmem:[#allocation104_spill] sm:$0xff]  ;;  %v862_v12 = vadd.f32 %v846_v39, %v826_v51  ;;  %2306 = vadd.xlane.f32.xlu0 %v6321_v24  ;;  %v1467_v49 = vmul.f32 %v8543_v55, %v8425_v10  ;;  %v8544_v39 = vld [vmem:[#allocation38_spill] sm:$0xff]  ;;  %v8546_v24 = vld [vmem:[#allocation61_spill] sm:$0xff] }
 0x1a3   : > { %v421_v56 = vmul.f32 %v8538_v15, %v8537_v36  ;;  %v6330_v19 = vld [vmem:[%s3841_s12 + $0x12d] sm:$0xff]  ;;  %v1872_v7 = vadd.f32 %v1856_v11, %v1836_v29  ;;  %v1383_v37 = vadd.f32 %v1367_v42, %v1347_v46  ;;  %v982_v51 = vmul.f32 %v8545_v48, %v8544_v39  ;;  %v8549_v55 = vld [vmem:[#allocation11_spill] sm:$0xff]  ;;  %v329_v29 = vld [vmem:[%s3841_s12 + $0x138] sm:$0xff] }
 0x1a4   : > { %8539 = vst [vmem:[#allocation7_spill] sm:$0xff] %v6330_v19  ;;  %v8541_v14 = vld [vmem:[#allocation112_spill] sm:$0xff]  ;;  %v401_v25 = vadd.f32 %v385_v22, %v349_v63  ;;  %v3566_v36 = vld [vmem:[%s3841_s12 + $0xf0] sm:$0xff]  ;;  %v926_v17 = vadd.f32 %v910_v30, %v862_v12  ;;  %v3567_v11 = vld [vmem:[%s3841_s12 + $0xfa] sm:$0xff] }
 0x1a5   : > { %v946_v50 = vmul.f32 %v8541_v14, %v8540_v43  ;;  %v457_v15 = vmul.f32 %v3566_v36, %v8484_v20  ;;  %v1964_v14 = vmul.f32 %v8366_v2, %v6330_v19  ;;  %v8547_v23 = vld [vmem:[#allocation124_spill] sm:$0xff]  ;;  %v1908_v22 = vadd.f32 %v1892_v59, %v1872_v7  ;;  %v8552_v36 = vld [vmem:[#allocation31_spill] sm:$0xff] }
 0x1a6   : > { %v1503_v53 = vmul.f32 %v8547_v23, %v8546_v24  ;;  %v437_v60 = vadd.f32 %v421_v56, %v401_v25  ;;  %v8548_v43 = vld [vmem:[#allocation12_spill] sm:$0xff]  ;;  %v1419_v10 = vadd.f32 %v1403_v6, %v1383_v37  ;;  %v1539_v48 = vmul.f32 %v8552_v36, %v8438_v1  ;;  %v8553_v56 = vld [vmem:[#allocation57_spill] sm:$0xff]  ;;  %v8555_v7 = vld [vmem:[#allocation35_spill] sm:$0xff] }
 0x1a7   : > { %v493_v63 = vmul.f32 %v8549_v55, %v8548_v43  ;;  %v962_v20 = vadd.f32 %v946_v50, %v926_v17  ;;  %v8550_v30 = vld [vmem:[#allocation40_spill] sm:$0xff]  ;;  %v529_v25 = vmul.f32 %v8250_v28, %v8553_v56  ;;  %v1944_v43 = vadd.f32 %v1928_v52, %v1908_v22  ;;  %v8554_v6 = vld [vmem:[#allocation97_spill] sm:$0xff]  ;;  %v6363_v17 = vld [vmem:[%s3841_s12 + $0xdc] sm:$0xff] }
 0x1a8   : > { %v1018_v42 = vmul.f32 %v3567_v11, %v8550_v30  ;;  %v8551_v46 = vld [vmem:[#allocation76_spill] sm:$0xff]  ;;  %v473_v23 = vadd.f32 %v457_v15, %v437_v60  ;;  %v1483_v55 = vadd.f32 %v1467_v49, %v1419_v10  ;;  %v1054_v50 = vmul.f32 %v8440_v34, %v8554_v6  ;;  %8556 = vst [vmem:[#allocation93_spill] sm:$0xff] %v6363_v17  ;;  %v8557_v15 = vld [vmem:[#allocation94_spill] sm:$0xff]  ;;  %v8559_v56 = vld [vmem:[#allocation39_spill] sm:$0xff] }
 0x1a9   : > { %v2028_v12 = vmul.f32 %v8551_v46, %v8495_v8  ;;  %v998_v59 = vadd.f32 %v982_v51, %v962_v20  ;;  %v2064_v37 = vmul.f32 %v8555_v7, %v8500_v21  ;;  %v1575_v11 = vmul.f32 %v6363_v17, %v8444_v4  ;;  %v890_v46 = vld [vmem:[%s3841_s12 + $0x142] sm:$0xff]  ;;  %v8560_v17 = vld [vmem:[#allocation45_spill] sm:$0xff] }
 0x1aa   : > { %v509_v60 = vadd.f32 %v493_v63, %v473_v23  ;;  %v565_v28 = vmul.f32 %v8318_v5, %v329_v29  ;;  %v1980_v52 = vadd.f32 %v1964_v14, %v1944_v43  ;;  %v1519_v10 = vadd.f32 %v1503_v53, %v1483_v55  ;;  %v8558_v22 = vld [vmem:[#allocation92_spill] sm:$0xff]  ;;  %v8562_v14 = vld [vmem:[#allocation46_spill] sm:$0xff] }
 0x1ab   : > { %v1034_v49 = vadd.f32 %v1018_v42, %v998_v59  ;;  %v1090_v51 = vmul.f32 %v8136_v57, %v8557_v15  ;;  %v2100_v20 = vmul.f32 %v8558_v22, %v8381_v58  ;;  %v1611_v6 = vmul.f32 %v8505_v9, %v8559_v56  ;;  %v6378_v63 = vld [vmem:[%s3841_s12 + $0x124] sm:$0xff]  ;;  %v8565_v59 = vld [vmem:[#allocation126_spill] sm:$0xff]  ;;  %v8566_v15 = vld [vmem:[#allocation73_spill] sm:$0xff] }
 0x1ac   : > { %v545_v7 = vadd.f32 %v529_v25, %v509_v60  ;;  %v629_v36 = vmul.f32 %v8560_v17, %v8385_v27  ;;  %v2044_v23 = vadd.f32 %v2028_v12, %v1980_v52  ;;  %8561 = vst [vmem:[#allocation47_spill] sm:$0xff] %v6378_v63  ;;  %v1555_v5 = vadd.f32 %v1539_v48, %v1519_v10  ;;  %v6382_v29 = vld [vmem:[%s3841_s12 + $0xe6] sm:$0xff]  ;;  %v8568_v22 = vld [vmem:[#allocation114_spill] sm:$0xff] }
 0x1ad   : > { %v1070_v53 = vadd.f32 %v1054_v50, %v1034_v49  ;;  %v1126_v42 = vmul.f32 %v8562_v14, %v890_v46  ;;  %8563 = vst [vmem:[#allocation8_spill] sm:$0xff] %v6382_v29  ;;  %v8564_v43 = vld [vmem:[#allocation32_spill] sm:$0xff]  ;;  %v1647_v56 = vmul.f32 %v8566_v15, %v8565_v59  ;;  %v8567_v60 = vld [vmem:[#allocation15_spill] sm:$0xff]  ;;  %v3570_v50 = vld [vmem:[%s3841_s12 + $0xb3] sm:$0xff]  ;;  %v1683_v49 = vmul.f32 %v8393_v26, %v6378_v63 }
 0x1ae   : > { %v2136_v55 = vmul.f32 %v6382_v29, %v8564_v43  ;;  %v581_v25 = vadd.f32 %v565_v28, %v545_v7  ;;  %v665_v27 = vmul.f32 %v8568_v22, %v8567_v60  ;;  %v2080_v12 = vadd.f32 %v2064_v37, %v2044_v23  ;;  %v8569_v46 = vld [vmem:[#allocation44_spill] sm:$0xff]  ;;  %v8570_v59 = vld [vmem:[#allocation43_spill] sm:$0xff] }
 0x1af   : > { %v1591_v17 = vadd.f32 %v1575_v11, %v1555_v5  ;;  %v1106_v48 = vadd.f32 %v1090_v51, %v1070_v53  ;;  %v1190_v52 = vmul.f32 %v3570_v50, %v8453_v35  ;;  %v2172_v10 = vmul.f32 %v8514_v32, %v8569_v46  ;;  %v6399_v7 = vld [vmem:[%s3841_s12 + $0x12e] sm:$0xff]  ;;  %v8573_v5 = vld [vmem:[#allocation14_spill] sm:$0xff]  ;;  %v8574_v60 = vld [vmem:[#allocation91_spill] sm:$0xff] }
 0x1b0   : > { %v645_v29 = vadd.f32 %v629_v36, %v581_v25  ;;  %v701_v28 = vmul.f32 %v8570_v59, %v8027_v47  ;;  %8571 = vst [vmem:[#allocation63_spill] sm:$0xff] %v6399_v7  ;;  %v2116_v22 = vadd.f32 %v2100_v20, %v2080_v12  ;;  %v8572_v51 = vld [vmem:[#allocation16_spill] sm:$0xff]  ;;  %v2208_v53 = vmul.f32 %v8271_v16, %v8573_v5  ;;  %v3571_v36 = vld [vmem:[%s3841_s12 + $0xf1] sm:$0xff] }
 0x1b1   : > { %v1627_v37 = vadd.f32 %v1611_v6, %v1591_v17  ;;  %v1142_v11 = vadd.f32 %v1126_v42, %v1106_v48  ;;  %v1226_v23 = vmul.f32 %v8572_v51, %v8023_v62  ;;  %v1747_v50 = vmul.f32 %v8574_v60, %v8461_v31  ;;  %v8575_v6 = vld [vmem:[#allocation125_spill] sm:$0xff]  ;;  %v8576_v17 = vld [vmem:[#allocation95_spill] sm:$0xff]  ;;  %v8582_v63 = vld [vmem:[#allocation20_spill] sm:$0xff] }
 0x1b2   : > { %v681_v46 = vadd.f32 %v665_v27, %v645_v29  ;;  %v737_v47 = vmul.f32 %v3571_v36, %v8400_v33  ;;  %v2152_v59 = vadd.f32 %v2136_v55, %v2116_v22  ;;  %v1262_v42 = vmul.f32 %v8575_v6, %v8338_v44  ;;  %v8577_v60 = vld [vmem:[#allocation113_spill] sm:$0xff]  ;;  %v8578_v29 = vld [vmem:[#allocation18_spill] sm:$0xff] }
 0x1b3   : > { %v1663_v25 = vadd.f32 %v1647_v56, %v1627_v37  ;;  %v1206_v20 = vadd.f32 %v1190_v52, %v1142_v11  ;;  %v2244_v12 = vmul.f32 %v8460_v45, %v6399_v7  ;;  %v1783_v48 = vmul.f32 %v8576_v17, %v8521_v18  ;;  %v3572_v56 = vld [vmem:[%s3841_s12 + $0xfb] sm:$0xff]  ;;  %v8579_v52 = vld [vmem:[#allocation52_spill] sm:$0xff] }
 0x1b4   : > { %v717_v51 = vadd.f32 %v701_v28, %v681_v46  ;;  %v773_v27 = vmul.f32 %v8578_v29, %v8577_v60  ;;  %v2188_v5 = vadd.f32 %v2172_v10, %v2152_v59  ;;  %v1298_v22 = vmul.f32 %v3572_v56, %v8579_v52  ;;  %v609_v37 = vld [vmem:[%s3841_s12 + $0x139] sm:$0xff]  ;;  %v8580_v11 = vld [vmem:[#allocation80_spill] sm:$0xff] }
 0x1b5   : > { %v1699_v33 = vadd.f32 %v1683_v49, %v1663_v25  ;;  %v1242_v55 = vadd.f32 %v1226_v23, %v1206_v20  ;;  %v1819_v36 = vmul.f32 %v8580_v11, %v8526_v13  ;;  %v8581_v7 = vld [vmem:[#allocation74_spill] sm:$0xff]  ;;  %v8584_v49 = vld [vmem:[#allocation23_spill] sm:$0xff]  ;;  %v845_v20 = vmul.f32 %v3947_v61, %v609_v37 }
 0x1b6   : > { %v753_v6 = vadd.f32 %v737_v47, %v717_v51  ;;  %v809_v17 = vmul.f32 %v8582_v63, %v8581_v7  ;;  %v2224_v19 = vadd.f32 %v2208_v53, %v2188_v5  ;;  %v8583_v18 = vld [vmem:[#allocation102_spill] sm:$0xff]  ;;  %v1170_v59 = vld [vmem:[%s3841_s12 + $0x143] sm:$0xff]  ;;  %v8585_v63 = vld [vmem:[#allocation17_spill] sm:$0xff] }
 0x1b7   : > { %v1763_v28 = vadd.f32 %v1747_v50, %v1699_v33  ;;  %v1278_v46 = vadd.f32 %v1262_v42, %v1242_v55  ;;  %v1334_v60 = vmul.f32 %v8162_v54, %v8583_v18  ;;  %v6427_v10 = vld [vmem:[%s3841_s12 + $0xdd] sm:$0xff]  ;;  %v1370_v7 = vmul.f32 %v8110_v40, %v8585_v63  ;;  %v8586_v5 = vld [vmem:[#allocation68_spill] sm:$0xff] }
 0x1b8   : > { %v1855_v23 = vmul.f32 %v6427_v10, %v8584_v49  ;;  %v789_v25 = vadd.f32 %v773_v27, %v753_v6  ;;  %v2260_v47 = vadd.f32 %v2244_v12, %v2224_v19  ;;  %v1891_v18 = vmul.f32 %v8222_v38, %v8586_v5  ;;  %v8587_v50 = vld [vmem:[#allocation83_spill] sm:$0xff]  ;;  %v8591_v6 = vld [vmem:[#allocation25_spill] sm:$0xff]  ;;  %v8594_v63 = vld [vmem:[#allocation116_spill] sm:$0xff] }
 0x1b9   : > { %v1799_v51 = vadd.f32 %v1783_v48, %v1763_v28  ;;  %v1314_v29 = vadd.f32 %v1298_v22, %v1278_v46  ;;  %v909_v42 = vmul.f32 %v8587_v50, %v8533_v41  ;;  %v1406_v61 = vmul.f32 %v8422_v0, %v1170_v59  ;;  %v6444_v19 = vld [vmem:[%s3841_s12 + $0x125] sm:$0xff]  ;;  %v8588_v48 = vld [vmem:[#allocation34_spill] sm:$0xff]  ;;  %v8593_v59 = vld [vmem:[#allocation101_spill] sm:$0xff] }
 0x1ba   : > { %v825_v53 = vadd.f32 %v809_v17, %v789_v25  ;;  %v6440_v33 = vadd.f32 %v6318_v3, %v2260_v47  ;;  %v8589_v56 = vld [vmem:[#allocation79_spill] sm:$0xff]  ;;  %v3574_v46 = vld [vmem:[%s3841_s12 + $0xb4] sm:$0xff]  ;;  %v8592_v25 = vld [vmem:[#allocation60_spill] sm:$0xff]  ;;  %v981_v47 = vmul.f32 %v8593_v59, %v8544_v39 }
 0x1bb   : > { %v1835_v27 = vadd.f32 %v1819_v36, %v1799_v51  ;;  %v1350_v55 = vadd.f32 %v1334_v60, %v1314_v29  ;;  %v945_v22 = vmul.f32 %v8589_v56, %v8588_v48  ;;  %v8590_v37 = vld [vmem:[#allocation71_spill] sm:$0xff]  ;;  %v1470_v36 = vmul.f32 %v3574_v46, %v8592_v25  ;;  %v8596_v39 = vld [vmem:[#allocation58_spill] sm:$0xff] }
 0x1bc   : > { %v861_v12 = vadd.f32 %v845_v20, %v825_v53  ;;  %2312 = vadd.xlane.f32.xlu1 %v6440_v33  ;;  %v1927_v41 = vmul.f32 %v8591_v6, %v8590_v37  ;;  %v1963_v20 = vmul.f32 %v8366_v2, %v6444_v19  ;;  %v3575_v53 = vld [vmem:[%s3841_s12 + $0xf2] sm:$0xff]  ;;  %v8597_v48 = vld [vmem:[#allocation115_spill] sm:$0xff] }
 0x1bd   : > { %v1871_v17 = vadd.f32 %v1855_v23, %v1835_v27  ;;  %v1386_v28 = vadd.f32 %v1370_v7, %v1350_v55  ;;  %v1506_v23 = vmul.f32 %v8594_v63, %v8546_v24  ;;  %v1017_v7 = vmul.f32 %v3575_v53, %v8550_v30  ;;  %v3576_v30 = vld [vmem:[%s3841_s12 + $0xfc] sm:$0xff] }
 0x1be   : > { %v925_v60 = vadd.f32 %v909_v42, %v861_v12  ;;  %v8595_v42 = vld [vmem:[#allocation75_spill] sm:$0xff] }
 0x1bf   : > { %v1907_v51 = vadd.f32 %v1891_v18, %v1871_v17  ;;  %v1422_v29 = vadd.f32 %v1406_v61, %v1386_v28  ;;  %v2027_v27 = vmul.f32 %v8595_v42, %v8495_v8  ;;  %v1542_v18 = vmul.f32 %v8596_v39, %v8438_v1  ;;  %v8598_v17 = vld [vmem:[#allocation65_spill] sm:$0xff]  ;;  %v889_v46 = vld [vmem:[%s3841_s12 + $0x13a] sm:$0xff] }
 0x1c0   : > { %v961_v5 = vadd.f32 %v945_v22, %v925_v60  ;;  %v1053_v61 = vmul.f32 %v8440_v34, %v8597_v48  ;;  %v2063_v22 = vmul.f32 %v8598_v17, %v8500_v21  ;;  %v8601_v34 = vld [vmem:[#allocation105_spill] sm:$0xff]  ;;  %v6481_v42 = vld [vmem:[%s3841_s12 + $0xde] sm:$0xff] }
 0x1c1   : > { %v1943_v50 = vadd.f32 %v1927_v41, %v1907_v51  ;;  %v1486_v55 = vadd.f32 %v1470_v36, %v1422_v29  ;;  %v1578_v41 = vmul.f32 %v3576_v30, %v8444_v4  ;;  %v8599_v36 = vld [vmem:[#allocation50_spill] sm:$0xff] }
 0x1c2   : > { %v997_v12 = vadd.f32 %v981_v47, %v961_v5  ;;  %v1089_v59 = vmul.f32 %v8136_v57, %v8599_v36  ;;  %v8600_v47 = vld [vmem:[#allocation111_spill] sm:$0xff]  ;;  %v2135_v57 = vmul.f32 %v6481_v42, %v8564_v43  ;;  %v8606_v36 = vld [vmem:[#allocation66_spill] sm:$0xff] }
 0x1c3   : > { %v1979_v56 = vadd.f32 %v1963_v20, %v1943_v50  ;;  %v1522_v28 = vadd.f32 %v1506_v23, %v1486_v55  ;;  %v2099_v29 = vmul.f32 %v8600_v47, %v8381_v58  ;;  %v1614_v20 = vmul.f32 %v8505_v9, %v8601_v34  ;;  %v1450_v5 = vld [vmem:[%s3841_s12 + $0x144] sm:$0xff] }
 0x1c4   : > { %v1033_v60 = vadd.f32 %v1017_v7, %v997_v12  ;;  %v1125_v23 = vmul.f32 %v8562_v14, %v889_v46  ;;  %v8607_v34 = vld [vmem:[#allocation55_spill] sm:$0xff] }
 0x1c5   : > { %v2043_v51 = vadd.f32 %v2027_v27, %v1979_v56  ;;  %v1558_v63 = vadd.f32 %v1542_v18, %v1522_v28  ;;  %v8602_v27 = vld [vmem:[#allocation103_spill] sm:$0xff]  ;;  %v8603_v18 = vld [vmem:[#allocation121_spill] sm:$0xff] }
 0x1c6   : > { %v1069_v53 = vadd.f32 %v1053_v61, %v1033_v60  ;;  %v1650_v55 = vmul.f32 %v8566_v15, %v8602_v27  ;;  %v1189_v12 = vmul.f32 %v8603_v18, %v8453_v35  ;;  %v8604_v56 = vld [vmem:[#allocation89_spill] sm:$0xff]  ;;  %v6493_v28 = vld [vmem:[%s3841_s12 + $0x126] sm:$0xff] }
 0x1c7   : > { %v2079_v50 = vadd.f32 %v2063_v22, %v2043_v51  ;;  %v1594_v7 = vadd.f32 %v1578_v41, %v1558_v63  ;;  %v2171_v61 = vmul.f32 %v8514_v32, %v8604_v56  ;;  %v1686_v22 = vmul.f32 %v8393_v26, %v1450_v5  ;;  %v8605_v41 = vld [vmem:[#allocation119_spill] sm:$0xff]  ;;  %v3578_v35 = vld [vmem:[%s3841_s12 + $0xb5] sm:$0xff] }
 0x1c8   : > { %v1105_v39 = vadd.f32 %v1089_v59, %v1069_v53  ;;  %v1225_v46 = vmul.f32 %v8605_v41, %v8023_v62  ;;  %v2207_v59 = vmul.f32 %v8271_v16, %v8606_v36  ;;  %v2243_v53 = vmul.f32 %v8460_v45, %v6493_v28  ;;  %v8608_v62 = vld [vmem:[#allocation21_spill] sm:$0xff] }
 0x1c9   : > { %v2115_v48 = vadd.f32 %v2099_v29, %v2079_v50  ;;  %v1630_v14 = vadd.f32 %v1614_v20, %v1594_v7  ;;  %v1750_v29 = vmul.f32 %v3578_v35, %v8461_v31  ;;  %v1261_v20 = vmul.f32 %v8607_v34, %v8338_v44  ;;  %v8609_v50 = vld [vmem:[#allocation86_spill] sm:$0xff]  ;;  %v8612_v35 = vld [vmem:[#allocation67_spill] sm:$0xff] }
 0x1ca   : > { %v1141_v30 = vadd.f32 %v1125_v23, %v1105_v39  ;;  %v3579_v27 = vld [vmem:[%s3841_s12 + $0xf3] sm:$0xff] }
 0x1cb   : > { %v2151_v60 = vadd.f32 %v2135_v57, %v2115_v48  ;;  %v1666_v51 = vadd.f32 %v1650_v55, %v1630_v14  ;;  %v1786_v57 = vmul.f32 %v8609_v50, %v8608_v62  ;;  %v1297_v55 = vmul.f32 %v3579_v27, %v8579_v52 }
 0x1cc   : > { %v1205_v63 = vadd.f32 %v1189_v12, %v1141_v30  ;;  %v8610_v12 = vld [vmem:[#allocation42_spill] sm:$0xff]  ;;  %v1369_v52 = vmul.f32 %v8110_v40, %v8612_v35  ;;  %v8619_v35 = vld [vmem:[#allocation8_spill] sm:$0xff] }
 0x1cd   : > { %v2187_v5 = vadd.f32 %v2171_v61, %v2151_v60  ;;  %v1702_v23 = vadd.f32 %v1686_v22, %v1666_v51  ;;  %v1822_v48 = vmul.f32 %v8610_v12, %v8526_v13  ;;  %v8611_v61 = vld [vmem:[#allocation118_spill] sm:$0xff] }
 0x1ce   : > { %v1241_v7 = vadd.f32 %v1225_v46, %v1205_v63  ;;  %v1333_v14 = vmul.f32 %v8162_v54, %v8611_v61  ;;  %v3580_v22 = vld [vmem:[%s3841_s12 + $0xfd] sm:$0xff]  ;;  %v8613_v63 = vld [vmem:[#allocation109_spill] sm:$0xff] }
 0x1cf   : > { %v2223_v39 = vadd.f32 %v2207_v59, %v2187_v5  ;;  %v1766_v18 = vadd.f32 %v1750_v29, %v1702_v23  ;;  %v1858_v60 = vmul.f32 %v3580_v22, %v8584_v49  ;;  %v1169_v51 = vld [vmem:[%s3841_s12 + $0x13b] sm:$0xff]  ;;  %v1894_v34 = vmul.f32 %v8222_v38, %v8613_v63 }
 0x1d0   : > { %v1277_v44 = vadd.f32 %v1261_v20, %v1241_v7  ;;  %v1730_v20 = vld [vmem:[%s3841_s12 + $0x145] sm:$0xff]  ;;  %v1405_v5 = vmul.f32 %v8422_v0, %v1169_v51  ;;  %v3582_v51 = vld [vmem:[%s3841_s12 + $0xf4] sm:$0xff] }
 0x1d1   : > { %v2259_v30 = vadd.f32 %v2243_v53, %v2223_v39  ;;  %v1802_v41 = vadd.f32 %v1786_v57, %v1766_v18  ;;  %v8614_v23 = vld [vmem:[#allocation7_spill] sm:$0xff]  ;;  %v8615_v57 = vld [vmem:[#allocation124_spill] sm:$0xff]  ;;  %v8620_v63 = vld [vmem:[#allocation126_spill] sm:$0xff] }
 0x1d2   : > { %v1313_v46 = vadd.f32 %v1297_v55, %v1277_v44  ;;  %v1930_v50 = vmul.f32 %v8591_v6, %v8614_v23  ;;  %v1469_v7 = vmul.f32 %v8615_v57, %v8592_v25  ;;  %v1966_v55 = vmul.f32 %v8366_v2, %v1730_v20  ;;  %v8616_v18 = vld [vmem:[#allocation31_spill] sm:$0xff]  ;;  %v8618_v25 = vld [vmem:[#allocation92_spill] sm:$0xff]  ;;  %v8622_v57 = vld [vmem:[#allocation14_spill] sm:$0xff] }
 0x1d3   : > { %v6519_v59 = vadd.f32 %v6318_v3, %v2259_v30  ;;  %v1838_v29 = vadd.f32 %v1822_v48, %v1802_v41  ;;  %v1505_v12 = vmul.f32 %v8616_v18, %v8546_v24  ;;  %v3581_v48 = vld [vmem:[%s3841_s12 + $0xb6] sm:$0xff]  ;;  %v2066_v22 = vmul.f32 %v8618_v25, %v8500_v21  ;;  %v8621_v23 = vld [vmem:[#allocation47_spill] sm:$0xff] }
 0x1d4   : > { %v1349_v54 = vadd.f32 %v1333_v14, %v1313_v46  ;;  %v2030_v44 = vmul.f32 %v3581_v48, %v8495_v8  ;;  %v8617_v14 = vld [vmem:[#allocation93_spill] sm:$0xff]  ;;  %v1577_v46 = vmul.f32 %v3582_v51, %v8444_v4  ;;  %v2174_v4 = vmul.f32 %v8514_v32, %v8622_v57 }
 0x1d5   : > { %2310 = vadd.xlane.f32.xlu0 %v6519_v59  ;;  %v1874_v53 = vadd.f32 %v1858_v60, %v1838_v29  ;;  %v1541_v30 = vmul.f32 %v8617_v14, %v8438_v1  ;;  %v1785_v14 = vmul.f32 %v8580_v11, %v8608_v62  ;;  %v1729_v11 = vld [vmem:[%s3841_s12 + $0x13d] sm:$0xff]  ;;  %v8625_v62 = vld [vmem:[#allocation41_spill] sm:$0xff] }
 0x1d6   : > { %v1385_v40 = vadd.f32 %v1369_v52, %v1349_v54  ;;  %v2102_v52 = vmul.f32 %v8619_v35, %v8381_v58  ;;  %v3583_v54 = vld [vmem:[%s3841_s12 + $0xfe] sm:$0xff]  ;;  %v2319_v35 = vmul.f32 %v8625_v62, %v8625_v62  ;;  %v8630_v57 = vld [vmem:[#allocation37_spill] sm:$0xff] }
 0x1d7   : > { %v1910_v27 = vadd.f32 %v1894_v34, %v1874_v53  ;;  %v1613_v34 = vmul.f32 %v8505_v9, %v8620_v63  ;;  %v2138_v1 = vmul.f32 %v3583_v54, %v8564_v43  ;;  %v8623_v9 = vld [vmem:[#allocation63_spill] sm:$0xff]  ;;  %v8627_v54 = vld [vmem:[#allocation90_spill] sm:$0xff] }
 0x1d8   : > { %v1421_v39 = vadd.f32 %v1405_v5, %v1385_v40  ;;  %v1449_v5 = vld [vmem:[%s3841_s12 + $0x13c] sm:$0xff]  ;;  %v2210_v18 = vmul.f32 %v8271_v16, %v8623_v9 }
 0x1d9   : > { %v1946_v0 = vadd.f32 %v1930_v50, %v1910_v27  ;;  %v1649_v50 = vmul.f32 %v8566_v15, %v8621_v23  ;;  %v3364_v9 = vld [vmem:[%s7044_s3 + $0x38] sm:$0xff]  }
 0x1da   : > { %v1485_v61 = vadd.f32 %v1469_v7, %v1421_v39  ;;  %v2010_v7 = vld [vmem:[%s3841_s12 + $0x146] sm:$0xff]  ;;  %3226 = vmatprep.subr.bf16.mxu0 %v3364_v9 }
 0x1db   : > { %v1982_v41 = vadd.f32 %v1966_v55, %v1946_v0  ;;  %v1685_v55 = vmul.f32 %v8393_v26, %v1449_v5  ;;  %v8624_v0 = vld [vmem:[#allocation95_spill] sm:$0xff]  ;;  %v2246_v15 = vmul.f32 %v8460_v45, %v2010_v7  ;;  %v1821_v26 = vmul.f32 %v6427_v10, %v8526_v13  ;;  %3227 = vmatpush3.bf16.msra.mxu0 %v3364_v9 }
 0x1dc   : > { %v1521_v60 = vadd.f32 %v1505_v12, %v1485_v61  ;;  %v1749_v48 = vmul.f32 %v8624_v0, %v8461_v31  ;;  %v1929_v13 = vmul.f32 %v8591_v6, %v6444_v19  ;;  %v2323_v19 = vmul.f32 %v8627_v54, %v8627_v54  ;;  %v3365_v0 = vld [vmem:[%s7044_s3 + $0x30] sm:$0xff]  }
 0x1dd   : > { %v2046_v24 = vadd.f32 %v2030_v44, %v1982_v41  ;;  %v2137_v5 = vmul.f32 %v8564_v43, %v8604_v56  ;;  %3228 = vmatprep.subr.bf16.mxu0 %v3365_v0 }
 0x1de   : > { %v1557_v29 = vadd.f32 %v1541_v30, %v1521_v60  ;;  %v3584_v60 = vld [vmem:[%s3841_s12 + $0xf5] sm:$0xff] }
 0x1df   : > { %v2082_v20 = vadd.f32 %v2066_v22, %v2046_v24  ;;  %v1857_v51 = vmul.f32 %v3584_v60, %v8584_v49  ;;  %v1893_v24 = vmul.f32 %v8222_v38, %v8590_v37  ;;  %v1965_v49 = vmul.f32 %v8366_v2, %v1729_v11  ;;  %3229 = vmatpush3.bf16.msra.mxu0 %v3365_v0  ;;  %v3370_v60 = vld [vmem:[%s7044_s3 + $0x8] sm:$0xff]  }
 0x1e0   : > { %v1593_v53 = vadd.f32 %v1577_v46, %v1557_v29  ;;  %v8626_v29 = vld [vmem:[#allocation110_spill] sm:$0xff]  ;;  %v2029_v38 = vmul.f32 %v8598_v17, %v8495_v8  ;;  %v2101_v2 = vmul.f32 %v6481_v42, %v8381_v58 }
 0x1e1   : > { %v2118_v40 = vadd.f32 %v2102_v52, %v2082_v20  ;;  %v2321_v63 = vmul.f32 %v8626_v29, %v8626_v29  ;;  %v2065_v20 = vmul.f32 %v8600_v47, %v8500_v21  ;;  %v2173_v21 = vmul.f32 %v8514_v32, %v8606_v36  ;;  %v2009_v47 = vld [vmem:[%s3841_s12 + $0x13e] sm:$0xff] }
 0x1e2   : > { %v1629_v27 = vadd.f32 %v1613_v34, %v1593_v53  ;;  %v8628_v53 = vld [vmem:[#allocation62_spill] sm:$0xff]  ;;  %v2245_v43 = vmul.f32 %v8460_v45, %v2009_v47 }
 0x1e3   : > { %v2154_v39 = vadd.f32 %v2138_v1, %v2118_v40  ;;  %v2325_v8 = vmul.f32 %v8628_v53, %v8628_v53  ;;  %v8629_v40 = vld [vmem:[#allocation53_spill] sm:$0xff] }
 0x1e4   : > { %v1665_v12 = vadd.f32 %v1649_v50, %v1629_v27  ;;  %v2209_v50 = vmul.f32 %v8271_v16, %v6493_v28  ;;  %v2327_v58 = vmul.f32 %v8629_v40, %v8629_v40  ;;  %v2331_v16 = vmul.f32 %v6440_v33, %v6440_v33  ;;  %v8631_v28 = vld [vmem:[#allocation64_spill] sm:$0xff]  ;;  %v8632_v27 = vld [vmem:[#allocation99_spill] sm:$0xff] }
 0x1e5   : > { %v2190_v44 = vadd.f32 %v2174_v4, %v2154_v39  ;;  %v2329_v4 = vmul.f32 %v8630_v57, %v8630_v57  ;;  %v2318_v36 = vmul.f32 %v8631_v28, %v8631_v28 }
 0x1e6   : > { %v1701_v61 = vadd.f32 %v1685_v55, %v1665_v12  ;;  %v2320_v55 = vmul.f32 %v8632_v27, %v8632_v27 }
 0x1e7   : > { %v2226_v30 = vadd.f32 %v2210_v18, %v2190_v44  ;;  %v8634_v18 = vld [vmem:[#allocation30_spill] sm:$0xff] }
 0x1e8   : > { %v1765_v41 = vadd.f32 %v1749_v48, %v1701_v61  ;;  %v2324_v12 = vmul.f32 %v8634_v18, %v8634_v18  ;;  %v8635_v48 = vld [vmem:[#allocation123_spill] sm:$0xff]  ;;  %v8636_v61 = vld [vmem:[#allocation49_spill] sm:$0xff] }
 0x1e9   : > { %v2262_v25 = vadd.f32 %v2246_v15, %v2226_v30  ;;  %v2326_v44 = vmul.f32 %v8635_v48, %v8635_v48  ;;  %v3366_v15 = vld [vmem:[%s7044_s3 + $0x28] sm:$0xff]   ;;  %v3367_v30 = vld [vmem:[%s7044_s3 + $0x20] sm:$0xff]  }
 0x1ea   : > { %v1801_v22 = vadd.f32 %v1785_v14, %v1765_v41  ;;  %3230 = vmatprep.subr.bf16.mxu0 %v3366_v15  ;;  %v2328_v14 = vmul.f32 %v8636_v61, %v8636_v61  ;;  %v2330_v41 = vmul.f32 %v6519_v59, %v6519_v59 }
 0x1eb   : > { %v6566_v31 = vadd.f32 %v6318_v3, %v2262_v25  ;;  %3231 = vmatpush3.bf16.msra.mxu0 %v3366_v15 }
 0x1ec   : > { %v1837_v46 = vadd.f32 %v1821_v26, %v1801_v22  ;;  %3232 = vmatprep.subr.bf16.mxu0 %v3367_v30  ;;  %v3368_v26 = vld [vmem:[%s7044_s3 + $0x18] sm:$0xff]   ;;  %v3369_v22 = vld [vmem:[%s7044_s3 + $0x10] sm:$0xff]  }
 0x1ed   : > { %2316 = vadd.xlane.f32.xlu1 %v6566_v31  ;;  %v2333_v45 = vmul.f32 %v6566_v31, %v6566_v31 }
 0x1ee   : > { %v1873_v52 = vadd.f32 %v1857_v51, %v1837_v46  ;;  %v3371_v51 = vld [vmem:[%s7044_s3] sm:$0xff]   ;;  %v2291_v46 = vpop.xlane.xlu1 %2290 }
 0x1ef   : > { %3233 = vmatpush3.bf16.msra.mxu0 %v3367_v30 }
 0x1f0   : > { %v1909_v10 = vadd.f32 %v1893_v24, %v1873_v52  ;;  %3234 = vmatprep.subr.bf16.mxu0 %v3368_v26 }
 0x1f1   : > { %2336 = vadd.xlane.f32.xlu1 %v2319_v35 }
 0x1f2   : > { %v1945_v34 = vadd.f32 %v1929_v13, %v1909_v10  ;;  %v2293_v24 = vpop.xlane.xlu1 %2292  ;;  %v2287_v13 = vpop.xlane.xlu0 %2286 }
 0x1f3   : > { %3235 = vmatpush3.bf16.msra.mxu0 %v3368_v26  ;;  %v6661_v47 = vmul.f32 0.25, %v2293_v24 }
 0x1f4   : > { %v1981_v37 = vadd.f32 %v1965_v49, %v1945_v34  ;;  %3236 = vmatprep.subr.bf16.mxu0 %v3369_v22 }
 0x1f5   : > { %2340 = vadd.xlane.f32.xlu1 %v2321_v63 }
 0x1f6   : > { %v2045_v6 = vadd.f32 %v2029_v38, %v1981_v37  ;;  %v2297_v11 = vpop.xlane.xlu1 %2296  ;;  %v2289_v49 = vpop.xlane.xlu0 %2288 }
 0x1f7   : > { %3237 = vmatpush3.bf16.msra.mxu0 %v3369_v22 }
 0x1f8   : > { %v2081_v1 = vadd.f32 %v2065_v20, %v2045_v6  ;;  %3238 = vmatprep.subr.bf16.mxu0 %v3370_v60 }
 0x1f9   : > { %2344 = vadd.xlane.f32.xlu1 %v2323_v19 }
 0x1fa   : > { %v2117_v17 = vadd.f32 %v2101_v2, %v2081_v1  ;;  %v2301_v35 = vpop.xlane.xlu1 %2300  ;;  %v2295_v34 = vpop.xlane.xlu0 %2294 }
 0x1fb   : > { %3239 = vmatpush3.bf16.msra.mxu0 %v3370_v60 }
 0x1fc   : > { %v2153_v23 = vadd.f32 %v2137_v5, %v2117_v17  ;;  %3240 = vmatprep.subr.bf16.mxu0 %v3371_v51  ;;  %v6657_v5 = vmul.f32 0.25, %v2289_v49 }
 0x1fd   : > { %2348 = vadd.xlane.f32.xlu1 %v2325_v8 }
 0x1fe   : > { %v2189_v42 = vadd.f32 %v2173_v21, %v2153_v23  ;;  %v2305_v52 = vpop.xlane.xlu1 %2304  ;;  %v2299_v37 = vpop.xlane.xlu0 %2298  ;;  %v2399_v23 = vmul.f32 %v6657_v5, %v6657_v5 }
 0x1ff   : > { %3241 = vmatpush3.bf16.msra.mxu0 %v3371_v51  ;;  %v6683_v22 = vmul.f32 0.25, %v2305_v52 }
 0x200   : > { %v2225_v56 = vadd.f32 %v2209_v50, %v2189_v42  ;;  %v2401_v42 = vmul.f32 %v6661_v47, %v6661_v47 }
 0x201   : > { %2352 = vadd.xlane.f32.xlu1 %v2327_v58 }
 0x202   : > { %v2261_v7 = vadd.f32 %v2245_v43, %v2225_v56  ;;  %v6653_v19 = vpop.xlane.xlu0 %2302  ;;  %v6667_v43 = vmul.f32 0.25, %v2297_v11 }
 0x204   : > { %v6602_v32 = vadd.f32 %v6318_v3, %v2261_v7  ;;  %v8633_v3 = vld [vmem:[#allocation100_spill] sm:$0xff] }
 0x205   : > { %2356 = vadd.xlane.f32.xlu1 %v2329_v4  ;;  %v2322_v39 = vmul.f32 %v8633_v3, %v8633_v3  ;;  %v6671_v4 = vmul.f32 0.25, %v2287_v13 }
 0x206   : > { %2314 = vadd.xlane.f32.xlu0 %v6602_v32  ;;  %v2332_v25 = vmul.f32 %v6602_v32, %v6602_v32 }
 0x207   : > { %v2398_v0 = vmul.f32 %v6671_v4, %v6671_v4 }
 0x209   : > { %2360 = vadd.xlane.f32.xlu1 %v2331_v16 }
 0x20a   : > { %2334 = vadd.xlane.f32.xlu0 %v2318_v36 }
 0x20d   : > { %2364 = vadd.xlane.f32.xlu1 %v2333_v45 }
 0x20e   : > { %2338 = vadd.xlane.f32.xlu0 %v2320_v55  ;;  %v2403_v55 = vmul.f32 %v6667_v43, %v6667_v43 }
 0x212   : > { %2342 = vadd.xlane.f32.xlu0 %v2322_v39  ;;  %v2309_v10 = vpop.xlane.xlu1 %2308  ;;  %v6675_v39 = vmul.f32 0.25, %v2301_v35 }
 0x216   : > { %2346 = vadd.xlane.f32.xlu0 %v2324_v12  ;;  %v6677_v12 = vmul.f32 0.25, %v2291_v46  ;;  %v6687_v46 = vmul.f32 0.25, %v2295_v34 }
 0x218   : > { %v2400_v51 = vmul.f32 %v6677_v12, %v6677_v12 }
 0x21a   : > { %2350 = vadd.xlane.f32.xlu0 %v2326_v44 }
 0x21e   : > { %2354 = vadd.xlane.f32.xlu0 %v2328_v14 }
 0x222   : > { %2358 = vadd.xlane.f32.xlu0 %v2330_v41 }
 0x226   : > { %2362 = vadd.xlane.f32.xlu0 %v2332_v25  ;;  %v2405_v25 = vmul.f32 %v6675_v39, %v6675_v39 }
 0x22b   : > { %v6655_v2 = vpop.xlane.xlu0 %2306 }
 0x245   : > { %v6649_v63 = vpop.xlane.xlu1 %2312 }
 0x25e   : > { %v6659_v8 = vpop.xlane.xlu0 %2310 }
 0x276   : > { %v6651_v38 = vpop.xlane.xlu1 %2316 }
 0x27a   : > { %v2337_v20 = vpop.xlane.xlu1 %2336 }
 0x27b   : > { %v2383_v17 = vmul.f32 0.25, %v2337_v20 }
 0x27d   : > { %v2415_v58 = vsub.f32 %v2383_v17, %v2399_v23  ;;  %v2402_v17 = vmul.f32 %v6687_v46, %v6687_v46 }
 0x27e   : > { %v2341_v6 = vpop.xlane.xlu1 %2340 }
 0x27f   : > { %v2385_v50 = vmul.f32 0.25, %v2341_v6  ;;  %v2447_v45 = vadd.f32 1e-06, %v2415_v58  ;;  %v2407_v6 = vmul.f32 %v6683_v22, %v6683_v22 }
 0x281   : > { %v2417_v16 = vsub.f32 %v2385_v50, %v2401_v42  ;;  %3380 = vrsqrt.f32 %v2447_v45 }
 0x282   : > { %v2345_v1 = vpop.xlane.xlu1 %2344 }
 0x283   : > { %v2387_v36 = vmul.f32 0.25, %v2345_v1  ;;  %v2449_v15 = vadd.f32 1e-06, %v2417_v16  ;;  %v6691_v1 = vmul.f32 0.25, %v2309_v10  ;;  %v6700_v10 = vmul.f32 0.25, %v6649_v63 }
 0x284   : > { %v2431_v63 = vsub.f32 %v8625_v62, %v6657_v5  ;;  %v2430_v5 = vsub.f32 %v8631_v28, %v6671_v4  ;;  %v2432_v4 = vsub.f32 %v8632_v27, %v6677_v12 }
 0x285   : > { %v2419_v14 = vsub.f32 %v2387_v36, %v2403_v55  ;;  %3382 = vrsqrt.f32 %v2449_v15  ;;  %v2409_v36 = vmul.f32 %v6691_v1, %v6691_v1  ;;  %v6705_v55 = vmul.f32 0.25, %v6653_v19 }
 0x286   : > { %v2349_v21 = vpop.xlane.xlu1 %2348 }
 0x287   : > { %v2389_v30 = vmul.f32 0.25, %v2349_v21  ;;  %v2451_v35 = vadd.f32 1e-06, %v2419_v14  ;;  %v6695_v21 = vmul.f32 0.25, %v2299_v37 }
 0x289   : > { %v2421_v13 = vsub.f32 %v2389_v30, %v2405_v25  ;;  %v2404_v37 = vmul.f32 %v6695_v21, %v6695_v21  ;;  %v2411_v25 = vmul.f32 %v6700_v10, %v6700_v10 }
 0x28a   : > { %v2353_v7 = vpop.xlane.xlu1 %2352 }
 0x28b   : > { %v2391_v49 = vmul.f32 0.25, %v2353_v7  ;;  %v2453_v58 = vadd.f32 1e-06, %v2421_v13 }
 0x28d   : > { %v2423_v42 = vsub.f32 %v2391_v49, %v2407_v6 }
 0x28e   : > { %v2357_v26 = vpop.xlane.xlu1 %2356 }
 0x28f   : > { %v6669_v56 = vpop.xlane.xlu0 %2314  ;;  %v2393_v7 = vmul.f32 0.25, %v2357_v26  ;;  %v3381_v26 = vpop.eup %3380 }
 0x290   : > { %v2479_v6 = vmul.f32 %v3381_v26, %v2431_v63 }
 0x291   : > { %v2425_v15 = vsub.f32 %v2393_v7, %v2409_v36 }
 0x292   : > { %v2361_v50 = vpop.xlane.xlu1 %2360  ;;  %v3383_v62 = vpop.eup %3382 }
 0x293   : > { %v2335_v9 = vpop.xlane.xlu0 %2334  ;;  %v2395_v14 = vmul.f32 0.25, %v2361_v50  ;;  %v2457_v13 = vadd.f32 1e-06, %v2425_v15 }
 0x294   : > { %v2382_v44 = vmul.f32 0.25, %v2335_v9 }
 0x295   : > { %v2427_v49 = vsub.f32 %v2395_v14, %v2411_v25  ;;  %v2434_v14 = vsub.f32 %v8633_v3, %v6687_v46  ;;  %v2437_v25 = vsub.f32 %v8628_v53, %v6675_v39  ;;  %v2436_v3 = vsub.f32 %v8634_v18, %v6695_v21 }
 0x296   : > { %v2414_v41 = vsub.f32 %v2382_v44, %v2398_v0  ;;  %v2455_v44 = vadd.f32 1e-06, %v2423_v42  ;;  %v2439_v53 = vsub.f32 %v8629_v40, %v6683_v22 }
 0x297   : > { %v2339_v60 = vpop.xlane.xlu0 %2338  ;;  %v2459_v7 = vadd.f32 1e-06, %v2427_v49 }
 0x298   : > { %v2446_v24 = vadd.f32 1e-06, %v2414_v41  ;;  %v2384_v11 = vmul.f32 0.25, %v2339_v60  ;;  %v2365_v41 = vpop.xlane.xlu1 %2364  ;;  %v6712_v60 = vmul.f32 0.25, %v6651_v38 }
 0x29a   : > { %3384 = vrsqrt.f32 %v2446_v24  ;;  %v2416_v20 = vsub.f32 %v2384_v11, %v2400_v51  ;;  %v2406_v51 = vmul.f32 %v6705_v55, %v6705_v55  ;;  %v6717_v24 = vmul.f32 0.25, %v6655_v2 }
 0x29b   : > { %v2343_v52 = vpop.xlane.xlu0 %2342  ;;  %3386 = vrsqrt.f32 %v2451_v35  ;;  %v6724_v2 = vmul.f32 0.25, %v6659_v8 }
 0x29c   : > { %v2448_v34 = vadd.f32 1e-06, %v2416_v20  ;;  %v2386_v23 = vmul.f32 0.25, %v2343_v52  ;;  %v2397_v20 = vmul.f32 0.25, %v2365_v41  ;;  %v2408_v50 = vmul.f32 %v6717_v24, %v6717_v24 }
 0x29d   : > { %v2440_v40 = vsub.f32 %v8636_v61, %v6717_v24 }
 0x29e   : > { %3388 = vrsqrt.f32 %v2448_v34  ;;  %v2418_v16 = vsub.f32 %v2386_v23, %v2402_v17  ;;  %v2433_v17 = vsub.f32 %v8626_v29, %v6661_v47  ;;  %v2413_v34 = vmul.f32 %v6712_v60, %v6712_v60 }
 0x29f   : > { %v2347_v45 = vpop.xlane.xlu0 %2346  ;;  %3390 = vrsqrt.f32 %v2453_v58 }
 0x2a0   : > { %v2450_v9 = vadd.f32 1e-06, %v2418_v16  ;;  %v2388_v0 = vmul.f32 0.25, %v2347_v45  ;;  %v2429_v16 = vsub.f32 %v2397_v20, %v2413_v34  ;;  %v2481_v36 = vmul.f32 %v3383_v62, %v2433_v17 }
 0x2a1   : > { %v2441_v17 = vsub.f32 %v8630_v57, %v6691_v1 }
 0x2a2   : > { %3392 = vrsqrt.f32 %v2450_v9  ;;  %v2420_v30 = vsub.f32 %v2388_v0, %v2404_v37  ;;  %v2435_v37 = vsub.f32 %v8627_v54, %v6667_v43  ;;  %v2410_v9 = vmul.f32 %v6724_v2, %v6724_v2 }
 0x2a3   : > { %v2351_v19 = vpop.xlane.xlu0 %2350  ;;  %3394 = vrsqrt.f32 %v2455_v44  ;;  %v6737_v44 = vmul.f32 0.25, %v6669_v56 }
 0x2a4   : > { %v2452_v11 = vadd.f32 1e-06, %v2420_v30  ;;  %v2390_v35 = vmul.f32 0.25, %v2351_v19  ;;  %v2461_v30 = vadd.f32 1e-06, %v2429_v16 }
 0x2a5   : > { %v2412_v19 = vmul.f32 %v6737_v44, %v6737_v44  ;;  %v2444_v24 = vsub.f32 %v6602_v32, %v6737_v44  ;;  %v3374_v32 = vld [vmem:[%s7046_s5 + $0x28] sm:$0xff]  }
 0x2a6   : > { %3396 = vrsqrt.f32 %v2452_v11  ;;  %v2422_v38 = vsub.f32 %v2390_v35, %v2406_v51 }
 0x2a7   : > { %v3385_v52 = vpop.eup %3384  ;;  %v2355_v23 = vpop.xlane.xlu0 %2354  ;;  %3398 = vrsqrt.f32 %v2457_v13 }
 0x2a8   : > { %v2454_v58 = vadd.f32 1e-06, %v2422_v38  ;;  %v2392_v42 = vmul.f32 0.25, %v2355_v23  ;;  %v2478_v28 = vmul.f32 %v3385_v52, %v2430_v5  ;;  %v3387_v29 = vpop.eup %3386 }
 0x2a9   : > { %v2483_v43 = vmul.f32 %v3387_v29, %v2435_v37  ;;  %v6790_v37 = vld [vmem:[%s7045_s4] ss:$0 sm:$0xff] }
 0x2aa   : > { %3400 = vrsqrt.f32 %v2454_v58  ;;  %v2424_v8 = vsub.f32 %v2392_v42, %v2408_v50  ;;  %v2494_v47 = vpack.c.bf16 %v2479_v6, %v2478_v28  ;;  %v2438_v6 = vsub.f32 %v8635_v48, %v6705_v55 }
 0x2ab   : > { %v3389_v45 = vpop.eup %3388  ;;  %v2359_v0 = vpop.xlane.xlu0 %2358  ;;  %3402 = vrsqrt.f32 %v2459_v7  ;;  %v2443_v42 = vsub.f32 %v6440_v33, %v6700_v10  ;;  %v2442_v28 = vsub.f32 %v6519_v59, %v6724_v2  ;;  %v2445_v7 = vsub.f32 %v6566_v31, %v6712_v60  ;;  %v3372_v59 = vld [vmem:[%s7046_s5 + $0x38] sm:$0xff]   ;;  %v3373_v31 = vld [vmem:[%s7046_s5 + $0x30] sm:$0xff]   ;;  %v3375_v60 = vld [vmem:[%s7046_s5 + $0x20] sm:$0xff]  }
 0x2ac   : > { %v2456_v27 = vadd.f32 1e-06, %v2424_v8  ;;  %v2394_v12 = vmul.f32 0.25, %v2359_v0  ;;  %3242 = vmatprep.mubr.bf16.mxu0 %v2494_v47  ;;  %v2480_v15 = vmul.f32 %v3389_v45, %v2432_v4  ;;  %v3391_v41 = vpop.eup %3390  ;;  %3258 = vmatprep.subr.bf16.mxu1 %v3372_v59  ;;  %v3376_v2 = vld [vmem:[%s7046_s5 + $0x18] sm:$0xff]   ;;  %v3377_v47 = vld [vmem:[%s7046_s5 + $0x10] sm:$0xff]   ;;  %v3379_v45 = vld [vmem:[%s7046_s5] sm:$0xff]  }
 0x2ad   : > { %v2485_v20 = vmul.f32 %v3391_v41, %v2437_v25  ;;  %3259 = vmatpush3.bf16.msra.mxu1 %v3372_v59 }
 0x2ae   : > { %3404 = vrsqrt.f32 %v2456_v27  ;;  %v2426_v26 = vsub.f32 %v2394_v12, %v2410_v9  ;;  %v2495_v54 = vpack.c.bf16 %v2481_v36, %v2480_v15  ;;  %3260 = vmatprep.subr.bf16.mxu1 %v3373_v31  ;;  %v3378_v36 = vld [vmem:[%s7046_s5 + $0x8] sm:$0xff]  }
 0x2af   : > { %v3393_v63 = vpop.eup %3392  ;;  %v2363_v56 = vpop.xlane.xlu0 %2362  ;;  %3406 = vrsqrt.f32 %v2461_v30 }
 0x2b0   : > { %v2458_v51 = vadd.f32 1e-06, %v2426_v26  ;;  %v2396_v11 = vmul.f32 0.25, %v2363_v56  ;;  %3243 = vmatmul.mubr.bf16.vlgmr.msra.gmra.mxu0 %v2495_v54  ;;  %v2482_v35 = vmul.f32 %v3393_v63, %v2434_v14  ;;  %v3395_v46 = vpop.eup %3394 }
 0x2b1   : > { %v2487_v18 = vmul.f32 %v3395_v46, %v2439_v53  ;;  %3261 = vmatpush3.bf16.msra.mxu1 %v3373_v31 }
 0x2b2   : > { %3408 = vrsqrt.f32 %v2458_v51  ;;  %v2428_v13 = vsub.f32 %v2396_v11, %v2412_v19  ;;  %v2496_v49 = vpack.c.bf16 %v2483_v43, %v2482_v35  ;;  %3262 = vmatprep.subr.bf16.mxu1 %v3374_v32 }
 0x2b3   : > { %v3397_v62 = vpop.eup %3396 }
 0x2b4   : > { %v2460_v39 = vadd.f32 1e-06, %v2428_v13  ;;  %3246 = vmatprep.mubr.bf16.mxu0 %v2496_v49  ;;  %v2484_v5 = vmul.f32 %v3397_v62, %v2436_v3  ;;  %v3399_v38 = vpop.eup %3398 }
 0x2b5   : > { %v2489_v50 = vmul.f32 %v3399_v38, %v2441_v17  ;;  %3263 = vmatpush3.bf16.msra.mxu1 %v3374_v32 }
 0x2b6   : > { %3410 = vrsqrt.f32 %v2460_v39  ;;  %v2497_v52 = vpack.c.bf16 %v2485_v20, %v2484_v5  ;;  %3264 = vmatprep.subr.bf16.mxu1 %v3375_v60 }
 0x2b7   : > { %v3401_v21 = vpop.eup %3400 }
 0x2b8   : > { %3247 = vmatmul.mubr.bf16.gmra.mxu0 %v2497_v52  ;;  %v2486_v34 = vmul.f32 %v3401_v21, %v2438_v6  ;;  %v3403_v23 = vpop.eup %3402 }
 0x2b9   : > { %v2491_v57 = vmul.f32 %v3403_v23, %v2443_v42  ;;  %3265 = vmatpush3.bf16.msra.mxu1 %v3375_v60 }
 0x2ba   : > { %v2498_v22 = vpack.c.bf16 %v2487_v18, %v2486_v34  ;;  %3266 = vmatprep.subr.bf16.mxu1 %v3376_v2 }
 0x2bb   : > { %v3405_v58 = vpop.eup %3404 }
 0x2bc   : > { %3250 = vmatprep.mubr.bf16.mxu0 %v2498_v22  ;;  %v2488_v48 = vmul.f32 %v3405_v58, %v2440_v40  ;;  %v3407_v55 = vpop.eup %3406 }
 0x2bd   : > { %v2493_v29 = vmul.f32 %v3407_v55, %v2445_v7  ;;  %3267 = vmatpush3.bf16.msra.mxu1 %v3376_v2 }
 0x2be   : > { %v2499_v4 = vpack.c.bf16 %v2489_v50, %v2488_v48  ;;  %3268 = vmatprep.subr.bf16.mxu1 %v3377_v47 }
 0x2bf   : > { %v3409_v1 = vpop.eup %3408 }
 0x2c0   : > { %3251 = vmatmul.mubr.bf16.gmra.mxu0 %v2499_v4  ;;  %v2490_v61 = vmul.f32 %v3409_v1, %v2442_v28 }
 0x2c1   : > { %3269 = vmatpush3.bf16.msra.mxu1 %v3377_v47 }
 0x2c2   : > { %v2500_v16 = vpack.c.bf16 %v2491_v57, %v2490_v61  ;;  %3270 = vmatprep.subr.bf16.mxu1 %v3378_v36 }
 0x2c3   : > { %v3411_v33 = vpop.eup %3410 }
 0x2c4   : > { %3254 = vmatprep.mubr.bf16.mxu0 %v2500_v16  ;;  %v2492_v10 = vmul.f32 %v3411_v33, %v2444_v24 }
 0x2c5   : > { %3271 = vmatpush3.bf16.msra.mxu1 %v3378_v36 }
 0x2c6   : > { %v2501_v8 = vpack.c.bf16 %v2493_v29, %v2492_v10  ;;  %3272 = vmatprep.subr.bf16.mxu1 %v3379_v45 }
 0x2c8   : > { %3255 = vmatmul.mubr.bf16.gmra.mxu0 %v2501_v8 }
 0x2c9   : > { %3273 = vmatpush3.bf16.msra.mxu1 %v3379_v45 }
 0x370   : > { %v3244_v9 = vpop.f32.mrf.mxu0 }
 0x371   : > { %v6793_v0 = vadd.f32 %v3244_v9, %v6790_v37 }
 0x372   : > { %v2607_v44 = vpop.f32.mrf.mxu0 }
 0x373   : > { %v2672_v27 = vmul.f32 %v6793_v0, %v6793_v0  ;;  %v6798_v12 = vadd.f32 %v6790_v37, %v2607_v44 }
 0x374   : > { %v3245_v15 = vpop.f32.mrf.mxu0 }
 0x375   : > { %v2688_v14 = vmul.f32 %v2672_v27, %v6793_v0  ;;  %v2670_v30 = vmul.f32 %v6798_v12, %v6798_v12  ;;  %v6804_v41 = vadd.f32 %v3245_v15, %v6790_v37 }
 0x376   : > { %v2610_v26 = vpop.f32.mrf.mxu0 }
 0x377   : > { %v2704_v54 = vmul.f32 0.044715, %v2688_v14  ;;  %v2686_v43 = vmul.f32 %v2670_v30, %v6798_v12  ;;  %v2673_v63 = vmul.f32 %v6804_v41, %v6804_v41  ;;  %v6810_v25 = vadd.f32 %v6790_v37, %v2610_v26 }
 0x378   : > { %v3248_v56 = vpop.f32.mrf.mxu0 }
 0x379   : > { %v2720_v19 = vadd.f32 %v2704_v54, %v6793_v0  ;;  %v2702_v51 = vmul.f32 0.044715, %v2686_v43  ;;  %v2689_v11 = vmul.f32 %v2673_v63, %v6804_v41  ;;  %v2671_v35 = vmul.f32 %v6810_v25, %v6810_v25 }
 0x37a   : > { %v6817_v3 = vadd.f32 %v3248_v56, %v6790_v37  ;;  %v2623_v46 = vpop.f32.mrf.mxu0 }
 0x37b   : > { %v2736_v13 = vmul.f32 0.7978846, %v2720_v19  ;;  %v2718_v49 = vadd.f32 %v2702_v51, %v6798_v12  ;;  %v2705_v20 = vmul.f32 0.044715, %v2689_v11  ;;  %v2687_v62 = vmul.f32 %v2671_v35, %v6810_v25 }
 0x37c   : > { %v2676_v53 = vmul.f32 %v6817_v3, %v6817_v3  ;;  %v6824_v39 = vadd.f32 %v6790_v37, %v2623_v46  ;;  %v3249_v5 = vpop.f32.mrf.mxu0 }
 0x37d   : > { %3412 = vtanh.f32 %v2736_v13  ;;  %v2721_v38 = vadd.f32 %v2705_v20, %v6804_v41  ;;  %v2703_v6 = vmul.f32 0.044715, %v2687_v62  ;;  %v6828_v52 = vadd.f32 %v3249_v5, %v6790_v37 }
 0x37e   : > { %v2692_v18 = vmul.f32 %v2676_v53, %v6817_v3  ;;  %v2674_v21 = vmul.f32 %v6824_v39, %v6824_v39  ;;  %v2626_v17 = vpop.f32.mrf.mxu0  ;;  %v2734_v34 = vmul.f32 0.7978846, %v2718_v49 }
 0x37f   : > { %v2737_v23 = vmul.f32 0.7978846, %v2721_v38  ;;  %v2719_v40 = vadd.f32 %v2703_v6, %v6810_v25  ;;  %v2677_v22 = vmul.f32 %v6828_v52, %v6828_v52  ;;  %v6837_v50 = vadd.f32 %v6790_v37, %v2626_v17 }
 0x380   : > { %v2708_v58 = vmul.f32 0.044715, %v2692_v18  ;;  %v2690_v42 = vmul.f32 %v2674_v21, %v6824_v39  ;;  %v3252_v48 = vpop.f32.mrf.mxu0  ;;  %3414 = vtanh.f32 %v2734_v34 }
 0x381   : > { %3416 = vtanh.f32 %v2737_v23  ;;  %v2693_v55 = vmul.f32 %v2677_v22, %v6828_v52  ;;  %v2675_v28 = vmul.f32 %v6837_v50, %v6837_v50  ;;  %v6844_v4 = vadd.f32 %v3252_v48, %v6790_v37 }
 0x382   : > { %v2724_v57 = vadd.f32 %v2708_v58, %v6817_v3  ;;  %v2706_v1 = vmul.f32 0.044715, %v2690_v42  ;;  %v2639_v7 = vpop.f32.mrf.mxu0  ;;  %v2735_v61 = vmul.f32 0.7978846, %v2719_v40 }
 0x383   : > { %v2709_v24 = vmul.f32 0.044715, %v2693_v55  ;;  %v2691_v16 = vmul.f32 %v2675_v28, %v6837_v50  ;;  %v2680_v29 = vmul.f32 %v6844_v4, %v6844_v4  ;;  %v6851_v33 = vadd.f32 %v6790_v37, %v2639_v7 }
 0x384   : > { %v2740_v10 = vmul.f32 0.7978846, %v2724_v57  ;;  %v2722_v8 = vadd.f32 %v2706_v1, %v6824_v39  ;;  %v3253_v59 = vpop.f32.mrf.mxu0  ;;  %3418 = vtanh.f32 %v2735_v61 }
 0x385   : > { %v2725_v31 = vadd.f32 %v2709_v24, %v6828_v52  ;;  %v2707_v32 = vmul.f32 0.044715, %v2691_v16  ;;  %v2696_v60 = vmul.f32 %v2680_v29, %v6844_v4  ;;  %v2678_v2 = vmul.f32 %v6851_v33, %v6851_v33 }
 0x386   : > { %3420 = vtanh.f32 %v2740_v10  ;;  %v2738_v47 = vmul.f32 0.7978846, %v2722_v8  ;;  %v6859_v36 = vadd.f32 %v3253_v59, %v6790_v37  ;;  %v2642_v45 = vpop.f32.mrf.mxu0 }
 0x387   : > { %v2741_v9 = vmul.f32 0.7978846, %v2725_v31  ;;  %v2723_v44 = vadd.f32 %v2707_v32, %v6837_v50  ;;  %v2712_v27 = vmul.f32 0.044715, %v2696_v60  ;;  %v2694_v15 = vmul.f32 %v2678_v2, %v6851_v33 }
 0x388   : > { %3422 = vtanh.f32 %v2738_v47  ;;  %v2681_v14 = vmul.f32 %v6859_v36, %v6859_v36  ;;  %v6866_v30 = vadd.f32 %v6790_v37, %v2642_v45  ;;  %v3256_v26 = vpop.f32.mrf.mxu0 }
 0x389   : > { %3424 = vtanh.f32 %v2741_v9  ;;  %v2739_v54 = vmul.f32 0.7978846, %v2723_v44  ;;  %v2728_v43 = vadd.f32 %v2712_v27, %v6844_v4  ;;  %v2710_v63 = vmul.f32 0.044715, %v2694_v15 }
 0x38a   : > { %v3413_v56 = vpop.eup %3412  ;;  %v2697_v19 = vmul.f32 %v2681_v14, %v6859_v36  ;;  %v2679_v51 = vmul.f32 %v6866_v30, %v6866_v30  ;;  %v6873_v11 = vadd.f32 %v3256_v26, %v6790_v37  ;;  %v2655_v35 = vpop.f32.mrf.mxu0 }
 0x38b   : > { %3426 = vtanh.f32 %v2739_v54  ;;  %v2744_v46 = vmul.f32 0.7978846, %v2728_v43  ;;  %v2726_v13 = vadd.f32 %v2710_v63, %v6851_v33  ;;  %v6877_v49 = vadd.f32 %v6790_v37, %v2655_v35 }
 0x38c   : > { %v2713_v20 = vmul.f32 0.044715, %v2697_v19  ;;  %v2695_v62 = vmul.f32 %v2679_v51, %v6866_v30  ;;  %v2684_v53 = vmul.f32 %v6873_v11, %v6873_v11  ;;  %v3257_v5 = vpop.f32.mrf.mxu0  ;;  %v2768_v38 = vadd.f32 1.0, %v3413_v56 }
 0x38d   : > { %v3415_v6 = vpop.eup %3414  ;;  %3428 = vtanh.f32 %v2744_v46  ;;  %v2742_v18 = vmul.f32 0.7978846, %v2726_v13  ;;  %v2682_v21 = vmul.f32 %v6877_v49, %v6877_v49  ;;  %v6885_v17 = vadd.f32 %v3257_v5, %v6790_v37 }
 0x38e   : > { %v3417_v34 = vpop.eup %3416  ;;  %v2729_v23 = vadd.f32 %v2713_v20, %v6859_v36  ;;  %v2711_v40 = vmul.f32 0.044715, %v2695_v62  ;;  %v2700_v22 = vmul.f32 %v2684_v53, %v6873_v11  ;;  %v2658_v58 = vpop.f32.mrf.mxu0  ;;  %v2766_v42 = vadd.f32 1.0, %v3415_v6 }
 0x38f   : > { %3430 = vtanh.f32 %v2742_v18  ;;  %v2698_v48 = vmul.f32 %v2682_v21, %v6877_v49  ;;  %v2685_v55 = vmul.f32 %v6885_v17, %v6885_v17  ;;  %v6893_v28 = vadd.f32 %v6790_v37, %v2658_v58 }
 0x390   : > { %v2745_v57 = vmul.f32 0.7978846, %v2729_v23  ;;  %v2727_v1 = vadd.f32 %v2711_v40, %v6866_v30  ;;  %v2716_v7 = vmul.f32 0.044715, %v2700_v22  ;;  %v2782_v61 = vmul.f32 0.5, %v2766_v42 }
 0x391   : > { %v3419_v24 = vpop.eup %3418  ;;  %v2714_v16 = vmul.f32 0.044715, %v2698_v48  ;;  %v2701_v29 = vmul.f32 %v2685_v55, %v6885_v17  ;;  %v2683_v10 = vmul.f32 %v6893_v28, %v6893_v28  ;;  %v2769_v8 = vadd.f32 1.0, %v3417_v34 }
 0x392   : > { %3432 = vtanh.f32 %v2745_v57  ;;  %v2743_v59 = vmul.f32 0.7978846, %v2727_v1  ;;  %v2732_v31 = vadd.f32 %v2716_v7, %v6873_v11  ;;  %v2767_v32 = vadd.f32 1.0, %v3419_v24 }
 0x393   : > { %v3421_v37 = vpop.eup %3420  ;;  %v2730_v60 = vadd.f32 %v2714_v16, %v6877_v49  ;;  %v2717_v2 = vmul.f32 0.044715, %v2701_v29  ;;  %v2699_v47 = vmul.f32 %v2683_v10, %v6893_v28  ;;  %v2798_v45 = vmul.f32 %v2782_v61, %v6798_v12 }
 0x394   : > { %3434 = vtanh.f32 %v2743_v59  ;;  %v2748_v9 = vmul.f32 0.7978846, %v2732_v31  ;;  %v2783_v44 = vmul.f32 0.5, %v2767_v32  ;;  %v2784_v27 = vmul.f32 0.5, %v2768_v38 }
 0x395   : > { %v3423_v15 = vpop.eup %3422  ;;  %v2746_v14 = vmul.f32 0.7978846, %v2730_v60  ;;  %v2733_v26 = vadd.f32 %v2717_v2, %v6885_v17  ;;  %v2715_v54 = vmul.f32 0.044715, %v2699_v47  ;;  %v2785_v43 = vmul.f32 0.5, %v2769_v8 }
 0x396   : > { %v3425_v63 = vpop.eup %3424  ;;  %3436 = vtanh.f32 %v2748_v9  ;;  %v2799_v56 = vmul.f32 %v2783_v44, %v6810_v25  ;;  %v2800_v19 = vmul.f32 %v2784_v27, %v6793_v0  ;;  %v2770_v51 = vadd.f32 1.0, %v3423_v15 }
 0x397   : > { %3438 = vtanh.f32 %v2746_v14  ;;  %v2749_v35 = vmul.f32 0.7978846, %v2733_v26  ;;  %v2731_v12 = vadd.f32 %v2715_v54, %v6893_v28  ;;  %v2801_v46 = vmul.f32 %v2785_v43, %v6804_v41 }
 0x398   : > { %v3427_v13 = vpop.eup %3426  ;;  %v2814_v20 = vpack.c.bf16 %v2799_v56, %v2798_v45  ;;  %v2786_v62 = vmul.f32 0.5, %v2770_v51  ;;  %v2772_v53 = vadd.f32 1.0, %v3421_v37  ;;  %v2773_v5 = vadd.f32 1.0, %v3425_v63  ;;  %v6924_v63 = vld [vmem:[%s7047_s6] ss:$0 sm:$0xff] }
 0x399   : > { %3440 = vtanh.f32 %v2749_v35  ;;  %v2747_v38 = vmul.f32 0.7978846, %v2731_v12  ;;  %v2815_v6 = vpack.c.bf16 %v2801_v46, %v2800_v19  ;;  %v2771_v18 = vadd.f32 1.0, %v3427_v13  ;;  %v3170_v19 = vld [vmem:[%s3841_s12 + $0x4b] sm:$0xff] }
 0x39a   : > { %v3429_v21 = vpop.eup %3428  ;;  %3274 = vmatprep.mubr.bf16.mxu1 %v2814_v20  ;;  %v2789_v25 = vmul.f32 0.5, %v2773_v5  ;;  %v2788_v34 = vmul.f32 0.5, %v2772_v53  ;;  %v2802_v40 = vmul.f32 %v2786_v62, %v6824_v39  ;;  %v3173_v12 = vld [vmem:[%s3841_s12 + $0x6b] sm:$0xff]  ;;  %v3171_v62 = vld [vmem:[%s3841_s12 + $0x53] sm:$0xff] }
 0x39b   : > { %3442 = vtanh.f32 %v2747_v38  ;;  %3275 = vmatmul.mubr.bf16.vlgmr.msra.gmra.mxu1 %v2815_v6  ;;  %v2787_v0 = vmul.f32 0.5, %v2771_v18  ;;  %v2776_v57 = vadd.f32 1.0, %v3429_v21  ;;  %v3176_v6 = vld [vmem:[%s3841_s12 + $0x93] sm:$0xff] }
 0x39c   : > { %v3431_v23 = vpop.eup %3430  ;;  %v2805_v22 = vmul.f32 %v2789_v25, %v6828_v52  ;;  %v2804_v55 = vmul.f32 %v2788_v34, %v6817_v3 }
 0x39d   : > { %v2803_v41 = vmul.f32 %v2787_v0, %v6837_v50  ;;  %v2774_v58 = vadd.f32 1.0, %v3431_v23  ;;  %v2792_v39 = vmul.f32 0.5, %v2776_v57  ;;  %v3174_v0 = vld [vmem:[%s3841_s12 + $0x7b] sm:$0xff] }
 0x39e   : > { %v2817_v61 = vpack.c.bf16 %v2805_v22, %v2804_v55 }
 0x39f   : > { %v3433_v42 = vpop.eup %3432  ;;  %v2816_v48 = vpack.c.bf16 %v2803_v41, %v2802_v40  ;;  %v2790_v16 = vmul.f32 0.5, %v2774_v58  ;;  %v2808_v37 = vmul.f32 %v2792_v39, %v6844_v4  ;;  %v3177_v41 = vld [vmem:[%s3841_s12 + $0x9b] sm:$0xff] }
 0x3a0   : > { %v2777_v1 = vadd.f32 1.0, %v3433_v42 }
 0x3a1   : > { %v3435_v7 = vpop.eup %3434  ;;  %3278 = vmatprep.mubr.bf16.mxu1 %v2816_v48  ;;  %v2806_v32 = vmul.f32 %v2790_v16, %v6851_v33  ;;  %v3175_v48 = vld [vmem:[%s3841_s12 + $0x83] sm:$0xff] }
 0x3a2   : > { %v2775_v24 = vadd.f32 1.0, %v3435_v7  ;;  %v2793_v29 = vmul.f32 0.5, %v2777_v1  ;;  %v3180_v7 = vld [vmem:[%s3841_s12 + $0xc3] sm:$0xff] }
 0x3a3   : > { %v3437_v10 = vpop.eup %3436  ;;  %3279 = vmatmul.mubr.bf16.gmra.mxu1 %v2817_v61 }
 0x3a4   : > { %v3439_v8 = vpop.eup %3438  ;;  %v2791_v50 = vmul.f32 0.5, %v2775_v24  ;;  %v2809_v52 = vmul.f32 %v2793_v29, %v6859_v36  ;;  %v2780_v60 = vadd.f32 1.0, %v3437_v10  ;;  %v3178_v29 = vld [vmem:[%s3841_s12 + $0xab] sm:$0xff] }
 0x3a5   : > { %v2778_v59 = vadd.f32 1.0, %v3439_v8 }
 0x3a6   : > { %v3441_v31 = vpop.eup %3440  ;;  %v2807_v3 = vmul.f32 %v2791_v50, %v6866_v30  ;;  %v2819_v9 = vpack.c.bf16 %v2809_v52, %v2808_v37  ;;  %v2796_v14 = vmul.f32 0.5, %v2780_v60  ;;  %v3181_v50 = vld [vmem:[%s3841_s12 + $0xcb] sm:$0xff] }
 0x3a7   : > { %v2781_v2 = vadd.f32 1.0, %v3441_v31  ;;  %v2794_v27 = vmul.f32 0.5, %v2778_v59 }
 0x3a8   : > { %v3443_v47 = vpop.eup %3442  ;;  %v2818_v45 = vpack.c.bf16 %v2807_v3, %v2806_v32  ;;  %v2812_v54 = vmul.f32 %v2796_v14, %v6873_v11  ;;  %v3179_v32 = vld [vmem:[%s3841_s12 + $0xb3] sm:$0xff]  ;;  %v3185_v14 = vld [vmem:[%s3841_s12 + $0xfb] sm:$0xff] }
 0x3a9   : > { %v2779_v44 = vadd.f32 1.0, %v3443_v47  ;;  %v2797_v15 = vmul.f32 0.5, %v2781_v2  ;;  %v2810_v33 = vmul.f32 %v2794_v27, %v6877_v49  ;;  %v3184_v2 = vld [vmem:[%s3841_s12 + $0xf3] sm:$0xff] }
 0x3aa   : > { %3282 = vmatprep.mubr.bf16.mxu1 %v2818_v45 }
 0x3ab   : > { %3283 = vmatmul.mubr.bf16.gmra.mxu1 %v2819_v9  ;;  %v2795_v36 = vmul.f32 0.5, %v2779_v44  ;;  %v2813_v30 = vmul.f32 %v2797_v15, %v6885_v17  ;;  %v3182_v44 = vld [vmem:[%s3841_s12 + $0xdb] sm:$0xff] }
 0x3ad   : > { %v2811_v4 = vmul.f32 %v2795_v36, %v6893_v28  ;;  %v2821_v43 = vpack.c.bf16 %v2813_v30, %v2812_v54  ;;  %v3172_v28 = vld [vmem:[%s3841_s12 + $0x63] sm:$0xff] }
 0x3af   : > { %v2820_v26 = vpack.c.bf16 %v2811_v4, %v2810_v33 }
 0x3b1   : > { %3286 = vmatprep.mubr.bf16.mxu1 %v2820_v26  ;;  %v3183_v26 = vld [vmem:[%s3841_s12 + $0xe3] sm:$0xff]  ;;  %s3585_s12 = scalar_lea.vmem %s6984_s28, 2048 }
 0x3b2   : > { %p3586_p13 = scmp.ne.s32.totalorder %s6984_s28, %s3585_s12  ;;  %p3593_p4 = scmp.lt.s32.totalorder %s3591_s17, %s3585_s12 }
 0x3b3   : > { %3287 = vmatmul.mubr.bf16.gmra.mxu1 %v2821_v43 }
 0x3b4   : > { %p3587_p0 = pnand %p3586_p13, %p3773_p3  ;;  %p3594_p5 = por %p3593_p4, %p3592_p2 }
 0x3b6   : > { %p3588_p1 = pneg %p3587_p0 }
 0x3b8   : > { %p3595_p6 = pnand %p3594_p5, %p3588_p1 }
 0x45b   : > { %v3276_v49 = vpop.f32.mrf.mxu1 }
 0x45c   : > { %v2936_v17 = vadd.f32 %v3276_v49, %v6924_v63 }
 0x45d   : > { %v2927_v56 = vpop.f32.mrf.mxu1 }
 0x45e   : > { %v3011_v11 = vadd.f32 %v3172_v28, %v2936_v17  ;;  %v2928_v51 = vadd.f32 %v6924_v63, %v2927_v56 }
 0x45f   : > { %v3277_v35 = vpop.f32.mrf.mxu1 }
 0x460   : > { %3027 = vst [vmem:[%s6933_s21 + $0x10] sm:$0xff] %v3011_v11  ;;  %v3009_v46 = vadd.f32 %v3170_v19, %v2928_v51  ;;  %v2939_v13 = vadd.f32 %v3277_v35, %v6924_v63 }
 0x461   : > { %v2930_v20 = vpop.f32.mrf.mxu1 }
 0x462   : > { %3025 = vst [vmem:[%s6933_s21] sm:$0xff] %v3009_v46  ;;  %v3012_v53 = vadd.f32 %v3173_v12, %v2939_v13  ;;  %v2931_v5 = vadd.f32 %v6924_v63, %v2930_v20 }
 0x463   : > { %v3280_v38 = vpop.f32.mrf.mxu1 }
 0x464   : > { %3028 = vst [vmem:[%s6933_s21 + $0x18] sm:$0xff] %v3012_v53  ;;  %v3010_v18 = vadd.f32 %v3171_v62, %v2931_v5  ;;  %v2952_v21 = vadd.f32 %v3280_v38, %v6924_v63 }
 0x465   : > { %v2943_v25 = vpop.f32.mrf.mxu1 }
 0x466   : > { %3026 = vst [vmem:[%s6933_s21 + $0x8] sm:$0xff] %v3010_v18  ;;  %v3015_v34 = vadd.f32 %v3176_v6, %v2952_v21  ;;  %v2944_v23 = vadd.f32 %v6924_v63, %v2943_v25 }
 0x467   : > { %v3281_v40 = vpop.f32.mrf.mxu1 }
 0x468   : > { %3031 = vst [vmem:[%s6933_s21 + $0x30] sm:$0xff] %v3015_v34  ;;  %v3013_v22 = vadd.f32 %v3174_v0, %v2944_v23  ;;  %v2955_v58 = vadd.f32 %v3281_v40, %v6924_v63 }
 0x469   : > { %v2946_v42 = vpop.f32.mrf.mxu1 }
 0x46a   : > { %3029 = vst [vmem:[%s6933_s21 + $0x20] sm:$0xff] %v3013_v22  ;;  %v3016_v55 = vadd.f32 %v3177_v41, %v2955_v58  ;;  %v2947_v57 = vadd.f32 %v6924_v63, %v2946_v42 }
 0x46b   : > { %v3284_v1 = vpop.f32.mrf.mxu1 }
 0x46c   : > { %3032 = vst [vmem:[%s6933_s21 + $0x38] sm:$0xff] %v3016_v55  ;;  %v3014_v61 = vadd.f32 %v3175_v48, %v2947_v57  ;;  %v2968_v24 = vadd.f32 %v3284_v1, %v6924_v63 }
 0x46d   : > { %v2959_v16 = vpop.f32.mrf.mxu1 }
 0x46e   : > { %3030 = vst [vmem:[%s6933_s21 + $0x28] sm:$0xff] %v3014_v61  ;;  %v3019_v10 = vadd.f32 %v3180_v7, %v2968_v24  ;;  %v2960_v39 = vadd.f32 %v6924_v63, %v2959_v16 }
 0x46f   : > { %v3285_v8 = vpop.f32.mrf.mxu1 }
 0x470   : > { %3035 = vst [vmem:[%s6933_s21 + $0x50] sm:$0xff] %v3019_v10  ;;  %v3017_v52 = vadd.f32 %v3178_v29, %v2960_v39  ;;  %v2971_v59 = vadd.f32 %v3285_v8, %v6924_v63 }
 0x471   : > { %v2962_v31 = vpop.f32.mrf.mxu1 }
 0x472   : > { %3033 = vst [vmem:[%s6933_s21 + $0x40] sm:$0xff] %v3017_v52  ;;  %v3020_v3 = vadd.f32 %v3181_v50, %v2971_v59  ;;  %v2963_v37 = vadd.f32 %v6924_v63, %v2962_v31 }
 0x473   : > { %v3288_v60 = vpop.f32.mrf.mxu1 }
 0x474   : > { %3036 = vst [vmem:[%s6933_s21 + $0x58] sm:$0xff] %v3020_v3  ;;  %v3018_v47 = vadd.f32 %v3179_v32, %v2963_v37  ;;  %v2984_v45 = vadd.f32 %v3288_v60, %v6924_v63 }
 0x475   : > { %v2975_v9 = vpop.f32.mrf.mxu1 }
 0x476   : > { %3034 = vst [vmem:[%s6933_s21 + $0x48] sm:$0xff] %v3018_v47  ;;  %v3023_v27 = vadd.f32 %v3184_v2, %v2984_v45  ;;  %v2976_v15 = vadd.f32 %v6924_v63, %v2975_v9 }
 0x477   : > { %v3289_v36 = vpop.f32.mrf.mxu1 }
 0x478   : > { %3039 = vst [vmem:[%s6933_s21 + $0x70] sm:$0xff] %v3023_v27  ;;  %v3021_v33 = vadd.f32 %v3182_v44, %v2976_v15  ;;  %v2987_v4 = vadd.f32 %v3289_v36, %v6924_v63 }
 0x479   : > { %v2978_v30 = vpop.f32.mrf.mxu1 }
 0x47a   : > { %3037 = vst [vmem:[%s6933_s21 + $0x60] sm:$0xff] %v3021_v33  ;;  %v3024_v54 = vadd.f32 %v3185_v14, %v2987_v4  ;;  %v2979_v43 = vadd.f32 %v6924_v63, %v2978_v30 }
 0x47c   : > { %3040 = vst [vmem:[%s6933_s21 + $0x78] sm:$0xff] %v3024_v54  ;;  %v3022_v49 = vadd.f32 %v3183_v26, %v2979_v43 }
 0x47e   : > { %3038 = vst [vmem:[%s6933_s21 + $0x68] sm:$0xff] %v3022_v49 }
 0x47f   : > { %3598 = shalt.err (!%p3595_p6)
}
 0x480   : > { %s3599_s13 = scalar_lea.hbm %s6982_s10, 2048  ;;  %s3603_s22 = scalar_lea.hbm %s7048_s7, 8192 }
 0x481   : > { %p3600_p7 = scmp.ne.s32.totalorder %s6982_s10, %s3599_s13  ;;  %p3604_p11 = scmp.lt.s32.totalorder %s6982_s10, %s7048_s7 }
 0x482   : > { %p3605_p12 = scmp.lt.s32.totalorder %s3603_s22, %s3599_s13 }
 0x483   : > { %p3601_p9 = pnand %p3600_p7, %p3773_p3 }
 0x484   : > { %p3606_p13 = por %p3605_p12, %p3604_p11 }
 0x485   : > { %p3602_p10 = pneg %p3601_p9 }
 0x487   : > { %p3607_p0 = pnand %p3606_p13, %p3602_p10 }
 0x489   : > { %3610 = shalt.err (!%p3607_p0)
}
 0x48a   : > { %s3680_s9 = smov 128   ;;  %s3681_s12 = smov 8  }
 0x48b   : > { %3291 = dma.vmem_to_hbm [thread:$0]  (%p3773_p3), %s6984_s28, 2048, %s6982_s10, %s6990_s16, %s3680_s9, %s3680_s9, %s3681_s12  }
 0x48c PF: > { %p3297_p1 = scmp.ge.s32.totalorder %s3677_s8, 2  ;;  %s3073_s11 = sand.u32 1, %s3649_s24  }
 0x48d   : > { %s3074_s20 = scalar_lea.sflag [#allocation3], %s3073_s11 }
 0x48e   : > { %p3294_p2 = pnand %p3297_p1, %p3782_p8 }
 0x490   : > { %p3295_p4 = pneg %p3294_p2 }
 0x492   : > { %3644 = dma.done.wait (%p3295_p4), %s3074_s20, 2048  }
 0x493   : > { %3646 = vsyncadd (%p3295_p4), %s3074_s20, 4294965248  ;;  %s20_s8 = sadd.s32 1, %s3677_s8   ;;  %s8637_s14 = sld [smem:[#allocation5_spill]] }
 0x494   : > { %p17_p5 = scmp.ge.s32.totalorder %s20_s8, 6   ;;  %s8638_s10 = sld [smem:[#allocation6_spill]] }
 0x495   : > { %s8639_s24 = smov %s3653_s25  ;;  %s8640_s25 = smov %s3657_s26 }
 0x496   : > { %s8641_s26 = smov %s3791_s19  ;;  %s8642_s27 = smov %s3669_s29 }
 0x497   : > { %s8643_s28 = smov %s3673_s30  ;;  %19 = sbr.rel (!%p17_p5) target bundleno = 5 (0x5), region = 85 }
 0x499   : > { %s8644_s29 = smov %s8637_s14 }
 0x49a   : > { %s8645_s30 = smov %s8638_s10 }
 0x49c   :  { %3079 = vsyncpa [#allocation3], 1 }
 0x49d   :  { %3081 = vsyncpa [#allocation3 + $0x1], 1 }

</bundles_post_ra>
